<compile_context>
chip_gen: v7x
topology: tpu7x:2x2x1
jax: 0.10.0
libtpu: 0.0.40
codegen_flags: <defaults>
</compile_context>

<pallas_src>
import numpy as np
import jax
import jax.numpy as jnp
from jax.experimental import pallas as pl
from jax.experimental.pallas import tpu as pltpu

# ----------------------------- model config ---------------------------------
IMG_IN = 16                      # small demo input resolution
IMG_RES = 224                    # CLIP preprocess target resolution
PATCH = 32
GRID = IMG_RES // PATCH          # 7
N_PATCH = GRID * GRID            # 49
N_TOK = N_PATCH + 1              # 50 (patches + CLS)
T_PAD = 56                       # token axis padded to a sublane multiple of 8
PATCH_DIM = 3 * PATCH * PATCH    # 3072
WIDTH = 64
HEADS = 4
HEAD_DIM = WIDTH // HEADS        # 16
LAYERS = 2
EMBED_DIM = 64
ATTN_SCALE = 1.0 / float(np.sqrt(HEAD_DIM))


# ---------------- kernel 1: fused bicubic resize + normalize -----------------
def _cubic_weights(out_size, in_size, A=-0.75):
    """PyTorch/kornia bicubic, align_corners=True, as a (out, in) matrix."""
    W = np.zeros((out_size, in_size), dtype=np.float64)
    scale = 0.0 if out_size == 1 else (in_size - 1) / (out_size - 1)

    def cubic(t):
        t = abs(t)
        if t <= 1.0:
            return (A + 2) * t**3 - (A + 3) * t**2 + 1
        if t < 2.0:
            return A * t**3 - 5 * A * t**2 + 8 * A * t - 4 * A
        return 0.0

    for i in range(out_size):
        real = i * scale
        i0 = int(np.floor(real))
        t = real - i0
        for off in range(-1, 3):
            idx = min(max(i0 + off, 0), in_size - 1)   # border replicate
            W[i, idx] += cubic(t - off)
    return jnp.asarray(W, dtype=jnp.float32)


def _preprocess_kernel(scale_ref, shift_ref, wh_ref, x_ref, wwt_ref, o_ref):
    # out = (Wh @ x @ Ww.T) * scale[c] + shift[c]   (resize + (x+1)/2 + norm)
    c = pl.program_id(1)
    y = jnp.dot(wh_ref[...], x_ref[...], preferred_element_type=jnp.float32)
    y = jnp.dot(y, wwt_ref[...], preferred_element_type=jnp.float32)
    o_ref[...] = (y * scale_ref[c] + shift_ref[c]).astype(o_ref.dtype)


def preprocess(params, x):
    B, C, H, W = x.shape
    wh = _cubic_weights(IMG_RES, H)          # (224, H)  height pass
    wwt = _cubic_weights(IMG_RES, W).T       # (W, 224)  width pass
    # TODO(synk): antialias=True resize path not implemented (module default is False)
    return pl.pallas_call(
        _preprocess_kernel,
        out_shape=jax.ShapeDtypeStruct((B, C, IMG_RES, IMG_RES), jnp.bfloat16),
        grid=(B, C),
        in_specs=[
            pl.BlockSpec(memory_space=pltpu.MemorySpace.SMEM),   # scale (3,)
            pl.BlockSpec(memory_space=pltpu.MemorySpace.SMEM),   # shift (3,)
            pl.BlockSpec((IMG_RES, H), lambda b, c: (0, 0)),
            pl.BlockSpec((None, None, H, W), lambda b, c: (b, c, 0, 0)),
            pl.BlockSpec((W, IMG_RES), lambda b, c: (0, 0)),
        ],
        out_specs=pl.BlockSpec((None, None, IMG_RES, IMG_RES),
                               lambda b, c: (b, c, 0, 0)),
        compiler_params=pltpu.CompilerParams(
            dimension_semantics=("parallel", "parallel")),
    )(params["norm_scale"], params["norm_shift"], wh, x, wwt)


# -------------------- kernel 2: fused ViT image encoder ----------------------
def _vit_kernel(p_ref, wp_ref, clspos_ref, lnpre_g_ref, lnpre_b_ref,
                ln1g_ref, ln1b_ref, wqkv_ref, bqkv_ref, wout_ref, bout_ref,
                ln2g_ref, ln2b_ref, wfc_ref, bfc_ref, wp2_ref, bp2_ref,
                lnpost_g_ref, lnpost_b_ref, proj_ref, o_ref):
    def ln(v, g, b):
        mu = jnp.mean(v, axis=-1, keepdims=True)
        vc = v - mu
        var = jnp.mean(vc * vc, axis=-1, keepdims=True)
        return vc * jax.lax.rsqrt(var + 1e-5) * g + b

    def mm(a, w):
        # bf16 MXU operands, f32 accumulation
        return jnp.dot(a.astype(jnp.bfloat16), w.astype(jnp.bfloat16),
                       preferred_element_type=jnp.float32)

    # patch embedding (Conv2d stride==kernel as matmul) + CLS + positional emb.
    # Row 0 of p_ref is zero (CLS slot), rows >= N_TOK are zero padding.
    tok = mm(p_ref[...], wp_ref[...]) + clspos_ref[...]          # (T_PAD, WIDTH) f32
    x = ln(tok, lnpre_g_ref[...], lnpre_b_ref[...])              # ln_pre

    # mask bias: padded key columns (tokens >= N_TOK) get -inf scores.
    col = jax.lax.broadcasted_iota(jnp.int32, (T_PAD, T_PAD), 1)
    mask_bias = jnp.where(col < N_TOK, 0.0, -1e30).astype(jnp.float32)

    for l in range(LAYERS):
        # ---- attention branch: LN -> QKV -> per-head softmax attn -> out-proj
        y = ln(x, ln1g_ref[l], ln1b_ref[l])
        qkv = mm(y, wqkv_ref[l]) + bqkv_ref[l]                   # (T_PAD, 3*WIDTH)
        heads = []
        for h in range(HEADS):
            q = qkv[:, h * HEAD_DIM:(h + 1) * HEAD_DIM]
            k = qkv[:, WIDTH + h * HEAD_DIM:WIDTH + (h + 1) * HEAD_DIM]
            v = qkv[:, 2 * WIDTH + h * HEAD_DIM:2 * WIDTH + (h + 1) * HEAD_DIM]
            s = jax.lax.dot_general(
                q.astype(jnp.bfloat16), k.astype(jnp.bfloat16),
                (((1,), (1,)), ((), ())),
                preferred_element_type=jnp.float32)              # (T_PAD, T_PAD)
            s = s * ATTN_SCALE + mask_bias
            m = jnp.max(s, axis=-1, keepdims=True)
            p = jnp.exp(s - m)
            denom = jnp.sum(p, axis=-1, keepdims=True)
            o = jnp.dot(p.astype(jnp.bfloat16), v.astype(jnp.bfloat16),
                        preferred_element_type=jnp.float32)      # (T_PAD, HEAD_DIM)
            heads.append(o * pl.reciprocal(denom, approx=True))
        attn = jnp.concatenate(heads, axis=-1)                   # (T_PAD, WIDTH)
        x = x + mm(attn, wout_ref[l]) + bout_ref[l]

        # ---- MLP branch: LN -> fc -> QuickGELU -> proj
        y2 = ln(x, ln2g_ref[l], ln2b_ref[l])
        f = mm(y2, wfc_ref[l]) + bfc_ref[l]
        f = f * jax.nn.sigmoid(1.702 * f)                        # QuickGELU
        x = x + mm(f, wp2_ref[l]) + bp2_ref[l]

    cls = ln(x[0:1, :], lnpost_g_ref[...], lnpost_b_ref[...])    # (1, WIDTH)
    o_ref[...] = mm(cls, proj_ref[...]).astype(o_ref.dtype)      # (1, EMBED_DIM)


def vit_encode(params, patches):
    B = patches.shape[0]

    def cs(shape):                                   # VMEM-resident constant
        return pl.BlockSpec(shape, lambda b: (0,) * len(shape))

    in_specs = [
        pl.BlockSpec((None, T_PAD, PATCH_DIM), lambda b: (b, 0, 0)),   # patches
        cs((PATCH_DIM, WIDTH)),                                        # w_patch
        cs((T_PAD, WIDTH)),                                            # cls+pos
        cs((1, WIDTH)), cs((1, WIDTH)),                                # ln_pre
        cs((LAYERS, 1, WIDTH)), cs((LAYERS, 1, WIDTH)),                # ln1 g,b
        cs((LAYERS, WIDTH, 3 * WIDTH)), cs((LAYERS, 1, 3 * WIDTH)),    # qkv
        cs((LAYERS, WIDTH, WIDTH)), cs((LAYERS, 1, WIDTH)),            # out proj
        cs((LAYERS, 1, WIDTH)), cs((LAYERS, 1, WIDTH)),                # ln2 g,b
        cs((LAYERS, WIDTH, 4 * WIDTH)), cs((LAYERS, 1, 4 * WIDTH)),    # fc
        cs((LAYERS, 4 * WIDTH, WIDTH)), cs((LAYERS, 1, WIDTH)),        # mlp proj
        cs((1, WIDTH)), cs((1, WIDTH)),                                # ln_post
        cs((WIDTH, EMBED_DIM)),                                        # proj
    ]
    return pl.pallas_call(
        _vit_kernel,
        out_shape=jax.ShapeDtypeStruct((B, 1, EMBED_DIM), jnp.float32),
        grid=(B,),
        in_specs=in_specs,
        out_specs=pl.BlockSpec((None, 1, EMBED_DIM), lambda b: (b, 0, 0)),
        compiler_params=pltpu.CompilerParams(dimension_semantics=("parallel",)),
    )(patches, params["w_patch"], params["cls_pos"],
      params["ln_pre_g"], params["ln_pre_b"],
      params["ln1_g"], params["ln1_b"],
      params["w_qkv"], params["b_qkv"],
      params["w_out"], params["b_out"],
      params["ln2_g"], params["ln2_b"],
      params["w_fc"], params["b_fc"],
      params["w_proj2"], params["b_proj2"],
      params["ln_post_g"], params["ln_post_b"],
      params["proj"])


# ------------------------------ full forward ---------------------------------
def frozen_clip_image_embedder(params, x):
    B = x.shape[0]
    img = preprocess(params, x)                              # (B, 3, 224, 224) bf16
    # TODO(synk): patch extraction (space-to-depth) stays as one small XLA
    # transpose; expressing it via BlockSpec index_map would need 49 tiny grid
    # steps or in-kernel relayouts that cost more than this ~1 MiB re-layout.
    p = img.reshape(B, 3, GRID, PATCH, GRID, PATCH)
    p = jnp.transpose(p, (0, 2, 4, 1, 3, 5)).reshape(B, N_PATCH, PATCH_DIM)
    p = jnp.pad(p, ((0, 0), (1, T_PAD - 1 - N_PATCH), (0, 0)))  # row 0 = CLS slot
    out = vit_encode(params, p)                              # (B, 1, EMBED_DIM)
    return out[:, 0, :]


# ------------------------------- parameters ----------------------------------
def init_params(key):
    keys = jax.random.split(key, 64)
    it = iter(keys)

    def nrm(shape, scale=0.02):
        return scale * jax.random.normal(next(it), shape, dtype=jnp.float32)

    mean = jnp.array([0.48145466, 0.4578275, 0.40821073], jnp.float32)
    std = jnp.array([0.26862954, 0.26130258, 0.27577711], jnp.float32)

    conv_w = nrm((WIDTH, 3, PATCH, PATCH))
    class_emb = nrm((WIDTH,))
    pos_emb = nrm((N_TOK, WIDTH))
    cls_pos = jnp.zeros((T_PAD, WIDTH), jnp.float32)
    cls_pos = cls_pos.at[:N_TOK].set(pos_emb)
    cls_pos = cls_pos.at[0].add(class_emb)                   # CLS token + pos[0]

    params = {
        # folds (x+1)/2 and the mean/std normalize into one affine per channel
        "norm_scale": 0.5 / std,
        "norm_shift": (0.5 - mean) / std,
        "w_patch": conv_w.reshape(WIDTH, PATCH_DIM).T.astype(jnp.bfloat16),
        "cls_pos": cls_pos,
        "ln_pre_g": jnp.ones((1, WIDTH), jnp.float32),
        "ln_pre_b": jnp.zeros((1, WIDTH), jnp.float32),
        "ln_post_g": jnp.ones((1, WIDTH), jnp.float32),
        "ln_post_b": jnp.zeros((1, WIDTH), jnp.float32),
        "proj": nrm((WIDTH, EMBED_DIM)).astype(jnp.bfloat16),
        # per-layer weights stacked on a leading LAYERS axis (VMEM-resident)
        "ln1_g": jnp.ones((LAYERS, 1, WIDTH), jnp.float32),
        "ln1_b": jnp.zeros((LAYERS, 1, WIDTH), jnp.float32),
        "ln2_g": jnp.ones((LAYERS, 1, WIDTH), jnp.float32),
        "ln2_b": jnp.zeros((LAYERS, 1, WIDTH), jnp.float32),
        "w_qkv": jnp.stack([nrm((WIDTH, 3 * WIDTH))
                            for _ in range(LAYERS)]).astype(jnp.bfloat16),
        "b_qkv": jnp.zeros((LAYERS, 1, 3 * WIDTH), jnp.float32),
        "w_out": jnp.stack([nrm((WIDTH, WIDTH))
                            for _ in range(LAYERS)]).astype(jnp.bfloat16),
        "b_out": jnp.zeros((LAYERS, 1, WIDTH), jnp.float32),
        "w_fc": jnp.stack([nrm((WIDTH, 4 * WIDTH))
                           for _ in range(LAYERS)]).astype(jnp.bfloat16),
        "b_fc": jnp.zeros((LAYERS, 1, 4 * WIDTH), jnp.float32),
        "w_proj2": jnp.stack([nrm((4 * WIDTH, WIDTH))
                              for _ in range(LAYERS)]).astype(jnp.bfloat16),
        "b_proj2": jnp.zeros((LAYERS, 1, WIDTH), jnp.float32),
    }
    return params


# ---------------------------------- main --------------------------------------
if __name__ == "__main__":
    key = jax.random.PRNGKey(0)
    pkey, xkey = jax.random.split(key)
    params = init_params(pkey)
    # module input: image batch in [-1, 1], NCHW
    x = jax.random.uniform(xkey, (2, 3, IMG_IN, IMG_IN),
                           dtype=jnp.float32, minval=-1.0, maxval=1.0)
    out = jax.jit(frozen_clip_image_embedder)(params, x)
    out = jax.block_until_ready(out)
    assert out.shape == (2, EMBED_DIM), out.shape
    assert bool(jnp.all(jnp.isfinite(out)))
    print("KERNEL_OK")
</pallas_src>

<mosaic_0001>
module attributes {stable_mosaic.version = 11 : i64} {
  func.func @_preprocess_kernel(%arg0: i32, %arg1: i32, %arg2: memref<3xf32, #tpu.memory_space<smem>>, %arg3: memref<3xf32, #tpu.memory_space<smem>>, %arg4: memref<224x16xf32, #tpu.memory_space<vmem>>, %arg5: memref<1x1x16x16xf32, #tpu.memory_space<vmem>>, %arg6: memref<16x224xf32, #tpu.memory_space<vmem>>, %arg7: memref<1x1x224x224xbf16, #tpu.memory_space<vmem>>) attributes {dimension_semantics = [#tpu.dimension_semantics<parallel>, #tpu.dimension_semantics<parallel>], iteration_bounds = array<i64: 2, 3>, scalar_prefetch = 0 : i64, scratch_operands = 0 : i64, tpu.core_type = #tpu.core_type<tc>, window_params = [{transform_indices = @transform_0, window_bounds = array<i64: 3>}, {transform_indices = @transform_1, window_bounds = array<i64: 3>}, {pipeline_mode = #tpu.pipeline_mode<synchronous>, transform_indices = @transform_2, window_bounds = array<i64: 224, 16>}, {transform_indices = @transform_3, window_bounds = array<i64: 1, 1, 16, 16>}, {pipeline_mode = #tpu.pipeline_mode<synchronous>, transform_indices = @transform_4, window_bounds = array<i64: 16, 224>}, {transform_indices = @transform_5, window_bounds = array<i64: 1, 1, 224, 224>}]} {
    %c0 = arith.constant 0 : index
    %c0_0 = arith.constant 0 : index
    %0 = vector.load %arg4[%c0, %c0_0] : memref<224x16xf32, #tpu.memory_space<vmem>>, vector<224x16xf32>
    %c0_1 = arith.constant 0 : index
    %c0_2 = arith.constant 0 : index
    %c0_3 = arith.constant 0 : index
    %c0_4 = arith.constant 0 : index
    %1 = vector.load %arg5[%c0_1, %c0_2, %c0_3, %c0_4] : memref<1x1x16x16xf32, #tpu.memory_space<vmem>>, vector<1x1x16x16xf32>
    %2 = vector.shape_cast %1 : vector<1x1x16x16xf32> to vector<16x16xf32>
    %cst = arith.constant dense<0.000000e+00> : vector<224x16xf32>
    %3 = tpu.matmul %0, %2, %cst {dimension_numbers = #tpu.dot_dimension_numbers<[1], [0], [0], [1], [0, 0, 1, 1], [], []>} : vector<224x16xf32>, vector<16x16xf32>, vector<224x16xf32> -> vector<224x16xf32>
    %c0_5 = arith.constant 0 : index
    %c0_6 = arith.constant 0 : index
    %4 = vector.load %arg6[%c0_5, %c0_6] : memref<16x224xf32, #tpu.memory_space<vmem>>, vector<16x224xf32>
    %cst_7 = arith.constant dense<0.000000e+00> : vector<224x224xf32>
    %5 = tpu.matmul %3, %4, %cst_7 {dimension_numbers = #tpu.dot_dimension_numbers<[1], [0], [0], [1], [0, 0, 1, 1], [], []>} : vector<224x16xf32>, vector<16x224xf32>, vector<224x224xf32> -> vector<224x224xf32>
    %6 = arith.index_cast %arg1 : i32 to index
    %7 = memref.load %arg2[%6] : memref<3xf32, #tpu.memory_space<smem>>
    %8 = vector.broadcast %7 : f32 to vector<224x224xf32>
    %9 = arith.mulf %5, %8 : vector<224x224xf32>
    %10 = arith.index_cast %arg1 : i32 to index
    %11 = memref.load %arg3[%10] : memref<3xf32, #tpu.memory_space<smem>>
    %12 = vector.broadcast %11 : f32 to vector<224x224xf32>
    %13 = arith.addf %9, %12 : vector<224x224xf32>
    %14 = arith.truncf %13 : vector<224x224xf32> to vector<224x224xbf16>
    %c0_8 = arith.constant 0 : index
    %c0_9 = arith.constant 0 : index
    %c0_10 = arith.constant 0 : index
    %c0_11 = arith.constant 0 : index
    %15 = vector.load %arg7[%c0_8, %c0_9, %c0_10, %c0_11] : memref<1x1x224x224xbf16, #tpu.memory_space<vmem>>, vector<1x1x224x224xbf16>
    %16 = vector.shape_cast %15 : vector<1x1x224x224xbf16> to vector<224x224xbf16>
    %17 = vector.shape_cast %14 : vector<224x224xbf16> to vector<1x1x224x224xbf16>
    tpu.vector_store %arg7[%c0_8, %c0_9, %c0_10, %c0_11], %17 {strides = array<i32>} : memref<1x1x224x224xbf16, #tpu.memory_space<vmem>>, vector<1x1x224x224xbf16>,
    return
  }
  func.func @transform_0(%arg0: i32, %arg1: i32) -> i32 {
    %c0_i32 = arith.constant 0 : i32
    %c0_i32_0 = arith.constant 0 : i32
    return %c0_i32 : i32
  }
  func.func @transform_1(%arg0: i32, %arg1: i32) -> i32 {
    %c0_i32 = arith.constant 0 : i32
    %c0_i32_0 = arith.constant 0 : i32
    return %c0_i32 : i32
  }
  func.func @transform_2(%arg0: i32, %arg1: i32) -> (i32, i32) {
    %c0_i32 = arith.constant 0 : i32
    %c0_i32_0 = arith.constant 0 : i32
    %c0_i32_1 = arith.constant 0 : i32
    return %c0_i32, %c0_i32_0 : i32, i32
  }
  func.func @transform_3(%arg0: i32, %arg1: i32) -> (i32, i32, i32, i32) {
    %c0_i32 = arith.constant 0 : i32
    %c0_i32_0 = arith.constant 0 : i32
    %c0_i32_1 = arith.constant 0 : i32
    return %arg0, %arg1, %c0_i32, %c0_i32_0 : i32, i32, i32, i32
  }
  func.func @transform_4(%arg0: i32, %arg1: i32) -> (i32, i32) {
    %c0_i32 = arith.constant 0 : i32
    %c0_i32_0 = arith.constant 0 : i32
    %c0_i32_1 = arith.constant 0 : i32
    return %c0_i32, %c0_i32_0 : i32, i32
  }
  func.func @transform_5(%arg0: i32, %arg1: i32) -> (i32, i32, i32, i32) {
    %c0_i32 = arith.constant 0 : i32
    %c0_i32_0 = arith.constant 0 : i32
    %c0_i32_1 = arith.constant 0 : i32
    return %arg0, %arg1, %c0_i32, %c0_i32_0 : i32, i32, i32, i32
  }
}

module attributes {stable_mosaic.version = 11 : i64} {
  func.func @_vit_kernel(%arg0: i32, %arg1: memref<1x56x3072xbf16, #tpu.memory_space<vmem>>, %arg2: memref<3072x64xbf16, #tpu.memory_space<vmem>>, %arg3: memref<56x64xf32, #tpu.memory_space<vmem>>, %arg4: memref<1x64xf32, #tpu.memory_space<vmem>>, %arg5: memref<1x64xf32, #tpu.memory_space<vmem>>, %arg6: memref<2x1x64xf32, #tpu.memory_space<vmem>>, %arg7: memref<2x1x64xf32, #tpu.memory_space<vmem>>, %arg8: memref<2x64x192xbf16, #tpu.memory_space<vmem>>, %arg9: memref<2x1x192xf32, #tpu.memory_space<vmem>>, %arg10: memref<2x64x64xbf16, #tpu.memory_space<vmem>>, %arg11: memref<2x1x64xf32, #tpu.memory_space<vmem>>, %arg12: memref<2x1x64xf32, #tpu.memory_space<vmem>>, %arg13: memref<2x1x64xf32, #tpu.memory_space<vmem>>, %arg14: memref<2x64x256xbf16, #tpu.memory_space<vmem>>, %arg15: memref<2x1x256xf32, #tpu.memory_space<vmem>>, %arg16: memref<2x256x64xbf16, #tpu.memory_space<vmem>>, %arg17: memref<2x1x64xf32, #tpu.memory_space<vmem>>, %arg18: memref<1x64xf32, #tpu.memory_space<vmem>>, %arg19: memref<1x64xf32, #tpu.memory_space<vmem>>, %arg20: memref<64x64xbf16, #tpu.memory_space<vmem>>, %arg21: memref<1x1x64xf32, #tpu.memory_space<vmem>>) attributes {dimension_semantics = [#tpu.dimension_semantics<parallel>], iteration_bounds = array<i64: 2>, scalar_prefetch = 0 : i64, scratch_operands = 0 : i64, tpu.core_type = #tpu.core_type<tc>, window_params = [{transform_indices = @transform_0, window_bounds = array<i64: 1, 56, 3072>}, {pipeline_mode = #tpu.pipeline_mode<synchronous>, transform_indices = @transform_1, window_bounds = array<i64: 3072, 64>}, {pipeline_mode = #tpu.pipeline_mode<synchronous>, transform_indices = @transform_2, window_bounds = array<i64: 56, 64>}, {pipeline_mode = #tpu.pipeline_mode<synchronous>, transform_indices = @transform_3, window_bounds = array<i64: 1, 64>}, {pipeline_mode = #tpu.pipeline_mode<synchronous>, transform_indices = @transform_4, window_bounds = array<i64: 1, 64>}, {pipeline_mode = #tpu.pipeline_mode<synchronous>, transform_indices = @transform_5, window_bounds = array<i64: 2, 1, 64>}, {pipeline_mode = #tpu.pipeline_mode<synchronous>, transform_indices = @transform_6, window_bounds = array<i64: 2, 1, 64>}, {pipeline_mode = #tpu.pipeline_mode<synchronous>, transform_indices = @transform_7, window_bounds = array<i64: 2, 64, 192>}, {pipeline_mode = #tpu.pipeline_mode<synchronous>, transform_indices = @transform_8, window_bounds = array<i64: 2, 1, 192>}, {pipeline_mode = #tpu.pipeline_mode<synchronous>, transform_indices = @transform_9, window_bounds = array<i64: 2, 64, 64>}, {pipeline_mode = #tpu.pipeline_mode<synchronous>, transform_indices = @transform_10, window_bounds = array<i64: 2, 1, 64>}, {pipeline_mode = #tpu.pipeline_mode<synchronous>, transform_indices = @transform_11, window_bounds = array<i64: 2, 1, 64>}, {pipeline_mode = #tpu.pipeline_mode<synchronous>, transform_indices = @transform_12, window_bounds = array<i64: 2, 1, 64>}, {pipeline_mode = #tpu.pipeline_mode<synchronous>, transform_indices = @transform_13, window_bounds = array<i64: 2, 64, 256>}, {pipeline_mode = #tpu.pipeline_mode<synchronous>, transform_indices = @transform_14, window_bounds = array<i64: 2, 1, 256>}, {pipeline_mode = #tpu.pipeline_mode<synchronous>, transform_indices = @transform_15, window_bounds = array<i64: 2, 256, 64>}, {pipeline_mode = #tpu.pipeline_mode<synchronous>, transform_indices = @transform_16, window_bounds = array<i64: 2, 1, 64>}, {pipeline_mode = #tpu.pipeline_mode<synchronous>, transform_indices = @transform_17, window_bounds = array<i64: 1, 64>}, {pipeline_mode = #tpu.pipeline_mode<synchronous>, transform_indices = @transform_18, window_bounds = array<i64: 1, 64>}, {pipeline_mode = #tpu.pipeline_mode<synchronous>, transform_indices = @transform_19, window_bounds = array<i64: 64, 64>}, {transform_indices = @transform_20, window_bounds = array<i64: 1, 1, 64>}]} {
    %c0 = arith.constant 0 : index
    %c0_0 = arith.constant 0 : index
    %c0_1 = arith.constant 0 : index
    %0 = vector.load %arg1[%c0, %c0_0, %c0_1] : memref<1x56x3072xbf16, #tpu.memory_space<vmem>>, vector<1x56x3072xbf16>
    %1 = vector.shape_cast %0 : vector<1x56x3072xbf16> to vector<56x3072xbf16>
    %c0_2 = arith.constant 0 : index
    %c0_3 = arith.constant 0 : index
    %2 = vector.load %arg2[%c0_2, %c0_3] : memref<3072x64xbf16, #tpu.memory_space<vmem>>, vector<3072x64xbf16>
    %cst = arith.constant dense<0.000000e+00> : vector<56x64xf32>
    %3 = tpu.matmul %1, %2, %cst {dimension_numbers = #tpu.dot_dimension_numbers<[1], [0], [0], [1], [0, 0, 1, 1], [], []>} : vector<56x3072xbf16>, vector<3072x64xbf16>, vector<56x64xf32> -> vector<56x64xf32>
    %c0_4 = arith.constant 0 : index
    %c0_5 = arith.constant 0 : index
    %4 = vector.load %arg3[%c0_4, %c0_5] : memref<56x64xf32, #tpu.memory_space<vmem>>, vector<56x64xf32>
    %5 = arith.addf %3, %4 : vector<56x64xf32>
    %c0_6 = arith.constant 0 : index
    %c0_7 = arith.constant 0 : index
    %6 = vector.load %arg4[%c0_6, %c0_7] : memref<1x64xf32, #tpu.memory_space<vmem>>, vector<1x64xf32>
    %c0_8 = arith.constant 0 : index
    %c0_9 = arith.constant 0 : index
    %7 = vector.load %arg5[%c0_8, %c0_9] : memref<1x64xf32, #tpu.memory_space<vmem>>, vector<1x64xf32>
    %cst_10 = arith.constant dense<0.000000e+00> : vector<56xf32>
    %8 = vector.multi_reduction <add>, %5, %cst_10 [1] : vector<56x64xf32> to vector<56xf32>
    %9 = vector.shape_cast %8 : vector<56xf32> to vector<56x1xf32>
    %cst_11 = arith.constant 6.400000e+01 : f32
    %10 = vector.broadcast %cst_11 : f32 to vector<56x1xf32>
    %11 = arith.divf %9, %10 : vector<56x1xf32>
    %12 = vector.broadcast %11 : vector<56x1xf32> to vector<56x64xf32>
    %13 = arith.subf %5, %12 : vector<56x64xf32>
    %14 = arith.mulf %13, %13 : vector<56x64xf32>
    %cst_12 = arith.constant dense<0.000000e+00> : vector<56xf32>
    %15 = vector.multi_reduction <add>, %14, %cst_12 [1] : vector<56x64xf32> to vector<56xf32>
    %16 = vector.shape_cast %15 : vector<56xf32> to vector<56x1xf32>
    %cst_13 = arith.constant 6.400000e+01 : f32
    %17 = vector.broadcast %cst_13 : f32 to vector<56x1xf32>
    %18 = arith.divf %16, %17 : vector<56x1xf32>
    %cst_14 = arith.constant 9.99999974E-6 : f32
    %19 = vector.broadcast %cst_14 : f32 to vector<56x1xf32>
    %20 = arith.addf %18, %19 : vector<56x1xf32>
    %21 = math.rsqrt %20 : vector<56x1xf32>
    %22 = vector.broadcast %21 : vector<56x1xf32> to vector<56x64xf32>
    %23 = arith.mulf %13, %22 : vector<56x64xf32>
    %24 = vector.broadcast %6 : vector<1x64xf32> to vector<56x64xf32>
    %25 = arith.mulf %23, %24 : vector<56x64xf32>
    %26 = vector.broadcast %7 : vector<1x64xf32> to vector<56x64xf32>
    %27 = arith.addf %25, %26 : vector<56x64xf32>
    %28 = tpu.iota {dimensions = array<i32: 1>} : vector<56x56xi32>
    %c50_i32 = arith.constant 50 : i32
    %29 = vector.broadcast %c50_i32 : i32 to vector<56x56xi32>
    %30 = arith.cmpi slt, %28, %29 : vector<56x56xi32>
    %cst_15 = arith.constant 0.000000e+00 : f32
    %cst_16 = arith.constant -1.000000e+30 : f32
    %31 = vector.broadcast %cst_15 : f32 to vector<56x56xf32>
    %32 = vector.broadcast %cst_16 : f32 to vector<56x56xf32>
    %33 = arith.select %30, %31, %32 : vector<56x56xi1>, vector<56x56xf32>
    %c0_17 = arith.constant 0 : index
    %c0_18 = arith.constant 0 : index
    %c0_19 = arith.constant 0 : index
    %34 = vector.load %arg6[%c0_17, %c0_18, %c0_19] : memref<2x1x64xf32, #tpu.memory_space<vmem>>, vector<1x1x64xf32>
    %35 = vector.shape_cast %34 : vector<1x1x64xf32> to vector<1x64xf32>
    %c0_20 = arith.constant 0 : index
    %c0_21 = arith.constant 0 : index
    %c0_22 = arith.constant 0 : index
    %36 = vector.load %arg7[%c0_20, %c0_21, %c0_22] : memref<2x1x64xf32, #tpu.memory_space<vmem>>, vector<1x1x64xf32>
    %37 = vector.shape_cast %36 : vector<1x1x64xf32> to vector<1x64xf32>
    %cst_23 = arith.constant dense<0.000000e+00> : vector<56xf32>
    %38 = vector.multi_reduction <add>, %27, %cst_23 [1] : vector<56x64xf32> to vector<56xf32>
    %39 = vector.shape_cast %38 : vector<56xf32> to vector<56x1xf32>
    %cst_24 = arith.constant 6.400000e+01 : f32
    %40 = vector.broadcast %cst_24 : f32 to vector<56x1xf32>
    %41 = arith.divf %39, %40 : vector<56x1xf32>
    %42 = vector.broadcast %41 : vector<56x1xf32> to vector<56x64xf32>
    %43 = arith.subf %27, %42 : vector<56x64xf32>
    %44 = arith.mulf %43, %43 : vector<56x64xf32>
    %cst_25 = arith.constant dense<0.000000e+00> : vector<56xf32>
    %45 = vector.multi_reduction <add>, %44, %cst_25 [1] : vector<56x64xf32> to vector<56xf32>
    %46 = vector.shape_cast %45 : vector<56xf32> to vector<56x1xf32>
    %cst_26 = arith.constant 6.400000e+01 : f32
    %47 = vector.broadcast %cst_26 : f32 to vector<56x1xf32>
    %48 = arith.divf %46, %47 : vector<56x1xf32>
    %cst_27 = arith.constant 9.99999974E-6 : f32
    %49 = vector.broadcast %cst_27 : f32 to vector<56x1xf32>
    %50 = arith.addf %48, %49 : vector<56x1xf32>
    %51 = math.rsqrt %50 : vector<56x1xf32>
    %52 = vector.broadcast %51 : vector<56x1xf32> to vector<56x64xf32>
    %53 = arith.mulf %43, %52 : vector<56x64xf32>
    %54 = vector.broadcast %35 : vector<1x64xf32> to vector<56x64xf32>
    %55 = arith.mulf %53, %54 : vector<56x64xf32>
    %56 = vector.broadcast %37 : vector<1x64xf32> to vector<56x64xf32>
    %57 = arith.addf %55, %56 : vector<56x64xf32>
    %c0_28 = arith.constant 0 : index
    %c0_29 = arith.constant 0 : index
    %c0_30 = arith.constant 0 : index
    %58 = vector.load %arg8[%c0_28, %c0_29, %c0_30] : memref<2x64x192xbf16, #tpu.memory_space<vmem>>, vector<1x64x192xbf16>
    %59 = vector.shape_cast %58 : vector<1x64x192xbf16> to vector<64x192xbf16>
    %60 = arith.truncf %57 : vector<56x64xf32> to vector<56x64xbf16>
    %cst_31 = arith.constant dense<0.000000e+00> : vector<56x192xf32>
    %61 = tpu.matmul %60, %59, %cst_31 {dimension_numbers = #tpu.dot_dimension_numbers<[1], [0], [0], [1], [0, 0, 1, 1], [], []>} : vector<56x64xbf16>, vector<64x192xbf16>, vector<56x192xf32> -> vector<56x192xf32>
    %c0_32 = arith.constant 0 : index
    %c0_33 = arith.constant 0 : index
    %c0_34 = arith.constant 0 : index
    %62 = vector.load %arg9[%c0_32, %c0_33, %c0_34] : memref<2x1x192xf32, #tpu.memory_space<vmem>>, vector<1x1x192xf32>
    %63 = vector.shape_cast %62 : vector<1x1x192xf32> to vector<1x192xf32>
    %64 = vector.broadcast %63 : vector<1x192xf32> to vector<56x192xf32>
    %65 = arith.addf %61, %64 : vector<56x192xf32>
    %66 = vector.extract_strided_slice %65 {offsets = [0, 0], sizes = [56, 16], strides = [1, 1]} : vector<56x192xf32> to vector<56x16xf32>
    %67 = vector.extract_strided_slice %65 {offsets = [0, 64], sizes = [56, 16], strides = [1, 1]} : vector<56x192xf32> to vector<56x16xf32>
    %68 = vector.extract_strided_slice %65 {offsets = [0, 128], sizes = [56, 16], strides = [1, 1]} : vector<56x192xf32> to vector<56x16xf32>
    %69 = arith.truncf %66 : vector<56x16xf32> to vector<56x16xbf16>
    %70 = arith.truncf %67 : vector<56x16xf32> to vector<56x16xbf16>
    %cst_35 = arith.constant dense<0.000000e+00> : vector<56x56xf32>
    %71 = tpu.matmul %69, %70, %cst_35 {dimension_numbers = #tpu.dot_dimension_numbers<[1], [1], [0], [0], [0, 0, 1, 0], [], []>} : vector<56x16xbf16>, vector<56x16xbf16>, vector<56x56xf32> -> vector<56x56xf32>
    %cst_36 = arith.constant 2.500000e-01 : f32
    %72 = vector.broadcast %cst_36 : f32 to vector<56x56xf32>
    %73 = arith.mulf %71, %72 : vector<56x56xf32>
    %74 = arith.addf %73, %33 : vector<56x56xf32>
    %cst_37 = arith.constant dense<0xFF800000> : vector<56xf32>
    %75 = vector.multi_reduction <maximumf>, %74, %cst_37 [1] : vector<56x56xf32> to vector<56xf32>
    %76 = vector.shape_cast %75 : vector<56xf32> to vector<56x1xf32>
    %77 = vector.broadcast %76 : vector<56x1xf32> to vector<56x56xf32>
    %78 = arith.subf %74, %77 : vector<56x56xf32>
    %79 = math.exp %78 : vector<56x56xf32>
    %cst_38 = arith.constant dense<0.000000e+00> : vector<56xf32>
    %80 = vector.multi_reduction <add>, %79, %cst_38 [1] : vector<56x56xf32> to vector<56xf32>
    %81 = vector.shape_cast %80 : vector<56xf32> to vector<56x1xf32>
    %82 = arith.truncf %79 : vector<56x56xf32> to vector<56x56xbf16>
    %83 = arith.truncf %68 : vector<56x16xf32> to vector<56x16xbf16>
    %cst_39 = arith.constant dense<0.000000e+00> : vector<56x16xf32>
    %84 = tpu.matmul %82, %83, %cst_39 {dimension_numbers = #tpu.dot_dimension_numbers<[1], [0], [0], [1], [0, 0, 1, 1], [], []>} : vector<56x56xbf16>, vector<56x16xbf16>, vector<56x16xf32> -> vector<56x16xf32>
    %85 = tpu.reciprocal %81 {approx = true} : vector<56x1xf32> -> vector<56x1xf32>
    %86 = vector.broadcast %85 : vector<56x1xf32> to vector<56x16xf32>
    %87 = arith.mulf %84, %86 : vector<56x16xf32>
    %88 = vector.extract_strided_slice %65 {offsets = [0, 16], sizes = [56, 16], strides = [1, 1]} : vector<56x192xf32> to vector<56x16xf32>
    %89 = vector.extract_strided_slice %65 {offsets = [0, 80], sizes = [56, 16], strides = [1, 1]} : vector<56x192xf32> to vector<56x16xf32>
    %90 = vector.extract_strided_slice %65 {offsets = [0, 144], sizes = [56, 16], strides = [1, 1]} : vector<56x192xf32> to vector<56x16xf32>
    %91 = arith.truncf %88 : vector<56x16xf32> to vector<56x16xbf16>
    %92 = arith.truncf %89 : vector<56x16xf32> to vector<56x16xbf16>
    %cst_40 = arith.constant dense<0.000000e+00> : vector<56x56xf32>
    %93 = tpu.matmul %91, %92, %cst_40 {dimension_numbers = #tpu.dot_dimension_numbers<[1], [1], [0], [0], [0, 0, 1, 0], [], []>} : vector<56x16xbf16>, vector<56x16xbf16>, vector<56x56xf32> -> vector<56x56xf32>
    %cst_41 = arith.constant 2.500000e-01 : f32
    %94 = vector.broadcast %cst_41 : f32 to vector<56x56xf32>
    %95 = arith.mulf %93, %94 : vector<56x56xf32>
    %96 = arith.addf %95, %33 : vector<56x56xf32>
    %cst_42 = arith.constant dense<0xFF800000> : vector<56xf32>
    %97 = vector.multi_reduction <maximumf>, %96, %cst_42 [1] : vector<56x56xf32> to vector<56xf32>
    %98 = vector.shape_cast %97 : vector<56xf32> to vector<56x1xf32>
    %99 = vector.broadcast %98 : vector<56x1xf32> to vector<56x56xf32>
    %100 = arith.subf %96, %99 : vector<56x56xf32>
    %101 = math.exp %100 : vector<56x56xf32>
    %cst_43 = arith.constant dense<0.000000e+00> : vector<56xf32>
    %102 = vector.multi_reduction <add>, %101, %cst_43 [1] : vector<56x56xf32> to vector<56xf32>
    %103 = vector.shape_cast %102 : vector<56xf32> to vector<56x1xf32>
    %104 = arith.truncf %101 : vector<56x56xf32> to vector<56x56xbf16>
    %105 = arith.truncf %90 : vector<56x16xf32> to vector<56x16xbf16>
    %cst_44 = arith.constant dense<0.000000e+00> : vector<56x16xf32>
    %106 = tpu.matmul %104, %105, %cst_44 {dimension_numbers = #tpu.dot_dimension_numbers<[1], [0], [0], [1], [0, 0, 1, 1], [], []>} : vector<56x56xbf16>, vector<56x16xbf16>, vector<56x16xf32> -> vector<56x16xf32>
    %107 = tpu.reciprocal %103 {approx = true} : vector<56x1xf32> -> vector<56x1xf32>
    %108 = vector.broadcast %107 : vector<56x1xf32> to vector<56x16xf32>
    %109 = arith.mulf %106, %108 : vector<56x16xf32>
    %110 = vector.extract_strided_slice %65 {offsets = [0, 32], sizes = [56, 16], strides = [1, 1]} : vector<56x192xf32> to vector<56x16xf32>
    %111 = vector.extract_strided_slice %65 {offsets = [0, 96], sizes = [56, 16], strides = [1, 1]} : vector<56x192xf32> to vector<56x16xf32>
    %112 = vector.extract_strided_slice %65 {offsets = [0, 160], sizes = [56, 16], strides = [1, 1]} : vector<56x192xf32> to vector<56x16xf32>
    %113 = arith.truncf %110 : vector<56x16xf32> to vector<56x16xbf16>
    %114 = arith.truncf %111 : vector<56x16xf32> to vector<56x16xbf16>
    %cst_45 = arith.constant dense<0.000000e+00> : vector<56x56xf32>
    %115 = tpu.matmul %113, %114, %cst_45 {dimension_numbers = #tpu.dot_dimension_numbers<[1], [1], [0], [0], [0, 0, 1, 0], [], []>} : vector<56x16xbf16>, vector<56x16xbf16>, vector<56x56xf32> -> vector<56x56xf32>
    %cst_46 = arith.constant 2.500000e-01 : f32
    %116 = vector.broadcast %cst_46 : f32 to vector<56x56xf32>
    %117 = arith.mulf %115, %116 : vector<56x56xf32>
    %118 = arith.addf %117, %33 : vector<56x56xf32>
    %cst_47 = arith.constant dense<0xFF800000> : vector<56xf32>
    %119 = vector.multi_reduction <maximumf>, %118, %cst_47 [1] : vector<56x56xf32> to vector<56xf32>
    %120 = vector.shape_cast %119 : vector<56xf32> to vector<56x1xf32>
    %121 = vector.broadcast %120 : vector<56x1xf32> to vector<56x56xf32>
    %122 = arith.subf %118, %121 : vector<56x56xf32>
    %123 = math.exp %122 : vector<56x56xf32>
    %cst_48 = arith.constant dense<0.000000e+00> : vector<56xf32>
    %124 = vector.multi_reduction <add>, %123, %cst_48 [1] : vector<56x56xf32> to vector<56xf32>
    %125 = vector.shape_cast %124 : vector<56xf32> to vector<56x1xf32>
    %126 = arith.truncf %123 : vector<56x56xf32> to vector<56x56xbf16>
    %127 = arith.truncf %112 : vector<56x16xf32> to vector<56x16xbf16>
    %cst_49 = arith.constant dense<0.000000e+00> : vector<56x16xf32>
    %128 = tpu.matmul %126, %127, %cst_49 {dimension_numbers = #tpu.dot_dimension_numbers<[1], [0], [0], [1], [0, 0, 1, 1], [], []>} : vector<56x56xbf16>, vector<56x16xbf16>, vector<56x16xf32> -> vector<56x16xf32>
    %129 = tpu.reciprocal %125 {approx = true} : vector<56x1xf32> -> vector<56x1xf32>
    %130 = vector.broadcast %129 : vector<56x1xf32> to vector<56x16xf32>
    %131 = arith.mulf %128, %130 : vector<56x16xf32>
    %132 = vector.extract_strided_slice %65 {offsets = [0, 48], sizes = [56, 16], strides = [1, 1]} : vector<56x192xf32> to vector<56x16xf32>
    %133 = vector.extract_strided_slice %65 {offsets = [0, 112], sizes = [56, 16], strides = [1, 1]} : vector<56x192xf32> to vector<56x16xf32>
    %134 = vector.extract_strided_slice %65 {offsets = [0, 176], sizes = [56, 16], strides = [1, 1]} : vector<56x192xf32> to vector<56x16xf32>
    %135 = arith.truncf %132 : vector<56x16xf32> to vector<56x16xbf16>
    %136 = arith.truncf %133 : vector<56x16xf32> to vector<56x16xbf16>
    %cst_50 = arith.constant dense<0.000000e+00> : vector<56x56xf32>
    %137 = tpu.matmul %135, %136, %cst_50 {dimension_numbers = #tpu.dot_dimension_numbers<[1], [1], [0], [0], [0, 0, 1, 0], [], []>} : vector<56x16xbf16>, vector<56x16xbf16>, vector<56x56xf32> -> vector<56x56xf32>
    %cst_51 = arith.constant 2.500000e-01 : f32
    %138 = vector.broadcast %cst_51 : f32 to vector<56x56xf32>
    %139 = arith.mulf %137, %138 : vector<56x56xf32>
    %140 = arith.addf %139, %33 : vector<56x56xf32>
    %cst_52 = arith.constant dense<0xFF800000> : vector<56xf32>
    %141 = vector.multi_reduction <maximumf>, %140, %cst_52 [1] : vector<56x56xf32> to vector<56xf32>
    %142 = vector.shape_cast %141 : vector<56xf32> to vector<56x1xf32>
    %143 = vector.broadcast %142 : vector<56x1xf32> to vector<56x56xf32>
    %144 = arith.subf %140, %143 : vector<56x56xf32>
    %145 = math.exp %144 : vector<56x56xf32>
    %cst_53 = arith.constant dense<0.000000e+00> : vector<56xf32>
    %146 = vector.multi_reduction <add>, %145, %cst_53 [1] : vector<56x56xf32> to vector<56xf32>
    %147 = vector.shape_cast %146 : vector<56xf32> to vector<56x1xf32>
    %148 = arith.truncf %145 : vector<56x56xf32> to vector<56x56xbf16>
    %149 = arith.truncf %134 : vector<56x16xf32> to vector<56x16xbf16>
    %cst_54 = arith.constant dense<0.000000e+00> : vector<56x16xf32>
    %150 = tpu.matmul %148, %149, %cst_54 {dimension_numbers = #tpu.dot_dimension_numbers<[1], [0], [0], [1], [0, 0, 1, 1], [], []>} : vector<56x56xbf16>, vector<56x16xbf16>, vector<56x16xf32> -> vector<56x16xf32>
    %151 = tpu.reciprocal %147 {approx = true} : vector<56x1xf32> -> vector<56x1xf32>
    %152 = vector.broadcast %151 : vector<56x1xf32> to vector<56x16xf32>
    %153 = arith.mulf %150, %152 : vector<56x16xf32>
    %154 = tpu.concatenate %87, %109, %131, %153 in 1 : vector<56x16xf32>, vector<56x16xf32>, vector<56x16xf32>, vector<56x16xf32> -> vector<56x64xf32>
    %c0_55 = arith.constant 0 : index
    %c0_56 = arith.constant 0 : index
    %c0_57 = arith.constant 0 : index
    %155 = vector.load %arg10[%c0_55, %c0_56, %c0_57] : memref<2x64x64xbf16, #tpu.memory_space<vmem>>, vector<1x64x64xbf16>
    %156 = vector.shape_cast %155 : vector<1x64x64xbf16> to vector<64x64xbf16>
    %157 = arith.truncf %154 : vector<56x64xf32> to vector<56x64xbf16>
    %cst_58 = arith.constant dense<0.000000e+00> : vector<56x64xf32>
    %158 = tpu.matmul %157, %156, %cst_58 {dimension_numbers = #tpu.dot_dimension_numbers<[1], [0], [0], [1], [0, 0, 1, 1], [], []>} : vector<56x64xbf16>, vector<64x64xbf16>, vector<56x64xf32> -> vector<56x64xf32>
    %159 = arith.addf %27, %158 : vector<56x64xf32>
    %c0_59 = arith.constant 0 : index
    %c0_60 = arith.constant 0 : index
    %c0_61 = arith.constant 0 : index
    %160 = vector.load %arg11[%c0_59, %c0_60, %c0_61] : memref<2x1x64xf32, #tpu.memory_space<vmem>>, vector<1x1x64xf32>
    %161 = vector.shape_cast %160 : vector<1x1x64xf32> to vector<1x64xf32>
    %162 = vector.broadcast %161 : vector<1x64xf32> to vector<56x64xf32>
    %163 = arith.addf %159, %162 : vector<56x64xf32>
    %c0_62 = arith.constant 0 : index
    %c0_63 = arith.constant 0 : index
    %c0_64 = arith.constant 0 : index
    %164 = vector.load %arg12[%c0_62, %c0_63, %c0_64] : memref<2x1x64xf32, #tpu.memory_space<vmem>>, vector<1x1x64xf32>
    %165 = vector.shape_cast %164 : vector<1x1x64xf32> to vector<1x64xf32>
    %c0_65 = arith.constant 0 : index
    %c0_66 = arith.constant 0 : index
    %c0_67 = arith.constant 0 : index
    %166 = vector.load %arg13[%c0_65, %c0_66, %c0_67] : memref<2x1x64xf32, #tpu.memory_space<vmem>>, vector<1x1x64xf32>
    %167 = vector.shape_cast %166 : vector<1x1x64xf32> to vector<1x64xf32>
    %cst_68 = arith.constant dense<0.000000e+00> : vector<56xf32>
    %168 = vector.multi_reduction <add>, %163, %cst_68 [1] : vector<56x64xf32> to vector<56xf32>
    %169 = vector.shape_cast %168 : vector<56xf32> to vector<56x1xf32>
    %cst_69 = arith.constant 6.400000e+01 : f32
    %170 = vector.broadcast %cst_69 : f32 to vector<56x1xf32>
    %171 = arith.divf %169, %170 : vector<56x1xf32>
    %172 = vector.broadcast %171 : vector<56x1xf32> to vector<56x64xf32>
    %173 = arith.subf %163, %172 : vector<56x64xf32>
    %174 = arith.mulf %173, %173 : vector<56x64xf32>
    %cst_70 = arith.constant dense<0.000000e+00> : vector<56xf32>
    %175 = vector.multi_reduction <add>, %174, %cst_70 [1] : vector<56x64xf32> to vector<56xf32>
    %176 = vector.shape_cast %175 : vector<56xf32> to vector<56x1xf32>
    %cst_71 = arith.constant 6.400000e+01 : f32
    %177 = vector.broadcast %cst_71 : f32 to vector<56x1xf32>
    %178 = arith.divf %176, %177 : vector<56x1xf32>
    %cst_72 = arith.constant 9.99999974E-6 : f32
    %179 = vector.broadcast %cst_72 : f32 to vector<56x1xf32>
    %180 = arith.addf %178, %179 : vector<56x1xf32>
    %181 = math.rsqrt %180 : vector<56x1xf32>
    %182 = vector.broadcast %181 : vector<56x1xf32> to vector<56x64xf32>
    %183 = arith.mulf %173, %182 : vector<56x64xf32>
    %184 = vector.broadcast %165 : vector<1x64xf32> to vector<56x64xf32>
    %185 = arith.mulf %183, %184 : vector<56x64xf32>
    %186 = vector.broadcast %167 : vector<1x64xf32> to vector<56x64xf32>
    %187 = arith.addf %185, %186 : vector<56x64xf32>
    %c0_73 = arith.constant 0 : index
    %c0_74 = arith.constant 0 : index
    %c0_75 = arith.constant 0 : index
    %188 = vector.load %arg14[%c0_73, %c0_74, %c0_75] : memref<2x64x256xbf16, #tpu.memory_space<vmem>>, vector<1x64x256xbf16>
    %189 = vector.shape_cast %188 : vector<1x64x256xbf16> to vector<64x256xbf16>
    %190 = arith.truncf %187 : vector<56x64xf32> to vector<56x64xbf16>
    %cst_76 = arith.constant dense<0.000000e+00> : vector<56x256xf32>
    %191 = tpu.matmul %190, %189, %cst_76 {dimension_numbers = #tpu.dot_dimension_numbers<[1], [0], [0], [1], [0, 0, 1, 1], [], []>} : vector<56x64xbf16>, vector<64x256xbf16>, vector<56x256xf32> -> vector<56x256xf32>
    %c0_77 = arith.constant 0 : index
    %c0_78 = arith.constant 0 : index
    %c0_79 = arith.constant 0 : index
    %192 = vector.load %arg15[%c0_77, %c0_78, %c0_79] : memref<2x1x256xf32, #tpu.memory_space<vmem>>, vector<1x1x256xf32>
    %193 = vector.shape_cast %192 : vector<1x1x256xf32> to vector<1x256xf32>
    %194 = vector.broadcast %193 : vector<1x256xf32> to vector<56x256xf32>
    %195 = arith.addf %191, %194 : vector<56x256xf32>
    %cst_80 = arith.constant 1.702000e+00 : f32
    %196 = vector.broadcast %cst_80 : f32 to vector<56x256xf32>
    %197 = arith.mulf %196, %195 : vector<56x256xf32>
    %198 = arith.negf %197 : vector<56x256xf32>
    %199 = math.exp %198 : vector<56x256xf32>
    %cst_81 = arith.constant 1.000000e+00 : f32
    %200 = vector.broadcast %cst_81 : f32 to vector<56x256xf32>
    %201 = arith.addf %200, %199 : vector<56x256xf32>
    %202 = arith.divf %200, %201 : vector<56x256xf32>
    %203 = arith.mulf %195, %202 : vector<56x256xf32>
    %c0_82 = arith.constant 0 : index
    %c0_83 = arith.constant 0 : index
    %c0_84 = arith.constant 0 : index
    %204 = vector.load %arg16[%c0_82, %c0_83, %c0_84] : memref<2x256x64xbf16, #tpu.memory_space<vmem>>, vector<1x256x64xbf16>
    %205 = vector.shape_cast %204 : vector<1x256x64xbf16> to vector<256x64xbf16>
    %206 = arith.truncf %203 : vector<56x256xf32> to vector<56x256xbf16>
    %cst_85 = arith.constant dense<0.000000e+00> : vector<56x64xf32>
    %207 = tpu.matmul %206, %205, %cst_85 {dimension_numbers = #tpu.dot_dimension_numbers<[1], [0], [0], [1], [0, 0, 1, 1], [], []>} : vector<56x256xbf16>, vector<256x64xbf16>, vector<56x64xf32> -> vector<56x64xf32>
    %208 = arith.addf %163, %207 : vector<56x64xf32>
    %c0_86 = arith.constant 0 : index
    %c0_87 = arith.constant 0 : index
    %c0_88 = arith.constant 0 : index
    %209 = vector.load %arg17[%c0_86, %c0_87, %c0_88] : memref<2x1x64xf32, #tpu.memory_space<vmem>>, vector<1x1x64xf32>
    %210 = vector.shape_cast %209 : vector<1x1x64xf32> to vector<1x64xf32>
    %211 = vector.broadcast %210 : vector<1x64xf32> to vector<56x64xf32>
    %212 = arith.addf %208, %211 : vector<56x64xf32>
    %c1 = arith.constant 1 : index
    %c0_89 = arith.constant 0 : index
    %c0_90 = arith.constant 0 : index
    %213 = vector.load %arg6[%c1, %c0_89, %c0_90] : memref<2x1x64xf32, #tpu.memory_space<vmem>>, vector<1x1x64xf32>
    %214 = vector.shape_cast %213 : vector<1x1x64xf32> to vector<1x64xf32>
    %c1_91 = arith.constant 1 : index
    %c0_92 = arith.constant 0 : index
    %c0_93 = arith.constant 0 : index
    %215 = vector.load %arg7[%c1_91, %c0_92, %c0_93] : memref<2x1x64xf32, #tpu.memory_space<vmem>>, vector<1x1x64xf32>
    %216 = vector.shape_cast %215 : vector<1x1x64xf32> to vector<1x64xf32>
    %cst_94 = arith.constant dense<0.000000e+00> : vector<56xf32>
    %217 = vector.multi_reduction <add>, %212, %cst_94 [1] : vector<56x64xf32> to vector<56xf32>
    %218 = vector.shape_cast %217 : vector<56xf32> to vector<56x1xf32>
    %cst_95 = arith.constant 6.400000e+01 : f32
    %219 = vector.broadcast %cst_95 : f32 to vector<56x1xf32>
    %220 = arith.divf %218, %219 : vector<56x1xf32>
    %221 = vector.broadcast %220 : vector<56x1xf32> to vector<56x64xf32>
    %222 = arith.subf %212, %221 : vector<56x64xf32>
    %223 = arith.mulf %222, %222 : vector<56x64xf32>
    %cst_96 = arith.constant dense<0.000000e+00> : vector<56xf32>
    %224 = vector.multi_reduction <add>, %223, %cst_96 [1] : vector<56x64xf32> to vector<56xf32>
    %225 = vector.shape_cast %224 : vector<56xf32> to vector<56x1xf32>
    %cst_97 = arith.constant 6.400000e+01 : f32
    %226 = vector.broadcast %cst_97 : f32 to vector<56x1xf32>
    %227 = arith.divf %225, %226 : vector<56x1xf32>
    %cst_98 = arith.constant 9.99999974E-6 : f32
    %228 = vector.broadcast %cst_98 : f32 to vector<56x1xf32>
    %229 = arith.addf %227, %228 : vector<56x1xf32>
    %230 = math.rsqrt %229 : vector<56x1xf32>
    %231 = vector.broadcast %230 : vector<56x1xf32> to vector<56x64xf32>
    %232 = arith.mulf %222, %231 : vector<56x64xf32>
    %233 = vector.broadcast %214 : vector<1x64xf32> to vector<56x64xf32>
    %234 = arith.mulf %232, %233 : vector<56x64xf32>
    %235 = vector.broadcast %216 : vector<1x64xf32> to vector<56x64xf32>
    %236 = arith.addf %234, %235 : vector<56x64xf32>
    %c1_99 = arith.constant 1 : index
    %c0_100 = arith.constant 0 : index
    %c0_101 = arith.constant 0 : index
    %237 = vector.load %arg8[%c1_99, %c0_100, %c0_101] : memref<2x64x192xbf16, #tpu.memory_space<vmem>>, vector<1x64x192xbf16>
    %238 = vector.shape_cast %237 : vector<1x64x192xbf16> to vector<64x192xbf16>
    %239 = arith.truncf %236 : vector<56x64xf32> to vector<56x64xbf16>
    %cst_102 = arith.constant dense<0.000000e+00> : vector<56x192xf32>
    %240 = tpu.matmul %239, %238, %cst_102 {dimension_numbers = #tpu.dot_dimension_numbers<[1], [0], [0], [1], [0, 0, 1, 1], [], []>} : vector<56x64xbf16>, vector<64x192xbf16>, vector<56x192xf32> -> vector<56x192xf32>
    %c1_103 = arith.constant 1 : index
    %c0_104 = arith.constant 0 : index
    %c0_105 = arith.constant 0 : index
    %241 = vector.load %arg9[%c1_103, %c0_104, %c0_105] : memref<2x1x192xf32, #tpu.memory_space<vmem>>, vector<1x1x192xf32>
    %242 = vector.shape_cast %241 : vector<1x1x192xf32> to vector<1x192xf32>
    %243 = vector.broadcast %242 : vector<1x192xf32> to vector<56x192xf32>
    %244 = arith.addf %240, %243 : vector<56x192xf32>
    %245 = vector.extract_strided_slice %244 {offsets = [0, 0], sizes = [56, 16], strides = [1, 1]} : vector<56x192xf32> to vector<56x16xf32>
    %246 = vector.extract_strided_slice %244 {offsets = [0, 64], sizes = [56, 16], strides = [1, 1]} : vector<56x192xf32> to vector<56x16xf32>
    %247 = vector.extract_strided_slice %244 {offsets = [0, 128], sizes = [56, 16], strides = [1, 1]} : vector<56x192xf32> to vector<56x16xf32>
    %248 = arith.truncf %245 : vector<56x16xf32> to vector<56x16xbf16>
    %249 = arith.truncf %246 : vector<56x16xf32> to vector<56x16xbf16>
    %cst_106 = arith.constant dense<0.000000e+00> : vector<56x56xf32>
    %250 = tpu.matmul %248, %249, %cst_106 {dimension_numbers = #tpu.dot_dimension_numbers<[1], [1], [0], [0], [0, 0, 1, 0], [], []>} : vector<56x16xbf16>, vector<56x16xbf16>, vector<56x56xf32> -> vector<56x56xf32>
    %cst_107 = arith.constant 2.500000e-01 : f32
    %251 = vector.broadcast %cst_107 : f32 to vector<56x56xf32>
    %252 = arith.mulf %250, %251 : vector<56x56xf32>
    %253 = arith.addf %252, %33 : vector<56x56xf32>
    %cst_108 = arith.constant dense<0xFF800000> : vector<56xf32>
    %254 = vector.multi_reduction <maximumf>, %253, %cst_108 [1] : vector<56x56xf32> to vector<56xf32>
    %255 = vector.shape_cast %254 : vector<56xf32> to vector<56x1xf32>
    %256 = vector.broadcast %255 : vector<56x1xf32> to vector<56x56xf32>
    %257 = arith.subf %253, %256 : vector<56x56xf32>
    %258 = math.exp %257 : vector<56x56xf32>
    %cst_109 = arith.constant dense<0.000000e+00> : vector<56xf32>
    %259 = vector.multi_reduction <add>, %258, %cst_109 [1] : vector<56x56xf32> to vector<56xf32>
    %260 = vector.shape_cast %259 : vector<56xf32> to vector<56x1xf32>
    %261 = arith.truncf %258 : vector<56x56xf32> to vector<56x56xbf16>
    %262 = arith.truncf %247 : vector<56x16xf32> to vector<56x16xbf16>
    %cst_110 = arith.constant dense<0.000000e+00> : vector<56x16xf32>
    %263 = tpu.matmul %261, %262, %cst_110 {dimension_numbers = #tpu.dot_dimension_numbers<[1], [0], [0], [1], [0, 0, 1, 1], [], []>} : vector<56x56xbf16>, vector<56x16xbf16>, vector<56x16xf32> -> vector<56x16xf32>
    %264 = tpu.reciprocal %260 {approx = true} : vector<56x1xf32> -> vector<56x1xf32>
    %265 = vector.broadcast %264 : vector<56x1xf32> to vector<56x16xf32>
    %266 = arith.mulf %263, %265 : vector<56x16xf32>
    %267 = vector.extract_strided_slice %244 {offsets = [0, 16], sizes = [56, 16], strides = [1, 1]} : vector<56x192xf32> to vector<56x16xf32>
    %268 = vector.extract_strided_slice %244 {offsets = [0, 80], sizes = [56, 16], strides = [1, 1]} : vector<56x192xf32> to vector<56x16xf32>
    %269 = vector.extract_strided_slice %244 {offsets = [0, 144], sizes = [56, 16], strides = [1, 1]} : vector<56x192xf32> to vector<56x16xf32>
    %270 = arith.truncf %267 : vector<56x16xf32> to vector<56x16xbf16>
    %271 = arith.truncf %268 : vector<56x16xf32> to vector<56x16xbf16>
    %cst_111 = arith.constant dense<0.000000e+00> : vector<56x56xf32>
    %272 = tpu.matmul %270, %271, %cst_111 {dimension_numbers = #tpu.dot_dimension_numbers<[1], [1], [0], [0], [0, 0, 1, 0], [], []>} : vector<56x16xbf16>, vector<56x16xbf16>, vector<56x56xf32> -> vector<56x56xf32>
    %cst_112 = arith.constant 2.500000e-01 : f32
    %273 = vector.broadcast %cst_112 : f32 to vector<56x56xf32>
    %274 = arith.mulf %272, %273 : vector<56x56xf32>
    %275 = arith.addf %274, %33 : vector<56x56xf32>
    %cst_113 = arith.constant dense<0xFF800000> : vector<56xf32>
    %276 = vector.multi_reduction <maximumf>, %275, %cst_113 [1] : vector<56x56xf32> to vector<56xf32>
    %277 = vector.shape_cast %276 : vector<56xf32> to vector<56x1xf32>
    %278 = vector.broadcast %277 : vector<56x1xf32> to vector<56x56xf32>
    %279 = arith.subf %275, %278 : vector<56x56xf32>
    %280 = math.exp %279 : vector<56x56xf32>
    %cst_114 = arith.constant dense<0.000000e+00> : vector<56xf32>
    %281 = vector.multi_reduction <add>, %280, %cst_114 [1] : vector<56x56xf32> to vector<56xf32>
    %282 = vector.shape_cast %281 : vector<56xf32> to vector<56x1xf32>
    %283 = arith.truncf %280 : vector<56x56xf32> to vector<56x56xbf16>
    %284 = arith.truncf %269 : vector<56x16xf32> to vector<56x16xbf16>
    %cst_115 = arith.constant dense<0.000000e+00> : vector<56x16xf32>
    %285 = tpu.matmul %283, %284, %cst_115 {dimension_numbers = #tpu.dot_dimension_numbers<[1], [0], [0], [1], [0, 0, 1, 1], [], []>} : vector<56x56xbf16>, vector<56x16xbf16>, vector<56x16xf32> -> vector<56x16xf32>
    %286 = tpu.reciprocal %282 {approx = true} : vector<56x1xf32> -> vector<56x1xf32>
    %287 = vector.broadcast %286 : vector<56x1xf32> to vector<56x16xf32>
    %288 = arith.mulf %285, %287 : vector<56x16xf32>
    %289 = vector.extract_strided_slice %244 {offsets = [0, 32], sizes = [56, 16], strides = [1, 1]} : vector<56x192xf32> to vector<56x16xf32>
    %290 = vector.extract_strided_slice %244 {offsets = [0, 96], sizes = [56, 16], strides = [1, 1]} : vector<56x192xf32> to vector<56x16xf32>
    %291 = vector.extract_strided_slice %244 {offsets = [0, 160], sizes = [56, 16], strides = [1, 1]} : vector<56x192xf32> to vector<56x16xf32>
    %292 = arith.truncf %289 : vector<56x16xf32> to vector<56x16xbf16>
    %293 = arith.truncf %290 : vector<56x16xf32> to vector<56x16xbf16>
    %cst_116 = arith.constant dense<0.000000e+00> : vector<56x56xf32>
    %294 = tpu.matmul %292, %293, %cst_116 {dimension_numbers = #tpu.dot_dimension_numbers<[1], [1], [0], [0], [0, 0, 1, 0], [], []>} : vector<56x16xbf16>, vector<56x16xbf16>, vector<56x56xf32> -> vector<56x56xf32>
    %cst_117 = arith.constant 2.500000e-01 : f32
    %295 = vector.broadcast %cst_117 : f32 to vector<56x56xf32>
    %296 = arith.mulf %294, %295 : vector<56x56xf32>
    %297 = arith.addf %296, %33 : vector<56x56xf32>
    %cst_118 = arith.constant dense<0xFF800000> : vector<56xf32>
    %298 = vector.multi_reduction <maximumf>, %297, %cst_118 [1] : vector<56x56xf32> to vector<56xf32>
    %299 = vector.shape_cast %298 : vector<56xf32> to vector<56x1xf32>
    %300 = vector.broadcast %299 : vector<56x1xf32> to vector<56x56xf32>
    %301 = arith.subf %297, %300 : vector<56x56xf32>
    %302 = math.exp %301 : vector<56x56xf32>
    %cst_119 = arith.constant dense<0.000000e+00> : vector<56xf32>
    %303 = vector.multi_reduction <add>, %302, %cst_119 [1] : vector<56x56xf32> to vector<56xf32>
    %304 = vector.shape_cast %303 : vector<56xf32> to vector<56x1xf32>
    %305 = arith.truncf %302 : vector<56x56xf32> to vector<56x56xbf16>
    %306 = arith.truncf %291 : vector<56x16xf32> to vector<56x16xbf16>
    %cst_120 = arith.constant dense<0.000000e+00> : vector<56x16xf32>
    %307 = tpu.matmul %305, %306, %cst_120 {dimension_numbers = #tpu.dot_dimension_numbers<[1], [0], [0], [1], [0, 0, 1, 1], [], []>} : vector<56x56xbf16>, vector<56x16xbf16>, vector<56x16xf32> -> vector<56x16xf32>
    %308 = tpu.reciprocal %304 {approx = true} : vector<56x1xf32> -> vector<56x1xf32>
    %309 = vector.broadcast %308 : vector<56x1xf32> to vector<56x16xf32>
    %310 = arith.mulf %307, %309 : vector<56x16xf32>
    %311 = vector.extract_strided_slice %244 {offsets = [0, 48], sizes = [56, 16], strides = [1, 1]} : vector<56x192xf32> to vector<56x16xf32>
    %312 = vector.extract_strided_slice %244 {offsets = [0, 112], sizes = [56, 16], strides = [1, 1]} : vector<56x192xf32> to vector<56x16xf32>
    %313 = vector.extract_strided_slice %244 {offsets = [0, 176], sizes = [56, 16], strides = [1, 1]} : vector<56x192xf32> to vector<56x16xf32>
    %314 = arith.truncf %311 : vector<56x16xf32> to vector<56x16xbf16>
    %315 = arith.truncf %312 : vector<56x16xf32> to vector<56x16xbf16>
    %cst_121 = arith.constant dense<0.000000e+00> : vector<56x56xf32>
    %316 = tpu.matmul %314, %315, %cst_121 {dimension_numbers = #tpu.dot_dimension_numbers<[1], [1], [0], [0], [0, 0, 1, 0], [], []>} : vector<56x16xbf16>, vector<56x16xbf16>, vector<56x56xf32> -> vector<56x56xf32>
    %cst_122 = arith.constant 2.500000e-01 : f32
    %317 = vector.broadcast %cst_122 : f32 to vector<56x56xf32>
    %318 = arith.mulf %316, %317 : vector<56x56xf32>
    %319 = arith.addf %318, %33 : vector<56x56xf32>
    %cst_123 = arith.constant dense<0xFF800000> : vector<56xf32>
    %320 = vector.multi_reduction <maximumf>, %319, %cst_123 [1] : vector<56x56xf32> to vector<56xf32>
    %321 = vector.shape_cast %320 : vector<56xf32> to vector<56x1xf32>
    %322 = vector.broadcast %321 : vector<56x1xf32> to vector<56x56xf32>
    %323 = arith.subf %319, %322 : vector<56x56xf32>
    %324 = math.exp %323 : vector<56x56xf32>
    %cst_124 = arith.constant dense<0.000000e+00> : vector<56xf32>
    %325 = vector.multi_reduction <add>, %324, %cst_124 [1] : vector<56x56xf32> to vector<56xf32>
    %326 = vector.shape_cast %325 : vector<56xf32> to vector<56x1xf32>
    %327 = arith.truncf %324 : vector<56x56xf32> to vector<56x56xbf16>
    %328 = arith.truncf %313 : vector<56x16xf32> to vector<56x16xbf16>
    %cst_125 = arith.constant dense<0.000000e+00> : vector<56x16xf32>
    %329 = tpu.matmul %327, %328, %cst_125 {dimension_numbers = #tpu.dot_dimension_numbers<[1], [0], [0], [1], [0, 0, 1, 1], [], []>} : vector<56x56xbf16>, vector<56x16xbf16>, vector<56x16xf32> -> vector<56x16xf32>
    %330 = tpu.reciprocal %326 {approx = true} : vector<56x1xf32> -> vector<56x1xf32>
    %331 = vector.broadcast %330 : vector<56x1xf32> to vector<56x16xf32>
    %332 = arith.mulf %329, %331 : vector<56x16xf32>
    %333 = tpu.concatenate %266, %288, %310, %332 in 1 : vector<56x16xf32>, vector<56x16xf32>, vector<56x16xf32>, vector<56x16xf32> -> vector<56x64xf32>
    %c1_126 = arith.constant 1 : index
    %c0_127 = arith.constant 0 : index
    %c0_128 = arith.constant 0 : index
    %334 = vector.load %arg10[%c1_126, %c0_127, %c0_128] : memref<2x64x64xbf16, #tpu.memory_space<vmem>>, vector<1x64x64xbf16>
    %335 = vector.shape_cast %334 : vector<1x64x64xbf16> to vector<64x64xbf16>
    %336 = arith.truncf %333 : vector<56x64xf32> to vector<56x64xbf16>
    %cst_129 = arith.constant dense<0.000000e+00> : vector<56x64xf32>
    %337 = tpu.matmul %336, %335, %cst_129 {dimension_numbers = #tpu.dot_dimension_numbers<[1], [0], [0], [1], [0, 0, 1, 1], [], []>} : vector<56x64xbf16>, vector<64x64xbf16>, vector<56x64xf32> -> vector<56x64xf32>
    %338 = arith.addf %212, %337 : vector<56x64xf32>
    %c1_130 = arith.constant 1 : index
    %c0_131 = arith.constant 0 : index
    %c0_132 = arith.constant 0 : index
    %339 = vector.load %arg11[%c1_130, %c0_131, %c0_132] : memref<2x1x64xf32, #tpu.memory_space<vmem>>, vector<1x1x64xf32>
    %340 = vector.shape_cast %339 : vector<1x1x64xf32> to vector<1x64xf32>
    %341 = vector.broadcast %340 : vector<1x64xf32> to vector<56x64xf32>
    %342 = arith.addf %338, %341 : vector<56x64xf32>
    %c1_133 = arith.constant 1 : index
    %c0_134 = arith.constant 0 : index
    %c0_135 = arith.constant 0 : index
    %343 = vector.load %arg12[%c1_133, %c0_134, %c0_135] : memref<2x1x64xf32, #tpu.memory_space<vmem>>, vector<1x1x64xf32>
    %344 = vector.shape_cast %343 : vector<1x1x64xf32> to vector<1x64xf32>
    %c1_136 = arith.constant 1 : index
    %c0_137 = arith.constant 0 : index
    %c0_138 = arith.constant 0 : index
    %345 = vector.load %arg13[%c1_136, %c0_137, %c0_138] : memref<2x1x64xf32, #tpu.memory_space<vmem>>, vector<1x1x64xf32>
    %346 = vector.shape_cast %345 : vector<1x1x64xf32> to vector<1x64xf32>
    %cst_139 = arith.constant dense<0.000000e+00> : vector<56xf32>
    %347 = vector.multi_reduction <add>, %342, %cst_139 [1] : vector<56x64xf32> to vector<56xf32>
    %348 = vector.shape_cast %347 : vector<56xf32> to vector<56x1xf32>
    %cst_140 = arith.constant 6.400000e+01 : f32
    %349 = vector.broadcast %cst_140 : f32 to vector<56x1xf32>
    %350 = arith.divf %348, %349 : vector<56x1xf32>
    %351 = vector.broadcast %350 : vector<56x1xf32> to vector<56x64xf32>
    %352 = arith.subf %342, %351 : vector<56x64xf32>
    %353 = arith.mulf %352, %352 : vector<56x64xf32>
    %cst_141 = arith.constant dense<0.000000e+00> : vector<56xf32>
    %354 = vector.multi_reduction <add>, %353, %cst_141 [1] : vector<56x64xf32> to vector<56xf32>
    %355 = vector.shape_cast %354 : vector<56xf32> to vector<56x1xf32>
    %cst_142 = arith.constant 6.400000e+01 : f32
    %356 = vector.broadcast %cst_142 : f32 to vector<56x1xf32>
    %357 = arith.divf %355, %356 : vector<56x1xf32>
    %cst_143 = arith.constant 9.99999974E-6 : f32
    %358 = vector.broadcast %cst_143 : f32 to vector<56x1xf32>
    %359 = arith.addf %357, %358 : vector<56x1xf32>
    %360 = math.rsqrt %359 : vector<56x1xf32>
    %361 = vector.broadcast %360 : vector<56x1xf32> to vector<56x64xf32>
    %362 = arith.mulf %352, %361 : vector<56x64xf32>
    %363 = vector.broadcast %344 : vector<1x64xf32> to vector<56x64xf32>
    %364 = arith.mulf %362, %363 : vector<56x64xf32>
    %365 = vector.broadcast %346 : vector<1x64xf32> to vector<56x64xf32>
    %366 = arith.addf %364, %365 : vector<56x64xf32>
    %c1_144 = arith.constant 1 : index
    %c0_145 = arith.constant 0 : index
    %c0_146 = arith.constant 0 : index
    %367 = vector.load %arg14[%c1_144, %c0_145, %c0_146] : memref<2x64x256xbf16, #tpu.memory_space<vmem>>, vector<1x64x256xbf16>
    %368 = vector.shape_cast %367 : vector<1x64x256xbf16> to vector<64x256xbf16>
    %369 = arith.truncf %366 : vector<56x64xf32> to vector<56x64xbf16>
    %cst_147 = arith.constant dense<0.000000e+00> : vector<56x256xf32>
    %370 = tpu.matmul %369, %368, %cst_147 {dimension_numbers = #tpu.dot_dimension_numbers<[1], [0], [0], [1], [0, 0, 1, 1], [], []>} : vector<56x64xbf16>, vector<64x256xbf16>, vector<56x256xf32> -> vector<56x256xf32>
    %c1_148 = arith.constant 1 : index
    %c0_149 = arith.constant 0 : index
    %c0_150 = arith.constant 0 : index
    %371 = vector.load %arg15[%c1_148, %c0_149, %c0_150] : memref<2x1x256xf32, #tpu.memory_space<vmem>>, vector<1x1x256xf32>
    %372 = vector.shape_cast %371 : vector<1x1x256xf32> to vector<1x256xf32>
    %373 = vector.broadcast %372 : vector<1x256xf32> to vector<56x256xf32>
    %374 = arith.addf %370, %373 : vector<56x256xf32>
    %cst_151 = arith.constant 1.702000e+00 : f32
    %375 = vector.broadcast %cst_151 : f32 to vector<56x256xf32>
    %376 = arith.mulf %375, %374 : vector<56x256xf32>
    %377 = arith.negf %376 : vector<56x256xf32>
    %378 = math.exp %377 : vector<56x256xf32>
    %cst_152 = arith.constant 1.000000e+00 : f32
    %379 = vector.broadcast %cst_152 : f32 to vector<56x256xf32>
    %380 = arith.addf %379, %378 : vector<56x256xf32>
    %381 = arith.divf %379, %380 : vector<56x256xf32>
    %382 = arith.mulf %374, %381 : vector<56x256xf32>
    %c1_153 = arith.constant 1 : index
    %c0_154 = arith.constant 0 : index
    %c0_155 = arith.constant 0 : index
    %383 = vector.load %arg16[%c1_153, %c0_154, %c0_155] : memref<2x256x64xbf16, #tpu.memory_space<vmem>>, vector<1x256x64xbf16>
    %384 = vector.shape_cast %383 : vector<1x256x64xbf16> to vector<256x64xbf16>
    %385 = arith.truncf %382 : vector<56x256xf32> to vector<56x256xbf16>
    %cst_156 = arith.constant dense<0.000000e+00> : vector<56x64xf32>
    %386 = tpu.matmul %385, %384, %cst_156 {dimension_numbers = #tpu.dot_dimension_numbers<[1], [0], [0], [1], [0, 0, 1, 1], [], []>} : vector<56x256xbf16>, vector<256x64xbf16>, vector<56x64xf32> -> vector<56x64xf32>
    %387 = arith.addf %342, %386 : vector<56x64xf32>
    %c1_157 = arith.constant 1 : index
    %c0_158 = arith.constant 0 : index
    %c0_159 = arith.constant 0 : index
    %388 = vector.load %arg17[%c1_157, %c0_158, %c0_159] : memref<2x1x64xf32, #tpu.memory_space<vmem>>, vector<1x1x64xf32>
    %389 = vector.shape_cast %388 : vector<1x1x64xf32> to vector<1x64xf32>
    %390 = vector.broadcast %389 : vector<1x64xf32> to vector<56x64xf32>
    %391 = arith.addf %387, %390 : vector<56x64xf32>
    %392 = vector.extract_strided_slice %391 {offsets = [0, 0], sizes = [1, 64], strides = [1, 1]} : vector<56x64xf32> to vector<1x64xf32>
    %c0_160 = arith.constant 0 : index
    %c0_161 = arith.constant 0 : index
    %393 = vector.load %arg18[%c0_160, %c0_161] : memref<1x64xf32, #tpu.memory_space<vmem>>, vector<1x64xf32>
    %c0_162 = arith.constant 0 : index
    %c0_163 = arith.constant 0 : index
    %394 = vector.load %arg19[%c0_162, %c0_163] : memref<1x64xf32, #tpu.memory_space<vmem>>, vector<1x64xf32>
    %cst_164 = arith.constant dense<0.000000e+00> : vector<1xf32>
    %395 = vector.multi_reduction <add>, %392, %cst_164 [1] : vector<1x64xf32> to vector<1xf32>
    %396 = vector.shape_cast %395 : vector<1xf32> to vector<1x1xf32>
    %cst_165 = arith.constant 6.400000e+01 : f32
    %397 = vector.broadcast %cst_165 : f32 to vector<1x1xf32>
    %398 = arith.divf %396, %397 : vector<1x1xf32>
    %399 = vector.broadcast %398 : vector<1x1xf32> to vector<1x64xf32>
    %400 = arith.subf %392, %399 : vector<1x64xf32>
    %401 = arith.mulf %400, %400 : vector<1x64xf32>
    %cst_166 = arith.constant dense<0.000000e+00> : vector<1xf32>
    %402 = vector.multi_reduction <add>, %401, %cst_166 [1] : vector<1x64xf32> to vector<1xf32>
    %403 = vector.shape_cast %402 : vector<1xf32> to vector<1x1xf32>
    %cst_167 = arith.constant 6.400000e+01 : f32
    %404 = vector.broadcast %cst_167 : f32 to vector<1x1xf32>
    %405 = arith.divf %403, %404 : vector<1x1xf32>
    %cst_168 = arith.constant 9.99999974E-6 : f32
    %406 = vector.broadcast %cst_168 : f32 to vector<1x1xf32>
    %407 = arith.addf %405, %406 : vector<1x1xf32>
    %408 = math.rsqrt %407 : vector<1x1xf32>
    %409 = vector.broadcast %408 : vector<1x1xf32> to vector<1x64xf32>
    %410 = arith.mulf %400, %409 : vector<1x64xf32>
    %411 = arith.mulf %410, %393 : vector<1x64xf32>
    %412 = arith.addf %411, %394 : vector<1x64xf32>
    %c0_169 = arith.constant 0 : index
    %c0_170 = arith.constant 0 : index
    %413 = vector.load %arg20[%c0_169, %c0_170] : memref<64x64xbf16, #tpu.memory_space<vmem>>, vector<64x64xbf16>
    %414 = arith.truncf %412 : vector<1x64xf32> to vector<1x64xbf16>
    %cst_171 = arith.constant dense<0.000000e+00> : vector<1x64xf32>
    %415 = tpu.matmul %414, %413, %cst_171 {dimension_numbers = #tpu.dot_dimension_numbers<[1], [0], [0], [1], [0, 0, 1, 1], [], []>} : vector<1x64xbf16>, vector<64x64xbf16>, vector<1x64xf32> -> vector<1x64xf32>
    %c0_172 = arith.constant 0 : index
    %c0_173 = arith.constant 0 : index
    %c0_174 = arith.constant 0 : index
    %416 = vector.load %arg21[%c0_172, %c0_173, %c0_174] : memref<1x1x64xf32, #tpu.memory_space<vmem>>, vector<1x1x64xf32>
    %417 = vector.shape_cast %416 : vector<1x1x64xf32> to vector<1x64xf32>
    %418 = vector.shape_cast %415 : vector<1x64xf32> to vector<1x1x64xf32>
    tpu.vector_store %arg21[%c0_172, %c0_173, %c0_174], %418 {strides = array<i32>} : memref<1x1x64xf32, #tpu.memory_space<vmem>>, vector<1x1x64xf32>,
    return
  }
  func.func @transform_0(%arg0: i32) -> (i32, i32, i32) {
    %c0_i32 = arith.constant 0 : i32
    %c0_i32_0 = arith.constant 0 : i32
    %c0_i32_1 = arith.constant 0 : i32
    return %arg0, %c0_i32, %c0_i32_0 : i32, i32, i32
  }
  func.func @transform_1(%arg0: i32) -> (i32, i32) {
    %c0_i32 = arith.constant 0 : i32
    %c0_i32_0 = arith.constant 0 : i32
    %c0_i32_1 = arith.constant 0 : i32
    return %c0_i32, %c0_i32_0 : i32, i32
  }
  func.func @transform_2(%arg0: i32) -> (i32, i32) {
    %c0_i32 = arith.constant 0 : i32
    %c0_i32_0 = arith.constant 0 : i32
    %c0_i32_1 = arith.constant 0 : i32
    return %c0_i32, %c0_i32_0 : i32, i32
  }
  func.func @transform_3(%arg0: i32) -> (i32, i32) {
    %c0_i32 = arith.constant 0 : i32
    %c0_i32_0 = arith.constant 0 : i32
    %c0_i32_1 = arith.constant 0 : i32
    return %c0_i32, %c0_i32_0 : i32, i32
  }
  func.func @transform_4(%arg0: i32) -> (i32, i32) {
    %c0_i32 = arith.constant 0 : i32
    %c0_i32_0 = arith.constant 0 : i32
    %c0_i32_1 = arith.constant 0 : i32
    return %c0_i32, %c0_i32_0 : i32, i32
  }
  func.func @transform_5(%arg0: i32) -> (i32, i32, i32) {
    %c0_i32 = arith.constant 0 : i32
    %c0_i32_0 = arith.constant 0 : i32
    %c0_i32_1 = arith.constant 0 : i32
    %c0_i32_2 = arith.constant 0 : i32
    return %c0_i32, %c0_i32_0, %c0_i32_1 : i32, i32, i32
  }
  func.func @transform_6(%arg0: i32) -> (i32, i32, i32) {
    %c0_i32 = arith.constant 0 : i32
    %c0_i32_0 = arith.constant 0 : i32
    %c0_i32_1 = arith.constant 0 : i32
    %c0_i32_2 = arith.constant 0 : i32
    return %c0_i32, %c0_i32_0, %c0_i32_1 : i32, i32, i32
  }
  func.func @transform_7(%arg0: i32) -> (i32, i32, i32) {
    %c0_i32 = arith.constant 0 : i32
    %c0_i32_0 = arith.constant 0 : i32
    %c0_i32_1 = arith.constant 0 : i32
    %c0_i32_2 = arith.constant 0 : i32
    return %c0_i32, %c0_i32_0, %c0_i32_1 : i32, i32, i32
  }
  func.func @transform_8(%arg0: i32) -> (i32, i32, i32) {
    %c0_i32 = arith.constant 0 : i32
    %c0_i32_0 = arith.constant 0 : i32
    %c0_i32_1 = arith.constant 0 : i32
    %c0_i32_2 = arith.constant 0 : i32
    return %c0_i32, %c0_i32_0, %c0_i32_1 : i32, i32, i32
  }
  func.func @transform_9(%arg0: i32) -> (i32, i32, i32) {
    %c0_i32 = arith.constant 0 : i32
    %c0_i32_0 = arith.constant 0 : i32
    %c0_i32_1 = arith.constant 0 : i32
    %c0_i32_2 = arith.constant 0 : i32
    return %c0_i32, %c0_i32_0, %c0_i32_1 : i32, i32, i32
  }
  func.func @transform_10(%arg0: i32) -> (i32, i32, i32) {
    %c0_i32 = arith.constant 0 : i32
    %c0_i32_0 = arith.constant 0 : i32
    %c0_i32_1 = arith.constant 0 : i32
    %c0_i32_2 = arith.constant 0 : i32
    return %c0_i32, %c0_i32_0, %c0_i32_1 : i32, i32, i32
  }
  func.func @transform_11(%arg0: i32) -> (i32, i32, i32) {
    %c0_i32 = arith.constant 0 : i32
    %c0_i32_0 = arith.constant 0 : i32
    %c0_i32_1 = arith.constant 0 : i32
    %c0_i32_2 = arith.constant 0 : i32
    return %c0_i32, %c0_i32_0, %c0_i32_1 : i32, i32, i32
  }
  func.func @transform_12(%arg0: i32) -> (i32, i32, i32) {
    %c0_i32 = arith.constant 0 : i32
    %c0_i32_0 = arith.constant 0 : i32
    %c0_i32_1 = arith.constant 0 : i32
    %c0_i32_2 = arith.constant 0 : i32
    return %c0_i32, %c0_i32_0, %c0_i32_1 : i32, i32, i32
  }
  func.func @transform_13(%arg0: i32) -> (i32, i32, i32) {
    %c0_i32 = arith.constant 0 : i32
    %c0_i32_0 = arith.constant 0 : i32
    %c0_i32_1 = arith.constant 0 : i32
    %c0_i32_2 = arith.constant 0 : i32
    return %c0_i32, %c0_i32_0, %c0_i32_1 : i32, i32, i32
  }
  func.func @transform_14(%arg0: i32) -> (i32, i32, i32) {
    %c0_i32 = arith.constant 0 : i32
    %c0_i32_0 = arith.constant 0 : i32
    %c0_i32_1 = arith.constant 0 : i32
    %c0_i32_2 = arith.constant 0 : i32
    return %c0_i32, %c0_i32_0, %c0_i32_1 : i32, i32, i32
  }
  func.func @transform_15(%arg0: i32) -> (i32, i32, i32) {
    %c0_i32 = arith.constant 0 : i32
    %c0_i32_0 = arith.constant 0 : i32
    %c0_i32_1 = arith.constant 0 : i32
    %c0_i32_2 = arith.constant 0 : i32
    return %c0_i32, %c0_i32_0, %c0_i32_1 : i32, i32, i32
  }
  func.func @transform_16(%arg0: i32) -> (i32, i32, i32) {
    %c0_i32 = arith.constant 0 : i32
    %c0_i32_0 = arith.constant 0 : i32
    %c0_i32_1 = arith.constant 0 : i32
    %c0_i32_2 = arith.constant 0 : i32
    return %c0_i32, %c0_i32_0, %c0_i32_1 : i32, i32, i32
  }
  func.func @transform_17(%arg0: i32) -> (i32, i32) {
    %c0_i32 = arith.constant 0 : i32
    %c0_i32_0 = arith.constant 0 : i32
    %c0_i32_1 = arith.constant 0 : i32
    return %c0_i32, %c0_i32_0 : i32, i32
  }
  func.func @transform_18(%arg0: i32) -> (i32, i32) {
    %c0_i32 = arith.constant 0 : i32
    %c0_i32_0 = arith.constant 0 : i32
    %c0_i32_1 = arith.constant 0 : i32
    return %c0_i32, %c0_i32_0 : i32, i32
  }
  func.func @transform_19(%arg0: i32) -> (i32, i32) {
    %c0_i32 = arith.constant 0 : i32
    %c0_i32_0 = arith.constant 0 : i32
    %c0_i32_1 = arith.constant 0 : i32
    return %c0_i32, %c0_i32_0 : i32, i32
  }
  func.func @transform_20(%arg0: i32) -> (i32, i32, i32) {
    %c0_i32 = arith.constant 0 : i32
    %c0_i32_0 = arith.constant 0 : i32
    %c0_i32_1 = arith.constant 0 : i32
    return %arg0, %c0_i32, %c0_i32_0 : i32, i32, i32
  }
}

</mosaic_0001>

<bundles_post_ra>
// kernel: frozen_clip_image_embedder.2
= control target key start
LH: loop header
LB: loop body
LE: loop exit
PB: predicated region body
PF: predicated region fallthrough
CT: control target
= control target key end

     0   :  { %s2559_s0 = inlined_call_operand.hbm [shape: f32[3], index: 0, kind: input, shape index: {}]   ;;  %s2560_s1 = inlined_call_operand.hbm [shape: f32[3], index: 1, kind: input, shape index: {}]   ;;  %s2561_s2 = inlined_call_operand.hbm [shape: f32[224,16], index: 2, kind: input, shape index: {}]   ;;  %s2562_s3 = inlined_call_operand.hbm [shape: f32[2,3,16,16], index: 3, kind: input, shape index: {}]   ;;  %s2563_s4 = inlined_call_operand.hbm [shape: f32[16,224], index: 4, kind: input, shape index: {}]   ;;  %s2564_s5 = inlined_call_operand.vmem [shape: bf16[2,3,224,224], index: 5, kind: output, shape index: {}]  }
   0x1   :  { %2572 = sst [smem:[#allocation16_spill]] %s2559_s0 }
   0x2   :  { %2573 = sst [smem:[#allocation17_spill]] %s2560_s1 }
   0x3   :  { %2574 = sst [smem:[#allocation18_spill]] %s2561_s2 }
   0x4   :  { %10 = vsyncpa [#allocation4], 0 }
   0x5   :  { %11 = vsyncpa [#allocation6], 0 }
   0x6   :  { %12 = vsyncpa [#allocation3], 0 }
   0x7   :  { %13 = vsyncpa [#allocation9], 0 }
   0x8   :  { %15 = vsyncpa [#allocation9 + $0x1], 0  ;;  %s1997_s18 = smov 0   ;;  %s1999_s19 = smov 0  }
   0x9   :  { %s2001_s20 = smov 0   ;;  %s2003_s21 = smov 0  }
   0xa   :  { %s2005_s22 = smov 0   ;;  %s2007_s23 = smov 0  }
   0xb   :  { %s2009_s24 = smov 0   ;;  %s2011_s25 = smov 0  }
   0xc LB: > { %s2569_s26 = sadd.s32 4294967295, %s1955_s25   ;;  %p118_p0 = scmp.ne.s32.totalorder %s1931_s19, %s1927_s18  ;;  %s1955_s25 = sphi %s2011_s25, %s21_s25   ;;  %s1951_s24 = sphi %s2009_s24, %s2599_s24   ;;  %s1947_s23 = sphi %s2007_s23, %s2598_s23   ;;  %s1943_s22 = sphi %s2005_s22, %s2597_s22   ;;  %s1939_s21 = sphi %s2003_s21, %s2596_s21   ;;  %s1935_s20 = sphi %s2001_s20, %s2595_s20   ;;  %s1931_s19 = sphi %s1999_s19, %s2594_s19   ;;  %s1927_s18 = sphi %s1997_s18, %s2593_s18  }
   0xd   : > { %p2039_p1 = scmp.eq.s32.totalorder %s2569_s26, 0  ;;  %p1425_p2 = scmp.ge.s32.totalorder %s1955_s25, 1 }
   0xe   : > { %p178_p3 = scmp.lt.s32.totalorder %s1955_s25, 7  ;;  %s1957_s30 = smov [#allocation10]  }
   0xf   : > { %s2575_s27 = scalar_select %p2039_p1, 1, 0 }
  0x10   : > { %p2047_p4 = por %p2039_p1, %p118_p0  ;;  %p2051_p5 = pnand %p1425_p2, %p178_p3 }
  0x11   : > { %s221_s6 = sshll.u32 %s1957_s30, 4  ;;  %s1761_s10 = scalar_lea.hbm %s2563_s4, 512  ;;  %s222_s6 = int_to_ptr.vmem [resolvable:$true] %s221_s6 }
  0x12   : > { %s2576_s28 = scalar_select %p2047_p4, 1, 0 }
  0x13   : > { %s2577_s29 = scalar_select %p2051_p5, 1, 0 }
  0x14   : > { %p1662_p6 = pneg %p2051_p5  ;;  %p1762_p8 = scmp.ne.s32.totalorder %s2563_s4, %s1761_s10 }
  0x15   : > { %p1768_p12 = scmp.lt.u32.totalorder %s1761_s10, %s2563_s4 }
  0x16   : > { %p2059_p7 = pnand %p1662_p6, %p2039_p1 }
  0x18   : > { %p2071_p9 = pneg %p2059_p7 }
  0x1a   : > { %p1764_p10 = pnand %p2071_p9, %p1762_p8 }
  0x1c   : > { %p1765_p11 = pneg %p1764_p10 }
  0x1e   : > { %p1770_p13 = pnand %p1768_p12, %p1765_p11 }
  0x20   : > { %1773 = shalt.err (!%p1770_p13)
}
  0x21   : > { %s1774_s16 = scalar_lea.vmem %s222_s6, 512  ;;  %p1782_p6 = scmp.lt.s32.totalorder %s222_s6, %s222_s6 }
  0x22   : > { %p1775_p0 = scmp.ne.s32.totalorder %s222_s6, %s1774_s16  ;;  %p1783_p4 = scmp.lt.s32.totalorder %s1774_s16, %s1774_s16 }
  0x24   : > { %p1777_p2 = pnand %p1775_p0, %p2071_p9  ;;  %p1784_p1 = por %p1783_p4, %p1782_p6 }
  0x26   : > { %p1778_p3 = pneg %p1777_p2 }
  0x28   : > { %p1785_p5 = pnand %p1784_p1, %p1778_p3 }
  0x2a   : > { %1788 = shalt.err (!%p1785_p5)
}
  0x2b   : > { %s1958_s17 = smov 256   ;;  %s1959_s18 = smov 16  }
  0x2c   : > { %1674 = dma.hbm_to_vmem [thread:$0]  (!%p2059_p7), %s2563_s4, 512, %s222_s6, [#allocation9], %s1958_s17, %s1958_s17, %s1959_s18  }
  0x2d   : > { %s2580_s0 = sld [smem:[#allocation16_spill]] }
  0x33   : > { %s1789_s11 = scalar_lea.hbm %s2580_s0, 16 }
  0x34   : > { %p1790_p8 = scmp.ne.s32.totalorder %s2580_s0, %s1789_s11  ;;  %p1796_p5 = scmp.lt.u32.totalorder %s1789_s11, %s2580_s0 }
  0x36   : > { %p1792_p1 = pnand %p1790_p8, %p2071_p9 }
  0x38   : > { %p1793_p4 = pneg %p1792_p1 }
  0x3a   : > { %p1798_p10 = pnand %p1796_p5, %p1793_p4 }
  0x3c   : > { %1801 = shalt.err (!%p1798_p10)
}
  0x3d   : > { %s1960_s26 = smov [#allocation2]   ;;  %s2581_s1 = sld [smem:[#allocation17_spill]] }
  0x3e   : > { %1665 = dma.hbm_to_smem (!%p2059_p7), %s2580_s0, 16, %s1960_s26, [#allocation4]  }
  0x43   : > { %s1802_s8 = scalar_lea.hbm %s2581_s1, 16 }
  0x44   : > { %p1803_p11 = scmp.ne.s32.totalorder %s2581_s1, %s1802_s8  ;;  %p1809_p0 = scmp.lt.u32.totalorder %s1802_s8, %s2581_s1 }
  0x46   : > { %p1805_p12 = pnand %p1803_p11, %p2071_p9 }
  0x48   : > { %p1806_p13 = pneg %p1805_p12 }
  0x4a   : > { %p1811_p2 = pnand %p1809_p0, %p1806_p13 }
  0x4c   : > { %1814 = shalt.err (!%p1811_p2)
}
  0x4d   : > { %s1961_s14 = smov [#allocation5]   ;;  %s1962_s16 = smov [#allocation7]  }
  0x4e   : > { %1668 = dma.hbm_to_smem (!%p2059_p7), %s2581_s1, 16, %s1961_s14, [#allocation6]  }
  0x4f   : > { %s208_s6 = sshll.u32 %s1962_s16, 4  ;;  %s2582_s2 = sld [smem:[#allocation18_spill]]  ;;  %s209_s6 = int_to_ptr.vmem [resolvable:$true] %s208_s6 }
  0x55   : > { %s1815_s30 = scalar_lea.hbm %s2582_s2, 3584 }
  0x56   : > { %p1816_p3 = scmp.ne.s32.totalorder %s2582_s2, %s1815_s30  ;;  %p1822_p1 = scmp.lt.u32.totalorder %s1815_s30, %s2582_s2 }
  0x58   : > { %p1818_p6 = pnand %p1816_p3, %p2071_p9 }
  0x5a   : > { %p1819_p8 = pneg %p1818_p6 }
  0x5c   : > { %p1824_p4 = pnand %p1822_p1, %p1819_p8 }
  0x5e   : > { %1827 = shalt.err (!%p1824_p4)
}
  0x5f   : > { %s1828_s12 = scalar_lea.vmem %s209_s6, 3584  ;;  %p1836_p12 = scmp.lt.s32.totalorder %s209_s6, %s209_s6 }
  0x60   : > { %p1829_p5 = scmp.ne.s32.totalorder %s209_s6, %s1828_s12  ;;  %p1837_p13 = scmp.lt.s32.totalorder %s1828_s12, %s1828_s12 }
  0x62   : > { %p1831_p10 = pnand %p1829_p5, %p2071_p9  ;;  %p1838_p0 = por %p1837_p13, %p1836_p12 }
  0x64   : > { %p1832_p11 = pneg %p1831_p10 }
  0x66   : > { %p1839_p2 = pnand %p1838_p0, %p1832_p11 }
  0x68   : > { %1842 = shalt.err (!%p1839_p2)
}
  0x69   : > { %s2570_s14 = smov 128   ;;  %s2571_s13 = smov 8  }
  0x6a   : > { %1671 = dma.hbm_to_vmem [thread:$0]  (!%p2059_p7), %s2582_s2, 3584, %s209_s6, [#allocation3], %s2570_s14, %s2570_s14, %s2571_s13  }
  0x6b   : > { %s30_s16 = sadd.s32 1, %s1947_s23  ;;  %s33_s17 = sadd.s32 1, %s1951_s24 }
  0x6c   : > { %p31_p9 = scmp.ge.s32.totalorder %s30_s16, 3  ;;  %s105_s18 = sadd.s32 1, %s1935_s20 }
  0x6d   : > { %p112_p3 = scmp.ne.s32.totalorder %s1935_s20, %s1931_s19  ;;  %p113_p6 = scmp.eq.s32.totalorder %s1955_s25, 0 }
  0x6e   : > { %s2601_s16 = smov (%p31_p9, %s30_s16), 0  ;;  %s2603_s17 = smov (!%p31_p9, %s33_s17), %s1951_s24 }
  0x6f   : > { %s101_s7 = ssub.s32 %s1947_s23, %s2601_s16  ;;  %p2151_p8 = por %p113_p6, %p112_p3 }
  0x70   : > { %p35_p7 = scmp.ge.s32.totalorder %s2603_s17, 2  ;;  %p1683_p1 = scmp.lt.s32.totalorder %s1955_s25, 6 }
  0x71   : > { %s235_s6 = sand.u32 1, %s1955_s25   ;;  %s237_s9 = sand.u32 1, %s1935_s20  }
  0x72   : > { %s2605_s17 = smov (%p35_p7, %s2603_s17), 0  ;;  %s1431_s10 = sshll.u32 %s237_s9, 4 }
  0x73   : > { %s100_s8 = ssub.s32 %s1951_s24, %s2605_s17  ;;  %s1432_s12 = sshll.u32 %s1947_s23, 1 }
  0x74   : > { %s102_s11 = sor.u32 %s101_s7, %s100_s8  ;;  %s1641_s26 = smul.u32 6, %s1951_s24 }
  0x75   : > { %p103_p4 = scmp.eq.s32.totalorder %s102_s11, 0  ;;  %s239_s15 = scalar_lea.vmem [#allocation8], %s1431_s10 }
  0x76   : > { %s248_s14 = sshll.u32 %s239_s15, 4  ;;  %p2166_p5 = pnand %p1683_p1, %p2151_p8  ;;  %s2173_s14 = int_to_ptr.vmem [resolvable:$true] %s248_s14 }
  0x77   : > { %s2171_s0 = scalar_select %p103_p4, %s1935_s20, %s105_s18  }
  0x78   : > { %s245_s1 = sadd.s32 %s1641_s26, %s1432_s12  ;;  %s2180_s30 = scalar_lea.sflag [#allocation9], %s235_s6 }
  0x79   : > { %s1433_s9 = sshll.u32 %s245_s1, 7  ;;  %p1845_p11 = pneg %p2166_p5 }
  0x7a   : > { %s2178_s8 = scalar_lea.hbm %s2562_s3, %s1433_s9  ;;  %s1848_s2 = scalar_lea.hbm %s2562_s3, 1536 }
  0x7b   : > { %s1843_s10 = scalar_lea.hbm %s2178_s8, 256  ;;  %p1849_p0 = scmp.lt.u32.totalorder %s2178_s8, %s2562_s3 }
  0x7c   : > { %p1844_p10 = scmp.ne.s32.totalorder %s2178_s8, %s1843_s10  ;;  %p1850_p2 = scmp.lt.u32.totalorder %s1848_s2, %s1843_s10 }
  0x7d   : > { %p1852_p3 = scmp.lt.u32.totalorder %s1843_s10, %s2178_s8 }
  0x7e   : > { %p1846_p12 = pnand %p1845_p11, %p1844_p10  ;;  %p1851_p9 = por %p1850_p2, %p1849_p0 }
  0x80   : > { %p1847_p13 = pneg %p1846_p12  ;;  %p1853_p6 = por %p1852_p3, %p1851_p9 }
  0x82   : > { %p1854_p8 = pnand %p1853_p6, %p1847_p13 }
  0x84   : > { %1857 = shalt.err (!%p1854_p8)
}
  0x85   : > { %s1858_s6 = scalar_lea.vmem %s2173_s14, 256  ;;  %s1965_s26 = smov [#allocation8]  }
  0x86   : > { %p1859_p7 = scmp.ne.s32.totalorder %s2173_s14, %s1858_s6  ;;  %s1863_s15 = sshll.u32 %s1965_s26, 4  ;;  %s1864_s15 = int_to_ptr.vmem [resolvable:$false] %s1863_s15 }
  0x87   : > { %s1865_s9 = scalar_lea.vmem %s1864_s15, 512  ;;  %p1866_p10 = scmp.lt.s32.totalorder %s2173_s14, %s1864_s15 }
  0x88   : > { %p1861_p1 = pnand %p1859_p7, %p1845_p11  ;;  %p1867_p12 = scmp.lt.s32.totalorder %s1865_s9, %s1858_s6 }
  0x8a   : > { %p1862_p4 = pneg %p1861_p1  ;;  %p1868_p0 = por %p1867_p12, %p1866_p10 }
  0x8c   : > { %p1869_p2 = pnand %p1868_p0, %p1862_p4 }
  0x8e   : > { %1872 = shalt.err (!%p1869_p2)
}
  0x8f   : > { %s2585_s7 = smov 8   ;;  %s2586_s10 = smov 128  }
  0x90   : > { %1678 = dma.hbm_to_vmem [thread:$0]  (!%p2166_p5), %s2178_s8, 256, %s2173_s14, %s2180_s30, %s2586_s10, %s2586_s10, %s2585_s7  }
  0x91   : > { %p2587_p11 = scmp.ne.s32.totalorder %s2577_s29, 0 }
  0x92   : > { %p2588_p13 = scmp.ne.s32.totalorder (!%p2587_p11), %s2575_s27, 0 }
  0x93   : > { %260 = sbr.rel (%p2587_p11) target bundleno = 701 (0x2bd), region = 40 }
  0x9a   : > { %1906 = dma.done.wait (%p2588_p13), [#allocation4], 16  }
  0x9b   : > { %1908 = vsyncadd (%p2588_p13), [#allocation4], 4294967280 }
  0x9c   : > { %1910 = dma.done.wait (%p2588_p13), [#allocation6], 16  }
  0x9d   : > { %1912 = vsyncadd (%p2588_p13), [#allocation6], 4294967280 }
  0x9e   : > { %1914 = dma.done.wait (%p2588_p13), [#allocation3], 3584  }
  0x9f   : > { %1916 = vsyncadd (%p2588_p13), [#allocation3], 4294963712  ;;  %s2589_s29 = sadd.s32 4294967295, %s1955_s25   ;;  %s276_s13 = sand.u32 1, %s1931_s19  }
  0xa0   : > { %s274_s14 = sand.u32 1, %s2589_s29   ;;  %s1438_s8 = sshll.u32 %s276_s13, 4 }
  0xa1   : > { %s275_s30 = scalar_lea.sflag [#allocation9], %s274_s14  ;;  %s278_s1 = scalar_lea.vmem [#allocation8], %s1438_s8 }
  0xa2   : > { %p2590_p5 = scmp.ne.s32.totalorder %s2576_s28, 0 }
  0xa4   : > { %1918 = dma.done.wait (%p2590_p5), %s275_s30, 256  }
  0xa5   : > { %1920 = vsyncadd (%p2590_p5), %s275_s30, 4294967040 }
  0xa6   : > { %1922 = dma.done.wait (%p2588_p13), [#allocation9], 512  }
  0xa7   : > { %1924 = vsyncadd (%p2588_p13), [#allocation9], 4294966784 }
  0xa8   : > { %287 = sfence }
  0xa9   : > { %v351_v0 = vld [vmem:[%s278_s1] sm:$0xff]  ;;  %v352_v1 = vld [vmem:[%s278_s1 + $0x8] sm:$0xff]  ;;  %vm353_vm0 = vcmask 130048   ;;  %v1966_v37 = vmov 0.0   ;;  %p314_p9 = scmp.lt.s32.totalorder %s1943_s22, 1  ;;  %p316_p3 = scmp.lt.s32.totalorder %s1939_s21, 2 }
  0xaa   : > { %v323_v2 = vld [vmem:[#allocation7] sm:$0xff]  ;;  %v1631_v3 = vpack.c.bf16 %v352_v1, %v351_v0  ;;  %v324_v4 = vld [vmem:[#allocation7 + $0x8] sm:$0xff]  ;;  %v325_v5 = vld [vmem:[#allocation7 + $0x10] sm:$0xff]  ;;  %837 = vmatprep.mubr.f32.mxu1 %v1966_v37  ;;  %s964_s27 = sld [smem:[#allocation2 + %s1939_s21]]  ;;  %vm1248_vm1 = vcmask 1043456   ;;  %vm1249_vm2 = vcmask 785412  }
  0xab   : > { %1589 = vmatprep.mubr.msk.f32.mxu0 %vm353_vm0, %v323_v2  ;;  %v326_v6 = vld [vmem:[#allocation7 + $0x18] sm:$0xff]  ;;  %v327_v7 = vld [vmem:[#allocation7 + $0x20] sm:$0xff]  ;;  %v644_v8 = vld [vmem:[#allocation10 + $0x8] sm:$0xff]  ;;  %s2607_s22 = smov (!%p314_p9, %s1943_s22), 1  ;;  %s1022_s18 = sld [smem:[#allocation5 + %s1939_s21]] }
  0xac   : > { %1632 = vmatprep.subr.bf16.mxu0 %v1631_v3  ;;  %v646_v9 = vld [vmem:[#allocation10 + $0x18] sm:$0xff]  ;;  %v643_v10 = vld [vmem:[#allocation10] sm:$0xff]  ;;  %v645_v12 = vld [vmem:[#allocation10 + $0x10] sm:$0xff]  ;;  %s317_s28 = scalar_select %p316_p3, %s1939_s21, 2 }
  0xad   : > { %1634 = vmatpush3.bf16.msra.mxu0 %v1631_v3  ;;  %v1635_v11 = vpack.c.bf16 %v646_v9, %v644_v8  ;;  %v328_v13 = vld [vmem:[#allocation7 + $0x28] sm:$0xff]  ;;  %v1637_v14 = vpack.c.bf16 %v645_v12, %v643_v10  ;;  %v329_v15 = vld [vmem:[#allocation7 + $0x30] sm:$0xff]  ;;  %v330_v16 = vld [vmem:[#allocation7 + $0x38] sm:$0xff]  ;;  %s1643_s2 = smul.u32 168, %s2607_s22 }
  0xae   : > { %v331_v17 = vld [vmem:[#allocation7 + $0x40] sm:$0xff]  ;;  %v332_v18 = vld [vmem:[#allocation7 + $0x48] sm:$0xff]  ;;  %v333_v19 = vld [vmem:[#allocation7 + $0x50] sm:$0xff]  ;;  %s1642_s11 = smul.u32 56, %s317_s28 }
  0xaf   : > { %1636 = vmatprep.subr.bf16.mxu0 %v1635_v11  ;;  %1639 = vmatprep.subr.bf16.mxu1 %v1635_v11  ;;  %v334_v20 = vld [vmem:[#allocation7 + $0x58] sm:$0xff]  ;;  %v335_v21 = vld [vmem:[#allocation7 + $0x60] sm:$0xff]  ;;  %v336_v22 = vld [vmem:[#allocation7 + $0x68] sm:$0xff] }
  0xb0   : > { %1590 = vmatmul.mubr.msk.f32.vlgmr.msra.gmra.mrb[0].mxu0 %vm353_vm0, %v324_v4  ;;  %1640 = vmatpush1.bf16.msra.mxu1 %v1637_v14  ;;  %v337_v23 = vld [vmem:[#allocation7 + $0x70] sm:$0xff]  ;;  %v338_v24 = vld [vmem:[#allocation7 + $0x78] sm:$0xff]  ;;  %v339_v25 = vld [vmem:[#allocation7 + $0x80] sm:$0xff]  ;;  %v2326_v2 = vstv %s964_s27  ;;  %s320_s12 = sadd.s32 %s1643_s2, %s1642_s11 }
  0xb1   : > { %1592 = vmatprep.mubr.msk.f32.mxu0 %vm353_vm0, %v325_v5  ;;  %1638 = vmatpush1.bf16.msra.mxu0 %v1637_v14  ;;  %v340_v26 = vld [vmem:[#allocation7 + $0x88] sm:$0xff]  ;;  %v341_v27 = vld [vmem:[#allocation7 + $0x90] sm:$0xff]  ;;  %v342_v28 = vld [vmem:[#allocation7 + $0x98] sm:$0xff]  ;;  %v2328_v4 = vstv %s1022_s18  ;;  %s1440_s6 = sshll.u32 %s320_s12, 2 }
  0xb2   : > { %v343_v29 = vld [vmem:[#allocation7 + $0xa0] sm:$0xff]  ;;  %v344_v30 = vld [vmem:[#allocation7 + $0xa8] sm:$0xff]  ;;  %v345_v31 = vld [vmem:[#allocation7 + $0xb0] sm:$0xff]  ;;  %s2337_s26 = scalar_lea.vmem %s2564_s5, %s1440_s6 }
  0xb3   : > { %v346_v32 = vld [vmem:[#allocation7 + $0xb8] sm:$0xff]  ;;  %v347_v33 = vld [vmem:[#allocation7 + $0xc0] sm:$0xff]  ;;  %v348_v34 = vld [vmem:[#allocation7 + $0xc8] sm:$0xff] }
  0xb4   : > { %1593 = vmatmul.mubr.msk.f32.gmra.mrb[2].mxu0 %vm353_vm0, %v326_v6  ;;  %v349_v35 = vld [vmem:[#allocation7 + $0xd0] sm:$0xff]  ;;  %v350_v36 = vld [vmem:[#allocation7 + $0xd8] sm:$0xff]  ;;  %vm2339_vm3 = vmor %vm1249_vm2, %vm1248_vm1 }
  0xb5   : > { %1595 = vmatprep.mubr.msk.f32.mxu0 %vm353_vm0, %v327_v7 }
  0xb8   : > { %1596 = vmatmul.mubr.msk.f32.gmra.mrb[4].mxu0 %vm353_vm0, %v328_v13 }
  0xb9   : > { %1598 = vmatprep.mubr.msk.f32.mxu0 %vm353_vm0, %v329_v15 }
  0xbc   : > { %1599 = vmatmul.mubr.msk.f32.gmra.mrb[6].mxu0 %vm353_vm0, %v330_v16 }
  0xbd   : > { %1601 = vmatprep.mubr.msk.f32.mxu0 %vm353_vm0, %v331_v17 }
  0xc0   : > { %1602 = vmatmul.mubr.msk.f32.gmra.mrb[8].mxu0 %vm353_vm0, %v332_v18 }
  0xc1   : > { %1604 = vmatprep.mubr.msk.f32.mxu0 %vm353_vm0, %v333_v19 }
  0xc4   : > { %1605 = vmatmul.mubr.msk.f32.gmra.mrb[10].mxu0 %vm353_vm0, %v334_v20 }
  0xc5   : > { %1607 = vmatprep.mubr.msk.f32.mxu0 %vm353_vm0, %v335_v21 }
  0xc8   : > { %1608 = vmatmul.mubr.msk.f32.gmra.mrb[12].mxu0 %vm353_vm0, %v336_v22 }
  0xc9   : > { %1610 = vmatprep.mubr.msk.f32.mxu0 %vm353_vm0, %v337_v23 }
  0xcc   : > { %1611 = vmatmul.mubr.msk.f32.gmra.mrb[14].mxu0 %vm353_vm0, %v338_v24 }
  0xcd   : > { %1613 = vmatprep.mubr.msk.f32.mxu0 %vm353_vm0, %v339_v25 }
  0xd0   : > { %1614 = vmatmul.mubr.msk.f32.gmra.mrb[16].mxu0 %vm353_vm0, %v340_v26 }
  0xd1   : > { %1616 = vmatprep.mubr.msk.f32.mxu0 %vm353_vm0, %v341_v27 }
  0xd4   : > { %1617 = vmatmul.mubr.msk.f32.gmra.mrb[18].mxu0 %vm353_vm0, %v342_v28 }
  0xd5   : > { %1619 = vmatprep.mubr.msk.f32.mxu0 %vm353_vm0, %v343_v29 }
  0xd8   : > { %1620 = vmatmul.mubr.msk.f32.gmra.mrb[20].mxu0 %vm353_vm0, %v344_v30 }
  0xd9   : > { %1622 = vmatprep.mubr.msk.f32.mxu0 %vm353_vm0, %v345_v31 }
  0xdc   : > { %1623 = vmatmul.mubr.msk.f32.gmra.mrb[22].mxu0 %vm353_vm0, %v346_v32 }
  0xdd   : > { %1625 = vmatprep.mubr.msk.f32.mxu0 %vm353_vm0, %v347_v33 }
  0xe0   : > { %1626 = vmatmul.mubr.msk.f32.gmra.mrb[24].mxu0 %vm353_vm0, %v348_v34 }
  0xe1   : > { %1628 = vmatprep.mubr.msk.f32.mxu0 %vm353_vm0, %v349_v35 }
  0xe4   : > { %1629 = vmatmul.mubr.msk.f32.gmra.mrb[26].mxu0 %vm353_vm0, %v350_v36 }
  0xe5   : > { %795 = vmatprep.mubr.f32.mxu0 %v1966_v37 }
 0x183   : > { %v1591_v38 = vpop.f32.mrb[0].mxu0 }
 0x184   : > { %v504_v39 = vpop.f32.mrb[1].mxu0 }
 0x185   : > { %1469 = vmatmul.mubr.msk.f32.vlgmr.msra.gmra.mrb[28].mxu0 %vm353_vm0, %v504_v39 }
 0x186   : > { %801 = vmatprep.mubr.f32.mxu0 %v1966_v37 }
 0x187   : > { %v1594_v40 = vpop.f32.mrb[2].mxu0 }
 0x188   : > { %v514_v41 = vpop.f32.mrb[3].mxu0 }
 0x189   : > { %1470 = vmatmul.mubr.msk.f32.gmra.mrb[30].mxu0 %vm353_vm0, %v1591_v38 }
 0x18a   : > { %807 = vmatprep.mubr.f32.mxu0 %v1966_v37 }
 0x18b   : > { %v1597_v42 = vpop.f32.mrb[4].mxu0 }
 0x18c   : > { %v524_v43 = vpop.f32.mrb[5].mxu0 }
 0x18d   : > { %1471 = vmatmul.mubr.msk.f32.gmra.mrb[32].mxu0 %vm353_vm0, %v514_v41 }
 0x18e   : > { %813 = vmatprep.mubr.f32.mxu0 %v1966_v37 }
 0x18f   : > { %v1600_v44 = vpop.f32.mrb[6].mxu0 }
 0x190   : > { %v534_v45 = vpop.f32.mrb[7].mxu0  ;;  %1476 = vmatmul.mubr.msk.f32.vlgmr.msra.gmra.mrb[0].mxu1 %vm353_vm0, %v1600_v44 }
 0x191   : > { %1472 = vmatmul.mubr.msk.f32.gmra.mrb[34].mxu0 %vm353_vm0, %v1594_v40  ;;  %843 = vmatprep.mubr.f32.mxu1 %v1966_v37 }
 0x192   : > { %819 = vmatprep.mubr.f32.mxu0 %v1966_v37 }
 0x193   : > { %v1603_v46 = vpop.f32.mrb[8].mxu0 }
 0x194   : > { %v544_v47 = vpop.f32.mrb[9].mxu0 }
 0x195   : > { %1473 = vmatmul.mubr.msk.f32.gmra.mrb[36].mxu0 %vm353_vm0, %v524_v43  ;;  %1477 = vmatmul.mubr.msk.f32.gmra.mrb[2].mxu1 %vm353_vm0, %v544_v47 }
 0x196   : > { %825 = vmatprep.mubr.f32.mxu0 %v1966_v37  ;;  %849 = vmatprep.mubr.f32.mxu1 %v1966_v37 }
 0x197   : > { %v1606_v48 = vpop.f32.mrb[10].mxu0 }
 0x198   : > { %v554_v49 = vpop.f32.mrb[11].mxu0 }
 0x199   : > { %1474 = vmatmul.mubr.msk.f32.gmra.mrb[38].mxu0 %vm353_vm0, %v1597_v42  ;;  %1478 = vmatmul.mubr.msk.f32.gmra.mrb[4].mxu1 %vm353_vm0, %v1603_v46 }
 0x19a   : > { %831 = vmatprep.mubr.f32.mxu0 %v1966_v37  ;;  %855 = vmatprep.mubr.f32.mxu1 %v1966_v37 }
 0x19b   : > { %v1609_v50 = vpop.f32.mrb[12].mxu0 }
 0x19c   : > { %v564_v51 = vpop.f32.mrb[13].mxu0 }
 0x19d   : > { %1475 = vmatmul.mubr.msk.f32.gmra.mrb[40].mxu0 %vm353_vm0, %v534_v45  ;;  %1479 = vmatmul.mubr.msk.f32.gmra.mrb[6].mxu1 %vm353_vm0, %v554_v49 }
 0x19e   : > { %861 = vmatprep.mubr.f32.mxu1 %v1966_v37 }
 0x19f   : > { %v1612_v52 = vpop.f32.mrb[14].mxu0 }
 0x1a0   : > { %v574_v53 = vpop.f32.mrb[15].mxu0 }
 0x1a1   : > { %1480 = vmatmul.mubr.msk.f32.gmra.mrb[8].mxu1 %vm353_vm0, %v1606_v48 }
 0x1a2   : > { %867 = vmatprep.mubr.f32.mxu1 %v1966_v37 }
 0x1a3   : > { %v1615_v54 = vpop.f32.mrb[16].mxu0 }
 0x1a4   : > { %v584_v55 = vpop.f32.mrb[17].mxu0 }
 0x1a5   : > { %1481 = vmatmul.mubr.msk.f32.gmra.mrb[10].mxu1 %vm353_vm0, %v564_v51 }
 0x1a6   : > { %873 = vmatprep.mubr.f32.mxu1 %v1966_v37 }
 0x1a7   : > { %v1618_v56 = vpop.f32.mrb[18].mxu0 }
 0x1a8   : > { %v594_v57 = vpop.f32.mrb[19].mxu0 }
 0x1a9   : > { %1482 = vmatmul.mubr.msk.f32.gmra.mrb[12].mxu1 %vm353_vm0, %v1609_v50 }
 0x1aa   : > { %879 = vmatprep.mubr.f32.mxu1 %v1966_v37 }
 0x1ab   : > { %v1621_v58 = vpop.f32.mrb[20].mxu0 }
 0x1ac   : > { %v604_v59 = vpop.f32.mrb[21].mxu0 }
 0x1ad   : > { %1483 = vmatmul.mubr.msk.f32.gmra.mrb[14].mxu1 %vm353_vm0, %v574_v53 }
 0x1ae   : > { %885 = vmatprep.mubr.f32.mxu1 %v1966_v37 }
 0x1af   : > { %v1624_v60 = vpop.f32.mrb[22].mxu0 }
 0x1b0   : > { %v614_v61 = vpop.f32.mrb[23].mxu0 }
 0x1b1   : > { %1484 = vmatmul.mubr.msk.f32.gmra.mrb[16].mxu1 %vm353_vm0, %v1612_v52 }
 0x1b2   : > { %891 = vmatprep.mubr.f32.mxu1 %v1966_v37 }
 0x1b3   : > { %v1627_v62 = vpop.f32.mrb[24].mxu0 }
 0x1b4   : > { %v624_v63 = vpop.f32.mrb[25].mxu0 }
 0x1b5   : > { %1485 = vmatmul.mubr.msk.f32.gmra.mrb[18].mxu1 %vm353_vm0, %v584_v55 }
 0x1b6   : > { %897 = vmatprep.mubr.f32.mxu1 %v1966_v37 }
 0x1b7   : > { %v1630_v0 = vpop.f32.mrb[26].mxu0 }
 0x1b8   : > { %v634_v1 = vpop.f32.mrb[27].mxu0 }
 0x1b9   : > { %1486 = vmatmul.mubr.msk.f32.gmra.mrb[20].mxu1 %vm353_vm0, %v1615_v54 }
 0x1ba   : > { %903 = vmatprep.mubr.f32.mxu1 %v1966_v37 }
 0x1bd   : > { %1487 = vmatmul.mubr.msk.f32.gmra.mrb[22].mxu1 %vm353_vm0, %v594_v57 }
 0x1be   : > { %909 = vmatprep.mubr.f32.mxu1 %v1966_v37 }
 0x1c1   : > { %1488 = vmatmul.mubr.msk.f32.gmra.mrb[24].mxu1 %vm353_vm0, %v1618_v56 }
 0x1c2   : > { %915 = vmatprep.mubr.f32.mxu1 %v1966_v37 }
 0x1c5   : > { %1489 = vmatmul.mubr.msk.f32.gmra.mrb[26].mxu1 %vm353_vm0, %v604_v59 }
 0x1c6   : > { %921 = vmatprep.mubr.f32.mxu1 %v1966_v37 }
 0x1c9   : > { %1490 = vmatmul.mubr.msk.f32.gmra.mrb[28].mxu1 %vm353_vm0, %v1621_v58 }
 0x1ca   : > { %927 = vmatprep.mubr.f32.mxu1 %v1966_v37 }
 0x1cd   : > { %1491 = vmatmul.mubr.msk.f32.gmra.mrb[30].mxu1 %vm353_vm0, %v614_v61 }
 0x1ce   : > { %933 = vmatprep.mubr.f32.mxu1 %v1966_v37 }
 0x1d1   : > { %1492 = vmatmul.mubr.msk.f32.gmra.mrb[32].mxu1 %vm353_vm0, %v1624_v60 }
 0x1d2   : > { %939 = vmatprep.mubr.f32.mxu1 %v1966_v37 }
 0x1d5   : > { %1493 = vmatmul.mubr.msk.f32.gmra.mrb[34].mxu1 %vm353_vm0, %v624_v63 }
 0x1d6   : > { %945 = vmatprep.mubr.f32.mxu1 %v1966_v37 }
 0x1d9   : > { %1494 = vmatmul.mubr.msk.f32.gmra.mrb[36].mxu1 %vm353_vm0, %v1627_v62 }
 0x1da   : > { %951 = vmatprep.mubr.f32.mxu1 %v1966_v37 }
 0x1dd   : > { %1495 = vmatmul.mubr.msk.f32.gmra.mrb[38].mxu1 %vm353_vm0, %v634_v1 }
 0x1de   : > { %957 = vmatprep.mubr.f32.mxu1 %v1966_v37 }
 0x1e1   : > { %1496 = vmatmul.mubr.msk.f32.gmra.mrb[40].mxu1 %vm353_vm0, %v1630_v0 }
 0x258   : > { %v797_v3 = vpop.f32.mrb[28].mxu0 }
 0x259   : > { %v966_v5 = vmul.f32 %v2326_v2, %v797_v3  ;;  %v799_v6 = vpop.f32.mrb[29].mxu0 }
 0x25a   : > { %v967_v7 = vmul.f32 %v2326_v2, %v799_v6 }
 0x25b   : > { %v1024_v8 = vadd.f32 %v2328_v4, %v966_v5 }
 0x25c   : > { %v1025_v9 = vadd.f32 %v2328_v4, %v967_v7  ;;  %v803_v10 = vpop.f32.mrb[30].mxu0 }
 0x25d   : > { %v968_v12 = vmul.f32 %v2326_v2, %v803_v10  ;;  %v805_v13 = vpop.f32.mrb[31].mxu0 }
 0x25e   : > { %v1527_v14 = vpack.c.bf16 %v1025_v9, %v1024_v8  ;;  %v969_v15 = vmul.f32 %v2326_v2, %v805_v13 }
 0x25f   : > { %v1026_v16 = vadd.f32 %v2328_v4, %v968_v12 }
 0x260   : > { %1251 = vst.msk [vmem:[%s2337_s26] sm:$0xff] %vm2339_vm3, %v1527_v14  ;;  %v1027_v17 = vadd.f32 %v2328_v4, %v969_v15  ;;  %v809_v18 = vpop.f32.mrb[32].mxu0 }
 0x261   : > { %v970_v19 = vmul.f32 %v2326_v2, %v809_v18  ;;  %v811_v20 = vpop.f32.mrb[33].mxu0 }
 0x262   : > { %v1528_v21 = vpack.c.bf16 %v1027_v17, %v1026_v16  ;;  %v971_v22 = vmul.f32 %v2326_v2, %v811_v20 }
 0x263   : > { %v1028_v23 = vadd.f32 %v2328_v4, %v970_v19  ;;  %v839_v24 = vpop.f32.mrb[0].mxu1 }
 0x264   : > { %1252 = vst.msk [vmem:[%s2337_s26 + $0x8] sm:$0xff] %vm2339_vm3, %v1528_v21  ;;  %v1029_v25 = vadd.f32 %v2328_v4, %v971_v22  ;;  %v980_v26 = vmul.f32 %v2326_v2, %v839_v24  ;;  %v815_v27 = vpop.f32.mrb[34].mxu0  ;;  %v841_v28 = vpop.f32.mrb[1].mxu1 }
 0x265   : > { %v972_v29 = vmul.f32 %v2326_v2, %v815_v27  ;;  %v981_v30 = vmul.f32 %v2326_v2, %v841_v28  ;;  %v817_v31 = vpop.f32.mrb[35].mxu0 }
 0x266   : > { %v1529_v32 = vpack.c.bf16 %v1029_v25, %v1028_v23  ;;  %v1038_v33 = vadd.f32 %v2328_v4, %v980_v26  ;;  %v973_v34 = vmul.f32 %v2326_v2, %v817_v31 }
 0x267   : > { %v1030_v35 = vadd.f32 %v2328_v4, %v972_v29  ;;  %v1039_v36 = vadd.f32 %v2328_v4, %v981_v30 }
 0x268   : > { %1253 = vst.msk [vmem:[%s2337_s26 + $0x10] sm:$0xff] %vm2339_vm3, %v1529_v32  ;;  %v1031_v37 = vadd.f32 %v2328_v4, %v973_v34  ;;  %v821_v38 = vpop.f32.mrb[36].mxu0  ;;  %v845_v39 = vpop.f32.mrb[2].mxu1 }
 0x269   : > { %v1534_v40 = vpack.c.bf16 %v1039_v36, %v1038_v33  ;;  %v974_v41 = vmul.f32 %v2326_v2, %v821_v38  ;;  %v982_v42 = vmul.f32 %v2326_v2, %v845_v39  ;;  %v823_v43 = vpop.f32.mrb[37].mxu0  ;;  %v847_v44 = vpop.f32.mrb[3].mxu1 }
 0x26a   : > { %v1530_v45 = vpack.c.bf16 %v1031_v37, %v1030_v35  ;;  %v975_v46 = vmul.f32 %v2326_v2, %v823_v43  ;;  %v983_v47 = vmul.f32 %v2326_v2, %v847_v44 }
 0x26b   : > { %1258 = vst.msk [vmem:[%s2337_s26 + $0x38] sm:$0xff] %vm2339_vm3, %v1534_v40  ;;  %v1032_v48 = vadd.f32 %v2328_v4, %v974_v41  ;;  %v1040_v49 = vadd.f32 %v2328_v4, %v982_v42 }
 0x26c   : > { %1254 = vst.msk [vmem:[%s2337_s26 + $0x18] sm:$0xff] %vm2339_vm3, %v1530_v45  ;;  %v1033_v50 = vadd.f32 %v2328_v4, %v975_v46  ;;  %v1041_v51 = vadd.f32 %v2328_v4, %v983_v47  ;;  %v827_v52 = vpop.f32.mrb[38].mxu0  ;;  %v851_v53 = vpop.f32.mrb[4].mxu1 }
 0x26d   : > { %v976_v54 = vmul.f32 %v2326_v2, %v827_v52  ;;  %v984_v55 = vmul.f32 %v2326_v2, %v851_v53  ;;  %v829_v56 = vpop.f32.mrb[39].mxu0  ;;  %v853_v57 = vpop.f32.mrb[5].mxu1 }
 0x26e   : > { %v1531_v58 = vpack.c.bf16 %v1033_v50, %v1032_v48  ;;  %v1535_v59 = vpack.c.bf16 %v1041_v51, %v1040_v49  ;;  %v977_v60 = vmul.f32 %v2326_v2, %v829_v56  ;;  %v985_v61 = vmul.f32 %v2326_v2, %v853_v57 }
 0x26f   : > { %v1034_v62 = vadd.f32 %v2328_v4, %v976_v54  ;;  %v1042_v63 = vadd.f32 %v2328_v4, %v984_v55 }
 0x270   : > { %1255 = vst.msk [vmem:[%s2337_s26 + $0x20] sm:$0xff] %vm2339_vm3, %v1531_v58  ;;  %1259 = vst.msk [vmem:[%s2337_s26 + $0x40] sm:$0xff] %vm2339_vm3, %v1535_v59  ;;  %v1035_v0 = vadd.f32 %v2328_v4, %v977_v60  ;;  %v1043_v1 = vadd.f32 %v2328_v4, %v985_v61  ;;  %v833_v3 = vpop.f32.mrb[40].mxu0  ;;  %v857_v5 = vpop.f32.mrb[6].mxu1 }
 0x271   : > { %v978_v6 = vmul.f32 %v2326_v2, %v833_v3  ;;  %v986_v7 = vmul.f32 %v2326_v2, %v857_v5  ;;  %v835_v8 = vpop.f32.mrb[41].mxu0  ;;  %v859_v9 = vpop.f32.mrb[7].mxu1 }
 0x272   : > { %v1532_v10 = vpack.c.bf16 %v1035_v0, %v1034_v62  ;;  %v1536_v12 = vpack.c.bf16 %v1043_v1, %v1042_v63  ;;  %v979_v13 = vmul.f32 %v2326_v2, %v835_v8  ;;  %v987_v14 = vmul.f32 %v2326_v2, %v859_v9 }
 0x273   : > { %v1036_v15 = vadd.f32 %v2328_v4, %v978_v6  ;;  %v1044_v16 = vadd.f32 %v2328_v4, %v986_v7 }
 0x274   : > { %1256 = vst.msk [vmem:[%s2337_s26 + $0x28] sm:$0xff] %vm2339_vm3, %v1532_v10  ;;  %1260 = vst.msk [vmem:[%s2337_s26 + $0x48] sm:$0xff] %vm2339_vm3, %v1536_v12  ;;  %v1037_v17 = vadd.f32 %v2328_v4, %v979_v13  ;;  %v1045_v18 = vadd.f32 %v2328_v4, %v987_v14  ;;  %v863_v19 = vpop.f32.mrb[8].mxu1 }
 0x275   : > { %v988_v20 = vmul.f32 %v2326_v2, %v863_v19  ;;  %v865_v21 = vpop.f32.mrb[9].mxu1 }
 0x276   : > { %v1533_v22 = vpack.c.bf16 %v1037_v17, %v1036_v15  ;;  %v1537_v23 = vpack.c.bf16 %v1045_v18, %v1044_v16  ;;  %v989_v24 = vmul.f32 %v2326_v2, %v865_v21 }
 0x277   : > { %v1046_v25 = vadd.f32 %v2328_v4, %v988_v20 }
 0x278   : > { %1257 = vst.msk [vmem:[%s2337_s26 + $0x30] sm:$0xff] %vm2339_vm3, %v1533_v22  ;;  %1261 = vst.msk [vmem:[%s2337_s26 + $0x50] sm:$0xff] %vm2339_vm3, %v1537_v23  ;;  %v1047_v26 = vadd.f32 %v2328_v4, %v989_v24  ;;  %v869_v27 = vpop.f32.mrb[10].mxu1 }
 0x279   : > { %v990_v28 = vmul.f32 %v2326_v2, %v869_v27  ;;  %v871_v29 = vpop.f32.mrb[11].mxu1 }
 0x27a   : > { %v1538_v30 = vpack.c.bf16 %v1047_v26, %v1046_v25  ;;  %v991_v31 = vmul.f32 %v2326_v2, %v871_v29 }
 0x27b   : > { %v1048_v32 = vadd.f32 %v2328_v4, %v990_v28 }
 0x27c   : > { %1262 = vst.msk [vmem:[%s2337_s26 + $0x58] sm:$0xff] %vm2339_vm3, %v1538_v30  ;;  %v1049_v33 = vadd.f32 %v2328_v4, %v991_v31  ;;  %v875_v34 = vpop.f32.mrb[12].mxu1 }
 0x27d   : > { %v992_v35 = vmul.f32 %v2326_v2, %v875_v34  ;;  %v877_v36 = vpop.f32.mrb[13].mxu1 }
 0x27e   : > { %v1539_v37 = vpack.c.bf16 %v1049_v33, %v1048_v32  ;;  %v993_v38 = vmul.f32 %v2326_v2, %v877_v36 }
 0x27f   : > { %v1050_v39 = vadd.f32 %v2328_v4, %v992_v35 }
 0x280   : > { %1263 = vst.msk [vmem:[%s2337_s26 + $0x60] sm:$0xff] %vm2339_vm3, %v1539_v37  ;;  %v1051_v40 = vadd.f32 %v2328_v4, %v993_v38  ;;  %v881_v41 = vpop.f32.mrb[14].mxu1 }
 0x281   : > { %v994_v42 = vmul.f32 %v2326_v2, %v881_v41  ;;  %v883_v43 = vpop.f32.mrb[15].mxu1 }
 0x282   : > { %v1540_v44 = vpack.c.bf16 %v1051_v40, %v1050_v39  ;;  %v995_v45 = vmul.f32 %v2326_v2, %v883_v43 }
 0x283   : > { %v1052_v46 = vadd.f32 %v2328_v4, %v994_v42 }
 0x284   : > { %1264 = vst.msk [vmem:[%s2337_s26 + $0x68] sm:$0xff] %vm2339_vm3, %v1540_v44  ;;  %v1053_v47 = vadd.f32 %v2328_v4, %v995_v45  ;;  %v887_v48 = vpop.f32.mrb[16].mxu1 }
 0x285   : > { %v996_v49 = vmul.f32 %v2326_v2, %v887_v48  ;;  %v889_v50 = vpop.f32.mrb[17].mxu1 }
 0x286   : > { %v1541_v51 = vpack.c.bf16 %v1053_v47, %v1052_v46  ;;  %v997_v52 = vmul.f32 %v2326_v2, %v889_v50 }
 0x287   : > { %v1054_v53 = vadd.f32 %v2328_v4, %v996_v49 }
 0x288   : > { %1265 = vst.msk [vmem:[%s2337_s26 + $0x70] sm:$0xff] %vm2339_vm3, %v1541_v51  ;;  %v1055_v54 = vadd.f32 %v2328_v4, %v997_v52  ;;  %v893_v55 = vpop.f32.mrb[18].mxu1 }
 0x289   : > { %v998_v56 = vmul.f32 %v2326_v2, %v893_v55  ;;  %v895_v57 = vpop.f32.mrb[19].mxu1 }
 0x28a   : > { %v1542_v58 = vpack.c.bf16 %v1055_v54, %v1054_v53  ;;  %v999_v59 = vmul.f32 %v2326_v2, %v895_v57 }
 0x28b   : > { %v1056_v60 = vadd.f32 %v2328_v4, %v998_v56 }
 0x28c   : > { %1266 = vst.msk [vmem:[%s2337_s26 + $0x78] sm:$0xff] %vm2339_vm3, %v1542_v58  ;;  %v1057_v61 = vadd.f32 %v2328_v4, %v999_v59  ;;  %v899_v62 = vpop.f32.mrb[20].mxu1 }
 0x28d   : > { %v1000_v63 = vmul.f32 %v2326_v2, %v899_v62  ;;  %v901_v0 = vpop.f32.mrb[21].mxu1 }
 0x28e   : > { %v1543_v1 = vpack.c.bf16 %v1057_v61, %v1056_v60  ;;  %v1001_v3 = vmul.f32 %v2326_v2, %v901_v0 }
 0x28f   : > { %v1058_v5 = vadd.f32 %v2328_v4, %v1000_v63 }
 0x290   : > { %1267 = vst.msk [vmem:[%s2337_s26 + $0x80] sm:$0xff] %vm2339_vm3, %v1543_v1  ;;  %v1059_v6 = vadd.f32 %v2328_v4, %v1001_v3  ;;  %v905_v7 = vpop.f32.mrb[22].mxu1 }
 0x291   : > { %v1002_v8 = vmul.f32 %v2326_v2, %v905_v7  ;;  %v907_v9 = vpop.f32.mrb[23].mxu1 }
 0x292   : > { %v1544_v10 = vpack.c.bf16 %v1059_v6, %v1058_v5  ;;  %v1003_v12 = vmul.f32 %v2326_v2, %v907_v9 }
 0x293   : > { %v1060_v13 = vadd.f32 %v2328_v4, %v1002_v8 }
 0x294   : > { %1268 = vst.msk [vmem:[%s2337_s26 + $0x88] sm:$0xff] %vm2339_vm3, %v1544_v10  ;;  %v1061_v14 = vadd.f32 %v2328_v4, %v1003_v12  ;;  %v911_v15 = vpop.f32.mrb[24].mxu1 }
 0x295   : > { %v1004_v16 = vmul.f32 %v2326_v2, %v911_v15  ;;  %v913_v17 = vpop.f32.mrb[25].mxu1 }
 0x296   : > { %v1545_v18 = vpack.c.bf16 %v1061_v14, %v1060_v13  ;;  %v1005_v19 = vmul.f32 %v2326_v2, %v913_v17 }
 0x297   : > { %v1062_v20 = vadd.f32 %v2328_v4, %v1004_v16 }
 0x298   : > { %1269 = vst.msk [vmem:[%s2337_s26 + $0x90] sm:$0xff] %vm2339_vm3, %v1545_v18  ;;  %v1063_v21 = vadd.f32 %v2328_v4, %v1005_v19  ;;  %v917_v22 = vpop.f32.mrb[26].mxu1 }
 0x299   : > { %v1006_v23 = vmul.f32 %v2326_v2, %v917_v22  ;;  %v919_v24 = vpop.f32.mrb[27].mxu1 }
 0x29a   : > { %v1546_v25 = vpack.c.bf16 %v1063_v21, %v1062_v20  ;;  %v1007_v26 = vmul.f32 %v2326_v2, %v919_v24 }
 0x29b   : > { %v1064_v27 = vadd.f32 %v2328_v4, %v1006_v23 }
 0x29c   : > { %1270 = vst.msk [vmem:[%s2337_s26 + $0x98] sm:$0xff] %vm2339_vm3, %v1546_v25  ;;  %v1065_v28 = vadd.f32 %v2328_v4, %v1007_v26  ;;  %v923_v29 = vpop.f32.mrb[28].mxu1 }
 0x29d   : > { %v1008_v30 = vmul.f32 %v2326_v2, %v923_v29  ;;  %v925_v31 = vpop.f32.mrb[29].mxu1 }
 0x29e   : > { %v1547_v32 = vpack.c.bf16 %v1065_v28, %v1064_v27  ;;  %v1009_v33 = vmul.f32 %v2326_v2, %v925_v31 }
 0x29f   : > { %v1066_v34 = vadd.f32 %v2328_v4, %v1008_v30 }
 0x2a0   : > { %1271 = vst.msk [vmem:[%s2337_s26 + $0xa0] sm:$0xff] %vm2339_vm3, %v1547_v32  ;;  %v1067_v35 = vadd.f32 %v2328_v4, %v1009_v33  ;;  %v929_v36 = vpop.f32.mrb[30].mxu1 }
 0x2a1   : > { %v1010_v37 = vmul.f32 %v2326_v2, %v929_v36  ;;  %v931_v38 = vpop.f32.mrb[31].mxu1 }
 0x2a2   : > { %v1548_v39 = vpack.c.bf16 %v1067_v35, %v1066_v34  ;;  %v1011_v40 = vmul.f32 %v2326_v2, %v931_v38 }
 0x2a3   : > { %v1068_v41 = vadd.f32 %v2328_v4, %v1010_v37 }
 0x2a4   : > { %1272 = vst.msk [vmem:[%s2337_s26 + $0xa8] sm:$0xff] %vm2339_vm3, %v1548_v39  ;;  %v1069_v42 = vadd.f32 %v2328_v4, %v1011_v40  ;;  %v935_v43 = vpop.f32.mrb[32].mxu1 }
 0x2a5   : > { %v1012_v44 = vmul.f32 %v2326_v2, %v935_v43  ;;  %v937_v45 = vpop.f32.mrb[33].mxu1 }
 0x2a6   : > { %v1549_v46 = vpack.c.bf16 %v1069_v42, %v1068_v41  ;;  %v1013_v47 = vmul.f32 %v2326_v2, %v937_v45 }
 0x2a7   : > { %v1070_v48 = vadd.f32 %v2328_v4, %v1012_v44 }
 0x2a8   : > { %1273 = vst.msk [vmem:[%s2337_s26 + $0xb0] sm:$0xff] %vm2339_vm3, %v1549_v46  ;;  %v1071_v49 = vadd.f32 %v2328_v4, %v1013_v47  ;;  %v941_v50 = vpop.f32.mrb[34].mxu1 }
 0x2a9   : > { %v1014_v51 = vmul.f32 %v2326_v2, %v941_v50  ;;  %v943_v52 = vpop.f32.mrb[35].mxu1 }
 0x2aa   : > { %v1550_v53 = vpack.c.bf16 %v1071_v49, %v1070_v48  ;;  %v1015_v54 = vmul.f32 %v2326_v2, %v943_v52 }
 0x2ab   : > { %v1072_v55 = vadd.f32 %v2328_v4, %v1014_v51 }
 0x2ac   : > { %1274 = vst.msk [vmem:[%s2337_s26 + $0xb8] sm:$0xff] %vm2339_vm3, %v1550_v53  ;;  %v1073_v56 = vadd.f32 %v2328_v4, %v1015_v54  ;;  %v947_v57 = vpop.f32.mrb[36].mxu1 }
 0x2ad   : > { %v1016_v58 = vmul.f32 %v2326_v2, %v947_v57  ;;  %v949_v59 = vpop.f32.mrb[37].mxu1 }
 0x2ae   : > { %v1551_v60 = vpack.c.bf16 %v1073_v56, %v1072_v55  ;;  %v1017_v61 = vmul.f32 %v2326_v2, %v949_v59 }
 0x2af   : > { %v1074_v62 = vadd.f32 %v2328_v4, %v1016_v58 }
 0x2b0   : > { %1275 = vst.msk [vmem:[%s2337_s26 + $0xc0] sm:$0xff] %vm2339_vm3, %v1551_v60  ;;  %v1075_v63 = vadd.f32 %v2328_v4, %v1017_v61  ;;  %v953_v0 = vpop.f32.mrb[38].mxu1 }
 0x2b1   : > { %v1018_v1 = vmul.f32 %v2326_v2, %v953_v0  ;;  %v955_v3 = vpop.f32.mrb[39].mxu1 }
 0x2b2   : > { %v1552_v5 = vpack.c.bf16 %v1075_v63, %v1074_v62  ;;  %v1019_v6 = vmul.f32 %v2326_v2, %v955_v3 }
 0x2b3   : > { %v1076_v7 = vadd.f32 %v2328_v4, %v1018_v1 }
 0x2b4   : > { %1276 = vst.msk [vmem:[%s2337_s26 + $0xc8] sm:$0xff] %vm2339_vm3, %v1552_v5  ;;  %v1077_v8 = vadd.f32 %v2328_v4, %v1019_v6  ;;  %v959_v9 = vpop.f32.mrb[40].mxu1 }
 0x2b5   : > { %v1020_v10 = vmul.f32 %v2326_v2, %v959_v9  ;;  %v961_v12 = vpop.f32.mrb[41].mxu1 }
 0x2b6   : > { %v1553_v13 = vpack.c.bf16 %v1077_v8, %v1076_v7  ;;  %v1021_v14 = vmul.f32 %v2326_v2, %v961_v12 }
 0x2b7   : > { %v1078_v15 = vadd.f32 %v2328_v4, %v1020_v10 }
 0x2b8   : > { %1277 = vst.msk [vmem:[%s2337_s26 + $0xd0] sm:$0xff] %vm2339_vm3, %v1553_v13  ;;  %v1079_v16 = vadd.f32 %v2328_v4, %v1021_v14 }
 0x2ba   : > { %v1554_v17 = vpack.c.bf16 %v1079_v16, %v1078_v15 }
 0x2bc   : > { %1278 = vst.msk [vmem:[%s2337_s26 + $0xd8] sm:$0xff] %vm2339_vm3, %v1554_v17 }
 0x2bd PF: > { %s21_s25 = sadd.s32 1, %s1955_s25   ;;  %s2593_s18 = smov %s1931_s19 }
 0x2be   : > { %p18_p6 = scmp.ge.s32.totalorder %s21_s25, 8   ;;  %s2594_s19 = smov %s1935_s20 }
 0x2bf   : > { %s2595_s20 = smov %s2171_s0  ;;  %s2596_s21 = smov %s1947_s23 }
 0x2c0   : > { %s2597_s22 = smov %s1951_s24  ;;  %s2598_s23 = smov %s2601_s16 }
 0x2c1   : > { %s2599_s24 = smov %s2605_s17  ;;  %20 = sbr.rel (!%p18_p6) target bundleno = 12 (0xc), region = 98 }
 0x2c8   :  { %1308 = vsyncpa [#allocation3], 1 }
 0x2c9   :  { %1310 = vsyncpa [#allocation3 + $0x1], 1 }
 0x2ca   :  { %1311 = vsyncpa [#allocation9], 1 }
 0x2cb   :  { %1313 = vsyncpa [#allocation9 + $0x1], 1 }
 0x2cc   :  { %1314 = vsyncpa [#allocation4], 1 }
 0x2cd   :  { %1316 = vsyncpa [#allocation4 + $0x1], 1 }
 0x2ce   :  { %1317 = vsyncpa [#allocation6], 1 }

// kernel: frozen_clip_image_embedder.3
= control target key start
LH: loop header
LB: loop body
LE: loop exit
PB: predicated region body
PF: predicated region fallthrough
CT: control target
= control target key end

     0   :  { %s13669_s0 = inlined_call_operand.vmem [shape: bf16[2,56,3072], index: 0, kind: input, shape index: {}]   ;;  %s13670_s1 = inlined_call_operand.vmem [shape: bf16[3072,64], index: 1, kind: input, shape index: {}]   ;;  %s13671_s2 = inlined_call_operand.vmem [shape: f32[56,64], index: 2, kind: input, shape index: {}]   ;;  %s13672_s3 = inlined_call_operand.vmem [shape: f32[1,64], index: 3, kind: input, shape index: {}]   ;;  %s13673_s4 = inlined_call_operand.vmem [shape: f32[1,64], index: 4, kind: input, shape index: {}]   ;;  %s13674_s5 = inlined_call_operand.vmem [shape: f32[2,1,64], index: 5, kind: input, shape index: {}]   ;;  %s13675_s6 = inlined_call_operand.vmem [shape: f32[2,1,64], index: 6, kind: input, shape index: {}]   ;;  %s13676_s7 = inlined_call_operand.vmem [shape: bf16[2,64,192], index: 7, kind: input, shape index: {}]   ;;  %s13677_s8 = inlined_call_operand.vmem [shape: f32[2,1,192], index: 8, kind: input, shape index: {}]   ;;  %s13678_s9 = inlined_call_operand.vmem [shape: bf16[2,64,64], index: 9, kind: input, shape index: {}]   ;;  %s13679_s10 = inlined_call_operand.vmem [shape: f32[2,1,64], index: 10, kind: input, shape index: {}]   ;;  %s13680_s11 = inlined_call_operand.vmem [shape: f32[2,1,64], index: 11, kind: input, shape index: {}]   ;;  %s13681_s12 = inlined_call_operand.vmem [shape: f32[2,1,64], index: 12, kind: input, shape index: {}]   ;;  %s13682_s13 = inlined_call_operand.vmem [shape: bf16[2,64,256], index: 13, kind: input, shape index: {}]   ;;  %s13683_s14 = inlined_call_operand.vmem [shape: f32[2,1,256], index: 14, kind: input, shape index: {}]   ;;  %s13684_s15 = inlined_call_operand.vmem [shape: bf16[2,256,64], index: 15, kind: input, shape index: {}]   ;;  %s13685_s16 = inlined_call_operand.vmem [shape: f32[2,1,64], index: 16, kind: input, shape index: {}]   ;;  %s13686_s17 = inlined_call_operand.vmem [shape: f32[1,64], index: 17, kind: input, shape index: {}]   ;;  %s13687_s18 = inlined_call_operand.vmem [shape: f32[1,64], index: 18, kind: input, shape index: {}]   ;;  %s13688_s19 = inlined_call_operand.vmem [shape: bf16[64,64], index: 19, kind: input, shape index: {}]   ;;  %s13689_s20 = inlined_call_operand.hbm [shape: f32[2,1,64], index: 20, kind: output, shape index: {}]  }
   0x1   :  { %13729 = sst [smem:[#allocation19_spill]] %s13669_s0 }
   0x2   :  { %13730 = sst [smem:[#allocation20_spill]] %s13670_s1 }
   0x3   :  { %13731 = sst [smem:[#allocation21_spill]] %s13671_s2 }
   0x4   :  { %13732 = sst [smem:[#allocation22_spill]] %s13672_s3 }
   0x5   :  { %13733 = sst [smem:[#allocation23_spill]] %s13673_s4 }
   0x6   :  { %13734 = sst [smem:[#allocation24_spill]] %s13689_s20 }
   0x7   :  { %25 = vsyncpa [#allocation3], 0 }
   0x8   :  { %27 = vsyncpa [#allocation3 + $0x1], 0  ;;  %s10920_s1 = smov 0   ;;  %s10922_s22 = smov 0  }
   0x9   :  { %s10924_s23 = smov 0   ;;  %s10926_s24 = smov 0  }
   0xa LB: > { %13735 = sst [smem:[#allocation5_spill]] %s10789_s1  ;;  %s10941_s2 = sadd.s32 4294967295, %s10801_s24   ;;  %s10801_s24 = sphi %s10926_s24, %s13786_s24   ;;  %s10797_s23 = sphi %s10924_s23, %s13788_s23   ;;  %s10793_s22 = sphi %s10922_s22, %s13790_s22   ;;  %s10789_s1 = sphi %s10920_s1, %s13789_s1  }
   0xb   : > { %13736 = sst [smem:[#allocation6_spill]] %s10797_s23  ;;  %s8266_s25 = sadd.s32 4294967294, %s10801_s24  }
   0xc   : > { %13737 = sst [smem:[#allocation7_spill]] %s10801_s24  ;;  %s10945_s3 = sadd.s32 1, %s10801_s24  }
   0xd   : > { %13738 = sst [smem:[#allocation8_spill]] %s10945_s3  ;;  %s465_s26 = sadd.s32 1, %s10797_s23 }
   0xe   : > { %s462_s27 = ssub.s32 %s10801_s24, %s10945_s3  ;;  %p475_p0 = scmp.ne.s32.totalorder %s10797_s23, %s10793_s22 }
   0xf   : > { %p463_p1 = scmp.eq.s32.totalorder %s462_s27, 0  ;;  %p476_p2 = scmp.eq.s32.totalorder %s10941_s2, 1 }
  0x10   : > { %p481_p3 = scmp.ne.s32.totalorder %s10793_s22, %s10789_s1  ;;  %p482_p4 = scmp.eq.s32.totalorder %s8266_s25, 1 }
  0x11   : > { %s10956_s28 = scalar_select %p463_p1, %s10797_s23, %s465_s26  }
  0x12   : > { %p10958_p5 = por %p476_p2, %p475_p0  ;;  %p10962_p6 = por %p482_p4, %p481_p3 }
  0x13   : > { %13739 = sst [smem:[#allocation9_spill]] %s10956_s28  ;;  %p8269_p7 = scmp.ge.s32.totalorder %s10801_s24, 1 }
  0x14   : > { %s13741_s29 = scalar_select %p10962_p6, 1, 0 }
  0x15   : > { %p565_p8 = scmp.lt.s32.totalorder %s10801_s24, 3 }
  0x16   : > { %13742 = sst [smem:[#allocation10_spill]] %s13741_s29 }
  0x17   : > { %p566_p9 = pnand %p8269_p7, %p565_p8 }
  0x19   : > { %569 = sbr.rel (%p566_p9) target bundleno = 7623 (0x1dc7), region = 100 }
  0x20   : > { %s13743_s21 = sld [smem:[#allocation20_spill]]  ;;  %p622_p10 = scmp.lt.s32.totalorder %s10941_s2, 1  ;;  %vm3469_vm0 = vcmask 523264   ;;  %vm3874_vm1 = vcmask 130048   ;;  %vm4061_vm2 = vcmask 1043456   ;;  %vm3977_vm4 = vcmask 457728  }
  0x21   : > { %s13744_s20 = sld [smem:[#allocation19_spill]]  ;;  %s13745_s30 = sld [smem:[#allocation21_spill]]  ;;  %vm5105_vm5 = vcmask 261120   ;;  %vm5113_vm6 = vcmask 392192   ;;  %vm8105_vm7 = vcmask 516096   ;;  %vm10813_vm8 = vmmov 0  }
  0x22   : > { %s623_s28 = scalar_select %p622_p10, %s10941_s2, 1 }
  0x23   : > { %s13746_s27 = sld [smem:[#allocation22_spill]]  ;;  %s13747_s3 = sld [smem:[#allocation23_spill]] }
  0x24   : > { %s9882_s25 = smul.u32 672, %s623_s28  ;;  %s13721_s1 = smov 48  }
  0x25   : > { %s13719_s29 = smov 112   ;;  %s13715_s0 = smov 16  }
  0x26   : > { %v10023_v0 = vld [vmem:[%s13743_s21 + $0x40] sm:$0xff]   ;;  %v10027_v4 = vld [vmem:[%s13743_s21 + $0x48] sm:$0xff]   ;;  %v10031_v8 = vld [vmem:[%s13743_s21 + $0x50] sm:$0xff]   ;;  %s13711_s28 = smov 80   ;;  %s13771_s23 = smov 96  }
  0x27   : > { %v10024_v1 = vld [vmem:[%s13743_s21 + $0xc0] sm:$0xff]   ;;  %8833 = vmatprep.subr.bf16.mxu0 %v10023_v0  ;;  %v10028_v5 = vld [vmem:[%s13743_s21 + $0xc8] sm:$0xff]   ;;  %v10032_v9 = vld [vmem:[%s13743_s21 + $0xd0] sm:$0xff]   ;;  %s11063_s24 = scalar_lea.vmem %s13744_s20, %s9882_s25  ;;  %s10805_s20 = smov 64  }
  0x28   : > { %v10025_v2 = vld [vmem:[%s13743_s21] sm:$0xff]   ;;  %8873 = vmatprep.subr.bf16.mxu1 %v10024_v1  ;;  %v10029_v6 = vld [vmem:[%s13743_s21 + $0x8] sm:$0xff]   ;;  %v10033_v10 = vld [vmem:[%s13743_s21 + $0x10] sm:$0xff]   ;;  %s13717_s25 = smov 32   ;;  %s620_s26 = sand.u32 1, %s10793_s22  }
  0x29   : > { %v10026_v3 = vld [vmem:[%s13743_s21 + $0x80] sm:$0xff]   ;;  %8834 = vmatpush3.bf16.msra.mxu0 %v10025_v2  ;;  %v10030_v7 = vld [vmem:[%s13743_s21 + $0x88] sm:$0xff]   ;;  %v10034_v11 = vld [vmem:[%s13743_s21 + $0x90] sm:$0xff]  }
  0x2a   : > { %8874 = vmatpush3.bf16.msra.mxu1 %v10026_v3  ;;  %8835 = vmatprep.subr.bf16.mxu0 %v10027_v4  ;;  %v10035_v12 = vld [vmem:[%s13743_s21 + $0x58] sm:$0xff]   ;;  %v10039_v16 = vld [vmem:[%s13743_s21 + $0x60] sm:$0xff]   ;;  %v10043_v20 = vld [vmem:[%s13743_s21 + $0x68] sm:$0xff]  }
  0x2b   : > { %8875 = vmatprep.subr.bf16.mxu1 %v10028_v5  ;;  %v10036_v13 = vld [vmem:[%s13743_s21 + $0xd8] sm:$0xff]   ;;  %v10040_v17 = vld [vmem:[%s13743_s21 + $0xe0] sm:$0xff]   ;;  %v10044_v21 = vld [vmem:[%s13743_s21 + $0xe8] sm:$0xff]  }
  0x2c   : > { %v10037_v14 = vld [vmem:[%s13743_s21 + $0x18] sm:$0xff]   ;;  %v10041_v18 = vld [vmem:[%s13743_s21 + $0x20] sm:$0xff]   ;;  %v10045_v22 = vld [vmem:[%s13743_s21 + $0x28] sm:$0xff]  }
  0x2d   : > { %8836 = vmatpush3.bf16.msra.mxu0 %v10029_v6  ;;  %v10038_v15 = vld [vmem:[%s13743_s21 + $0x98] sm:$0xff]   ;;  %v10042_v19 = vld [vmem:[%s13743_s21 + $0xa0] sm:$0xff]   ;;  %v10046_v23 = vld [vmem:[%s13743_s21 + $0xa8] sm:$0xff]  }
  0x2e   : > { %8876 = vmatpush3.bf16.msra.mxu1 %v10030_v7  ;;  %8837 = vmatprep.subr.bf16.mxu0 %v10031_v8  ;;  %v10047_v24 = vld [vmem:[%s13743_s21 + $0x70] sm:$0xff]   ;;  %v10051_v28 = vld [vmem:[%s13743_s21 + $0x78] sm:$0xff]   ;;  %v628_v32 = vld [vmem:[%s11063_s24] sm:$0xff] }
  0x2f   : > { %8877 = vmatprep.subr.bf16.mxu1 %v10032_v9  ;;  %v10048_v25 = vld [vmem:[%s13743_s21 + $0xf0] sm:$0xff]   ;;  %v10052_v29 = vld [vmem:[%s13743_s21 + $0xf8] sm:$0xff]   ;;  %v640_v33 = vld [vmem:[%s11063_s24 + $0x60] sm:$0xff] }
  0x30   : > { %v10049_v26 = vld [vmem:[%s13743_s21 + $0x30] sm:$0xff]   ;;  %v10053_v30 = vld [vmem:[%s13743_s21 + $0x38] sm:$0xff]   ;;  %v629_v34 = vld [vmem:[%s11063_s24 + $0x8] sm:$0xff]  ;;  %v8271_v35 = vcombine.low %v628_v32, %v640_v33  ;;  %v8272_v36 = vcombine.high %v628_v32, %v640_v33 }
  0x31   : > { %8838 = vmatpush3.bf16.msra.mxu0 %v10033_v10  ;;  %v10050_v27 = vld [vmem:[%s13743_s21 + $0xb0] sm:$0xff]   ;;  %v10054_v31 = vld [vmem:[%s13743_s21 + $0xb8] sm:$0xff]   ;;  %v641_v37 = vld [vmem:[%s11063_s24 + $0x68] sm:$0xff] }
  0x32   : > { %8878 = vmatpush3.bf16.msra.mxu1 %v10034_v11  ;;  %8839 = vmatprep.subr.bf16.mxu0 %v10035_v12  ;;  %v8273_v38 = vcombine.low %v629_v34, %v641_v37  ;;  %v8274_v39 = vcombine.high %v629_v34, %v641_v37  ;;  %v10055_v40 = vld [vmem:[%s13743_s21 + $0x140] sm:$0xff]   ;;  %v10059_v44 = vld [vmem:[%s13743_s21 + $0x148] sm:$0xff]   ;;  %v10063_v56 = vld [vmem:[%s13743_s21 + $0x150] sm:$0xff]  }
  0x33   : > { %8879 = vmatprep.subr.bf16.mxu1 %v10036_v13  ;;  %2731 = vmatprep.mubr.bf16.mxu0 %v8272_v36  ;;  %v10056_v41 = vld [vmem:[%s13743_s21 + $0x1c0] sm:$0xff]   ;;  %v10060_v45 = vld [vmem:[%s13743_s21 + $0x1c8] sm:$0xff]   ;;  %v10064_v57 = vld [vmem:[%s13743_s21 + $0x1d0] sm:$0xff]  }
  0x34   : > { %2795 = vmatprep.mubr.bf16.mxu1 %v8274_v39  ;;  %v10057_v42 = vld [vmem:[%s13743_s21 + $0x100] sm:$0xff]   ;;  %v10061_v46 = vld [vmem:[%s13743_s21 + $0x108] sm:$0xff]   ;;  %v10065_v58 = vld [vmem:[%s13743_s21 + $0x110] sm:$0xff]  }
  0x35   : > { %8840 = vmatpush3.bf16.msra.mxu0 %v10037_v14  ;;  %v10058_v43 = vld [vmem:[%s13743_s21 + $0x180] sm:$0xff]   ;;  %v10062_v47 = vld [vmem:[%s13743_s21 + $0x188] sm:$0xff]   ;;  %v10066_v59 = vld [vmem:[%s13743_s21 + $0x190] sm:$0xff]  }
  0x36   : > { %8880 = vmatpush3.bf16.msra.mxu1 %v10038_v15  ;;  %8841 = vmatprep.subr.bf16.mxu0 %v10039_v16  ;;  %v652_v48 = vld [vmem:[%s11063_s24 + $0xc0] sm:$0xff]  ;;  %v653_v51 = vld [vmem:[%s11063_s24 + $0xc8] sm:$0xff]  ;;  %v10067_v60 = vld [vmem:[%s13743_s21 + $0x158] sm:$0xff]  }
  0x37   : > { %8881 = vmatprep.subr.bf16.mxu1 %v10040_v17  ;;  %v664_v49 = vld [vmem:[%s11063_s24 + $0x120] sm:$0xff]  ;;  %v665_v52 = vld [vmem:[%s11063_s24 + $0x128] sm:$0xff]  ;;  %v10068_v61 = vld [vmem:[%s13743_s21 + $0x1d8] sm:$0xff]  }
  0x38   : > { %v8296_v50 = vcombine.high %v652_v48, %v664_v49  ;;  %v8295_v53 = vcombine.low %v652_v48, %v664_v49  ;;  %v8298_v54 = vcombine.high %v653_v51, %v665_v52  ;;  %v8297_v55 = vcombine.low %v653_v51, %v665_v52  ;;  %v10069_v62 = vld [vmem:[%s13743_s21 + $0x118] sm:$0xff]   ;;  %v676_v0 = vld [vmem:[%s11063_s24 + $0x180] sm:$0xff]  ;;  %v677_v2 = vld [vmem:[%s11063_s24 + $0x188] sm:$0xff] }
  0x39   : > { %8842 = vmatpush3.bf16.msra.mxu0 %v10041_v18  ;;  %v10070_v63 = vld [vmem:[%s13743_s21 + $0x198] sm:$0xff]   ;;  %v688_v1 = vld [vmem:[%s11063_s24 + $0x1e0] sm:$0xff]  ;;  %v689_v3 = vld [vmem:[%s11063_s24 + $0x1e8] sm:$0xff] }
  0x3a   : > { %8882 = vmatpush3.bf16.msra.mxu1 %v10042_v19  ;;  %8843 = vmatprep.subr.bf16.mxu0 %v10043_v20  ;;  %v8320_v4 = vcombine.high %v676_v0, %v688_v1  ;;  %v8322_v5 = vcombine.high %v677_v2, %v689_v3  ;;  %v8319_v6 = vcombine.low %v676_v0, %v688_v1  ;;  %v10071_v8 = vld [vmem:[%s13743_s21 + $0x160] sm:$0xff]   ;;  %v10075_v12 = vld [vmem:[%s13743_s21 + $0x168] sm:$0xff]   ;;  %v631_v32 = vld [vmem:[%s11063_s24 + $0x18] sm:$0xff] }
  0x3b   : > { %8883 = vmatprep.subr.bf16.mxu1 %v10044_v21  ;;  %v8321_v7 = vcombine.low %v677_v2, %v689_v3  ;;  %v10072_v9 = vld [vmem:[%s13743_s21 + $0x1e0] sm:$0xff]   ;;  %v10076_v13 = vld [vmem:[%s13743_s21 + $0x1e8] sm:$0xff]   ;;  %v10083_v21 = vld [vmem:[%s13743_s21 + $0x170] sm:$0xff]  }
  0x3c   : > { %v10073_v10 = vld [vmem:[%s13743_s21 + $0x120] sm:$0xff]   ;;  %v10077_v14 = vld [vmem:[%s13743_s21 + $0x128] sm:$0xff]   ;;  %v643_v33 = vld [vmem:[%s11063_s24 + $0x78] sm:$0xff] }
  0x3d   : > { %8844 = vmatpush3.bf16.msra.mxu0 %v10045_v22  ;;  %v10074_v11 = vld [vmem:[%s13743_s21 + $0x1a0] sm:$0xff]   ;;  %v10078_v15 = vld [vmem:[%s13743_s21 + $0x1a8] sm:$0xff]   ;;  %v8277_v36 = vcombine.low %v631_v32, %v643_v33  ;;  %v655_v48 = vld [vmem:[%s11063_s24 + $0xd8] sm:$0xff] }
  0x3e   : > { %8884 = vmatpush3.bf16.msra.mxu1 %v10046_v23  ;;  %8845 = vmatprep.subr.bf16.mxu0 %v10047_v24  ;;  %v700_v16 = vld [vmem:[%s11063_s24 + $0x240] sm:$0xff]  ;;  %v701_v17 = vld [vmem:[%s11063_s24 + $0x248] sm:$0xff]  ;;  %v10084_v23 = vld [vmem:[%s13743_s21 + $0x1f0] sm:$0xff]  }
  0x3f   : > { %8885 = vmatprep.subr.bf16.mxu1 %v10048_v25  ;;  %v8344_v18 = vcombine.high %v700_v16, %v700_v16  ;;  %v8346_v19 = vcombine.high %v701_v17, %v701_v17  ;;  %v8343_v20 = vcombine.low %v700_v16, %v700_v16  ;;  %v8345_v22 = vcombine.low %v701_v17, %v701_v17  ;;  %v10085_v24 = vld [vmem:[%s13743_s21 + $0x130] sm:$0xff]   ;;  %v10091_v37 = vld [vmem:[%s13743_s21 + $0x240] sm:$0xff]   ;;  %v679_v1 = vld [vmem:[%s11063_s24 + $0x198] sm:$0xff] }
  0x40   : > { %v10086_v25 = vld [vmem:[%s13743_s21 + $0x1b0] sm:$0xff]   ;;  %v10092_v39 = vld [vmem:[%s13743_s21 + $0x2c0] sm:$0xff]   ;;  %v691_v2 = vld [vmem:[%s11063_s24 + $0x1f8] sm:$0xff] }
  0x41   : > { %8846 = vmatpush3.bf16.msra.mxu0 %v10049_v26  ;;  %v10087_v26 = vld [vmem:[%s13743_s21 + $0x178] sm:$0xff]  }
  0x42   : > { %8886 = vmatpush3.bf16.msra.mxu1 %v10050_v27  ;;  %8847 = vmatprep.subr.bf16.mxu0 %v10051_v28  ;;  %v10088_v27 = vld [vmem:[%s13743_s21 + $0x1f8] sm:$0xff]  }
  0x43   : > { %8887 = vmatprep.subr.bf16.mxu1 %v10052_v29  ;;  %v10089_v28 = vld [vmem:[%s13743_s21 + $0x138] sm:$0xff]  }
  0x44   : > { %v10090_v29 = vld [vmem:[%s13743_s21 + $0x1b8] sm:$0xff]  }
  0x45   : > { %8848 = vmatpush3.bf16.msra.mxu0 %v10053_v30  ;;  %v630_v30 = vld [vmem:[%s11063_s24 + $0x10] sm:$0xff]  ;;  %v703_v16 = vld [vmem:[%s11063_s24 + $0x258] sm:$0xff] }
  0x46   : > { %8888 = vmatpush3.bf16.msra.mxu1 %v10054_v31  ;;  %8913 = vmatprep.subr.bf16.mxu0 %v10055_v40  ;;  %v642_v31 = vld [vmem:[%s11063_s24 + $0x70] sm:$0xff]  ;;  %v10093_v40 = vld [vmem:[%s13743_s21 + $0x200] sm:$0xff]  }
  0x47   : > { %8953 = vmatprep.subr.bf16.mxu1 %v10056_v41  ;;  %v8275_v34 = vcombine.low %v630_v30, %v642_v31  ;;  %v10094_v41 = vld [vmem:[%s13743_s21 + $0x280] sm:$0xff]  }
  0x48   : > { %2732 = vmatmul.mubr.bf16.vlgmr.msra.gmra.mrb[0].mxu0 %v8271_v35  ;;  %v8276_v35 = vcombine.high %v630_v30, %v642_v31 }
  0x49   : > { %2796 = vmatmul.mubr.bf16.vlgmr.msra.gmra.mrb[0].mxu1 %v8273_v38  ;;  %8914 = vmatpush3.bf16.msra.mxu0 %v10057_v42  ;;  %v8278_v38 = vcombine.high %v631_v32, %v643_v33  ;;  %v10095_v42 = vld [vmem:[%s13743_s21 + $0x248] sm:$0xff]  }
  0x4a   : > { %8954 = vmatpush3.bf16.msra.mxu1 %v10058_v43  ;;  %8915 = vmatprep.subr.bf16.mxu0 %v10059_v44  ;;  %v10096_v43 = vld [vmem:[%s13743_s21 + $0x2c8] sm:$0xff]  }
  0x4b   : > { %8955 = vmatprep.subr.bf16.mxu1 %v10060_v45  ;;  %2739 = vmatprep.mubr.bf16.mxu0 %v8296_v50  ;;  %v10097_v44 = vld [vmem:[%s13743_s21 + $0x208] sm:$0xff]   ;;  %v667_v50 = vld [vmem:[%s11063_s24 + $0x138] sm:$0xff] }
  0x4c   : > { %2803 = vmatprep.mubr.bf16.mxu1 %v8298_v54  ;;  %v10098_v45 = vld [vmem:[%s13743_s21 + $0x288] sm:$0xff]   ;;  %v8302_v52 = vcombine.high %v655_v48, %v667_v50  ;;  %v10099_v54 = vld [vmem:[%s13743_s21 + $0x250] sm:$0xff]  }
  0x4d   : > { %8916 = vmatpush3.bf16.msra.mxu0 %v10061_v46  ;;  %v654_v46 = vld [vmem:[%s11063_s24 + $0xd0] sm:$0xff]  ;;  %v633_v32 = vld [vmem:[%s11063_s24 + $0x28] sm:$0xff] }
  0x4e   : > { %8956 = vmatpush3.bf16.msra.mxu1 %v10062_v47  ;;  %8917 = vmatprep.subr.bf16.mxu0 %v10063_v56  ;;  %v666_v47 = vld [vmem:[%s11063_s24 + $0x130] sm:$0xff]  ;;  %v645_v33 = vld [vmem:[%s11063_s24 + $0x88] sm:$0xff] }
  0x4f   : > { %8957 = vmatprep.subr.bf16.mxu1 %v10064_v57  ;;  %v8300_v49 = vcombine.high %v654_v46, %v666_v47  ;;  %v8299_v51 = vcombine.low %v654_v46, %v666_v47  ;;  %v10101_v56 = vld [vmem:[%s13743_s21 + $0x210] sm:$0xff]   ;;  %v657_v46 = vld [vmem:[%s11063_s24 + $0xe8] sm:$0xff] }
  0x50   : > { %2740 = vmatmul.mubr.bf16.gmra.mrb[4].mxu0 %v8295_v53  ;;  %v8301_v53 = vcombine.low %v655_v48, %v667_v50  ;;  %v10102_v57 = vld [vmem:[%s13743_s21 + $0x290] sm:$0xff]   ;;  %v669_v47 = vld [vmem:[%s11063_s24 + $0x148] sm:$0xff] }
  0x51   : > { %2804 = vmatmul.mubr.bf16.gmra.mrb[4].mxu1 %v8297_v55  ;;  %8918 = vmatpush3.bf16.msra.mxu0 %v10065_v58  ;;  %v10100_v55 = vld [vmem:[%s13743_s21 + $0x2d0] sm:$0xff]   ;;  %v10103_v58 = vld [vmem:[%s13743_s21 + $0x258] sm:$0xff]  }
  0x52   : > { %8958 = vmatpush3.bf16.msra.mxu1 %v10066_v59  ;;  %8919 = vmatprep.subr.bf16.mxu0 %v10067_v60  ;;  %v10104_v59 = vld [vmem:[%s13743_s21 + $0x2d8] sm:$0xff]  }
  0x53   : > { %8959 = vmatprep.subr.bf16.mxu1 %v10068_v61  ;;  %2747 = vmatprep.mubr.bf16.mxu0 %v8320_v4  ;;  %v10105_v60 = vld [vmem:[%s13743_s21 + $0x218] sm:$0xff]   ;;  %v8326_v4 = vcombine.high %v679_v1, %v691_v2 }
  0x54   : > { %2811 = vmatprep.mubr.bf16.mxu1 %v8322_v5  ;;  %v10106_v61 = vld [vmem:[%s13743_s21 + $0x298] sm:$0xff]   ;;  %v8325_v5 = vcombine.low %v679_v1, %v691_v2 }
  0x55   : > { %8920 = vmatpush3.bf16.msra.mxu0 %v10069_v62  ;;  %v678_v62 = vld [vmem:[%s11063_s24 + $0x190] sm:$0xff] }
  0x56   : > { %8960 = vmatpush3.bf16.msra.mxu1 %v10070_v63  ;;  %8921 = vmatprep.subr.bf16.mxu0 %v10071_v8  ;;  %v690_v63 = vld [vmem:[%s11063_s24 + $0x1f0] sm:$0xff]  ;;  %v10109_v8 = vld [vmem:[%s13743_s21 + $0x220] sm:$0xff]  }
  0x57   : > { %8961 = vmatprep.subr.bf16.mxu1 %v10072_v9  ;;  %v8324_v0 = vcombine.high %v678_v62, %v690_v63  ;;  %v8323_v3 = vcombine.low %v678_v62, %v690_v63  ;;  %v10110_v9 = vld [vmem:[%s13743_s21 + $0x2a0] sm:$0xff]   ;;  %v681_v62 = vld [vmem:[%s11063_s24 + $0x1a8] sm:$0xff] }
  0x58   : > { %2748 = vmatmul.mubr.bf16.gmra.mrb[8].mxu0 %v8319_v6  ;;  %v10107_v6 = vld [vmem:[%s13743_s21 + $0x260] sm:$0xff]  }
  0x59   : > { %2812 = vmatmul.mubr.bf16.gmra.mrb[8].mxu1 %v8321_v7  ;;  %8922 = vmatpush3.bf16.msra.mxu0 %v10073_v10  ;;  %v10108_v7 = vld [vmem:[%s13743_s21 + $0x2e0] sm:$0xff]   ;;  %v10111_v10 = vld [vmem:[%s13743_s21 + $0x268] sm:$0xff]  }
  0x5a   : > { %8962 = vmatpush3.bf16.msra.mxu1 %v10074_v11  ;;  %8923 = vmatprep.subr.bf16.mxu0 %v10075_v12  ;;  %v10112_v11 = vld [vmem:[%s13743_s21 + $0x2e8] sm:$0xff]  }
  0x5b   : > { %8963 = vmatprep.subr.bf16.mxu1 %v10076_v13  ;;  %2755 = vmatprep.mubr.bf16.mxu0 %v8344_v18  ;;  %v10113_v12 = vld [vmem:[%s13743_s21 + $0x228] sm:$0xff]   ;;  %v8350_v18 = vcombine.high %v703_v16, %v703_v16 }
  0x5c   : > { %2819 = vmatprep.mubr.bf16.mxu1 %v8346_v19  ;;  %v10114_v13 = vld [vmem:[%s13743_s21 + $0x2a8] sm:$0xff]   ;;  %v8349_v19 = vcombine.low %v703_v16, %v703_v16 }
  0x5d   : > { %8924 = vmatpush3.bf16.msra.mxu0 %v10077_v14  ;;  %v702_v14 = vld [vmem:[%s11063_s24 + $0x250] sm:$0xff] }
  0x5e   : > { %8964 = vmatpush3.bf16.msra.mxu1 %v10078_v15  ;;  %8925 = vmatprep.subr.bf16.mxu0 %v10083_v21  ;;  %v8348_v15 = vcombine.high %v702_v14, %v702_v14  ;;  %v8347_v17 = vcombine.low %v702_v14, %v702_v14  ;;  %v10120_v21 = vld [vmem:[%s13743_s21 + $0x2f0] sm:$0xff]  }
  0x5f   : > { %8965 = vmatprep.subr.bf16.mxu1 %v10084_v23  ;;  %v10122_v23 = vld [vmem:[%s13743_s21 + $0x2b0] sm:$0xff]  }
  0x60   : > { %2756 = vmatmul.mubr.bf16.gmra.mrb[12].mxu0 %v8343_v20  ;;  %v10119_v20 = vld [vmem:[%s13743_s21 + $0x270] sm:$0xff]  }
  0x61   : > { %2820 = vmatmul.mubr.bf16.gmra.mrb[12].mxu1 %v8345_v22  ;;  %8926 = vmatpush3.bf16.msra.mxu0 %v10085_v24  ;;  %v10121_v22 = vld [vmem:[%s13743_s21 + $0x230] sm:$0xff]   ;;  %v10123_v24 = vld [vmem:[%s13743_s21 + $0x278] sm:$0xff]  }
  0x62   : > { %8966 = vmatpush3.bf16.msra.mxu1 %v10086_v25  ;;  %8927 = vmatprep.subr.bf16.mxu0 %v10087_v26  ;;  %v10124_v25 = vld [vmem:[%s13743_s21 + $0x2f8] sm:$0xff]  }
  0x63   : > { %8967 = vmatprep.subr.bf16.mxu1 %v10088_v27  ;;  %2859 = vmatprep.mubr.bf16.mxu0 %v8276_v35  ;;  %v10125_v26 = vld [vmem:[%s13743_s21 + $0x238] sm:$0xff]   ;;  %v8282_v35 = vcombine.high %v633_v32, %v645_v33 }
  0x64   : > { %2923 = vmatprep.mubr.bf16.mxu1 %v8278_v38  ;;  %v10126_v27 = vld [vmem:[%s13743_s21 + $0x2b8] sm:$0xff]   ;;  %v10129_v38 = vld [vmem:[%s13743_s21 + $0x300] sm:$0xff]  }
  0x65   : > { %8928 = vmatpush3.bf16.msra.mxu0 %v10089_v28  ;;  %v632_v28 = vld [vmem:[%s11063_s24 + $0x20] sm:$0xff] }
  0x66   : > { %8968 = vmatpush3.bf16.msra.mxu1 %v10090_v29  ;;  %8993 = vmatprep.subr.bf16.mxu0 %v10091_v37  ;;  %v644_v29 = vld [vmem:[%s11063_s24 + $0x80] sm:$0xff] }
  0x67   : > { %9033 = vmatprep.subr.bf16.mxu1 %v10092_v39  ;;  %v8279_v30 = vcombine.low %v632_v28, %v644_v29  ;;  %v8280_v31 = vcombine.high %v632_v28, %v644_v29  ;;  %v10128_v37 = vld [vmem:[%s13743_s21 + $0x3c0] sm:$0xff]   ;;  %v635_v28 = vld [vmem:[%s11063_s24 + $0x38] sm:$0xff] }
  0x68   : > { %2860 = vmatmul.mubr.bf16.vlgmr.msra.gmra.mrb[16].mxu0 %v8275_v34  ;;  %v8281_v34 = vcombine.low %v633_v32, %v645_v33  ;;  %v10130_v39 = vld [vmem:[%s13743_s21 + $0x380] sm:$0xff]  }
  0x69   : > { %2924 = vmatmul.mubr.bf16.vlgmr.msra.gmra.mrb[16].mxu1 %v8277_v36  ;;  %8994 = vmatpush3.bf16.msra.mxu0 %v10093_v40  ;;  %v10127_v36 = vld [vmem:[%s13743_s21 + $0x340] sm:$0xff]   ;;  %v10131_v40 = vld [vmem:[%s13743_s21 + $0x348] sm:$0xff]  }
  0x6a   : > { %9034 = vmatpush3.bf16.msra.mxu1 %v10094_v41  ;;  %8995 = vmatprep.subr.bf16.mxu0 %v10095_v42  ;;  %v10132_v41 = vld [vmem:[%s13743_s21 + $0x3c8] sm:$0xff]  }
  0x6b   : > { %9035 = vmatprep.subr.bf16.mxu1 %v10096_v43  ;;  %2867 = vmatprep.mubr.bf16.mxu0 %v8300_v49  ;;  %v10133_v42 = vld [vmem:[%s13743_s21 + $0x308] sm:$0xff]   ;;  %v8306_v49 = vcombine.high %v657_v46, %v669_v47 }
  0x6c   : > { %2931 = vmatprep.mubr.bf16.mxu1 %v8302_v52  ;;  %v10134_v43 = vld [vmem:[%s13743_s21 + $0x388] sm:$0xff]   ;;  %v10135_v52 = vld [vmem:[%s13743_s21 + $0x350] sm:$0xff]  }
  0x6d   : > { %8996 = vmatpush3.bf16.msra.mxu0 %v10097_v44  ;;  %v656_v44 = vld [vmem:[%s11063_s24 + $0xe0] sm:$0xff] }
  0x6e   : > { %9036 = vmatpush3.bf16.msra.mxu1 %v10098_v45  ;;  %8997 = vmatprep.subr.bf16.mxu0 %v10099_v54  ;;  %v668_v45 = vld [vmem:[%s11063_s24 + $0x140] sm:$0xff]  ;;  %v10137_v54 = vld [vmem:[%s13743_s21 + $0x310] sm:$0xff]  }
  0x6f   : > { %9037 = vmatprep.subr.bf16.mxu1 %v10100_v55  ;;  %v8304_v48 = vcombine.high %v656_v44, %v668_v45  ;;  %v8303_v50 = vcombine.low %v656_v44, %v668_v45  ;;  %v10138_v55 = vld [vmem:[%s13743_s21 + $0x390] sm:$0xff]   ;;  %v659_v45 = vld [vmem:[%s11063_s24 + $0xf8] sm:$0xff] }
  0x70   : > { %2868 = vmatmul.mubr.bf16.gmra.mrb[20].mxu0 %v8299_v51  ;;  %v8305_v51 = vcombine.low %v657_v46, %v669_v47  ;;  %v671_v46 = vld [vmem:[%s11063_s24 + $0x158] sm:$0xff] }
  0x71   : > { %2932 = vmatmul.mubr.bf16.gmra.mrb[20].mxu1 %v8301_v53  ;;  %8998 = vmatpush3.bf16.msra.mxu0 %v10101_v56  ;;  %v10136_v53 = vld [vmem:[%s13743_s21 + $0x3d0] sm:$0xff]   ;;  %v10139_v56 = vld [vmem:[%s13743_s21 + $0x358] sm:$0xff]  }
  0x72   : > { %9038 = vmatpush3.bf16.msra.mxu1 %v10102_v57  ;;  %8999 = vmatprep.subr.bf16.mxu0 %v10103_v58  ;;  %v10140_v57 = vld [vmem:[%s13743_s21 + $0x3d8] sm:$0xff]  }
  0x73   : > { %9039 = vmatprep.subr.bf16.mxu1 %v10104_v59  ;;  %2875 = vmatprep.mubr.bf16.mxu0 %v8324_v0  ;;  %v10141_v58 = vld [vmem:[%s13743_s21 + $0x318] sm:$0xff]   ;;  %v693_v0 = vld [vmem:[%s11063_s24 + $0x208] sm:$0xff] }
  0x74   : > { %2939 = vmatprep.mubr.bf16.mxu1 %v8326_v4  ;;  %v10142_v59 = vld [vmem:[%s13743_s21 + $0x398] sm:$0xff]   ;;  %v8330_v2 = vcombine.high %v681_v62, %v693_v0  ;;  %v10143_v4 = vld [vmem:[%s13743_s21 + $0x360] sm:$0xff]  }
  0x75   : > { %9000 = vmatpush3.bf16.msra.mxu0 %v10105_v60  ;;  %v680_v60 = vld [vmem:[%s11063_s24 + $0x1a0] sm:$0xff] }
  0x76   : > { %9040 = vmatpush3.bf16.msra.mxu1 %v10106_v61  ;;  %9001 = vmatprep.subr.bf16.mxu0 %v10107_v6  ;;  %v692_v61 = vld [vmem:[%s11063_s24 + $0x200] sm:$0xff] }
  0x77   : > { %9041 = vmatprep.subr.bf16.mxu1 %v10108_v7  ;;  %v8328_v63 = vcombine.high %v680_v60, %v692_v61  ;;  %v8327_v1 = vcombine.low %v680_v60, %v692_v61  ;;  %v10145_v6 = vld [vmem:[%s13743_s21 + $0x320] sm:$0xff]   ;;  %v683_v60 = vld [vmem:[%s11063_s24 + $0x1b8] sm:$0xff] }
  0x78   : > { %2876 = vmatmul.mubr.bf16.gmra.mrb[24].mxu0 %v8323_v3  ;;  %v8329_v3 = vcombine.low %v681_v62, %v693_v0  ;;  %v10146_v7 = vld [vmem:[%s13743_s21 + $0x3a0] sm:$0xff]   ;;  %v695_v61 = vld [vmem:[%s11063_s24 + $0x218] sm:$0xff] }
  0x79   : > { %2940 = vmatmul.mubr.bf16.gmra.mrb[24].mxu1 %v8325_v5  ;;  %9002 = vmatpush3.bf16.msra.mxu0 %v10109_v8  ;;  %v10144_v5 = vld [vmem:[%s13743_s21 + $0x3e0] sm:$0xff]   ;;  %v10147_v8 = vld [vmem:[%s13743_s21 + $0x368] sm:$0xff]  }
  0x7a   : > { %9042 = vmatpush3.bf16.msra.mxu1 %v10110_v9  ;;  %9003 = vmatprep.subr.bf16.mxu0 %v10111_v10  ;;  %v10148_v9 = vld [vmem:[%s13743_s21 + $0x3e8] sm:$0xff]  }
  0x7b   : > { %9043 = vmatprep.subr.bf16.mxu1 %v10112_v11  ;;  %2883 = vmatprep.mubr.bf16.mxu0 %v8348_v15  ;;  %v10149_v10 = vld [vmem:[%s13743_s21 + $0x328] sm:$0xff]  }
  0x7c   : > { %2947 = vmatprep.mubr.bf16.mxu1 %v8350_v18  ;;  %v10150_v11 = vld [vmem:[%s13743_s21 + $0x3a8] sm:$0xff]   ;;  %v10155_v18 = vld [vmem:[%s13743_s21 + $0x370] sm:$0xff]  }
  0x7d   : > { %9004 = vmatpush3.bf16.msra.mxu0 %v10113_v12  ;;  %v704_v12 = vld [vmem:[%s11063_s24 + $0x260] sm:$0xff] }
  0x7e   : > { %9044 = vmatpush3.bf16.msra.mxu1 %v10114_v13  ;;  %9005 = vmatprep.subr.bf16.mxu0 %v10119_v20  ;;  %v705_v13 = vld [vmem:[%s11063_s24 + $0x268] sm:$0xff]  ;;  %v8352_v14 = vcombine.high %v704_v12, %v704_v12  ;;  %v8351_v16 = vcombine.low %v704_v12, %v704_v12  ;;  %v10157_v20 = vld [vmem:[%s13743_s21 + $0x330] sm:$0xff]  }
  0x7f   : > { %9045 = vmatprep.subr.bf16.mxu1 %v10120_v21  ;;  %v8354_v15 = vcombine.high %v705_v13, %v705_v13  ;;  %v10158_v21 = vld [vmem:[%s13743_s21 + $0x3b0] sm:$0xff]  }
  0x80   : > { %2884 = vmatmul.mubr.bf16.gmra.mrb[28].mxu0 %v8347_v17  ;;  %v8353_v17 = vcombine.low %v705_v13, %v705_v13 }
  0x81   : > { %2948 = vmatmul.mubr.bf16.gmra.mrb[28].mxu1 %v8349_v19  ;;  %9006 = vmatpush3.bf16.msra.mxu0 %v10121_v22  ;;  %v10156_v19 = vld [vmem:[%s13743_s21 + $0x3f0] sm:$0xff]   ;;  %v10159_v22 = vld [vmem:[%s13743_s21 + $0x378] sm:$0xff]  }
  0x82   : > { %9046 = vmatpush3.bf16.msra.mxu1 %v10122_v23  ;;  %9007 = vmatprep.subr.bf16.mxu0 %v10123_v24  ;;  %v10160_v23 = vld [vmem:[%s13743_s21 + $0x3f8] sm:$0xff]  }
  0x83   : > { %9047 = vmatprep.subr.bf16.mxu1 %v10124_v25  ;;  %2987 = vmatprep.mubr.bf16.mxu0 %v8280_v31  ;;  %v10161_v24 = vld [vmem:[%s13743_s21 + $0x338] sm:$0xff]  }
  0x84   : > { %3051 = vmatprep.mubr.bf16.mxu1 %v8282_v35  ;;  %v10162_v25 = vld [vmem:[%s13743_s21 + $0x3b8] sm:$0xff]   ;;  %v10164_v35 = vld [vmem:[%s13743_s21 + $0x4c0] sm:$0xff]  }
  0x85   : > { %9008 = vmatpush3.bf16.msra.mxu0 %v10125_v26  ;;  %v634_v26 = vld [vmem:[%s11063_s24 + $0x30] sm:$0xff]  ;;  %v647_v31 = vld [vmem:[%s11063_s24 + $0x98] sm:$0xff] }
  0x86   : > { %9048 = vmatpush3.bf16.msra.mxu1 %v10126_v27  ;;  %9073 = vmatprep.subr.bf16.mxu0 %v10127_v36  ;;  %v646_v27 = vld [vmem:[%s11063_s24 + $0x90] sm:$0xff]  ;;  %v8285_v32 = vcombine.low %v635_v28, %v647_v31  ;;  %v8286_v33 = vcombine.high %v635_v28, %v647_v31  ;;  %v10165_v36 = vld [vmem:[%s13743_s21 + $0x400] sm:$0xff]  }
  0x87   : > { %9113 = vmatprep.subr.bf16.mxu1 %v10128_v37  ;;  %v8283_v29 = vcombine.low %v634_v26, %v646_v27  ;;  %v10166_v37 = vld [vmem:[%s13743_s21 + $0x480] sm:$0xff]  }
  0x88   : > { %2988 = vmatmul.mubr.bf16.vlgmr.msra.gmra.mrb[32].mxu0 %v8279_v30  ;;  %v8284_v30 = vcombine.high %v634_v26, %v646_v27  ;;  %v637_v26 = vld [vmem:[%s11063_s24 + $0x48] sm:$0xff]  ;;  %v10199_v31 = vld [vmem:[%s13743_s21 + $0x540] sm:$0xff]  }
  0x89   : > { %3052 = vmatmul.mubr.bf16.vlgmr.msra.gmra.mrb[32].mxu1 %v8281_v34  ;;  %9074 = vmatpush3.bf16.msra.mxu0 %v10129_v38  ;;  %v10163_v34 = vld [vmem:[%s13743_s21 + $0x440] sm:$0xff]   ;;  %v10167_v38 = vld [vmem:[%s13743_s21 + $0x448] sm:$0xff]  }
  0x8a   : > { %9114 = vmatpush3.bf16.msra.mxu1 %v10130_v39  ;;  %9075 = vmatprep.subr.bf16.mxu0 %v10131_v40  ;;  %v10168_v39 = vld [vmem:[%s13743_s21 + $0x4c8] sm:$0xff]  }
  0x8b   : > { %9115 = vmatprep.subr.bf16.mxu1 %v10132_v41  ;;  %2995 = vmatprep.mubr.bf16.mxu0 %v8304_v48  ;;  %v10169_v40 = vld [vmem:[%s13743_s21 + $0x408] sm:$0xff]   ;;  %v8310_v48 = vcombine.high %v659_v45, %v671_v46 }
  0x8c   : > { %3059 = vmatprep.mubr.bf16.mxu1 %v8306_v49  ;;  %v10170_v41 = vld [vmem:[%s13743_s21 + $0x488] sm:$0xff]   ;;  %v8309_v49 = vcombine.low %v659_v45, %v671_v46 }
  0x8d   : > { %9076 = vmatpush3.bf16.msra.mxu0 %v10133_v42  ;;  %v658_v42 = vld [vmem:[%s11063_s24 + $0xf0] sm:$0xff]  ;;  %v649_v27 = vld [vmem:[%s11063_s24 + $0xa8] sm:$0xff] }
  0x8e   : > { %9116 = vmatpush3.bf16.msra.mxu1 %v10134_v43  ;;  %9077 = vmatprep.subr.bf16.mxu0 %v10135_v52  ;;  %v670_v43 = vld [vmem:[%s11063_s24 + $0x150] sm:$0xff] }
  0x8f   : > { %9117 = vmatprep.subr.bf16.mxu1 %v10136_v53  ;;  %v8308_v44 = vcombine.high %v658_v42, %v670_v43  ;;  %v8307_v47 = vcombine.low %v658_v42, %v670_v43  ;;  %v10173_v52 = vld [vmem:[%s13743_s21 + $0x410] sm:$0xff]   ;;  %v661_v42 = vld [vmem:[%s11063_s24 + $0x108] sm:$0xff] }
  0x90   : > { %2996 = vmatmul.mubr.bf16.gmra.mrb[36].mxu0 %v8303_v50  ;;  %v10171_v50 = vld [vmem:[%s13743_s21 + $0x450] sm:$0xff]  }
  0x91   : > { %3060 = vmatmul.mubr.bf16.gmra.mrb[36].mxu1 %v8305_v51  ;;  %9078 = vmatpush3.bf16.msra.mxu0 %v10137_v54  ;;  %v10172_v51 = vld [vmem:[%s13743_s21 + $0x4d0] sm:$0xff]   ;;  %v10175_v54 = vld [vmem:[%s13743_s21 + $0x458] sm:$0xff]  }
  0x92   : > { %9118 = vmatpush3.bf16.msra.mxu1 %v10138_v55  ;;  %9079 = vmatprep.subr.bf16.mxu0 %v10139_v56  ;;  %v10174_v53 = vld [vmem:[%s13743_s21 + $0x490] sm:$0xff]   ;;  %v10176_v55 = vld [vmem:[%s13743_s21 + $0x4d8] sm:$0xff]  }
  0x93   : > { %9119 = vmatprep.subr.bf16.mxu1 %v10140_v57  ;;  %3003 = vmatprep.mubr.bf16.mxu0 %v8328_v63  ;;  %v10177_v56 = vld [vmem:[%s13743_s21 + $0x418] sm:$0xff]   ;;  %v8334_v63 = vcombine.high %v683_v60, %v695_v61 }
  0x94   : > { %3067 = vmatprep.mubr.bf16.mxu1 %v8330_v2  ;;  %v10178_v57 = vld [vmem:[%s13743_s21 + $0x498] sm:$0xff]   ;;  %v10179_v2 = vld [vmem:[%s13743_s21 + $0x460] sm:$0xff]  }
  0x95   : > { %9080 = vmatpush3.bf16.msra.mxu0 %v10141_v58  ;;  %v682_v58 = vld [vmem:[%s11063_s24 + $0x1b0] sm:$0xff] }
  0x96   : > { %9120 = vmatpush3.bf16.msra.mxu1 %v10142_v59  ;;  %9081 = vmatprep.subr.bf16.mxu0 %v10143_v4  ;;  %v694_v59 = vld [vmem:[%s11063_s24 + $0x210] sm:$0xff]  ;;  %v10181_v4 = vld [vmem:[%s13743_s21 + $0x420] sm:$0xff]  }
  0x97   : > { %9121 = vmatprep.subr.bf16.mxu1 %v10144_v5  ;;  %v8332_v62 = vcombine.high %v682_v58, %v694_v59  ;;  %v8331_v0 = vcombine.low %v682_v58, %v694_v59  ;;  %v10182_v5 = vld [vmem:[%s13743_s21 + $0x4a0] sm:$0xff]   ;;  %v685_v59 = vld [vmem:[%s11063_s24 + $0x1c8] sm:$0xff] }
  0x98   : > { %3004 = vmatmul.mubr.bf16.gmra.mrb[40].mxu0 %v8327_v1  ;;  %v8333_v1 = vcombine.low %v683_v60, %v695_v61  ;;  %v697_v60 = vld [vmem:[%s11063_s24 + $0x228] sm:$0xff] }
  0x99   : > { %3068 = vmatmul.mubr.bf16.gmra.mrb[40].mxu1 %v8329_v3  ;;  %9082 = vmatpush3.bf16.msra.mxu0 %v10145_v6  ;;  %v10180_v3 = vld [vmem:[%s13743_s21 + $0x4e0] sm:$0xff]   ;;  %v10183_v6 = vld [vmem:[%s13743_s21 + $0x468] sm:$0xff]  }
  0x9a   : > { %9122 = vmatpush3.bf16.msra.mxu1 %v10146_v7  ;;  %9083 = vmatprep.subr.bf16.mxu0 %v10147_v8  ;;  %v10184_v7 = vld [vmem:[%s13743_s21 + $0x4e8] sm:$0xff]  }
  0x9b   : > { %9123 = vmatprep.subr.bf16.mxu1 %v10148_v9  ;;  %3011 = vmatprep.mubr.bf16.mxu0 %v8352_v14  ;;  %v10185_v8 = vld [vmem:[%s13743_s21 + $0x428] sm:$0xff]  }
  0x9c   : > { %3075 = vmatprep.mubr.bf16.mxu1 %v8354_v15  ;;  %v10186_v9 = vld [vmem:[%s13743_s21 + $0x4a8] sm:$0xff]   ;;  %v10191_v15 = vld [vmem:[%s13743_s21 + $0x470] sm:$0xff]  }
  0x9d   : > { %9084 = vmatpush3.bf16.msra.mxu0 %v10149_v10  ;;  %v706_v10 = vld [vmem:[%s11063_s24 + $0x270] sm:$0xff] }
  0x9e   : > { %9124 = vmatpush3.bf16.msra.mxu1 %v10150_v11  ;;  %9085 = vmatprep.subr.bf16.mxu0 %v10155_v18  ;;  %v707_v11 = vld [vmem:[%s11063_s24 + $0x278] sm:$0xff]  ;;  %v8356_v12 = vcombine.high %v706_v10, %v706_v10  ;;  %v8355_v14 = vcombine.low %v706_v10, %v706_v10  ;;  %v10193_v18 = vld [vmem:[%s13743_s21 + $0x430] sm:$0xff]   ;;  %v709_v10 = vld [vmem:[%s11063_s24 + $0x288] sm:$0xff] }
  0x9f   : > { %9125 = vmatprep.subr.bf16.mxu1 %v10156_v19  ;;  %v8358_v13 = vcombine.high %v707_v11, %v707_v11  ;;  %v10194_v19 = vld [vmem:[%s13743_s21 + $0x4b0] sm:$0xff]  }
  0xa0   : > { %3012 = vmatmul.mubr.bf16.gmra.mrb[44].mxu0 %v8351_v16  ;;  %v8357_v16 = vcombine.low %v707_v11, %v707_v11 }
  0xa1   : > { %3076 = vmatmul.mubr.bf16.gmra.mrb[44].mxu1 %v8353_v17  ;;  %9086 = vmatpush3.bf16.msra.mxu0 %v10157_v20  ;;  %v10192_v17 = vld [vmem:[%s13743_s21 + $0x4f0] sm:$0xff]   ;;  %v10195_v20 = vld [vmem:[%s13743_s21 + $0x478] sm:$0xff]  }
  0xa2   : > { %9126 = vmatpush3.bf16.msra.mxu1 %v10158_v21  ;;  %9087 = vmatprep.subr.bf16.mxu0 %v10159_v22  ;;  %v10196_v21 = vld [vmem:[%s13743_s21 + $0x4f8] sm:$0xff]  }
  0xa3   : > { %9127 = vmatprep.subr.bf16.mxu1 %v10160_v23  ;;  %3115 = vmatprep.mubr.bf16.mxu0 %v8284_v30  ;;  %v10197_v22 = vld [vmem:[%s13743_s21 + $0x438] sm:$0xff]   ;;  %v8289_v30 = vcombine.low %v637_v26, %v649_v27 }
  0xa4   : > { %3179 = vmatprep.mubr.bf16.mxu1 %v8286_v33  ;;  %v10198_v23 = vld [vmem:[%s13743_s21 + $0x4b8] sm:$0xff]   ;;  %v10200_v33 = vld [vmem:[%s13743_s21 + $0x5c0] sm:$0xff]  }
  0xa5   : > { %9088 = vmatpush3.bf16.msra.mxu0 %v10161_v24  ;;  %v636_v24 = vld [vmem:[%s11063_s24 + $0x40] sm:$0xff] }
  0xa6   : > { %9128 = vmatpush3.bf16.msra.mxu1 %v10162_v25  ;;  %9153 = vmatprep.subr.bf16.mxu0 %v10163_v34  ;;  %v648_v25 = vld [vmem:[%s11063_s24 + $0xa0] sm:$0xff] }
  0xa7   : > { %9193 = vmatprep.subr.bf16.mxu1 %v10164_v35  ;;  %v8287_v28 = vcombine.low %v636_v24, %v648_v25  ;;  %v10201_v34 = vld [vmem:[%s13743_s21 + $0x500] sm:$0xff]  }
  0xa8   : > { %3116 = vmatmul.mubr.bf16.vlgmr.msra.gmra.mrb[48].mxu0 %v8283_v29  ;;  %v8288_v29 = vcombine.high %v636_v24, %v648_v25  ;;  %v10202_v35 = vld [vmem:[%s13743_s21 + $0x580] sm:$0xff]  }
  0xa9   : > { %3180 = vmatmul.mubr.bf16.vlgmr.msra.gmra.mrb[48].mxu1 %v8285_v32  ;;  %9154 = vmatpush3.bf16.msra.mxu0 %v10165_v36  ;;  %v8290_v32 = vcombine.high %v637_v26, %v649_v27  ;;  %v10203_v36 = vld [vmem:[%s13743_s21 + $0x548] sm:$0xff]   ;;  %v639_v26 = vld [vmem:[%s11063_s24 + $0x58] sm:$0xff] }
  0xaa   : > { %9194 = vmatpush3.bf16.msra.mxu1 %v10166_v37  ;;  %9155 = vmatprep.subr.bf16.mxu0 %v10167_v38  ;;  %v10204_v37 = vld [vmem:[%s13743_s21 + $0x5c8] sm:$0xff]   ;;  %v651_v27 = vld [vmem:[%s11063_s24 + $0xb8] sm:$0xff] }
  0xab   : > { %9195 = vmatprep.subr.bf16.mxu1 %v10168_v39  ;;  %3123 = vmatprep.mubr.bf16.mxu0 %v8308_v44  ;;  %v10205_v38 = vld [vmem:[%s13743_s21 + $0x508] sm:$0xff]  }
  0xac   : > { %3187 = vmatprep.mubr.bf16.mxu1 %v8310_v48  ;;  %v10206_v39 = vld [vmem:[%s13743_s21 + $0x588] sm:$0xff]   ;;  %v10207_v48 = vld [vmem:[%s13743_s21 + $0x550] sm:$0xff]  }
  0xad   : > { %9156 = vmatpush3.bf16.msra.mxu0 %v10169_v40  ;;  %v660_v40 = vld [vmem:[%s11063_s24 + $0x100] sm:$0xff]  ;;  %v673_v44 = vld [vmem:[%s11063_s24 + $0x168] sm:$0xff] }
  0xae   : > { %9196 = vmatpush3.bf16.msra.mxu1 %v10170_v41  ;;  %9157 = vmatprep.subr.bf16.mxu0 %v10171_v50  ;;  %v672_v41 = vld [vmem:[%s11063_s24 + $0x160] sm:$0xff]  ;;  %v8314_v46 = vcombine.high %v661_v42, %v673_v44  ;;  %v10209_v50 = vld [vmem:[%s13743_s21 + $0x510] sm:$0xff]  }
  0xaf   : > { %9197 = vmatprep.subr.bf16.mxu1 %v10172_v51  ;;  %v8312_v43 = vcombine.high %v660_v40, %v672_v41  ;;  %v8311_v45 = vcombine.low %v660_v40, %v672_v41  ;;  %v10210_v51 = vld [vmem:[%s13743_s21 + $0x590] sm:$0xff]  }
  0xb0   : > { %3124 = vmatmul.mubr.bf16.gmra.mrb[52].mxu0 %v8307_v47  ;;  %v8313_v47 = vcombine.low %v661_v42, %v673_v44  ;;  %v710_v44 = vld [vmem:[%s11063_s24 + $0x290] sm:$0xff] }
  0xb1   : > { %3188 = vmatmul.mubr.bf16.gmra.mrb[52].mxu1 %v8309_v49  ;;  %9158 = vmatpush3.bf16.msra.mxu0 %v10173_v52  ;;  %v10208_v49 = vld [vmem:[%s13743_s21 + $0x5d0] sm:$0xff]   ;;  %v10211_v52 = vld [vmem:[%s13743_s21 + $0x558] sm:$0xff]  }
  0xb2   : > { %9198 = vmatpush3.bf16.msra.mxu1 %v10174_v53  ;;  %9159 = vmatprep.subr.bf16.mxu0 %v10175_v54  ;;  %v10212_v53 = vld [vmem:[%s13743_s21 + $0x5d8] sm:$0xff]  }
  0xb3   : > { %9199 = vmatprep.subr.bf16.mxu1 %v10176_v55  ;;  %3131 = vmatprep.mubr.bf16.mxu0 %v8332_v62  ;;  %v10213_v54 = vld [vmem:[%s13743_s21 + $0x518] sm:$0xff]   ;;  %v8338_v62 = vcombine.high %v685_v59, %v697_v60 }
  0xb4   : > { %3195 = vmatprep.mubr.bf16.mxu1 %v8334_v63  ;;  %v10214_v55 = vld [vmem:[%s13743_s21 + $0x598] sm:$0xff]   ;;  %v8337_v63 = vcombine.low %v685_v59, %v697_v60 }
  0xb5   : > { %9160 = vmatpush3.bf16.msra.mxu0 %v10177_v56  ;;  %v684_v56 = vld [vmem:[%s11063_s24 + $0x1c0] sm:$0xff] }
  0xb6   : > { %9200 = vmatpush3.bf16.msra.mxu1 %v10178_v57  ;;  %9161 = vmatprep.subr.bf16.mxu0 %v10179_v2  ;;  %v696_v57 = vld [vmem:[%s11063_s24 + $0x220] sm:$0xff] }
  0xb7   : > { %9201 = vmatprep.subr.bf16.mxu1 %v10180_v3  ;;  %v8336_v58 = vcombine.high %v684_v56, %v696_v57  ;;  %v8335_v61 = vcombine.low %v684_v56, %v696_v57  ;;  %v10217_v2 = vld [vmem:[%s13743_s21 + $0x520] sm:$0xff]   ;;  %v1097_v56 = vld [vmem:[%s13745_s30 + $0x8] sm:$0xff] }
  0xb8   : > { %3132 = vmatmul.mubr.bf16.gmra.mrb[56].mxu0 %v8331_v0  ;;  %v10215_v0 = vld [vmem:[%s13743_s21 + $0x560] sm:$0xff]  }
  0xb9   : > { %3196 = vmatmul.mubr.bf16.gmra.mrb[56].mxu1 %v8333_v1  ;;  %9162 = vmatpush3.bf16.msra.mxu0 %v10181_v4  ;;  %v10216_v1 = vld [vmem:[%s13743_s21 + $0x5e0] sm:$0xff]   ;;  %v10219_v4 = vld [vmem:[%s13743_s21 + $0x568] sm:$0xff]  }
  0xba   : > { %9202 = vmatpush3.bf16.msra.mxu1 %v10182_v5  ;;  %9163 = vmatprep.subr.bf16.mxu0 %v10183_v6  ;;  %v10218_v3 = vld [vmem:[%s13743_s21 + $0x5a0] sm:$0xff]   ;;  %v10220_v5 = vld [vmem:[%s13743_s21 + $0x5e8] sm:$0xff]  }
  0xbb   : > { %9203 = vmatprep.subr.bf16.mxu1 %v10184_v7  ;;  %3139 = vmatprep.mubr.bf16.mxu0 %v8356_v12  ;;  %v10221_v6 = vld [vmem:[%s13743_s21 + $0x528] sm:$0xff]   ;;  %v8362_v12 = vcombine.high %v709_v10, %v709_v10 }
  0xbc   : > { %3203 = vmatprep.mubr.bf16.mxu1 %v8358_v13  ;;  %v10222_v7 = vld [vmem:[%s13743_s21 + $0x5a8] sm:$0xff]   ;;  %v8361_v13 = vcombine.low %v709_v10, %v709_v10  ;;  %v1099_v10 = vld [vmem:[%s13745_s30 + $0x18] sm:$0xff] }
  0xbd   : > { %9164 = vmatpush3.bf16.msra.mxu0 %v10185_v8  ;;  %v708_v8 = vld [vmem:[%s11063_s24 + $0x280] sm:$0xff] }
  0xbe   : > { %9204 = vmatpush3.bf16.msra.mxu1 %v10186_v9  ;;  %9165 = vmatprep.subr.bf16.mxu0 %v10191_v15  ;;  %v8360_v9 = vcombine.high %v708_v8, %v708_v8  ;;  %v8359_v11 = vcombine.low %v708_v8, %v708_v8  ;;  %v10228_v15 = vld [vmem:[%s13743_s21 + $0x5f0] sm:$0xff]  }
  0xbf   : > { %9205 = vmatprep.subr.bf16.mxu1 %v10192_v17  ;;  %v10230_v17 = vld [vmem:[%s13743_s21 + $0x5b0] sm:$0xff]  }
  0xc0   : > { %3140 = vmatmul.mubr.bf16.gmra.mrb[60].mxu0 %v8355_v14  ;;  %v10227_v14 = vld [vmem:[%s13743_s21 + $0x570] sm:$0xff]  }
  0xc1   : > { %3204 = vmatmul.mubr.bf16.gmra.mrb[60].mxu1 %v8357_v16  ;;  %9166 = vmatpush3.bf16.msra.mxu0 %v10193_v18  ;;  %v10229_v16 = vld [vmem:[%s13743_s21 + $0x530] sm:$0xff]   ;;  %v10231_v18 = vld [vmem:[%s13743_s21 + $0x578] sm:$0xff]  }
  0xc2   : > { %9206 = vmatpush3.bf16.msra.mxu1 %v10194_v19  ;;  %9167 = vmatprep.subr.bf16.mxu0 %v10195_v20  ;;  %v10232_v19 = vld [vmem:[%s13743_s21 + $0x5f8] sm:$0xff]  }
  0xc3   : > { %9207 = vmatprep.subr.bf16.mxu1 %v10196_v21  ;;  %3243 = vmatprep.mubr.bf16.mxu0 %v8288_v29  ;;  %v10233_v20 = vld [vmem:[%s13743_s21 + $0x538] sm:$0xff]   ;;  %v8293_v29 = vcombine.low %v639_v26, %v651_v27 }
  0xc4   : > { %3307 = vmatprep.mubr.bf16.mxu1 %v8290_v32  ;;  %v10234_v21 = vld [vmem:[%s13743_s21 + $0x5b8] sm:$0xff]  }
  0xc5   : > { %9168 = vmatpush3.bf16.msra.mxu0 %v10197_v22  ;;  %v638_v22 = vld [vmem:[%s11063_s24 + $0x50] sm:$0xff]  ;;  %v663_v32 = vld [vmem:[%s11063_s24 + $0x118] sm:$0xff] }
  0xc6   : > { %9208 = vmatpush3.bf16.msra.mxu1 %v10198_v23  ;;  %9233 = vmatprep.subr.bf16.mxu0 %v10199_v31  ;;  %v650_v23 = vld [vmem:[%s11063_s24 + $0xb0] sm:$0xff] }
  0xc7   : > { %9273 = vmatprep.subr.bf16.mxu1 %v10200_v33  ;;  %v8291_v24 = vcombine.low %v638_v22, %v650_v23  ;;  %v8292_v25 = vcombine.high %v638_v22, %v650_v23  ;;  %v674_v31 = vld [vmem:[%s11063_s24 + $0x170] sm:$0xff]  ;;  %v675_v33 = vld [vmem:[%s11063_s24 + $0x178] sm:$0xff] }
  0xc8   : > { %3244 = vmatmul.mubr.bf16.vlgmr.msra.gmra.mrb[64].mxu0 %v8287_v28  ;;  %v662_v28 = vld [vmem:[%s11063_s24 + $0x110] sm:$0xff]  ;;  %v8317_v41 = vcombine.low %v663_v32, %v675_v33 }
  0xc9   : > { %3308 = vmatmul.mubr.bf16.vlgmr.msra.gmra.mrb[64].mxu1 %v8289_v30  ;;  %9234 = vmatpush3.bf16.msra.mxu0 %v10201_v34  ;;  %v8294_v30 = vcombine.high %v639_v26, %v651_v27  ;;  %v8316_v34 = vcombine.high %v662_v28, %v674_v31  ;;  %v8315_v40 = vcombine.low %v662_v28, %v674_v31  ;;  %v1100_v26 = vld [vmem:[%s13745_s30 + $0x20] sm:$0xff] }
  0xca   : > { %9274 = vmatpush3.bf16.msra.mxu1 %v10202_v35  ;;  %9235 = vmatprep.subr.bf16.mxu0 %v10203_v36  ;;  %v8318_v35 = vcombine.high %v663_v32, %v675_v33  ;;  %v686_v36 = vld [vmem:[%s11063_s24 + $0x1d0] sm:$0xff]  ;;  %v1101_v33 = vld [vmem:[%s13745_s30 + $0x28] sm:$0xff] }
  0xcb   : > { %9275 = vmatprep.subr.bf16.mxu1 %v10204_v37  ;;  %3251 = vmatprep.mubr.bf16.mxu0 %v8312_v43  ;;  %v698_v37 = vld [vmem:[%s11063_s24 + $0x230] sm:$0xff] }
  0xcc   : > { %3315 = vmatprep.mubr.bf16.mxu1 %v8314_v46  ;;  %v8340_v42 = vcombine.high %v686_v36, %v698_v37  ;;  %v8339_v46 = vcombine.low %v686_v36, %v698_v37 }
  0xcd   : > { %9236 = vmatpush3.bf16.msra.mxu0 %v10205_v38  ;;  %v687_v38 = vld [vmem:[%s11063_s24 + $0x1d8] sm:$0xff] }
  0xce   : > { %9276 = vmatpush3.bf16.msra.mxu1 %v10206_v39  ;;  %9237 = vmatprep.subr.bf16.mxu0 %v10207_v48  ;;  %v699_v39 = vld [vmem:[%s11063_s24 + $0x238] sm:$0xff]  ;;  %v8364_v48 = vcombine.high %v710_v44, %v710_v44 }
  0xcf   : > { %9277 = vmatprep.subr.bf16.mxu1 %v10208_v49  ;;  %v8342_v43 = vcombine.high %v687_v38, %v699_v39 }
  0xd0   : > { %3252 = vmatmul.mubr.bf16.gmra.mrb[68].mxu0 %v8311_v45  ;;  %v711_v45 = vld [vmem:[%s11063_s24 + $0x298] sm:$0xff]  ;;  %s13713_s24 = smov 96  }
  0xd1   : > { %3316 = vmatmul.mubr.bf16.gmra.mrb[68].mxu1 %v8313_v47  ;;  %9238 = vmatpush3.bf16.msra.mxu0 %v10209_v50  ;;  %v8341_v47 = vcombine.low %v687_v38, %v699_v39  ;;  %v8366_v49 = vcombine.high %v711_v45, %v711_v45  ;;  %v8363_v50 = vcombine.low %v710_v44, %v710_v44  ;;  %v1102_v44 = vld [vmem:[%s13745_s30 + $0x30] sm:$0xff] }
  0xd2   : > { %9278 = vmatpush3.bf16.msra.mxu1 %v10210_v51  ;;  %9239 = vmatprep.subr.bf16.mxu0 %v10211_v52  ;;  %v8365_v51 = vcombine.low %v711_v45, %v711_v45  ;;  %v1096_v52 = vld [vmem:[%s13745_s30] sm:$0xff] }
  0xd3   : > { %9279 = vmatprep.subr.bf16.mxu1 %v10212_v53  ;;  %3259 = vmatprep.mubr.bf16.mxu0 %v8336_v58 }
  0xd4   : > { %3323 = vmatprep.mubr.bf16.mxu1 %v8338_v62 }
  0xd5   : > { %9240 = vmatpush3.bf16.msra.mxu0 %v10213_v54 }
  0xd6   : > { %9280 = vmatpush3.bf16.msra.mxu1 %v10214_v55  ;;  %9241 = vmatprep.subr.bf16.mxu0 %v10215_v0 }
  0xd7   : > { %9281 = vmatprep.subr.bf16.mxu1 %v10216_v1 }
  0xd8   : > { %3260 = vmatmul.mubr.bf16.gmra.mrb[72].mxu0 %v8335_v61 }
  0xd9   : > { %3324 = vmatmul.mubr.bf16.gmra.mrb[72].mxu1 %v8337_v63  ;;  %9242 = vmatpush3.bf16.msra.mxu0 %v10217_v2 }
  0xda   : > { %9282 = vmatpush3.bf16.msra.mxu1 %v10218_v3  ;;  %9243 = vmatprep.subr.bf16.mxu0 %v10219_v4 }
  0xdb   : > { %9283 = vmatprep.subr.bf16.mxu1 %v10220_v5  ;;  %3267 = vmatprep.mubr.bf16.mxu0 %v8360_v9 }
  0xdc   : > { %3331 = vmatprep.mubr.bf16.mxu1 %v8362_v12 }
  0xdd   : > { %9244 = vmatpush3.bf16.msra.mxu0 %v10221_v6 }
  0xde   : > { %9284 = vmatpush3.bf16.msra.mxu1 %v10222_v7  ;;  %9245 = vmatprep.subr.bf16.mxu0 %v10227_v14  ;;  %v1098_v7 = vld [vmem:[%s13745_s30 + $0x10] sm:$0xff] }
  0xdf   : > { %9285 = vmatprep.subr.bf16.mxu1 %v10228_v15 }
  0xe0   : > { %3268 = vmatmul.mubr.bf16.gmra.mrb[76].mxu0 %v8359_v11 }
  0xe1   : > { %3332 = vmatmul.mubr.bf16.gmra.mrb[76].mxu1 %v8361_v13  ;;  %9246 = vmatpush3.bf16.msra.mxu0 %v10229_v16 }
  0xe2   : > { %9286 = vmatpush3.bf16.msra.mxu1 %v10230_v17  ;;  %9247 = vmatprep.subr.bf16.mxu0 %v10231_v18 }
  0xe3   : > { %9287 = vmatprep.subr.bf16.mxu1 %v10232_v19  ;;  %3371 = vmatprep.mubr.bf16.mxu0 %v8292_v25 }
  0xe4   : > { %3435 = vmatprep.mubr.bf16.mxu1 %v8294_v30 }
  0xe5   : > { %9248 = vmatpush3.bf16.msra.mxu0 %v10233_v20 }
  0xe6   : > { %9288 = vmatpush3.bf16.msra.mxu1 %v10234_v21 }
  0xe8   : > { %3372 = vmatmul.mubr.bf16.vlgmr.msra.gmra.mrb[80].mxu0 %v8291_v24 }
  0xe9   : > { %3436 = vmatmul.mubr.bf16.vlgmr.msra.gmra.mrb[80].mxu1 %v8293_v29  ;;  %3379 = vmatprep.mubr.bf16.mxu0 %v8316_v34 }
  0xea   : > { %3443 = vmatprep.mubr.bf16.mxu1 %v8318_v35 }
  0xf0   : > { %3380 = vmatmul.mubr.bf16.gmra.mrb[84].mxu0 %v8315_v40 }
  0xf1   : > { %3444 = vmatmul.mubr.bf16.gmra.mrb[84].mxu1 %v8317_v41  ;;  %3387 = vmatprep.mubr.bf16.mxu0 %v8340_v42 }
  0xf2   : > { %3451 = vmatprep.mubr.bf16.mxu1 %v8342_v43 }
  0xf8   : > { %3388 = vmatmul.mubr.bf16.gmra.mrb[88].mxu0 %v8339_v46 }
  0xf9   : > { %3452 = vmatmul.mubr.bf16.gmra.mrb[88].mxu1 %v8341_v47  ;;  %3395 = vmatprep.mubr.bf16.mxu0 %v8364_v48 }
  0xfa   : > { %3459 = vmatprep.mubr.bf16.mxu1 %v8366_v49 }
 0x100   : > { %3396 = vmatmul.mubr.bf16.gmra.mrb[92].mxu0 %v8363_v50 }
 0x101   : > { %3460 = vmatmul.mubr.bf16.gmra.mrb[92].mxu1 %v8365_v51 }
 0x11b   : > { %v8849_v53 = vpop.f32.mrb[0].mxu0 }
 0x11c   : > { %v8889_v54 = vpop.f32.mrb[0].mxu1  ;;  %v8850_v55 = vpop.f32.mrb[1].mxu0 }
 0x11d   : > { %v8851_v57 = vadd.f32 %v8850_v55, %v8849_v53  ;;  %v8890_v58 = vpop.f32.mrb[1].mxu1  ;;  %v8852_v59 = vpop.f32.mrb[2].mxu0 }
 0x11e   : > { %v8891_v60 = vadd.f32 %v8890_v58, %v8889_v54  ;;  %v8892_v61 = vpop.f32.mrb[2].mxu1  ;;  %v8853_v62 = vpop.f32.mrb[3].mxu0 }
 0x11f   : > { %v2734_v63 = vadd.f32 %v8851_v57, %v1096_v52  ;;  %v8854_v0 = vadd.f32 %v8853_v62, %v8852_v59  ;;  %v8893_v1 = vpop.f32.mrb[3].mxu1 }
 0x120   : > { %v8894_v2 = vadd.f32 %v8893_v1, %v8892_v61 }
 0x121   : > { %v2798_v3 = vadd.f32 %v8891_v60, %v2734_v63  ;;  %v2737_v4 = vadd.f32 %v8854_v0, %v1097_v56 }
 0x123   : > { %v11641_v5 = vadd.f32 %v8894_v2, %v2737_v4  ;;  %v8855_v6 = vpop.f32.mrb[4].mxu0 }
 0x124   : > { %v8895_v8 = vpop.f32.mrb[4].mxu1  ;;  %v8856_v9 = vpop.f32.mrb[5].mxu0 }
 0x125   : > { %v8857_v11 = vadd.f32 %v8856_v9, %v8855_v6  ;;  %v8896_v12 = vpop.f32.mrb[5].mxu1  ;;  %v8858_v13 = vpop.f32.mrb[6].mxu0 }
 0x126   : > { %v8897_v14 = vadd.f32 %v8896_v12, %v8895_v8  ;;  %v8898_v15 = vpop.f32.mrb[6].mxu1  ;;  %v8859_v16 = vpop.f32.mrb[7].mxu0 }
 0x127   : > { %v2742_v17 = vadd.f32 %v8857_v11, %v1098_v7  ;;  %v8860_v18 = vadd.f32 %v8859_v16, %v8858_v13  ;;  %v8899_v19 = vpop.f32.mrb[7].mxu1 }
 0x128   : > { %v8900_v20 = vadd.f32 %v8899_v19, %v8898_v15 }
 0x129   : > { %v2806_v21 = vadd.f32 %v8897_v14, %v2742_v17  ;;  %v2745_v22 = vadd.f32 %v8860_v18, %v1099_v10 }
 0x12b   : > { %v2809_v23 = vadd.f32 %v8900_v20, %v2745_v22  ;;  %v8861_v24 = vpop.f32.mrb[8].mxu0 }
 0x12c   : > { %v8901_v25 = vpop.f32.mrb[8].mxu1  ;;  %v8862_v27 = vpop.f32.mrb[9].mxu0 }
 0x12d   : > { %v8902_v28 = vpop.f32.mrb[9].mxu1  ;;  %v8863_v29 = vadd.f32 %v8862_v27, %v8861_v24  ;;  %v8864_v31 = vpop.f32.mrb[10].mxu0 }
 0x12e   : > { %v8903_v30 = vadd.f32 %v8902_v28, %v8901_v25  ;;  %v8904_v32 = vpop.f32.mrb[10].mxu1  ;;  %v8865_v34 = vpop.f32.mrb[11].mxu0 }
 0x12f   : > { %v8905_v35 = vpop.f32.mrb[11].mxu1  ;;  %v2750_v36 = vadd.f32 %v8863_v29, %v1100_v26  ;;  %v8866_v37 = vadd.f32 %v8865_v34, %v8864_v31 }
 0x130   : > { %v8906_v38 = vadd.f32 %v8905_v35, %v8904_v32 }
 0x131   : > { %v2814_v39 = vadd.f32 %v8903_v30, %v2750_v36  ;;  %v2753_v40 = vadd.f32 %v8866_v37, %v1101_v33 }
 0x133   : > { %v2817_v41 = vadd.f32 %v8906_v38, %v2753_v40  ;;  %v8867_v42 = vpop.f32.mrb[12].mxu0 }
 0x134   : > { %v8907_v43 = vpop.f32.mrb[12].mxu1  ;;  %v8868_v45 = vpop.f32.mrb[13].mxu0 }
 0x135   : > { %v8908_v46 = vpop.f32.mrb[13].mxu1  ;;  %v8869_v47 = vadd.f32 %v8868_v45, %v8867_v42  ;;  %v8870_v49 = vpop.f32.mrb[14].mxu0 }
 0x136   : > { %v8909_v48 = vadd.f32 %v8908_v46, %v8907_v43  ;;  %v8910_v50 = vpop.f32.mrb[14].mxu1  ;;  %v8871_v51 = vpop.f32.mrb[15].mxu0 }
 0x137   : > { %v8911_v52 = vpop.f32.mrb[15].mxu1  ;;  %v2758_v53 = vadd.f32 %v8869_v47, %v1102_v44 }
 0x139   : > { %v2822_v54 = vadd.f32 %v8909_v48, %v2758_v53 }
 0x13b   : > { %v8929_v55 = vpop.f32.mrb[16].mxu0 }
 0x13c   : > { %v8969_v56 = vpop.f32.mrb[16].mxu1  ;;  %v8930_v57 = vpop.f32.mrb[17].mxu0 }
 0x13d   : > { %v8931_v58 = vadd.f32 %v8930_v57, %v8929_v55  ;;  %v8970_v59 = vpop.f32.mrb[17].mxu1  ;;  %v8932_v60 = vpop.f32.mrb[18].mxu0 }
 0x13e   : > { %v8971_v61 = vadd.f32 %v8970_v59, %v8969_v56  ;;  %v8972_v62 = vpop.f32.mrb[18].mxu1  ;;  %v8933_v63 = vpop.f32.mrb[19].mxu0 }
 0x13f   : > { %v2862_v0 = vadd.f32 %v8931_v58, %v2798_v3  ;;  %v8934_v1 = vadd.f32 %v8933_v63, %v8932_v60  ;;  %v8973_v2 = vpop.f32.mrb[19].mxu1 }
 0x140   : > { %v8974_v4 = vadd.f32 %v8973_v2, %v8972_v62 }
 0x141   : > { %v2926_v6 = vadd.f32 %v8971_v61, %v2862_v0  ;;  %v2865_v7 = vadd.f32 %v8934_v1, %v11641_v5 }
 0x143   : > { %v2929_v8 = vadd.f32 %v8974_v4, %v2865_v7  ;;  %v8935_v9 = vpop.f32.mrb[20].mxu0 }
 0x144   : > { %v8975_v10 = vpop.f32.mrb[20].mxu1  ;;  %v8936_v11 = vpop.f32.mrb[21].mxu0 }
 0x145   : > { %v8937_v12 = vadd.f32 %v8936_v11, %v8935_v9  ;;  %v8976_v13 = vpop.f32.mrb[21].mxu1  ;;  %v8938_v14 = vpop.f32.mrb[22].mxu0 }
 0x146   : > { %v8977_v15 = vadd.f32 %v8976_v13, %v8975_v10  ;;  %v8978_v16 = vpop.f32.mrb[22].mxu1  ;;  %v8939_v17 = vpop.f32.mrb[23].mxu0 }
 0x147   : > { %v2870_v18 = vadd.f32 %v8937_v12, %v2806_v21  ;;  %v8940_v19 = vadd.f32 %v8939_v17, %v8938_v14  ;;  %v8979_v20 = vpop.f32.mrb[23].mxu1 }
 0x148   : > { %v8980_v3 = vadd.f32 %v8979_v20, %v8978_v16 }
 0x149   : > { %v2934_v22 = vadd.f32 %v8977_v15, %v2870_v18  ;;  %v2873_v24 = vadd.f32 %v8940_v19, %v2809_v23 }
 0x14b   : > { %v2937_v25 = vadd.f32 %v8980_v3, %v2873_v24  ;;  %v8941_v26 = vpop.f32.mrb[24].mxu0 }
 0x14c   : > { %v8981_v27 = vpop.f32.mrb[24].mxu1  ;;  %v8942_v5 = vpop.f32.mrb[25].mxu0 }
 0x14d   : > { %v8943_v28 = vadd.f32 %v8942_v5, %v8941_v26  ;;  %v8982_v29 = vpop.f32.mrb[25].mxu1  ;;  %v8944_v30 = vpop.f32.mrb[26].mxu0 }
 0x14e   : > { %v8983_v31 = vadd.f32 %v8982_v29, %v8981_v27  ;;  %v8984_v32 = vpop.f32.mrb[26].mxu1  ;;  %v8945_v33 = vpop.f32.mrb[27].mxu0 }
 0x14f   : > { %v2878_v34 = vadd.f32 %v8943_v28, %v2814_v39  ;;  %v8946_v35 = vadd.f32 %v8945_v33, %v8944_v30  ;;  %v8985_v36 = vpop.f32.mrb[27].mxu1 }
 0x150   : > { %v8986_v37 = vadd.f32 %v8985_v36, %v8984_v32 }
 0x151   : > { %v2942_v21 = vadd.f32 %v8983_v31, %v2878_v34  ;;  %v2881_v38 = vadd.f32 %v8946_v35, %v2817_v41 }
 0x153   : > { %v2945_v40 = vadd.f32 %v8986_v37, %v2881_v38  ;;  %v8947_v42 = vpop.f32.mrb[28].mxu0 }
 0x154   : > { %v8987_v43 = vpop.f32.mrb[28].mxu1  ;;  %v8948_v23 = vpop.f32.mrb[29].mxu0 }
 0x155   : > { %v8949_v44 = vadd.f32 %v8948_v23, %v8947_v42  ;;  %v8988_v45 = vpop.f32.mrb[29].mxu1  ;;  %v8950_v46 = vpop.f32.mrb[30].mxu0 }
 0x156   : > { %v8989_v47 = vadd.f32 %v8988_v45, %v8987_v43  ;;  %v8990_v48 = vpop.f32.mrb[30].mxu1  ;;  %v8951_v49 = vpop.f32.mrb[31].mxu0 }
 0x157   : > { %v2886_v50 = vadd.f32 %v8949_v44, %v2822_v54  ;;  %v8991_v51 = vpop.f32.mrb[31].mxu1 }
 0x159   : > { %v2950_v52 = vadd.f32 %v8989_v47, %v2886_v50 }
 0x15b   : > { %v9009_v53 = vpop.f32.mrb[32].mxu0 }
 0x15c   : > { %v9049_v39 = vpop.f32.mrb[32].mxu1  ;;  %v9010_v55 = vpop.f32.mrb[33].mxu0 }
 0x15d   : > { %v9011_v56 = vadd.f32 %v9010_v55, %v9009_v53  ;;  %v9050_v57 = vpop.f32.mrb[33].mxu1  ;;  %v9012_v58 = vpop.f32.mrb[34].mxu0 }
 0x15e   : > { %v9051_v41 = vadd.f32 %v9050_v57, %v9049_v39  ;;  %v9052_v59 = vpop.f32.mrb[34].mxu1  ;;  %v9013_v60 = vpop.f32.mrb[35].mxu0 }
 0x15f   : > { %v2990_v61 = vadd.f32 %v9011_v56, %v2926_v6  ;;  %v9014_v62 = vadd.f32 %v9013_v60, %v9012_v58  ;;  %v9053_v63 = vpop.f32.mrb[35].mxu1 }
 0x160   : > { %v9054_v0 = vadd.f32 %v9053_v63, %v9052_v59 }
 0x161   : > { %v3054_v1 = vadd.f32 %v9051_v41, %v2990_v61  ;;  %v2993_v2 = vadd.f32 %v9014_v62, %v2929_v8 }
 0x163   : > { %v3057_v4 = vadd.f32 %v9054_v0, %v2993_v2  ;;  %v9015_v7 = vpop.f32.mrb[36].mxu0 }
 0x164   : > { %v9055_v54 = vpop.f32.mrb[36].mxu1  ;;  %v9016_v9 = vpop.f32.mrb[37].mxu0 }
 0x165   : > { %v9056_v10 = vpop.f32.mrb[37].mxu1  ;;  %v9017_v11 = vadd.f32 %v9016_v9, %v9015_v7  ;;  %v9018_v13 = vpop.f32.mrb[38].mxu0 }
 0x166   : > { %v9057_v12 = vadd.f32 %v9056_v10, %v9055_v54  ;;  %v9058_v14 = vpop.f32.mrb[38].mxu1  ;;  %v9019_v15 = vpop.f32.mrb[39].mxu0 }
 0x167   : > { %v9059_v16 = vpop.f32.mrb[39].mxu1  ;;  %v2998_v17 = vadd.f32 %v9017_v11, %v2934_v22  ;;  %v9020_v18 = vadd.f32 %v9019_v15, %v9018_v13 }
 0x168   : > { %v9060_v19 = vadd.f32 %v9059_v16, %v9058_v14 }
 0x169   : > { %v3062_v6 = vadd.f32 %v9057_v12, %v2998_v17  ;;  %v3001_v20 = vadd.f32 %v9020_v18, %v2937_v25 }
 0x16b   : > { %v3065_v3 = vadd.f32 %v9060_v19, %v3001_v20  ;;  %v9021_v24 = vpop.f32.mrb[40].mxu0 }
 0x16c   : > { %v9061_v26 = vpop.f32.mrb[40].mxu1  ;;  %v9022_v8 = vpop.f32.mrb[41].mxu0 }
 0x16d   : > { %v9023_v27 = vadd.f32 %v9022_v8, %v9021_v24  ;;  %v9062_v5 = vpop.f32.mrb[41].mxu1  ;;  %v9024_v28 = vpop.f32.mrb[42].mxu0 }
 0x16e   : > { %v9063_v29 = vadd.f32 %v9062_v5, %v9061_v26  ;;  %v9064_v30 = vpop.f32.mrb[42].mxu1  ;;  %v9025_v31 = vpop.f32.mrb[43].mxu0 }
 0x16f   : > { %v3006_v32 = vadd.f32 %v9023_v27, %v2942_v21  ;;  %v9026_v33 = vadd.f32 %v9025_v31, %v9024_v28  ;;  %v9065_v34 = vpop.f32.mrb[43].mxu1 }
 0x170   : > { %v9066_v35 = vadd.f32 %v9065_v34, %v9064_v30 }
 0x171   : > { %v3070_v36 = vadd.f32 %v9063_v29, %v3006_v32  ;;  %v3009_v22 = vadd.f32 %v9026_v33, %v2945_v40 }
 0x173   : > { %v3073_v37 = vadd.f32 %v9066_v35, %v3009_v22  ;;  %v9027_v38 = vpop.f32.mrb[44].mxu0 }
 0x174   : > { %v9067_v42 = vpop.f32.mrb[44].mxu1  ;;  %v9028_v25 = vpop.f32.mrb[45].mxu0 }
 0x175   : > { %v9068_v43 = vpop.f32.mrb[45].mxu1  ;;  %v9029_v23 = vadd.f32 %v9028_v25, %v9027_v38  ;;  %v9030_v45 = vpop.f32.mrb[46].mxu0 }
 0x176   : > { %v9069_v44 = vadd.f32 %v9068_v43, %v9067_v42  ;;  %v9070_v46 = vpop.f32.mrb[46].mxu1  ;;  %v9031_v47 = vpop.f32.mrb[47].mxu0 }
 0x177   : > { %v9071_v48 = vpop.f32.mrb[47].mxu1  ;;  %v3014_v49 = vadd.f32 %v9029_v23, %v2950_v52 }
 0x179   : > { %v3078_v50 = vadd.f32 %v9069_v44, %v3014_v49 }
 0x17b   : > { %v9089_v51 = vpop.f32.mrb[48].mxu0 }
 0x17c   : > { %v9129_v21 = vpop.f32.mrb[48].mxu1  ;;  %v9090_v53 = vpop.f32.mrb[49].mxu0 }
 0x17d   : > { %v9091_v39 = vadd.f32 %v9090_v53, %v9089_v51  ;;  %v9130_v55 = vpop.f32.mrb[49].mxu1  ;;  %v9092_v56 = vpop.f32.mrb[50].mxu0 }
 0x17e   : > { %v9131_v40 = vadd.f32 %v9130_v55, %v9129_v21  ;;  %v9132_v57 = vpop.f32.mrb[50].mxu1  ;;  %v9093_v58 = vpop.f32.mrb[51].mxu0 }
 0x17f   : > { %v3118_v41 = vadd.f32 %v9091_v39, %v3054_v1  ;;  %v9094_v59 = vadd.f32 %v9093_v58, %v9092_v56  ;;  %v9133_v60 = vpop.f32.mrb[51].mxu1 }
 0x180   : > { %v9134_v61 = vadd.f32 %v9133_v60, %v9132_v57 }
 0x181   : > { %v3182_v62 = vadd.f32 %v9131_v40, %v3118_v41  ;;  %v3121_v63 = vadd.f32 %v9094_v59, %v3057_v4 }
 0x183   : > { %v3185_v0 = vadd.f32 %v9134_v61, %v3121_v63  ;;  %v9095_v2 = vpop.f32.mrb[52].mxu0 }
 0x184   : > { %v9135_v7 = vpop.f32.mrb[52].mxu1  ;;  %v9096_v52 = vpop.f32.mrb[53].mxu0 }
 0x185   : > { %v9097_v54 = vadd.f32 %v9096_v52, %v9095_v2  ;;  %v9136_v9 = vpop.f32.mrb[53].mxu1  ;;  %v9098_v10 = vpop.f32.mrb[54].mxu0 }
 0x186   : > { %v9137_v11 = vadd.f32 %v9136_v9, %v9135_v7  ;;  %v9138_v12 = vpop.f32.mrb[54].mxu1  ;;  %v9099_v13 = vpop.f32.mrb[55].mxu0 }
 0x187   : > { %v3126_v14 = vadd.f32 %v9097_v54, %v3062_v6  ;;  %v9100_v15 = vadd.f32 %v9099_v13, %v9098_v10  ;;  %v9139_v16 = vpop.f32.mrb[55].mxu1 }
 0x188   : > { %v9140_v17 = vadd.f32 %v9139_v16, %v9138_v12 }
 0x189   : > { %v3190_v1 = vadd.f32 %v9137_v11, %v3126_v14  ;;  %v3129_v18 = vadd.f32 %v9100_v15, %v3065_v3 }
 0x18b   : > { %v3193_v19 = vadd.f32 %v9140_v17, %v3129_v18  ;;  %v9101_v20 = vpop.f32.mrb[56].mxu0 }
 0x18c   : > { %v9141_v24 = vpop.f32.mrb[56].mxu1  ;;  %v9102_v4 = vpop.f32.mrb[57].mxu0 }
 0x18d   : > { %v9142_v26 = vpop.f32.mrb[57].mxu1  ;;  %v9103_v8 = vadd.f32 %v9102_v4, %v9101_v20  ;;  %v9104_v5 = vpop.f32.mrb[58].mxu0 }
 0x18e   : > { %v9143_v27 = vadd.f32 %v9142_v26, %v9141_v24  ;;  %v9144_v28 = vpop.f32.mrb[58].mxu1  ;;  %v9105_v29 = vpop.f32.mrb[59].mxu0 }
 0x18f   : > { %v9145_v30 = vpop.f32.mrb[59].mxu1  ;;  %v3134_v31 = vadd.f32 %v9103_v8, %v3070_v36  ;;  %v9106_v32 = vadd.f32 %v9105_v29, %v9104_v5 }
 0x190   : > { %v9146_v33 = vadd.f32 %v9145_v30, %v9144_v28 }
 0x191   : > { %v3198_v6 = vadd.f32 %v9143_v27, %v3134_v31  ;;  %v3137_v34 = vadd.f32 %v9106_v32, %v3073_v37 }
 0x193   : > { %v3201_v35 = vadd.f32 %v9146_v33, %v3137_v34  ;;  %v9107_v22 = vpop.f32.mrb[60].mxu0 }
 0x194   : > { %v9147_v38 = vpop.f32.mrb[60].mxu1  ;;  %v9108_v3 = vpop.f32.mrb[61].mxu0 }
 0x195   : > { %v9148_v42 = vpop.f32.mrb[61].mxu1  ;;  %v9109_v25 = vadd.f32 %v9108_v3, %v9107_v22  ;;  %v9110_v23 = vpop.f32.mrb[62].mxu0 }
 0x196   : > { %v9149_v43 = vadd.f32 %v9148_v42, %v9147_v38  ;;  %v9150_v44 = vpop.f32.mrb[62].mxu1  ;;  %v9111_v45 = vpop.f32.mrb[63].mxu0 }
 0x197   : > { %v9151_v46 = vpop.f32.mrb[63].mxu1  ;;  %v3142_v47 = vadd.f32 %v9109_v25, %v3078_v50 }
 0x199   : > { %v3206_v48 = vadd.f32 %v9149_v43, %v3142_v47 }
 0x19b   : > { %v9169_v49 = vpop.f32.mrb[64].mxu0 }
 0x19c   : > { %v9209_v51 = vpop.f32.mrb[64].mxu1  ;;  %v9170_v36 = vpop.f32.mrb[65].mxu0 }
 0x19d   : > { %v9171_v21 = vadd.f32 %v9170_v36, %v9169_v49  ;;  %v9210_v53 = vpop.f32.mrb[65].mxu1  ;;  %v9172_v39 = vpop.f32.mrb[66].mxu0 }
 0x19e   : > { %v9211_v37 = vadd.f32 %v9210_v53, %v9209_v51  ;;  %v9212_v55 = vpop.f32.mrb[66].mxu1  ;;  %v9173_v56 = vpop.f32.mrb[67].mxu0 }
 0x19f   : > { %v3246_v40 = vadd.f32 %v9171_v21, %v3182_v62  ;;  %v9174_v57 = vadd.f32 %v9173_v56, %v9172_v39  ;;  %v9213_v58 = vpop.f32.mrb[67].mxu1 }
 0x1a0   : > { %v9214_v41 = vadd.f32 %v9213_v58, %v9212_v55 }
 0x1a1   : > { %v3310_v59 = vadd.f32 %v9211_v37, %v3246_v40  ;;  %v3249_v60 = vadd.f32 %v9174_v57, %v3185_v0 }
 0x1a3   : > { %v3313_v61 = vadd.f32 %v9214_v41, %v3249_v60  ;;  %v9175_v63 = vpop.f32.mrb[68].mxu0 }
 0x1a4   : > { %v9215_v2 = vpop.f32.mrb[68].mxu1  ;;  %v9176_v50 = vpop.f32.mrb[69].mxu0 }
 0x1a5   : > { %v9177_v7 = vadd.f32 %v9176_v50, %v9175_v63  ;;  %v9216_v52 = vpop.f32.mrb[69].mxu1  ;;  %v9178_v54 = vpop.f32.mrb[70].mxu0 }
 0x1a6   : > { %v9217_v9 = vadd.f32 %v9216_v52, %v9215_v2  ;;  %v9218_v10 = vpop.f32.mrb[70].mxu1  ;;  %v9179_v11 = vpop.f32.mrb[71].mxu0 }
 0x1a7   : > { %v3254_v12 = vadd.f32 %v9177_v7, %v3190_v1  ;;  %v9180_v13 = vadd.f32 %v9179_v11, %v9178_v54  ;;  %v9219_v14 = vpop.f32.mrb[71].mxu1 }
 0x1a8   : > { %v9220_v15 = vadd.f32 %v9219_v14, %v9218_v10 }
 0x1a9   : > { %v3318_v62 = vadd.f32 %v9217_v9, %v3254_v12  ;;  %v3257_v16 = vadd.f32 %v9180_v13, %v3193_v19 }
 0x1ab   : > { %v11659_v17 = vadd.f32 %v9220_v15, %v3257_v16  ;;  %v9181_v18 = vpop.f32.mrb[72].mxu0 }
 0x1ac   : > { %v9221_v0 = vpop.f32.mrb[72].mxu1  ;;  %v9182_v20 = vpop.f32.mrb[73].mxu0 }
 0x1ad   : > { %v9183_v24 = vadd.f32 %v9182_v20, %v9181_v18  ;;  %v9222_v4 = vpop.f32.mrb[73].mxu1  ;;  %v9184_v26 = vpop.f32.mrb[74].mxu0 }
 0x1ae   : > { %v9223_v8 = vadd.f32 %v9222_v4, %v9221_v0  ;;  %v9224_v27 = vpop.f32.mrb[74].mxu1  ;;  %v9185_v5 = vpop.f32.mrb[75].mxu0 }
 0x1af   : > { %v3262_v28 = vadd.f32 %v9183_v24, %v3198_v6  ;;  %v9186_v29 = vadd.f32 %v9185_v5, %v9184_v26  ;;  %v9225_v30 = vpop.f32.mrb[75].mxu1 }
 0x1b0   : > { %v9226_v1 = vadd.f32 %v9225_v30, %v9224_v27 }
 0x1b1   : > { %v11661_v31 = vadd.f32 %v9223_v8, %v3262_v28  ;;  %v3265_v32 = vadd.f32 %v9186_v29, %v3201_v35 }
 0x1b3   : > { %v11663_v33 = vadd.f32 %v9226_v1, %v3265_v32  ;;  %v9187_v19 = vpop.f32.mrb[76].mxu0 }
 0x1b4   : > { %v9227_v34 = vpop.f32.mrb[76].mxu1  ;;  %v9188_v22 = vpop.f32.mrb[77].mxu0 }
 0x1b5   : > { %v9189_v38 = vadd.f32 %v9188_v22, %v9187_v19  ;;  %v9228_v3 = vpop.f32.mrb[77].mxu1  ;;  %v9190_v42 = vpop.f32.mrb[78].mxu0 }
 0x1b6   : > { %v9229_v25 = vadd.f32 %v9228_v3, %v9227_v34  ;;  %v9230_v43 = vpop.f32.mrb[78].mxu1  ;;  %v9191_v23 = vpop.f32.mrb[79].mxu0 }
 0x1b7   : > { %v3270_v44 = vadd.f32 %v9189_v38, %v3206_v48  ;;  %v9231_v45 = vpop.f32.mrb[79].mxu1 }
 0x1b9   : > { %v11665_v6 = vadd.f32 %v9229_v25, %v3270_v44 }
 0x1bb   : > { %v9249_v46 = vpop.f32.mrb[80].mxu0 }
 0x1bc   : > { %v9289_v47 = vpop.f32.mrb[80].mxu1  ;;  %v9250_v49 = vpop.f32.mrb[81].mxu0 }
 0x1bd   : > { %v9251_v51 = vadd.f32 %v9250_v49, %v9249_v46  ;;  %v9290_v35 = vpop.f32.mrb[81].mxu1  ;;  %v9252_v36 = vpop.f32.mrb[82].mxu0 }
 0x1be   : > { %v9291_v21 = vadd.f32 %v9290_v35, %v9289_v47  ;;  %v9292_v53 = vpop.f32.mrb[82].mxu1  ;;  %v9253_v39 = vpop.f32.mrb[83].mxu0 }
 0x1bf   : > { %v3374_v37 = vadd.f32 %v9251_v51, %v3310_v59  ;;  %v9254_v55 = vadd.f32 %v9253_v39, %v9252_v36  ;;  %v9293_v56 = vpop.f32.mrb[83].mxu1 }
 0x1c0   : > { %v9294_v40 = vadd.f32 %v9293_v56, %v9292_v53 }
 0x1c1   : > { %v3377_v57 = vadd.f32 %v9254_v55, %v3313_v61  ;;  %v3438_v58 = vadd.f32 %v9291_v21, %v3374_v37 }
 0x1c3   : > { %v9255_v48 = vpop.f32.mrb[84].mxu0  ;;  %v3470_v41 = vsel %vm3469_vm0, %v3438_v58, 0.0  ;;  %v11668_v60 = vadd.f32 %v9294_v40, %v3377_v57 }
 0x1c4   : > { %v9295_v63 = vpop.f32.mrb[84].mxu1  ;;  %v9256_v2 = vpop.f32.mrb[85].mxu0  ;;  %3471 = vadd.xlane.f32.xlu0 %v3470_v41 }
 0x1c5   : > { %v9257_v50 = vadd.f32 %v9256_v2, %v9255_v48  ;;  %v9296_v7 = vpop.f32.mrb[85].mxu1  ;;  %v9258_v52 = vpop.f32.mrb[86].mxu0  ;;  %v3473_v61 = vsel %vm3469_vm0, %v11668_v60, 0.0 }
 0x1c6   : > { %v9297_v54 = vadd.f32 %v9296_v7, %v9295_v63  ;;  %v9298_v9 = vpop.f32.mrb[86].mxu1  ;;  %v9259_v59 = vpop.f32.mrb[87].mxu0 }
 0x1c7   : > { %v3382_v10 = vadd.f32 %v9257_v50, %v3318_v62  ;;  %v9260_v11 = vadd.f32 %v9259_v59, %v9258_v52  ;;  %v9299_v12 = vpop.f32.mrb[87].mxu1 }
 0x1c8   : > { %v9300_v13 = vadd.f32 %v9299_v12, %v9298_v9  ;;  %3474 = vadd.xlane.f32.xlu0 %v3473_v61 }
 0x1c9   : > { %v3385_v14 = vadd.f32 %v9260_v11, %v11659_v17  ;;  %v3446_v15 = vadd.f32 %v9297_v54, %v3382_v10 }
 0x1cb   : > { %v9261_v16 = vpop.f32.mrb[88].mxu0  ;;  %v3476_v18 = vsel %vm3469_vm0, %v3446_v15, 0.0  ;;  %v3449_v0 = vadd.f32 %v9300_v13, %v3385_v14 }
 0x1cc   : > { %v9262_v20 = vpop.f32.mrb[89].mxu0  ;;  %3477 = vadd.xlane.f32.xlu1 %v3476_v18  ;;  %v9301_v24 = vpop.f32.mrb[88].mxu1 }
 0x1cd   : > { %v9263_v4 = vadd.f32 %v9262_v20, %v9261_v16  ;;  %v9264_v26 = vpop.f32.mrb[90].mxu0  ;;  %v9302_v62 = vpop.f32.mrb[89].mxu1  ;;  %v3479_v17 = vsel %vm3469_vm0, %v3449_v0, 0.0 }
 0x1ce   : > { %v9265_v8 = vpop.f32.mrb[91].mxu0  ;;  %v9303_v27 = vadd.f32 %v9302_v62, %v9301_v24  ;;  %v9304_v5 = vpop.f32.mrb[90].mxu1 }
 0x1cf   : > { %v3390_v28 = vadd.f32 %v9263_v4, %v11661_v31  ;;  %v9266_v29 = vadd.f32 %v9265_v8, %v9264_v26  ;;  %v9305_v30 = vpop.f32.mrb[91].mxu1 }
 0x1d0   : > { %v9306_v1 = vadd.f32 %v9305_v30, %v9304_v5  ;;  %3480 = vadd.xlane.f32.xlu1 %v3479_v17 }
 0x1d1   : > { %v3393_v32 = vadd.f32 %v9266_v29, %v11663_v33  ;;  %v3454_v19 = vadd.f32 %v9303_v27, %v3390_v28 }
 0x1d3   : > { %v9267_v34 = vpop.f32.mrb[92].mxu0  ;;  %v3482_v22 = vsel %vm3469_vm0, %v3454_v19, 0.0  ;;  %v3457_v38 = vadd.f32 %v9306_v1, %v3393_v32 }
 0x1d4   : > { %v9268_v3 = vpop.f32.mrb[93].mxu0  ;;  %3483 = vadd.xlane.f32.xlu0 %v3482_v22  ;;  %v9307_v42 = vpop.f32.mrb[92].mxu1 }
 0x1d5   : > { %v9269_v25 = vadd.f32 %v9268_v3, %v9267_v34  ;;  %v9308_v43 = vpop.f32.mrb[93].mxu1  ;;  %v3485_v31 = vsel %vm3469_vm0, %v3457_v38, 0.0  ;;  %v9270_v23 = vpop.f32.mrb[94].mxu0  ;;  %v8559_v34 = vld [vmem:[%s13746_s27] ss:$0 sm:$0xff]  ;;  %s8199_s27 = scalar_lea.sflag [#allocation3], %s620_s26 }
 0x1d6   : > { %v9309_v44 = vadd.f32 %v9308_v43, %v9307_v42  ;;  %3486 = vadd.xlane.f32.xlu1 %v3485_v31  ;;  %v9271_v45 = vpop.f32.mrb[95].mxu0  ;;  %v9310_v46 = vpop.f32.mrb[94].mxu1  ;;  %v8560_v42 = vld [vmem:[%s13747_s3] ss:$0 sm:$0xff]  ;;  %s13773_s3 = smov 16  }
 0x1d7   : > { %v3398_v47 = vadd.f32 %v9269_v25, %v11665_v6  ;;  %v9311_v33 = vpop.f32.mrb[95].mxu1 }
 0x1d9   : > { %v3462_v49 = vadd.f32 %v9309_v44, %v3398_v47 }
 0x1db   : > { %v3488_v51 = vsel %vm3469_vm0, %v3462_v49, 0.0 }
 0x1dc   : > { %3489 = vadd.xlane.f32.xlu0 %v3488_v51 }
 0x251   : > { %v3472_v35 = vpop.xlane.xlu0 %3471 }
 0x252   : > { %v3492_v36 = vmul.f32 0.015625, %v3472_v35 }
 0x254   : > { %v3499_v21 = vsub.f32 %v3438_v58, %v3492_v36 }
 0x255   : > { %v3475_v53 = vpop.xlane.xlu0 %3474 }
 0x256   : > { %v3493_v39 = vmul.f32 0.015625, %v3475_v53  ;;  %v3506_v37 = vmul.f32 %v3499_v21, %v3499_v21 }
 0x258   : > { %v11682_v55 = vsub.f32 %v11668_v60, %v3493_v39  ;;  %v3513_v56 = vsel %vm3469_vm0, %v3506_v37, 0.0 }
 0x259   : > { %v3478_v40 = vpop.xlane.xlu1 %3477  ;;  %3514 = vadd.xlane.f32.xlu1 %v3513_v56 }
 0x25a   : > { %v3494_v57 = vmul.f32 0.015625, %v3478_v40  ;;  %v3507_v6 = vmul.f32 %v11682_v55, %v11682_v55 }
 0x25c   : > { %v11687_v48 = vsub.f32 %v3446_v15, %v3494_v57  ;;  %v3516_v41 = vsel %vm3469_vm0, %v3507_v6, 0.0 }
 0x25d   : > { %v3481_v63 = vpop.xlane.xlu1 %3480  ;;  %3517 = vadd.xlane.f32.xlu0 %v3516_v41 }
 0x25e   : > { %v3495_v58 = vmul.f32 0.015625, %v3481_v63  ;;  %v3508_v2 = vmul.f32 %v11687_v48, %v11687_v48 }
 0x260   : > { %v11692_v60 = vsub.f32 %v3449_v0, %v3495_v58  ;;  %v3519_v50 = vsel %vm3469_vm0, %v3508_v2, 0.0 }
 0x261   : > { %3520 = vadd.xlane.f32.xlu1 %v3519_v50  ;;  %v3484_v7 = vpop.xlane.xlu0 %3483 }
 0x262   : > { %v3496_v52 = vmul.f32 0.015625, %v3484_v7  ;;  %v3509_v54 = vmul.f32 %v11692_v60, %v11692_v60 }
 0x263   : > { %v3487_v9 = vpop.xlane.xlu1 %3486 }
 0x264   : > { %v11697_v59 = vsub.f32 %v3454_v19, %v3496_v52  ;;  %v3497_v10 = vmul.f32 0.015625, %v3487_v9  ;;  %v3522_v11 = vsel %vm3469_vm0, %v3509_v54, 0.0 }
 0x265   : > { %3523 = vadd.xlane.f32.xlu0 %v3522_v11 }
 0x266   : > { %v11700_v12 = vsub.f32 %v3457_v38, %v3497_v10  ;;  %v3510_v61 = vmul.f32 %v11697_v59, %v11697_v59 }
 0x268   : > { %v3525_v13 = vsel %vm3469_vm0, %v3510_v61, 0.0  ;;  %v3511_v14 = vmul.f32 %v11700_v12, %v11700_v12 }
 0x269   : > { %3526 = vadd.xlane.f32.xlu1 %v3525_v13  ;;  %v3490_v15 = vpop.xlane.xlu0 %3489 }
 0x26a   : > { %v3498_v16 = vmul.f32 0.015625, %v3490_v15  ;;  %v3528_v18 = vsel %vm3469_vm0, %v3511_v14, 0.0  ;;  %v10239_v15 = vld [vmem:[%s13676_s7] ss:$8 sps:$4 sm:$0xff]  }
 0x26b   : > { %3529 = vadd.xlane.f32.xlu0 %v3528_v18 }
 0x26c   : > { %v11708_v0 = vsub.f32 %v3462_v49, %v3498_v16  ;;  %v10241_v16 = vld [vmem:[%s13676_s7 + $0x4] ss:$8 sps:$4 sm:$0xff]  }
 0x26d   : > { %3787 = vmatprep.subr.bf16.mxu0 %v10241_v16 }
 0x26e   : > { %v3512_v20 = vmul.f32 %v11708_v0, %v11708_v0  ;;  %3788 = vmatpush1.bf16.msra.mxu0 %v10239_v15 }
 0x270   : > { %v3531_v24 = vsel %vm3469_vm0, %v3512_v20, 0.0 }
 0x271   : > { %3532 = vadd.xlane.f32.xlu1 %v3531_v24 }
 0x2e6   : > { %v3515_v4 = vpop.xlane.xlu1 %3514 }
 0x2e7   : > { %v3534_v26 = vmul.f32 0.015625, %v3515_v4 }
 0x2e9   : > { %v3541_v62 = vadd.f32 1e-05, %v3534_v26 }
 0x2ea   : > { %v3518_v8 = vpop.xlane.xlu0 %3517 }
 0x2eb   : > { %10331 = vrsqrt.f32 %v3541_v62  ;;  %v3535_v27 = vmul.f32 0.015625, %v3518_v8 }
 0x2ed   : > { %v3542_v5 = vadd.f32 1e-05, %v3535_v27 }
 0x2ee   : > { %v3521_v28 = vpop.xlane.xlu1 %3520 }
 0x2ef   : > { %10333 = vrsqrt.f32 %v3542_v5  ;;  %v3536_v29 = vmul.f32 0.015625, %v3521_v28 }
 0x2f1   : > { %v3543_v30 = vadd.f32 1e-05, %v3536_v29 }
 0x2f2   : > { %v3524_v17 = vpop.xlane.xlu0 %3523 }
 0x2f3   : > { %10335 = vrsqrt.f32 %v3543_v30  ;;  %v3537_v1 = vmul.f32 0.015625, %v3524_v17 }
 0x2f5   : > { %v10332_v32 = vpop.eup %10331  ;;  %v3544_v19 = vadd.f32 1e-05, %v3537_v1 }
 0x2f6   : > { %v3527_v22 = vpop.xlane.xlu1 %3526  ;;  %v3555_v38 = vmul.f32 %v10332_v32, %v3499_v21 }
 0x2f7   : > { %10337 = vrsqrt.f32 %v3544_v19  ;;  %v3538_v3 = vmul.f32 0.015625, %v3527_v22 }
 0x2f8   : > { %v3530_v25 = vpop.xlane.xlu0 %3529  ;;  %v3568_v43 = vmul.f32 %v8559_v34, %v3555_v38 }
 0x2f9   : > { %v10334_v31 = vpop.eup %10333  ;;  %v3545_v23 = vadd.f32 1e-05, %v3538_v3  ;;  %v3539_v44 = vmul.f32 0.015625, %v3530_v25 }
 0x2fa   : > { %v11719_v45 = vadd.f32 %v8560_v42, %v3568_v43  ;;  %v3556_v46 = vmul.f32 %v10334_v31, %v11682_v55 }
 0x2fb   : > { %10339 = vrsqrt.f32 %v3545_v23  ;;  %v3546_v47 = vadd.f32 1e-05, %v3539_v44 }
 0x2fc   : > { %13748 = vst [vmem:[#allocation11_spill] sm:$0xff] %v11719_v45  ;;  %v3594_v33 = vsel %vm3469_vm0, %v11719_v45, 0.0  ;;  %v3569_v49 = vmul.f32 %v8559_v34, %v3556_v46 }
 0x2fd   : > { %v10336_v51 = vpop.eup %10335  ;;  %10341 = vrsqrt.f32 %v3546_v47  ;;  %3595 = vadd.xlane.f32.xlu0 %v3594_v33 }
 0x2fe   : > { %v3533_v35 = vpop.xlane.xlu1 %3532  ;;  %v11724_v36 = vadd.f32 %v8560_v42, %v3569_v49  ;;  %v3557_v21 = vmul.f32 %v10336_v51, %v11687_v48 }
 0x2ff   : > { %v3540_v53 = vmul.f32 0.015625, %v3533_v35 }
 0x300   : > { %13749 = vst [vmem:[#allocation12_spill] sm:$0xff] %v11724_v36  ;;  %v3597_v39 = vsel %vm3469_vm0, %v11724_v36, 0.0  ;;  %v3570_v37 = vmul.f32 %v8559_v34, %v3557_v21 }
 0x301   : > { %v10338_v55 = vpop.eup %10337  ;;  %v3547_v56 = vadd.f32 1e-05, %v3540_v53  ;;  %3598 = vadd.xlane.f32.xlu1 %v3597_v39  ;;  %v10244_v39 = vld [vmem:[%s13676_s7 + $0x14] ss:$8 sps:$4 sm:$0xff]  }
 0x302   : > { %v11729_v40 = vadd.f32 %v8560_v42, %v3570_v37  ;;  %v3558_v57 = vmul.f32 %v10338_v55, %v11692_v60  ;;  %v10242_v37 = vld [vmem:[%s13676_s7 + $0x10] ss:$8 sps:$4 sm:$0xff]   ;;  %3789 = vmatprep.subr.bf16.mxu0 %v10244_v39  ;;  %v10247_v55 = vld [vmem:[%s13676_s7 + $0x24] ss:$8 sps:$4 sm:$0xff]  }
 0x303   : > { %10343 = vrsqrt.f32 %v3547_v56  ;;  %3790 = vmatpush1.bf16.msra.mxu0 %v10242_v37  ;;  %v10245_v56 = vld [vmem:[%s13676_s7 + $0x20] ss:$8 sps:$4 sm:$0xff]  }
 0x304   : > { %v3600_v6 = vsel %vm3469_vm0, %v11729_v40, 0.0  ;;  %v3571_v41 = vmul.f32 %v8559_v34, %v3558_v57  ;;  %3791 = vmatprep.subr.bf16.mxu0 %v10247_v55  ;;  %v10250_v57 = vld [vmem:[%s13676_s7 + $0x34] ss:$8 sps:$4 sm:$0xff]  }
 0x305   : > { %v10340_v63 = vpop.eup %10339  ;;  %3601 = vadd.xlane.f32.xlu0 %v3600_v6  ;;  %v10248_v6 = vld [vmem:[%s13676_s7 + $0x30] ss:$8 sps:$4 sm:$0xff]  }
 0x306   : > { %v11734_v48 = vadd.f32 %v8560_v42, %v3571_v41  ;;  %v3559_v58 = vmul.f32 %v10340_v63, %v11697_v59  ;;  %v13699_v41 = vmov 0  }
 0x307   : > { %v10342_v2 = vpop.eup %10341  ;;  %3792 = vmatpush1.bf16.msra.mxu0 %v10245_v56  ;;  %3819 = vmatprep.mubr.bf16.mxu0 %v13699_v41 }
 0x308   : > { %13750 = vst [vmem:[#allocation13_spill] sm:$0xff] %v11734_v48  ;;  %v3603_v50 = vsel %vm3469_vm0, %v11734_v48, 0.0  ;;  %v3572_v7 = vmul.f32 %v8559_v34, %v3559_v58  ;;  %v3560_v52 = vmul.f32 %v10342_v2, %v11700_v12  ;;  %3793 = vmatprep.subr.bf16.mxu0 %v10250_v57 }
 0x309   : > { %3604 = vadd.xlane.f32.xlu1 %v3603_v50 }
 0x30a   : > { %v11740_v60 = vadd.f32 %v8560_v42, %v3572_v7  ;;  %v3573_v54 = vmul.f32 %v8559_v34, %v3560_v52 }
 0x30b   : > { %3794 = vmatpush1.bf16.msra.mxu0 %v10248_v6 }
 0x30c   : > { %13751 = vst [vmem:[#allocation14_spill] sm:$0xff] %v11740_v60  ;;  %v3606_v9 = vsel %vm3469_vm0, %v11740_v60, 0.0  ;;  %v11744_v10 = vadd.f32 %v8560_v42, %v3573_v54 }
 0x30d   : > { %v10344_v11 = vpop.eup %10343  ;;  %3607 = vadd.xlane.f32.xlu0 %v3606_v9 }
 0x30e   : > { %13752 = vst [vmem:[#allocation15_spill] sm:$0xff] %v11744_v10  ;;  %v3609_v59 = vsel %vm3469_vm0, %v11744_v10, 0.0  ;;  %v3561_v61 = vmul.f32 %v10344_v11, %v11708_v0 }
 0x30f   : > { %3610 = vadd.xlane.f32.xlu1 %v3609_v59 }
 0x310   : > { %v3574_v13 = vmul.f32 %v8559_v34, %v3561_v61 }
 0x312   : > { %v11749_v14 = vadd.f32 %v8560_v42, %v3574_v13 }
 0x314   : > { %13753 = vst [vmem:[#allocation16_spill] sm:$0xff] %v11749_v14  ;;  %v3612_v12 = vsel %vm3469_vm0, %v11749_v14, 0.0 }
 0x315   : > { %3613 = vadd.xlane.f32.xlu0 %v3612_v12 }
 0x38a   : > { %v3596_v18 = vpop.xlane.xlu0 %3595 }
 0x38b   : > { %v3615_v0 = vmul.f32 0.015625, %v3596_v18  ;;  %v8561_v18 = vld [vmem:[%s13674_s5] ss:$0 sm:$0xff] }
 0x38d   : > { %v11760_v20 = vsub.f32 %v11719_v45, %v3615_v0 }
 0x38e   : > { %v3599_v24 = vpop.xlane.xlu1 %3598 }
 0x38f   : > { %v3616_v4 = vmul.f32 0.015625, %v3599_v24  ;;  %v3629_v26 = vmul.f32 %v11760_v20, %v11760_v20 }
 0x391   : > { %v11765_v62 = vsub.f32 %v11724_v36, %v3616_v4  ;;  %v3636_v8 = vsel %vm3469_vm0, %v3629_v26, 0.0 }
 0x392   : > { %3637 = vadd.xlane.f32.xlu1 %v3636_v8  ;;  %v3602_v27 = vpop.xlane.xlu0 %3601 }
 0x393   : > { %v3617_v5 = vmul.f32 0.015625, %v3602_v27  ;;  %v3630_v28 = vmul.f32 %v11765_v62, %v11765_v62 }
 0x395   : > { %v11771_v29 = vsub.f32 %v11729_v40, %v3617_v5  ;;  %v3639_v30 = vsel %vm3469_vm0, %v3630_v28, 0.0  ;;  %v8562_v28 = vld [vmem:[%s13675_s6] ss:$0 sm:$0xff] }
 0x396   : > { %3640 = vadd.xlane.f32.xlu0 %v3639_v30  ;;  %v3605_v17 = vpop.xlane.xlu1 %3604 }
 0x397   : > { %v3618_v1 = vmul.f32 0.015625, %v3605_v17  ;;  %v3631_v32 = vmul.f32 %v11771_v29, %v11771_v29 }
 0x399   : > { %v11777_v19 = vsub.f32 %v11734_v48, %v3618_v1  ;;  %v3642_v34 = vsel %vm3469_vm0, %v3631_v32, 0.0 }
 0x39a   : > { %3643 = vadd.xlane.f32.xlu1 %v3642_v34  ;;  %v3608_v22 = vpop.xlane.xlu0 %3607 }
 0x39b   : > { %v3619_v38 = vmul.f32 0.015625, %v3608_v22  ;;  %v3632_v3 = vmul.f32 %v11777_v19, %v11777_v19 }
 0x39c   : > { %v3611_v42 = vpop.xlane.xlu1 %3610 }
 0x39d   : > { %v11783_v25 = vsub.f32 %v11740_v60, %v3619_v38  ;;  %v3620_v43 = vmul.f32 0.015625, %v3611_v42  ;;  %v3645_v31 = vsel %vm3469_vm0, %v3632_v3, 0.0 }
 0x39e   : > { %3646 = vadd.xlane.f32.xlu0 %v3645_v31 }
 0x39f   : > { %v11787_v23 = vsub.f32 %v11744_v10, %v3620_v43  ;;  %v3633_v44 = vmul.f32 %v11783_v25, %v11783_v25 }
 0x3a1   : > { %v3648_v46 = vsel %vm3469_vm0, %v3633_v44, 0.0  ;;  %v3634_v47 = vmul.f32 %v11787_v23, %v11787_v23 }
 0x3a2   : > { %3649 = vadd.xlane.f32.xlu1 %v3648_v46  ;;  %v3614_v33 = vpop.xlane.xlu0 %3613 }
 0x3a3   : > { %v3621_v49 = vmul.f32 0.015625, %v3614_v33  ;;  %v3651_v51 = vsel %vm3469_vm0, %v3634_v47, 0.0 }
 0x3a4   : > { %3652 = vadd.xlane.f32.xlu0 %v3651_v51 }
 0x3a5   : > { %v11796_v35 = vsub.f32 %v11749_v14, %v3621_v49 }
 0x3a7   : > { %v3635_v21 = vmul.f32 %v11796_v35, %v11796_v35 }
 0x3a9   : > { %v3654_v53 = vsel %vm3469_vm0, %v3635_v21, 0.0 }
 0x3aa   : > { %3655 = vadd.xlane.f32.xlu1 %v3654_v53 }
 0x41f   : > { %v3638_v63 = vpop.xlane.xlu1 %3637 }
 0x420   : > { %v3657_v58 = vmul.f32 0.015625, %v3638_v63 }
 0x422   : > { %v3664_v2 = vadd.f32 1e-05, %v3657_v58 }
 0x423   : > { %v3641_v50 = vpop.xlane.xlu0 %3640 }
 0x424   : > { %10345 = vrsqrt.f32 %v3664_v2  ;;  %v3658_v7 = vmul.f32 0.015625, %v3641_v50  ;;  %v3723_v50 = vld [vmem:[%s13677_s8] sm:$0x3] }
 0x426   : > { %v3665_v52 = vadd.f32 1e-05, %v3658_v7 }
 0x427   : > { %v3644_v54 = vpop.xlane.xlu1 %3643 }
 0x428   : > { %10347 = vrsqrt.f32 %v3665_v52  ;;  %v3659_v9 = vmul.f32 0.015625, %v3644_v54 }
 0x42a   : > { %v3666_v11 = vadd.f32 1e-05, %v3659_v9 }
 0x42b   : > { %v3647_v59 = vpop.xlane.xlu0 %3646 }
 0x42c   : > { %10349 = vrsqrt.f32 %v3666_v11  ;;  %v3660_v61 = vmul.f32 0.015625, %v3647_v59 }
 0x42e   : > { %v10346_v13 = vpop.eup %10345  ;;  %v3667_v12 = vadd.f32 1e-05, %v3660_v61 }
 0x42f   : > { %v3678_v15 = vmul.f32 %v10346_v13, %v11760_v20  ;;  %v3650_v16 = vpop.xlane.xlu1 %3649 }
 0x430   : > { %10351 = vrsqrt.f32 %v3667_v12  ;;  %v3661_v0 = vmul.f32 0.015625, %v3650_v16 }
 0x431   : > { %v3653_v24 = vpop.xlane.xlu0 %3652  ;;  %v3691_v27 = vmul.f32 %v8561_v18, %v3678_v15 }
 0x432   : > { %v10348_v4 = vpop.eup %10347  ;;  %v3668_v26 = vadd.f32 1e-05, %v3661_v0  ;;  %v3662_v8 = vmul.f32 0.015625, %v3653_v24 }
 0x433   : > { %v3679_v5 = vmul.f32 %v10348_v4, %v11765_v62  ;;  %v3704_v1 = vadd.f32 %v8562_v28, %v3691_v27 }
 0x434   : > { %10353 = vrsqrt.f32 %v3668_v26  ;;  %v3669_v20 = vadd.f32 1e-05, %v3662_v8 }
 0x435   : > { %v3692_v30 = vmul.f32 %v8561_v18, %v3679_v5 }
 0x436   : > { %v10350_v17 = vpop.eup %10349  ;;  %10355 = vrsqrt.f32 %v3669_v20 }
 0x437   : > { %v3705_v32 = vadd.f32 %v8562_v28, %v3692_v30  ;;  %v3656_v34 = vpop.xlane.xlu1 %3655  ;;  %v3680_v22 = vmul.f32 %v10350_v17, %v11771_v29 }
 0x438   : > { %v3663_v38 = vmul.f32 0.015625, %v3656_v34 }
 0x439   : > { %v3719_v3 = vpack.c.bf16 %v3705_v32, %v3704_v1  ;;  %v3693_v31 = vmul.f32 %v8561_v18, %v3680_v22 }
 0x43a   : > { %v10352_v42 = vpop.eup %10351  ;;  %v3670_v43 = vadd.f32 1e-05, %v3663_v38 }
 0x43b   : > { %8571 = vmatmul.mubr.msk.bf16.vlgmr.msra.gmra.mrb[96].mxu0 %vm3469_vm0, %v3719_v3  ;;  %v3681_v62 = vmul.f32 %v10352_v42, %v11777_v19  ;;  %v3706_v47 = vadd.f32 %v8562_v28, %v3693_v31 }
 0x43c   : > { %10357 = vrsqrt.f32 %v3670_v43  ;;  %3829 = vmatprep.mubr.bf16.mxu0 %v13699_v41 }
 0x43d   : > { %v3694_v44 = vmul.f32 %v8561_v18, %v3681_v62 }
 0x43e   : > { %v10354_v46 = vpop.eup %10353 }
 0x43f   : > { %v3707_v33 = vadd.f32 %v8562_v28, %v3694_v44  ;;  %v3682_v49 = vmul.f32 %v10354_v46, %v11783_v25 }
 0x440   : > { %v10356_v51 = vpop.eup %10355 }
 0x441   : > { %v3720_v29 = vpack.c.bf16 %v3707_v33, %v3706_v47  ;;  %v3683_v21 = vmul.f32 %v10356_v51, %v11787_v23  ;;  %v3695_v53 = vmul.f32 %v8561_v18, %v3682_v49  ;;  %v3588_v23 = vlaneseq }
 0x443   : > { %8572 = vmatmul.mubr.msk.bf16.gmra.mrb[100].mxu0 %vm3469_vm0, %v3720_v29  ;;  %v3696_v39 = vmul.f32 %v8561_v18, %v3683_v21  ;;  %v3708_v55 = vadd.f32 %v8562_v28, %v3695_v53  ;;  %v3726_v58 = vshrl.u32 %v3588_v23, 7 }
 0x444   : > { %3839 = vmatprep.mubr.bf16.mxu0 %v13699_v41 }
 0x445   : > { %v3709_v19 = vadd.f32 %v8562_v28, %v3696_v39  ;;  %v11841_v2 = vsub.s32 0, %v3726_v58 }
 0x446   : > { %v10358_v37 = vpop.eup %10357 }
 0x447   : > { %v3684_v56 = vmul.f32 %v10358_v37, %v11796_v35  ;;  %v3721_v57 = vpack.c.bf16 %v3709_v19, %v3708_v55  ;;  %13754 = vst [vmem:[#allocation17_spill] sm:$0xff] %v11841_v2  ;;  %v11846_v35 = vsub.s32 1, %v3726_v58  ;;  %v3728_v7 = vrot.slane %v3723_v50, %v11841_v2 }
 0x449   : > { %v3697_v6 = vmul.f32 %v8561_v18, %v3684_v56  ;;  %13755 = vst [vmem:[#allocation18_spill] sm:$0xff] %v11846_v35  ;;  %v11850_v54 = vrot.slane %v3723_v50, %v11846_v35 }
 0x44b   : > { %8573 = vmatmul.mubr.msk.bf16.gmra.mrb[104].mxu0 %vm3469_vm0, %v3721_v57  ;;  %v3710_v25 = vadd.f32 %v8562_v28, %v3697_v6 }
 0x44c   : > { %3849 = vmatprep.mubr.bf16.mxu0 %v13699_v41 }
 0x44d   : > { %v3722_v63 = vpack.c.bf16 %v3710_v25, %v3710_v25 }
 0x453   : > { %8574 = vmatmul.mubr.msk.bf16.gmra.mrb[108].mxu0 %vm3469_vm0, %v3722_v63 }
 0x50e   : > { %v3821_v52 = vpop.f32.mrb[96].mxu0 }
 0x50f   : > { %v3823_v9 = vpop.f32.mrb[97].mxu0  ;;  %v3822_v59 = vadd.f32 %v3821_v52, %v3728_v7 }
 0x510   : > { %v3825_v11 = vpop.f32.mrb[98].mxu0  ;;  %v3824_v12 = vadd.f32 %v3823_v9, %v11850_v54 }
 0x511   : > { %v3826_v61 = vadd.f32 %v3825_v11, %v3728_v7  ;;  %v3827_v13 = vpop.f32.mrb[99].mxu0 }
 0x512   : > { %v3828_v15 = vadd.f32 %v3827_v13, %v11850_v54 }
 0x513   : > { %v11854_v16 = vpack.c.bf16 %v3826_v61, %v3822_v59 }
 0x514   : > { %v11856_v18 = vpack.c.bf16 %v3828_v15, %v3824_v12 }
 0x515   : > { %4151 = vrot.lane.b32.xlu1 %v11854_v16, %s13721_s1  ;;  %3866 = vrot.lane.b32.xlu0 %v11854_v16, %s10805_s20 }
 0x516   : > { %9550 = vmatprep.mubr.msk.bf16.mxu1 %vm3874_vm1, %v11854_v16  ;;  %v3831_v0 = vpop.f32.mrb[100].mxu0 }
 0x517   : > { %v3833_v24 = vpop.f32.mrb[101].mxu0  ;;  %v3832_v26 = vadd.f32 %v3831_v0, %v3728_v7 }
 0x518   : > { %v3835_v4 = vpop.f32.mrb[102].mxu0  ;;  %v3834_v5 = vadd.f32 %v3833_v24, %v11850_v54 }
 0x519   : > { %v3836_v8 = vadd.f32 %v3835_v4, %v3728_v7  ;;  %v3837_v27 = vpop.f32.mrb[103].mxu0 }
 0x51a   : > { %v3838_v28 = vadd.f32 %v3837_v27, %v11850_v54 }
 0x51b   : > { %v11866_v20 = vpack.c.bf16 %v3836_v8, %v3832_v26 }
 0x51c   : > { %v11868_v30 = vpack.c.bf16 %v3838_v28, %v3834_v5 }
 0x51d   : > { %3868 = vrot.lane.b32.xlu1 %v11866_v20, %s10805_s20 }
 0x51e   : > { %v3841_v17 = vpop.f32.mrb[104].mxu0 }
 0x51f   : > { %v3843_v1 = vpop.f32.mrb[105].mxu0  ;;  %v3842_v34 = vadd.f32 %v3841_v17, %v3728_v7 }
 0x520   : > { %v3845_v32 = vpop.f32.mrb[106].mxu0  ;;  %v3844_v3 = vadd.f32 %v3843_v1, %v11850_v54 }
 0x521   : > { %v3846_v22 = vadd.f32 %v3845_v32, %v3728_v7  ;;  %4153 = vrot.lane.b32.xlu1 %v11866_v20, %s13721_s1  ;;  %v3847_v38 = vpop.f32.mrb[107].mxu0 }
 0x522   : > { %v3848_v42 = vadd.f32 %v3847_v38, %v11850_v54 }
 0x523   : > { %v11876_v43 = vpack.c.bf16 %v3846_v22, %v3842_v34  ;;  %v3589_v34 = vand.u32 127, %v3588_v23  ;;  %v10809_v22 = vmov -1e+30  }
 0x524   : > { %v11878_v62 = vpack.c.bf16 %v3848_v42, %v3844_v3 }
 0x525   : > { %4155 = vrot.lane.b32.xlu1 %v11876_v43, %s13721_s1  ;;  %3870 = vrot.lane.b32.xlu0 %v11876_v43, %s10805_s20  ;;  %vm3590_vm3 = vcmp.lt.s32.totalorder %v3589_v34, 50 }
 0x526   : > { %v3851_v31 = vpop.f32.mrb[108].mxu0  ;;  %v11981_v38 = vsel %vm3590_vm3, 0.0, %v10809_v22 }
 0x527   : > { %v3852_v44 = vadd.f32 %v3851_v31, %v3728_v7  ;;  %v3853_v46 = vpop.f32.mrb[109].mxu0 }
 0x528   : > { %v3855_v47 = vpop.f32.mrb[110].mxu0  ;;  %v3854_v51 = vadd.f32 %v3853_v46, %v11850_v54 }
 0x529   : > { %v11884_v33 = vpack.c.bf16 %v3852_v44, %v3852_v44  ;;  %v3856_v49 = vpop.f32.mrb[111].mxu0 }
 0x52a   : > { %v11925_v29 = vpack.c.bf16 %v3854_v51, %v3854_v51 }
 0x52b   : > { %4157 = vrot.lane.b32.xlu1 %v11884_v33, %s13721_s1  ;;  %3872 = vrot.lane.b32.xlu0 %v11884_v33, %s10805_s20 }
 0x52c   : > { %v4063_v4 = vsel %vm4061_vm2, %v11925_v29, 0 }
 0x52f   : > { %4444 = vrot.lane.b32.xlu1 %v11854_v16, %s13717_s25  ;;  %4143 = vrot.lane.b32.xlu0 %v11854_v16, %s13719_s29 }
 0x533   : > { %4446 = vrot.lane.b32.xlu1 %v11866_v20, %s13717_s25  ;;  %4145 = vrot.lane.b32.xlu0 %v11866_v20, %s13719_s29 }
 0x537   : > { %4147 = vrot.lane.b32.xlu1 %v11876_v43, %s13719_s29  ;;  %4448 = vrot.lane.b32.xlu0 %v11876_v43, %s13717_s25 }
 0x53b   : > { %4450 = vrot.lane.b32.xlu1 %v11884_v33, %s13717_s25  ;;  %4149 = vrot.lane.b32.xlu0 %v11884_v33, %s13719_s29 }
 0x53f   : > { %4438 = vrot.lane.b32.xlu1 %v11866_v20, %s13713_s24  ;;  %4436 = vrot.lane.b32.xlu0 %v11854_v16, %s13713_s24 }
 0x543   : > { %4442 = vrot.lane.b32.xlu1 %v11884_v33, %s13713_s24  ;;  %4440 = vrot.lane.b32.xlu0 %v11876_v43, %s13713_s24 }
 0x547   : > { %4334 = vrot.lane.b32.xlu1 %v11868_v30, %s13719_s29  ;;  %4332 = vrot.lane.b32.xlu0 %v11856_v18, %s13719_s29 }
 0x54b   : > { %4621 = vrot.lane.b32.xlu1 %v11856_v18, %s13713_s24  ;;  %4336 = vrot.lane.b32.xlu0 %v11878_v62, %s13719_s29 }
 0x54f   : > { %4623 = vrot.lane.b32.xlu1 %v11868_v30, %s13713_s24 }
 0x553   : > { %4338 = vrot.lane.b32.xlu1 %v11925_v29, %s13719_s29  ;;  %s13768_s29 = smov 48  }
 0x587   : > { %v4152_v21 = vpop.permute.xlu1 %4151  ;;  %v3867_v53 = vpop.permute.xlu0 %3866 }
 0x588   : > { %9842 = vmatprep.subr.msk.bf16.mxu1 %vm3874_vm1, %v3867_v53  ;;  %9847 = vmatprep.subr.msk.bf16.mxu0 %vm3874_vm1, %v4152_v21  ;;  %v3888_v39 = vsel %vm3874_vm1, %v3867_v53, 0  ;;  %v4172_v19 = vsel %vm3874_vm1, %v4152_v21, 0 }
 0x589   : > { %9543 = vmatpush3.bf16.xpose.msra.mxu1 %v3888_v39  ;;  %9575 = vmatpush3.bf16.xpose.msra.mxu0 %v4172_v19 }
 0x58f   : > { %v3869_v37 = vpop.permute.xlu1 %3868 }
 0x590   : > { %9843 = vmatprep.subr.msk.bf16.mxu1 %vm3874_vm1, %v3869_v37  ;;  %v3891_v55 = vsel %vm3874_vm1, %v3869_v37, 0 }
 0x591   : > { %9545 = vmatpush3.bf16.xpose.msra.mxu1 %v3891_v55 }
 0x593   : > { %v4154_v56 = vpop.permute.xlu1 %4153 }
 0x594   : > { %9848 = vmatprep.subr.msk.bf16.mxu0 %vm3874_vm1, %v4154_v56  ;;  %v4175_v57 = vsel %vm3874_vm1, %v4154_v56, 0 }
 0x595   : > { %9577 = vmatpush3.bf16.xpose.msra.mxu0 %v4175_v57 }
 0x597   : > { %v4156_v6 = vpop.permute.xlu1 %4155  ;;  %v3871_v25 = vpop.permute.xlu0 %3870 }
 0x598   : > { %9844 = vmatprep.subr.msk.bf16.mxu1 %vm3874_vm1, %v3871_v25  ;;  %9849 = vmatprep.subr.msk.bf16.mxu0 %vm3874_vm1, %v4156_v6  ;;  %v3894_v63 = vsel %vm3874_vm1, %v3871_v25, 0  ;;  %v4178_v58 = vsel %vm3874_vm1, %v4156_v6, 0 }
 0x599   : > { %9547 = vmatpush3.bf16.xpose.msra.mxu1 %v3894_v63 }
 0x59d   : > { %9579 = vmatpush3.bf16.xpose.msra.mxu0 %v4178_v58  ;;  %v4158_v50 = vpop.permute.xlu1 %4157  ;;  %v3873_v7 = vpop.permute.xlu0 %3872 }
 0x59e   : > { %9845 = vmatprep.subr.msk.bf16.mxu1 %vm3874_vm1, %v3873_v7  ;;  %9850 = vmatprep.subr.msk.bf16.mxu0 %vm3874_vm1, %v4158_v50  ;;  %v3897_v52 = vsel %vm3874_vm1, %v3873_v7, 0  ;;  %v4181_v11 = vsel %vm3874_vm1, %v4158_v50, 0 }
 0x5a1   : > { %v4445_v54 = vpop.permute.xlu1 %4444  ;;  %9549 = vmatpush3.bf16.xpose.msra.mxu1 %v3897_v52  ;;  %v4144_v9 = vpop.permute.xlu0 %4143 }
 0x5a2   : > { %9558 = vmatprep.subr.bf16.mxu1 %v11856_v18  ;;  %9582 = vmatprep.mubr.msk.bf16.mxu0 %vm3874_vm1, %v4144_v9  ;;  %v4465_v15 = vsel %vm3874_vm1, %v4445_v54, 0 }
 0x5a5   : > { %9581 = vmatpush3.bf16.xpose.msra.mxu0 %v4181_v11  ;;  %v4146_v59 = vpop.permute.xlu0 %4145  ;;  %v4447_v61 = vpop.permute.xlu1 %4446 }
 0x5a6   : > { %9852 = vmatprep.subr.msk.bf16.mxu0 %vm3874_vm1, %v4445_v54  ;;  %v4468_v26 = vsel %vm3874_vm1, %v4447_v61, 0 }
 0x5a8   : > { %9551 = vmatmul.mubr.msk.bf16.vlgmr.msra.gmra.mrb[96].mxu1 %vm3874_vm1, %v11866_v20 }
 0x5a9   : > { %9554 = vmatprep.mubr.msk.bf16.mxu1 %vm3874_vm1, %v11876_v43  ;;  %9559 = vmatpush3.bf16.msra.mxu1 %v11856_v18  ;;  %v4449_v13 = vpop.permute.xlu0 %4448  ;;  %v4148_v12 = vpop.permute.xlu1 %4147 }
 0x5aa   : > { %9560 = vmatprep.subr.bf16.mxu1 %v11868_v30  ;;  %v4471_v5 = vsel %vm3874_vm1, %v4449_v13, 0 }
 0x5ac   : > { %9583 = vmatmul.mubr.msk.bf16.vlgmr.msra.gmra.mrb[112].mxu0 %vm3874_vm1, %v4146_v59 }
 0x5ad   : > { %9561 = vmatpush3.bf16.msra.mxu1 %v11868_v30  ;;  %9586 = vmatprep.mubr.msk.bf16.mxu0 %vm3874_vm1, %v4148_v12  ;;  %v4150_v0 = vpop.permute.xlu0 %4149  ;;  %v4451_v28 = vpop.permute.xlu1 %4450 }
 0x5ae   : > { %9607 = vmatpush3.bf16.xpose.msra.mxu0 %v4465_v15  ;;  %9562 = vmatprep.subr.bf16.mxu1 %v11878_v62  ;;  %v4474_v17 = vsel %vm3874_vm1, %v4451_v28, 0 }
 0x5af   : > { %9853 = vmatprep.subr.msk.bf16.mxu0 %vm3874_vm1, %v4447_v61 }
 0x5b0   : > { %9555 = vmatmul.mubr.msk.bf16.gmra.mrb[100].mxu1 %vm3874_vm1, %v11884_v33 }
 0x5b1   : > { %9563 = vmatpush3.bf16.msra.mxu1 %v11878_v62  ;;  %v4437_v24 = vpop.permute.xlu0 %4436  ;;  %v4439_v1 = vpop.permute.xlu1 %4438 }
 0x5b2   : > { %9846 = vmatprep.subr.msk.bf16.mxu1 %vm4061_vm2, %v11925_v29 }
 0x5b4   : > { %9587 = vmatmul.mubr.msk.bf16.gmra.mrb[116].mxu0 %vm3874_vm1, %v4150_v0 }
 0x5b5   : > { %9565 = vmatpush3.bf16.msra.mxu1 %v4063_v4  ;;  %9614 = vmatprep.mubr.msk.bf16.mxu0 %vm3874_vm1, %v4437_v24  ;;  %v4441_v8 = vpop.permute.xlu0 %4440  ;;  %v4443_v32 = vpop.permute.xlu1 %4442 }
 0x5b6   : > { %9609 = vmatpush3.bf16.xpose.msra.mxu0 %v4468_v26 }
 0x5b7   : > { %9854 = vmatprep.subr.msk.bf16.mxu0 %vm3874_vm1, %v4449_v13 }
 0x5b9   : > { %v11971_v27 = vpop.permute.xlu0 %4332 }
 0x5ba   : > { %9590 = vmatprep.subr.bf16.mxu1 %v11971_v27 }
 0x5be   : > { %9611 = vmatpush3.bf16.xpose.msra.mxu0 %v4471_v5 }
 0x5bf   : > { %9855 = vmatprep.subr.msk.bf16.mxu0 %vm3874_vm1, %v4451_v28 }
 0x5c6   : > { %9613 = vmatpush3.bf16.xpose.msra.mxu0 %v4474_v17 }
 0x5cd   : > { %9615 = vmatmul.mubr.msk.bf16.vlgmr.msra.gmra.mrb[120].mxu0 %vm3874_vm1, %v4439_v1 }
 0x5ce   : > { %9618 = vmatprep.mubr.msk.bf16.mxu0 %vm3874_vm1, %v4441_v8 }
 0x5d5   : > { %9619 = vmatmul.mubr.msk.bf16.gmra.mrb[124].mxu0 %vm3874_vm1, %v4443_v32 }
 0x67b   : > { %v9552_v3 = vpop.f32.mrb[96].mxu1 }
 0x67c   : > { %v3965_v42 = vmul.f32 0.25, %v9552_v3  ;;  %v3933_v31 = vpop.f32.mrb[97].mxu1 }
 0x67d   : > { %v3963_v44 = vmul.f32 0.25, %v3933_v31  ;;  %v9553_v46 = vpop.f32.mrb[98].mxu1 }
 0x67e   : > { %v3936_v47 = vpop.f32.mrb[99].mxu1  ;;  %v11984_v49 = vadd.f32 %v3965_v42, %v11981_v38  ;;  %v3966_v51 = vmul.f32 0.25, %v9553_v46 }
 0x67f   : > { %v9584_v21 = vpop.f32.mrb[112].mxu0  ;;  %v11989_v19 = vadd.f32 %v3963_v44, %v11981_v38  ;;  %v3964_v6 = vmul.f32 0.25, %v3936_v47 }
 0x680   : > { %v4249_v53 = vmul.f32 0.25, %v9584_v21  ;;  %v4217_v39 = vpop.f32.mrb[113].mxu0  ;;  %v3984_v23 = vsel %vm3977_vm4, %v11984_v49, -inf  ;;  %v11995_v63 = vadd.f32 %v3966_v51, %v11981_v38 }
 0x681   : > { %v4247_v37 = vmul.f32 0.25, %v4217_v39  ;;  %3985 = vmax.xlane.f32.xlu0 %v3984_v23  ;;  %v9585_v55 = vpop.f32.mrb[114].mxu0  ;;  %v3978_v7 = vsel %vm3977_vm4, %v11989_v19, -inf  ;;  %v12007_v13 = vadd.f32 %v3964_v6, %v11981_v38 }
 0x682   : > { %v4220_v56 = vpop.f32.mrb[115].mxu0  ;;  %v11992_v57 = vadd.f32 %v4249_v53, %v11981_v38  ;;  %v4250_v58 = vmul.f32 0.25, %v9585_v55  ;;  %v3987_v61 = vsel %vm3977_vm4, %v11995_v63, -inf }
 0x683   : > { %v9556_v25 = vpop.f32.mrb[100].mxu1  ;;  %v12002_v54 = vadd.f32 %v4247_v37, %v11981_v38  ;;  %v4248_v12 = vmul.f32 0.25, %v4220_v56  ;;  %v3981_v5 = vsel %vm3977_vm4, %v12007_v13, -inf }
 0x684   : > { %v3949_v50 = vpop.f32.mrb[101].mxu1  ;;  %v4267_v52 = vsel %vm3977_vm4, %v11992_v57, -inf  ;;  %v12012_v4 = vadd.f32 %v4250_v58, %v11981_v38  ;;  %v3969_v28 = vmul.f32 0.25, %v9556_v25 }
 0x685   : > { %3979 = vmax.xlane.f32.xlu0 %v3978_v7  ;;  %v9557_v9 = vpop.f32.mrb[102].mxu1  ;;  %4268 = vmax.xlane.f32.xlu1 %v4267_v52  ;;  %v4261_v24 = vsel %vm3977_vm4, %v12002_v54, -inf  ;;  %v12019_v1 = vadd.f32 %v4248_v12, %v11981_v38  ;;  %v3967_v34 = vmul.f32 0.25, %v3949_v50 }
 0x686   : > { %v3952_v11 = vpop.f32.mrb[103].mxu1  ;;  %v4270_v17 = vsel %vm3977_vm4, %v12012_v4, -inf  ;;  %v12029_v42 = vadd.f32 %v3969_v28, %v11981_v38 }
 0x687   : > { %v9588_v59 = vpop.f32.mrb[116].mxu0  ;;  %v4264_v22 = vsel %vm3977_vm4, %v12019_v1, -inf  ;;  %v12034_v44 = vadd.f32 %v3967_v34, %v11981_v38  ;;  %v3968_v6 = vmul.f32 0.25, %v3952_v11 }
 0x688   : > { %v4253_v15 = vmul.f32 0.25, %v9588_v59  ;;  %v4233_v0 = vpop.f32.mrb[117].mxu0  ;;  %v3996_v31 = vsel %vm3977_vm4, %v12029_v42, -inf }
 0x689   : > { %3988 = vmax.xlane.f32.xlu0 %v3987_v61  ;;  %4262 = vmax.xlane.f32.xlu1 %v4261_v24  ;;  %v9589_v26 = vpop.f32.mrb[118].mxu0  ;;  %v3990_v46 = vsel %vm3977_vm4, %v12034_v44, -inf  ;;  %v4251_v56 = vmul.f32 0.25, %v4233_v0  ;;  %v12048_v52 = vadd.f32 %v3968_v6, %v11981_v38  ;;  %v4337_v6 = vpop.permute.xlu0 %4336 }
 0x68a   : > { %v4236_v8 = vpop.f32.mrb[119].mxu0  ;;  %v12022_v32 = vadd.f32 %v4253_v15, %v11981_v38 }
 0x68b   : > { %v12043_v25 = vadd.f32 %v4251_v56, %v11981_v38  ;;  %v4252_v58 = vmul.f32 0.25, %v4236_v8  ;;  %v3993_v11 = vsel %vm3977_vm4, %v12048_v52, -inf }
 0x68c   : > { %v4279_v3 = vsel %vm3977_vm4, %v12022_v32, -inf }
 0x68d   : > { %3982 = vmax.xlane.f32.xlu1 %v3981_v5  ;;  %4271 = vmax.xlane.f32.xlu0 %v4270_v17  ;;  %v4273_v7 = vsel %vm3977_vm4, %v12043_v25, -inf  ;;  %v12051_v9 = vadd.f32 %v4252_v58, %v11981_v38 }
 0x68f   : > { %v4276_v15 = vsel %vm3977_vm4, %v12051_v9, -inf }
 0x691   : > { %4265 = vmax.xlane.f32.xlu0 %v4264_v22  ;;  %4280 = vmax.xlane.f32.xlu1 %v4279_v3 }
 0x695   : > { %3997 = vmax.xlane.f32.xlu0 %v3996_v31 }
 0x699   : > { %3991 = vmax.xlane.f32.xlu0 %v3990_v46 }
 0x6a0   : > { %v9616_v47 = vpop.f32.mrb[120].mxu0 }
 0x6a1   : > { %v4510_v51 = vpop.f32.mrb[121].mxu0  ;;  %v4542_v59 = vmul.f32 0.25, %v9616_v47 }
 0x6a2   : > { %v9617_v21 = vpop.f32.mrb[122].mxu0  ;;  %4627 = vrot.lane.b32.xlu1 %v11925_v29, %s13713_s24  ;;  %v4540_v50 = vmul.f32 0.25, %v4510_v51 }
 0x6a3   : > { %v4513_v53 = vpop.f32.mrb[123].mxu0  ;;  %v4543_v61 = vmul.f32 0.25, %v9617_v21  ;;  %v12063_v26 = vadd.f32 %v4542_v59, %v11981_v38  ;;  %v4335_v21 = vpop.permute.xlu1 %4334 }
 0x6a4   : > { %v12056_v12 = vadd.f32 %v4540_v50, %v11981_v38  ;;  %v4541_v0 = vmul.f32 0.25, %v4513_v53 }
 0x6a5   : > { %v12066_v8 = vadd.f32 %v4543_v61, %v11981_v38  ;;  %v4560_v28 = vsel %vm3977_vm4, %v12063_v26, -inf }
 0x6a6   : > { %v4554_v24 = vsel %vm3977_vm4, %v12056_v12, -inf  ;;  %v12073_v34 = vadd.f32 %v4541_v0, %v11981_v38 }
 0x6a7   : > { %v4563_v17 = vsel %vm3977_vm4, %v12066_v8, -inf }
 0x6a8   : > { %v9620_v39 = vpop.f32.mrb[124].mxu0  ;;  %v4557_v3 = vsel %vm3977_vm4, %v12073_v34, -inf }
 0x6a9   : > { %v4526_v23 = vpop.f32.mrb[125].mxu0  ;;  %v4546_v5 = vmul.f32 0.25, %v9620_v39  ;;  %v12097_v39 = vpop.permute.xlu1 %4621 }
 0x6aa   : > { %v9621_v37 = vpop.f32.mrb[126].mxu0  ;;  %v4544_v22 = vmul.f32 0.25, %v4526_v23 }
 0x6ab   : > { %v4529_v55 = vpop.f32.mrb[127].mxu0  ;;  %v12078_v31 = vadd.f32 %v4546_v5, %v11981_v38 }
 0x6ac   : > { %v12083_v47 = vadd.f32 %v4544_v22, %v11981_v38  ;;  %v4545_v53 = vmul.f32 0.25, %v4529_v55 }
 0x6ad   : > { %v4572_v46 = vsel %vm3977_vm4, %v12078_v31, -inf  ;;  %v12104_v56 = vpop.permute.xlu1 %4623 }
 0x6ae   : > { %v4566_v51 = vsel %vm3977_vm4, %v12083_v47, -inf  ;;  %v12100_v23 = vadd.f32 %v4545_v53, %v11981_v38 }
 0x6af   : > { %4625 = vrot.lane.b32.xlu0 %v11878_v62, %s13713_s24  ;;  %s13774_s24 = smov 80  }
 0x6b0   : > { %v4569_v37 = vsel %vm3977_vm4, %v12100_v23, -inf }
 0x6b1   : > { %v4339_v58 = vpop.permute.xlu1 %4338 }
 0x6c6   : > { %4274 = vmax.xlane.f32.xlu1 %v4273_v7 }
 0x6ca   : > { %3994 = vmax.xlane.f32.xlu1 %v3993_v11 }
 0x6ce   : > { %4277 = vmax.xlane.f32.xlu0 %v4276_v15  ;;  %4555 = vmax.xlane.f32.xlu1 %v4554_v24 }
 0x6d2   : > { %4561 = vmax.xlane.f32.xlu0 %v4560_v28  ;;  %4564 = vmax.xlane.f32.xlu1 %v4563_v17 }
 0x6d6   : > { %4558 = vmax.xlane.f32.xlu0 %v4557_v3 }
 0x6da   : > { %4573 = vmax.xlane.f32.xlu0 %v4572_v46 }
 0x6de   : > { %4567 = vmax.xlane.f32.xlu0 %v4566_v51 }
 0x6e3   : > { %4735 = vrot.lane.b32.xlu1 %v11866_v20, %s13715_s0 }
 0x6f4   : > { %4733 = vrot.lane.b32.xlu0 %v11854_v16, %s13715_s0 }
 0x6f8   : > { %4739 = vrot.lane.b32.xlu0 %v11884_v33, %s13715_s0 }
 0x6fc   : > { %4727 = vrot.lane.b32.xlu0 %v11866_v20, %s13711_s28 }
 0x700   : > { %4731 = vrot.lane.b32.xlu0 %v11884_v33, %s13711_s28 }
 0x707   : > { %4570 = vmax.xlane.f32.xlu1 %v4569_v37 }
 0x70e   : > { %v3986_v50 = vpop.xlane.xlu0 %3985 }
 0x70f   : > { %v4001_v11 = vsub.f32 %v11984_v49, %v3986_v50 }
 0x711   : > { %v4010_v28 = vmul.f32 1.442695, %v4001_v11 }
 0x712   : > { %v12106_v7 = vpop.xlane.xlu1 %4268  ;;  %v3980_v20 = vpop.xlane.xlu0 %3979 }
 0x713   : > { %v3999_v55 = vsub.f32 %v11989_v19, %v3980_v20 }
 0x715   : > { %v4006_v15 = vmul.f32 1.442695, %v3999_v55 }
 0x716   : > { %v4263_v33 = vpop.xlane.xlu1 %4262  ;;  %v3989_v59 = vpop.xlane.xlu0 %3988 }
 0x717   : > { %v4002_v61 = vsub.f32 %v11995_v63, %v3989_v59  ;;  %10359 = vpow2.f32 %v4006_v15 }
 0x718   : > { %4737 = vrot.lane.b32.xlu1 %v11876_v43, %s13715_s0 }
 0x719   : > { %v4012_v0 = vmul.f32 1.442695, %v4002_v61 }
 0x71a   : > { %v3983_v24 = vpop.xlane.xlu1 %3982 }
 0x71b   : > { %v4000_v5 = vsub.f32 %v12007_v13, %v3983_v24  ;;  %10361 = vpow2.f32 %v4012_v0 }
 0x71c   : > { %4725 = vrot.lane.b32.xlu1 %v11854_v16, %s13711_s28 }
 0x71d   : > { %v4008_v19 = vmul.f32 1.442695, %v4000_v5 }
 0x71e   : > { %v4281_v46 = vpop.xlane.xlu1 %4280 }
 0x71f   : > { %10363 = vpow2.f32 %v4008_v19 }
 0x720   : > { %10365 = vpow2.f32 %v4010_v28  ;;  %4729 = vrot.lane.b32.xlu1 %v11876_v43, %s13711_s28  ;;  %v4272_v43 = vpop.xlane.xlu0 %4271 }
 0x721   : > { %v12120_v49 = vpop.eup %10359 }
 0x722   : > { %v12138_v53 = vpop.permute.xlu1 %4627 }
 0x724   : > { %4910 = vrot.lane.b32.xlu1 %v11856_v18, %s13711_s28  ;;  %v4356_v18 = vsel %vm4061_vm2, %v4339_v58, 0  ;;  %v4266_v3 = vpop.xlane.xlu0 %4265 }
 0x725   : > { %v12122_v63 = vpop.eup %10361 }
 0x728   : > { %v3998_v51 = vpop.xlane.xlu0 %3997 }
 0x729   : > { %v12124_v13 = vpop.eup %10363 }
 0x72a   : > { %v12126_v17 = vpop.eup %10365  ;;  %v4041_v16 = vpack.c.bf16 %v12124_v13, %v12120_v49 }
 0x72b   : > { %v4042_v22 = vpack.c.bf16 %v12122_v63, %v12126_v17 }
 0x72c   : > { %9566 = vmatprep.mubr.msk.bf16.mxu1 %vm3977_vm4, %v4041_v16  ;;  %v3992_v37 = vpop.xlane.xlu0 %3991 }
 0x72d   : > { %9567 = vmatmul.mubr.msk.bf16.vlgmr.msra.gmra.mrb[104].mxu1 %vm3977_vm4, %v4042_v22 }
 0x72e   : > { %9591 = vmatpush3.bf16.msra.mxu1 %v11971_v27  ;;  %v4283_v27 = vsub.f32 %v12019_v1, %v4266_v3  ;;  %v4285_v1 = vsub.f32 %v12012_v4, %v4272_v43  ;;  %v4288_v4 = vsub.f32 %v12022_v32, %v4281_v46 }
 0x72f   : > { %9592 = vmatprep.subr.bf16.mxu1 %v4335_v21 }
 0x730   : > { %v4291_v20 = vmul.f32 1.442695, %v4283_v27  ;;  %v12144_v61 = vpop.permute.xlu0 %4625  ;;  %v4295_v5 = vmul.f32 1.442695, %v4285_v1 }
 0x732   : > { %9593 = vmatpush3.bf16.msra.mxu1 %v4335_v21  ;;  %v4005_v21 = vsub.f32 %v12029_v42, %v3998_v51  ;;  %10367 = vpow2.f32 %v4291_v20  ;;  %v4301_v51 = vmul.f32 1.442695, %v4288_v4 }
 0x733   : > { %9594 = vmatprep.subr.bf16.mxu1 %v4337_v6 }
 0x734   : > { %v4018_v55 = vmul.f32 1.442695, %v4005_v21 }
 0x736   : > { %9595 = vmatpush3.bf16.msra.mxu1 %v4337_v6  ;;  %v4003_v6 = vsub.f32 %v12034_v44, %v3992_v37  ;;  %10369 = vpow2.f32 %v4018_v55 }
 0x737   : > { %9851 = vmatprep.subr.msk.bf16.mxu1 %vm4061_vm2, %v4339_v58  ;;  %v4282_v58 = vsub.f32 %v12002_v54, %v4263_v33  ;;  %v4284_v54 = vsub.f32 %v11992_v57, %v12106_v7 }
 0x738   : > { %v4014_v59 = vmul.f32 1.442695, %v4003_v6 }
 0x739   : > { %v4289_v0 = vmul.f32 1.442695, %v4282_v58  ;;  %v4293_v19 = vmul.f32 1.442695, %v4284_v54 }
 0x73a   : > { %9597 = vmatpush3.bf16.msra.mxu1 %v4356_v18  ;;  %10371 = vpow2.f32 %v4014_v59 }
 0x73b   : > { %9622 = vmatprep.subr.bf16.mxu1 %v12097_v39 }
 0x73c   : > { %v12152_v18 = vpop.eup %10367 }
 0x740   : > { %v12155_v3 = vpop.eup %10369 }
 0x741   : > { %v4044_v21 = vpack.c.bf16 %v12155_v3, %v12155_v3 }
 0x753   : > { %v4275_v50 = vpop.xlane.xlu1 %4274 }
 0x754   : > { %v4286_v33 = vsub.f32 %v12043_v25, %v4275_v50 }
 0x756   : > { %v4297_v22 = vmul.f32 1.442695, %v4286_v33 }
 0x757   : > { %v3995_v11 = vpop.xlane.xlu1 %3994 }
 0x758   : > { %v4004_v15 = vsub.f32 %v12048_v52, %v3995_v11 }
 0x75a   : > { %v4016_v24 = vmul.f32 1.442695, %v4004_v15 }
 0x75b   : > { %v4278_v42 = vpop.xlane.xlu0 %4277  ;;  %v4556_v16 = vpop.xlane.xlu1 %4555 }
 0x75c   : > { %10373 = vpow2.f32 %v4016_v24  ;;  %v4287_v44 = vsub.f32 %v12051_v9, %v4278_v42  ;;  %v12158_v9 = vpop.eup %10371  ;;  %v4575_v7 = vsub.f32 %v12056_v12, %v4556_v16 }
 0x75d   : > { %10375 = vpow2.f32 %v4289_v0 }
 0x75e   : > { %v4299_v52 = vmul.f32 1.442695, %v4287_v44  ;;  %10377 = vpow2.f32 %v4295_v5  ;;  %v4582_v6 = vmul.f32 1.442695, %v4575_v7  ;;  %v4645_v5 = vsel %vm4061_vm2, %v12138_v53, 0 }
 0x75f   : > { %v4562_v28 = vpop.xlane.xlu0 %4561  ;;  %v4565_v37 = vpop.xlane.xlu1 %4564 }
 0x760   : > { %10379 = vpow2.f32 %v4299_v52  ;;  %v4578_v50 = vsub.f32 %v12066_v8, %v4565_v37  ;;  %v4577_v12 = vsub.f32 %v12063_v26, %v4562_v28 }
 0x761   : > { %10381 = vpow2.f32 %v4293_v19 }
 0x762   : > { %10383 = vpow2.f32 %v4297_v22  ;;  %v4588_v55 = vmul.f32 1.442695, %v4578_v50  ;;  %v4586_v11 = vmul.f32 1.442695, %v4577_v12 }
 0x763   : > { %v4559_v43 = vpop.xlane.xlu0 %4558  ;;  %10385 = vpow2.f32 %v4301_v51  ;;  %v4736_v19 = vpop.permute.xlu1 %4735 }
 0x764   : > { %v4576_v57 = vsub.f32 %v12073_v34, %v4559_v43  ;;  %v4757_v22 = vsel %vm3874_vm1, %v4736_v19, 0 }
 0x766   : > { %v12160_v25 = vpop.eup %10373  ;;  %v4584_v46 = vmul.f32 1.442695, %v4576_v57 }
 0x767   : > { %v4043_v27 = vpack.c.bf16 %v12160_v25, %v12158_v9  ;;  %v12165_v32 = vpop.eup %10375  ;;  %v4574_v0 = vpop.xlane.xlu0 %4573 }
 0x768   : > { %v4324_v34 = vpack.c.bf16 %v12152_v18, %v12165_v32  ;;  %10387 = vpow2.f32 %v4584_v46  ;;  %v12176_v20 = vpop.eup %10377  ;;  %v4581_v16 = vsub.f32 %v12078_v31, %v4574_v0 }
 0x769   : > { %9570 = vmatprep.mubr.msk.bf16.mxu1 %vm3977_vm4, %v4043_v27  ;;  %10389 = vpow2.f32 %v4582_v6 }
 0x76a   : > { %9571 = vmatmul.mubr.msk.bf16.gmra.mrb[108].mxu1 %vm3977_vm4, %v4044_v21  ;;  %v12178_v58 = vpop.eup %10379  ;;  %10391 = vpow2.f32 %v4588_v55  ;;  %v4594_v4 = vmul.f32 1.442695, %v4581_v16 }
 0x76b   : > { %9598 = vmatprep.mubr.msk.bf16.mxu1 %vm3977_vm4, %v4324_v34  ;;  %v12180_v59 = vpop.eup %10381  ;;  %10393 = vpow2.f32 %v4586_v11  ;;  %v4568_v54 = vpop.xlane.xlu0 %4567 }
 0x76c   : > { %v12182_v15 = vpop.eup %10383  ;;  %v4325_v8 = vpack.c.bf16 %v12176_v20, %v12180_v59  ;;  %10395 = vpow2.f32 %v4594_v4 }
 0x76d   : > { %v4326_v26 = vpack.c.bf16 %v12178_v58, %v12182_v15  ;;  %v12192_v24 = vpop.eup %10385 }
 0x76e   : > { %v4327_v44 = vpack.c.bf16 %v12192_v24, %v12192_v24 }
 0x76f   : > { %v4734_v28 = vpop.permute.xlu0 %4733 }
 0x772   : > { %9599 = vmatmul.mubr.msk.bf16.vlgmr.msra.gmra.mrb[112].mxu1 %vm3977_vm4, %v4325_v8  ;;  %v12194_v1 = vpop.eup %10387 }
 0x773   : > { %9623 = vmatpush3.bf16.msra.mxu1 %v12097_v39  ;;  %9602 = vmatprep.mubr.msk.bf16.mxu1 %vm3977_vm4, %v4326_v26  ;;  %v12197_v42 = vpop.eup %10389  ;;  %v4740_v31 = vpop.permute.xlu0 %4739 }
 0x774   : > { %9624 = vmatprep.subr.bf16.mxu1 %v12104_v56  ;;  %v4617_v39 = vpack.c.bf16 %v12194_v1, %v12197_v42  ;;  %v12207_v33 = vpop.eup %10391  ;;  %v4763_v34 = vsel %vm3874_vm1, %v4740_v31, 0 }
 0x777   : > { %9625 = vmatpush3.bf16.msra.mxu1 %v12104_v56  ;;  %v12211_v56 = vpop.eup %10393  ;;  %v4728_v11 = vpop.permute.xlu0 %4727 }
 0x778   : > { %9626 = vmatprep.subr.bf16.mxu1 %v12144_v61  ;;  %v4618_v52 = vpack.c.bf16 %v12207_v33, %v12211_v56  ;;  %v12228_v21 = vpop.eup %10395 }
 0x779   : > { %v4620_v55 = vpack.c.bf16 %v12228_v21, %v12228_v21 }
 0x77a   : > { %9603 = vmatmul.mubr.msk.bf16.gmra.mrb[116].mxu1 %vm3977_vm4, %v4327_v44 }
 0x77b   : > { %9627 = vmatpush3.bf16.msra.mxu1 %v12144_v61  ;;  %9630 = vmatprep.mubr.msk.bf16.mxu1 %vm3977_vm4, %v4617_v39  ;;  %v4754_v61 = vsel %vm3874_vm1, %v4734_v28, 0  ;;  %v4732_v8 = vpop.permute.xlu0 %4731 }
 0x77c   : > { %9856 = vmatprep.subr.msk.bf16.mxu1 %vm4061_vm2, %v12138_v53  ;;  %v4579_v53 = vsub.f32 %v12083_v47, %v4568_v54 }
 0x77e   : > { %v4590_v43 = vmul.f32 1.442695, %v4579_v53 }
 0x77f   : > { %9629 = vmatpush3.bf16.msra.mxu1 %v4645_v5 }
 0x780   : > { %9857 = vmatprep.subr.msk.bf16.mxu1 %vm3874_vm1, %v4734_v28  ;;  %10397 = vpow2.f32 %v4590_v43 }
 0x782   : > { %9631 = vmatmul.mubr.msk.bf16.vlgmr.msra.gmra.mrb[120].mxu1 %vm3977_vm4, %v4618_v52 }
 0x788   : > { %9639 = vmatpush3.bf16.xpose.msra.mxu1 %v4754_v61 }
 0x789   : > { %9858 = vmatprep.subr.msk.bf16.mxu1 %vm3874_vm1, %v4736_v19 }
 0x790   : > { %9641 = vmatpush3.bf16.xpose.msra.mxu1 %v4757_v22 }
 0x794   : > { %v4571_v57 = vpop.xlane.xlu1 %4570 }
 0x795   : > { %v4580_v7 = vsub.f32 %v12100_v23, %v4571_v57  ;;  %v12231_v23 = vpop.eup %10397 }
 0x797   : > { %v4592_v51 = vmul.f32 1.442695, %v4580_v7 }
 0x798   : > { %v4738_v37 = vpop.permute.xlu1 %4737 }
 0x799   : > { %10399 = vpow2.f32 %v4592_v51  ;;  %9859 = vmatprep.subr.msk.bf16.mxu1 %vm3874_vm1, %v4738_v37  ;;  %v4760_v27 = vsel %vm3874_vm1, %v4738_v37, 0 }
 0x79a   : > { %9643 = vmatpush3.bf16.xpose.msra.mxu1 %v4760_v27 }
 0x79b   : > { %9860 = vmatprep.subr.msk.bf16.mxu1 %vm3874_vm1, %v4740_v31 }
 0x79c   : > { %v4726_v47 = vpop.permute.xlu1 %4725 }
 0x7a0   : > { %v4730_v46 = vpop.permute.xlu1 %4729 }
 0x7a2   : > { %9645 = vmatpush3.bf16.xpose.msra.mxu1 %v4763_v34 }
 0x7a3   : > { %v12233_v6 = vpop.eup %10399 }
 0x7a4   : > { %v4911_v50 = vpop.permute.xlu1 %4910  ;;  %v4619_v12 = vpack.c.bf16 %v12233_v6, %v12231_v23 }
 0x7a5   : > { %9654 = vmatprep.subr.bf16.mxu0 %v4911_v50 }
 0x7a6   : > { %9634 = vmatprep.mubr.msk.bf16.mxu1 %vm3977_vm4, %v4619_v12  ;;  %9655 = vmatpush3.bf16.msra.mxu0 %v4911_v50 }
 0x7a7   : > { %9635 = vmatmul.mubr.msk.bf16.gmra.mrb[124].mxu1 %vm3977_vm4, %v4620_v55 }
 0x7a8   : > { %9646 = vmatprep.mubr.msk.bf16.mxu1 %vm3874_vm1, %v4726_v47 }
 0x7af   : > { %9647 = vmatmul.mubr.msk.bf16.vlgmr.msra.gmra.mrb[128].mxu1 %vm3874_vm1, %v4728_v11 }
 0x7b0   : > { %9650 = vmatprep.mubr.msk.bf16.mxu1 %vm3874_vm1, %v4730_v46 }
 0x7b7   : > { %9651 = vmatmul.mubr.msk.bf16.gmra.mrb[132].mxu1 %vm3874_vm1, %v4732_v8 }
 0x7b8   : > { %5481 = vmatprep.mubr.bf16.mxu1 %v13699_v41 }
 0x800   : > { %v12246_v26 = vpop.f32.mrb[104].mxu1 }
 0x801   : > { %v12248_v0 = vpop.f32.mrb[105].mxu1 }
 0x802   : > { %v12250_v44 = vpop.f32.mrb[106].mxu1 }
 0x803   : > { %v12252_v54 = vpop.f32.mrb[107].mxu1 }
 0x83d   : > { %v12254_v39 = vpop.f32.mrb[108].mxu1 }
 0x83e   : > { %v12256_v5 = vpop.f32.mrb[109].mxu1 }
 0x83f   : > { %v9573_v28 = vpop.f32.mrb[110].mxu1 }
 0x840   : > { %v12258_v52 = vpop.f32.mrb[111].mxu1 }
 0x845   : > { %v12260_v61 = vpop.f32.mrb[112].mxu1 }
 0x846   : > { %v12262_v19 = vpop.f32.mrb[113].mxu1 }
 0x847   : > { %v12264_v16 = vpop.f32.mrb[114].mxu1 }
 0x848   : > { %v12266_v22 = vpop.f32.mrb[115].mxu1 }
 0x84d   : > { %v12268_v53 = vpop.f32.mrb[116].mxu1 }
 0x84e   : > { %v12270_v4 = vpop.f32.mrb[117].mxu1 }
 0x84f   : > { %v9605_v43 = vpop.f32.mrb[118].mxu1 }
 0x850   : > { %v12272_v57 = vpop.f32.mrb[119].mxu1 }
 0x855   : > { %v12274_v7 = vpop.f32.mrb[120].mxu1 }
 0x856   : > { %v12276_v51 = vpop.f32.mrb[121].mxu1 }
 0x857   : > { %v12278_v37 = vpop.f32.mrb[122].mxu1 }
 0x858   : > { %v12280_v27 = vpop.f32.mrb[123].mxu1 }
 0x87a   : > { %v12282_v31 = vpop.f32.mrb[124].mxu1 }
 0x87b   : > { %v12284_v47 = vpop.f32.mrb[125].mxu1 }
 0x87c   : > { %v9637_v46 = vpop.f32.mrb[126].mxu1 }
 0x87d   : > { %v12286_v34 = vpop.f32.mrb[127].mxu1 }
 0x882   : > { %v9648_v50 = vpop.f32.mrb[128].mxu1 }
 0x883   : > { %v4831_v12 = vmul.f32 0.25, %v9648_v50  ;;  %v4799_v55 = vpop.f32.mrb[129].mxu1 }
 0x884   : > { %v4829_v11 = vmul.f32 0.25, %v4799_v55  ;;  %v9649_v8 = vpop.f32.mrb[130].mxu1 }
 0x885   : > { %v4832_v28 = vmul.f32 0.25, %v9649_v8  ;;  %v4802_v43 = vpop.f32.mrb[131].mxu1  ;;  %v4838_v41 = vadd.f32 %v4831_v12, %v11981_v38 }
 0x886   : > { %v4836_v35 = vadd.f32 %v4829_v11, %v11981_v38  ;;  %v4830_v2 = vmul.f32 0.25, %v4802_v43 }
 0x887   : > { %v4849_v10 = vsel %vm3977_vm4, %v4838_v41, -inf  ;;  %v4839_v60 = vadd.f32 %v4832_v28, %v11981_v38 }
 0x888   : > { %4850 = vmax.xlane.f32.xlu0 %v4849_v10  ;;  %v4843_v46 = vsel %vm3977_vm4, %v4836_v35, -inf  ;;  %v4837_v8 = vadd.f32 %v4830_v2, %v11981_v38 }
 0x889   : > { %4844 = vmax.xlane.f32.xlu1 %v4843_v46  ;;  %v4852_v55 = vsel %vm3977_vm4, %v4839_v60, -inf }
 0x88a   : > { %v9652_v14 = vpop.f32.mrb[132].mxu1  ;;  %v4846_v28 = vsel %vm3977_vm4, %v4837_v8, -inf }
 0x88b   : > { %v4835_v50 = vmul.f32 0.25, %v9652_v14  ;;  %v4815_v48 = vpop.f32.mrb[133].mxu1 }
 0x88c   : > { %v4833_v36 = vmul.f32 0.25, %v4815_v48  ;;  %4853 = vmax.xlane.f32.xlu0 %v4852_v55  ;;  %v9653_v12 = vpop.f32.mrb[134].mxu1 }
 0x88d   : > { %v4818_v11 = vpop.f32.mrb[135].mxu1  ;;  %v12298_v10 = vadd.f32 %v4835_v50, %v11981_v38  ;;  %v4312_v50 = vsel %vm3977_vm4, %v12176_v20, 0.0 }
 0x88e   : > { %v4840_v43 = vadd.f32 %v4833_v36, %v11981_v38  ;;  %v4834_v45 = vmul.f32 0.25, %v4818_v11  ;;  %v4303_v36 = vsel %vm3977_vm4, %v12165_v32, 0.0  ;;  %v4602_v32 = vsel %vm3977_vm4, %v12211_v56, 0.0 }
 0x88f   : > { %v4861_v46 = vsel %vm3977_vm4, %v12298_v10, -inf }
 0x890   : > { %4847 = vmax.xlane.f32.xlu0 %v4846_v28  ;;  %v4855_v14 = vsel %vm3977_vm4, %v4840_v43, -inf  ;;  %v4841_v48 = vadd.f32 %v4834_v45, %v11981_v38  ;;  %v4306_v45 = vsel %vm3977_vm4, %v12152_v18, 0.0  ;;  %v4605_v18 = vsel %vm3977_vm4, %v12207_v33, 0.0 }
 0x891   : > { %4856 = vmax.xlane.f32.xlu1 %v4855_v14 }
 0x892   : > { %v4858_v2 = vsel %vm3977_vm4, %v4841_v48, -inf }
 0x894   : > { %4862 = vmax.xlane.f32.xlu0 %v4861_v46 }
 0x898   : > { %4859 = vmax.xlane.f32.xlu0 %v4858_v2 }
 0x8a2   : > { %4914 = vrot.lane.b32.xlu1 %v11878_v62, %s13711_s28  ;;  %v4309_v62 = vsel %vm3977_vm4, %v12180_v59, 0.0 }
 0x8a6   : > { %4916 = vrot.lane.b32.xlu1 %v11925_v29, %s13711_s28  ;;  %v4599_v29 = vsel %vm3977_vm4, %v12194_v1, 0.0 }
 0x8ae   : > { %4912 = vrot.lane.b32.xlu0 %v11868_v30, %s13711_s28  ;;  %v4596_v30 = vsel %vm3977_vm4, %v12197_v42, 0.0 }
 0x8ca   : > { %4304 = vadd.xlane.f32.xlu1 %v4303_v36 }
 0x8cd   : > { %4307 = vadd.xlane.f32.xlu0 %v4306_v45 }
 0x8ce   : > { %4313 = vadd.xlane.f32.xlu1 %v4312_v50 }
 0x8d1   : > { %4310 = vadd.xlane.f32.xlu0 %v4309_v62 }
 0x8d2   : > { %4600 = vadd.xlane.f32.xlu1 %v4599_v29 }
 0x8d5   : > { %4597 = vadd.xlane.f32.xlu0 %v4596_v30 }
 0x8d6   : > { %4606 = vadd.xlane.f32.xlu1 %v4605_v18 }
 0x8d9   : > { %4603 = vadd.xlane.f32.xlu0 %v4602_v32 }
 0x915   : > { %v4851_v20 = vpop.xlane.xlu0 %4850 }
 0x916   : > { %v4866_v55 = vsub.f32 %v4838_v41, %v4851_v20  ;;  %v4845_v59 = vpop.xlane.xlu1 %4844 }
 0x917   : > { %v4864_v12 = vsub.f32 %v4836_v35, %v4845_v59 }
 0x918   : > { %v4875_v11 = vmul.f32 1.442695, %v4866_v55 }
 0x919   : > { %v4871_v28 = vmul.f32 1.442695, %v4864_v12  ;;  %v4854_v1 = vpop.xlane.xlu0 %4853 }
 0x91a   : > { %10401 = vpow2.f32 %v4875_v11  ;;  %v4867_v14 = vsub.f32 %v4839_v60, %v4854_v1  ;;  %v4321_v1 = vsel %vm3977_vm4, %v12192_v24, 0.0  ;;  %v4614_v24 = vsel %vm3977_vm4, %v12228_v21, 0.0 }
 0x91b   : > { %10403 = vpow2.f32 %v4871_v28  ;;  %v4029_v21 = vsel %vm3977_vm4, %v12122_v63, 0.0 }
 0x91c   : > { %v4877_v42 = vmul.f32 1.442695, %v4867_v14  ;;  %v4318_v14 = vsel %vm3977_vm4, %v12178_v58, 0.0 }
 0x91d   : > { %v4848_v46 = vpop.xlane.xlu0 %4847 }
 0x91e   : > { %10405 = vpow2.f32 %v4877_v42  ;;  %v4865_v2 = vsub.f32 %v4837_v8, %v4848_v46  ;;  %v4857_v33 = vpop.xlane.xlu1 %4856 }
 0x91f   : > { %v4868_v45 = vsub.f32 %v4840_v43, %v4857_v33  ;;  %v4611_v33 = vsel %vm3977_vm4, %v12233_v6, 0.0 }
 0x920   : > { %v4873_v36 = vmul.f32 1.442695, %v4865_v2 }
 0x921   : > { %v4863_v50 = vpop.xlane.xlu0 %4862  ;;  %v4879_v62 = vmul.f32 1.442695, %v4868_v45 }
 0x922   : > { %10407 = vpow2.f32 %v4873_v36  ;;  %v4870_v60 = vsub.f32 %v12298_v10, %v4863_v50  ;;  %v4915_v55 = vpop.permute.xlu1 %4914  ;;  %v4608_v36 = vsel %vm3977_vm4, %v12231_v23, 0.0 }
 0x923   : > { %10409 = vpow2.f32 %v4879_v62  ;;  %v4023_v62 = vsel %vm3977_vm4, %v12124_v13, 0.0 }
 0x924   : > { %v10402_v56 = vpop.eup %10401  ;;  %v4883_v12 = vmul.f32 1.442695, %v4870_v60 }
 0x925   : > { %v4860_v41 = vpop.xlane.xlu0 %4859  ;;  %v4891_v35 = vsel %vm3977_vm4, %v10402_v56, 0.0  ;;  %v10404_v29 = vpop.eup %10403 }
 0x926   : > { %v4869_v30 = vsub.f32 %v4841_v48, %v4860_v41  ;;  %4892 = vadd.xlane.f32.xlu0 %v4891_v35  ;;  %v4885_v8 = vsel %vm3977_vm4, %v10404_v29, 0.0  ;;  %v4315_v48 = vsel %vm3977_vm4, %v12182_v15, 0.0  ;;  %v4917_v28 = vpop.permute.xlu1 %4916  ;;  %v4020_v41 = vsel %vm3977_vm4, %v12120_v49, 0.0 }
 0x927   : > { %v4934_v42 = vsel %vm4061_vm2, %v4917_v28, 0  ;;  %v4026_v35 = vsel %vm3977_vm4, %v12126_v17, 0.0  ;;  %v4038_v49 = vsel %vm3977_vm4, %v12155_v3, 0.0 }
 0x928   : > { %v10406_v18 = vpop.eup %10405  ;;  %v4881_v32 = vmul.f32 1.442695, %v4869_v30  ;;  %v4032_v30 = vsel %vm3977_vm4, %v12158_v9, 0.0 }
 0x929   : > { %v4913_v20 = vpop.permute.xlu0 %4912  ;;  %v4894_v43 = vsel %vm3977_vm4, %v10406_v18, 0.0  ;;  %v4907_v2 = vpack.c.bf16 %v10406_v18, %v10402_v56 }
 0x92a   : > { %10411 = vpow2.f32 %v4881_v32  ;;  %4886 = vadd.xlane.f32.xlu0 %v4885_v8  ;;  %4895 = vadd.xlane.f32.xlu1 %v4894_v43 }
 0x92b   : > { %9656 = vmatprep.subr.bf16.mxu0 %v4913_v20  ;;  %10413 = vpow2.f32 %v4883_v12 }
 0x92c   : > { %v10408_v59 = vpop.eup %10407  ;;  %9657 = vmatpush3.bf16.msra.mxu0 %v4913_v20 }
 0x92d   : > { %9658 = vmatprep.subr.bf16.mxu0 %v4915_v55  ;;  %v4888_v10 = vsel %vm3977_vm4, %v10408_v59, 0.0  ;;  %v4906_v11 = vpack.c.bf16 %v10408_v59, %v10404_v29  ;;  %v10410_v15 = vpop.eup %10409  ;;  %v4035_v29 = vsel %vm3977_vm4, %v12160_v25, 0.0 }
 0x92e   : > { %4316 = vadd.xlane.f32.xlu0 %v4315_v48  ;;  %4889 = vadd.xlane.f32.xlu1 %v4888_v10  ;;  %v4897_v58 = vsel %vm3977_vm4, %v10410_v15, 0.0 }
 0x92f   : > { %9662 = vmatprep.mubr.msk.bf16.mxu0 %vm3977_vm4, %v4906_v11 }
 0x930   : > { %9659 = vmatpush3.bf16.msra.mxu0 %v4915_v55 }
 0x931   : > { %9861 = vmatprep.subr.msk.bf16.mxu0 %vm4061_vm2, %v4917_v28 }
 0x932   : > { %4322 = vadd.xlane.f32.xlu0 %v4321_v1  ;;  %4319 = vadd.xlane.f32.xlu1 %v4318_v14 }
 0x934   : > { %v10412_v46 = vpop.eup %10411  ;;  %9661 = vmatpush3.bf16.msra.mxu0 %v4934_v42 }
 0x935   : > { %v4908_v45 = vpack.c.bf16 %v10412_v46, %v10410_v15  ;;  %v10414_v50 = vpop.eup %10413  ;;  %v4900_v56 = vsel %vm3977_vm4, %v10412_v46, 0.0 }
 0x936   : > { %4612 = vadd.xlane.f32.xlu0 %v4611_v33  ;;  %4609 = vadd.xlane.f32.xlu1 %v4608_v36  ;;  %v4903_v6 = vsel %vm3977_vm4, %v10414_v50, 0.0  ;;  %v4909_v23 = vpack.c.bf16 %v10414_v50, %v10414_v50 }
 0x937   : > { %9663 = vmatmul.mubr.msk.bf16.vlgmr.msra.gmra.mrb[128].mxu0 %vm3977_vm4, %v4907_v2 }
 0x938   : > { %9666 = vmatprep.mubr.msk.bf16.mxu0 %vm3977_vm4, %v4908_v45 }
 0x93a   : > { %4898 = vadd.xlane.f32.xlu0 %v4897_v58  ;;  %4615 = vadd.xlane.f32.xlu1 %v4614_v24 }
 0x93e   : > { %4904 = vadd.xlane.f32.xlu0 %v4903_v6  ;;  %4901 = vadd.xlane.f32.xlu1 %v4900_v56 }
 0x93f   : > { %9667 = vmatmul.mubr.msk.bf16.gmra.mrb[132].mxu0 %vm3977_vm4, %v4909_v23 }
 0x942   : > { %4024 = vadd.xlane.f32.xlu0 %v4023_v62  ;;  %4021 = vadd.xlane.f32.xlu1 %v4020_v41 }
 0x946   : > { %4030 = vadd.xlane.f32.xlu0 %v4029_v21  ;;  %4027 = vadd.xlane.f32.xlu1 %v4026_v35 }
 0x94a   : > { %4036 = vadd.xlane.f32.xlu0 %v4035_v29  ;;  %4033 = vadd.xlane.f32.xlu1 %v4032_v30 }
 0x94e   : > { %4039 = vadd.xlane.f32.xlu1 %v4038_v49 }
 0x957   : > { %v4305_v13 = vpop.xlane.xlu1 %4304 }
 0x958   : > { %10415 = vrcp.f32 %v4305_v13 }
 0x95a   : > { %v4308_v63 = vpop.xlane.xlu0 %4307 }
 0x95b   : > { %10417 = vrcp.f32 %v4308_v63  ;;  %v4314_v18 = vpop.xlane.xlu1 %4313 }
 0x95c   : > { %10419 = vrcp.f32 %v4314_v18  ;;  %v10254_v18 = vld [vmem:[%s13678_s9 + $0x18] sm:$0xff]  }
 0x95e   : > { %v4311_v17 = vpop.xlane.xlu0 %4310 }
 0x95f   : > { %10421 = vrcp.f32 %v4311_v17  ;;  %v4601_v60 = vpop.xlane.xlu1 %4600 }
 0x960   : > { %10423 = vrcp.f32 %v4601_v60 }
 0x962   : > { %v4598_v25 = vpop.xlane.xlu0 %4597  ;;  %v10416_v32 = vpop.eup %10415 }
 0x963   : > { %10425 = vrcp.f32 %v4598_v25  ;;  %v4607_v9 = vpop.xlane.xlu1 %4606  ;;  %v4429_v3 = vmul.f32 %v10416_v32, %v12262_v19 }
 0x964   : > { %10427 = vrcp.f32 %v4607_v9 }
 0x965   : > { %v10418_v20 = vpop.eup %10417 }
 0x966   : > { %v4604_v8 = vpop.xlane.xlu0 %4603  ;;  %v4430_v43 = vmul.f32 %v10418_v20, %v12266_v22  ;;  %v10420_v55 = vpop.eup %10419 }
 0x967   : > { %10429 = vrcp.f32 %v4604_v8  ;;  %v4432_v10 = vmul.f32 %v10420_v55, %v12264_v16  ;;  %v10251_v16 = vld [vmem:[%s13678_s9] sm:$0xff]  }
 0x968   : > { %v9933_v59 = vpack.i.bf16 %v4430_v43, %v4429_v3  ;;  %9670 = vmatprep.subr.bf16.mxu0 %v10251_v16 }
 0x969   : > { %v10422_v12 = vpop.eup %10421  ;;  %9671 = vmatpush3.bf16.msra.mxu0 %v10251_v16 }
 0x96a   : > { %9934 = vrot.lane.b32.xlu0 %v9933_v59, %s13715_s0  ;;  %v4431_v48 = vmul.f32 %v10422_v12, %v12260_v61  ;;  %v10424_v11 = vpop.eup %10423 }
 0x96b   : > { %v4719_v19 = vmul.f32 %v10424_v11, %v12280_v27 }
 0x96c   : > { %v9938_v28 = vpack.i.bf16 %v4432_v10, %v4431_v48 }
 0x96d   : > { %v10426_v1 = vpop.eup %10425 }
 0x96e   : > { %9939 = vrot.lane.b32.xlu1 %v9938_v28, %s13715_s0  ;;  %v4718_v14 = vmul.f32 %v10426_v1, %v12276_v51  ;;  %v10428_v22 = vpop.eup %10427  ;;  %v10252_v51 = vld [vmem:[%s13678_s9 + $0x8] sm:$0xff]  }
 0x96f   : > { %v4721_v61 = vmul.f32 %v10428_v22, %v12278_v37  ;;  %9672 = vmatprep.subr.bf16.mxu0 %v10252_v51 }
 0x970   : > { %v9943_v15 = vpack.i.bf16 %v4719_v19, %v4718_v14  ;;  %9673 = vmatpush3.bf16.msra.mxu0 %v10252_v51 }
 0x971   : > { %v10430_v42 = vpop.eup %10429 }
 0x972   : > { %9944 = vrot.lane.b32.xlu1 %v9943_v15, %s13717_s25  ;;  %v4720_v46 = vmul.f32 %v10430_v42, %v12274_v7  ;;  %v10253_v7 = vld [vmem:[%s13678_s9 + $0x10] sm:$0xff]  }
 0x973   : > { %9674 = vmatprep.subr.bf16.mxu0 %v10253_v7 }
 0x974   : > { %v9948_v2 = vpack.i.bf16 %v4721_v61, %v4720_v46  ;;  %9675 = vmatpush3.bf16.msra.mxu0 %v10253_v7 }
 0x975   : > { %9676 = vmatprep.subr.bf16.mxu0 %v10254_v18 }
 0x976   : > { %9949 = vrot.lane.b32.xlu1 %v9948_v2, %s13717_s25 }
 0x978   : > { %9677 = vmatpush3.bf16.msra.mxu0 %v10254_v18 }
 0x9b3   : > { %v4893_v37 = vpop.xlane.xlu0 %4892 }
 0x9b7   : > { %v4896_v27 = vpop.xlane.xlu1 %4895  ;;  %v4887_v33 = vpop.xlane.xlu0 %4886 }
 0x9bb   : > { %v4890_v36 = vpop.xlane.xlu1 %4889  ;;  %v4317_v45 = vpop.xlane.xlu0 %4316 }
 0x9bc   : > { %10431 = vrcp.f32 %v4317_v45 }
 0x9bf   : > { %v4320_v58 = vpop.xlane.xlu1 %4319  ;;  %v4323_v24 = vpop.xlane.xlu0 %4322 }
 0x9c0   : > { %10433 = vrcp.f32 %v4320_v58 }
 0x9c3   : > { %v4610_v50 = vpop.xlane.xlu1 %4609  ;;  %v4613_v6 = vpop.xlane.xlu0 %4612 }
 0x9c4   : > { %10435 = vrcp.f32 %v4610_v50 }
 0x9c5   : > { %10437 = vrcp.f32 %v4613_v6 }
 0x9c6   : > { %v10432_v56 = vpop.eup %10431  ;;  %10439 = vrcp.f32 %v4893_v37 }
 0x9c7   : > { %v4433_v62 = vmul.f32 %v10432_v56, %v12270_v4  ;;  %10441 = vrcp.f32 %v4896_v27  ;;  %v4616_v63 = vpop.xlane.xlu1 %4615  ;;  %v4899_v4 = vpop.xlane.xlu0 %4898 }
 0x9c8   : > { %10443 = vrcp.f32 %v4887_v33 }
 0x9c9   : > { %10445 = vrcp.f32 %v4890_v36 }
 0x9ca   : > { %v10434_v23 = vpop.eup %10433  ;;  %10447 = vrcp.f32 %v4323_v24 }
 0x9cb   : > { %v4434_v41 = vmul.f32 %v10434_v23, %v12272_v57  ;;  %v4902_v57 = vpop.xlane.xlu1 %4901  ;;  %10449 = vrcp.f32 %v4616_v63  ;;  %v4905_v20 = vpop.xlane.xlu0 %4904 }
 0x9cc   : > { %10451 = vrcp.f32 %v4899_v4 }
 0x9cd   : > { %v9963_v21 = vpack.i.bf16 %v4434_v41, %v4433_v62  ;;  %10453 = vrcp.f32 %v4902_v57 }
 0x9ce   : > { %v10436_v35 = vpop.eup %10435  ;;  %10455 = vrcp.f32 %v4905_v20 }
 0x9cf   : > { %v10438_v29 = vpop.eup %10437  ;;  %v4722_v30 = vmul.f32 %v10436_v35, %v12284_v47  ;;  %v4025_v33 = vpop.xlane.xlu0 %4024 }
 0x9d0   : > { %v4723_v49 = vmul.f32 %v10438_v29, %v12286_v34  ;;  %v10440_v17 = vpop.eup %10439 }
 0x9d1   : > { %v10442_v34 = vpop.eup %10441 }
 0x9d2   : > { %v9968_v13 = vpack.i.bf16 %v4723_v49, %v4722_v30  ;;  %v10444_v25 = vpop.eup %10443 }
 0x9d3   : > { %v10446_v9 = vpop.eup %10445  ;;  %v4031_v45 = vpop.xlane.xlu0 %4030 }
 0x9d4   : > { %v10448_v48 = vpop.eup %10447 }
 0x9d5   : > { %v10450_v28 = vpop.eup %10449  ;;  %v4435_v14 = vmul.f32 %v10448_v48, %v12268_v53  ;;  %v4022_v53 = vpop.xlane.xlu1 %4021 }
 0x9d6   : > { %v10452_v19 = vpop.eup %10451  ;;  %v4724_v2 = vmul.f32 %v10450_v28, %v12282_v31  ;;  %10457 = vrcp.f32 %v4022_v53 }
 0x9d7   : > { %v10454_v15 = vpop.eup %10453  ;;  %10459 = vrcp.f32 %v4025_v33  ;;  %v4037_v31 = vpop.xlane.xlu0 %4036 }
 0x9d8   : > { %v10456_v51 = vpop.eup %10455 }
 0x9d9   : > { %v4028_v37 = vpop.xlane.xlu1 %4027 }
 0x9da   : > { %10461 = vrcp.f32 %v4028_v37 }
 0x9db   : > { %10463 = vrcp.f32 %v4031_v45 }
 0x9dc   : > { %v9935_v6 = vpop.permute.xlu0 %9934 }
 0x9dd   : > { %v4034_v27 = vpop.xlane.xlu1 %4033  ;;  %v9936_v35 = vunpack.i.l.bf16 %v9935_v6 }
 0x9de   : > { %10465 = vrcp.f32 %v4034_v27 }
 0x9df   : > { %10467 = vrcp.f32 %v4037_v31 }
 0x9e0   : > { %v10458_v50 = vpop.eup %10457 }
 0x9e1   : > { %v4040_v36 = vpop.xlane.xlu1 %4039  ;;  %v10460_v56 = vpop.eup %10459  ;;  %v4136_v29 = vmul.f32 %v10458_v50, %v12248_v0 }
 0x9e2   : > { %10469 = vrcp.f32 %v4040_v36 }
 0x9e4   : > { %v10462_v23 = vpop.eup %10461 }
 0x9e5   : > { %v9940_v58 = vpop.permute.xlu1 %9939  ;;  %v10464_v41 = vpop.eup %10463  ;;  %v4138_v4 = vmul.f32 %v10462_v23, %v12246_v26 }
 0x9e6   : > { %v9942_v30 = vunpack.i.h.bf16 %v9940_v58  ;;  %v9941_v49 = vunpack.i.l.bf16 %v9940_v58  ;;  %v4139_v57 = vmul.f32 %v10464_v41, %v12250_v44 }
 0x9e9   : > { %v9945_v24 = vpop.permute.xlu1 %9944 }
 0x9ed   : > { %v9950_v62 = vpop.permute.xlu1 %9949 }
 0x9ee   : > { %v9952_v63 = vunpack.i.h.bf16 %v9950_v62  ;;  %v9951_v18 = vunpack.i.l.bf16 %v9950_v62 }
 0xa0a   : > { %v9664_v47 = vpop.f32.mrb[128].mxu0 }
 0xa0b   : > { %v4970_v60 = vpop.f32.mrb[129].mxu0  ;;  %v5009_v8 = vmul.f32 %v10440_v17, %v9664_v47  ;;  %v9947_v17 = vunpack.i.h.bf16 %v9945_v24  ;;  %v9946_v47 = vunpack.i.l.bf16 %v9945_v24 }
 0xa0c   : > { %v9665_v32 = vpop.f32.mrb[130].mxu0  ;;  %v5007_v55 = vmul.f32 %v10444_v25, %v4970_v60  ;;  %v5098_v60 = vsel %vm3874_vm1, %v4136_v29, %v9936_v35  ;;  %v5100_v25 = vsel %vm3874_vm1, %v4138_v4, %v9941_v49  ;;  %v13757_v4 = vld [vmem:[#allocation12_spill] sm:$0xff] }
 0xa0d   : > { %v5010_v3 = vmul.f32 %v10442_v34, %v9665_v32  ;;  %v4973_v43 = vpop.f32.mrb[131].mxu0  ;;  %v5101_v32 = vsel %vm3874_vm1, %v4139_v57, %v9942_v30  ;;  %v5108_v26 = vsel %vm5105_vm5, %v5100_v25, %v9951_v18  ;;  %v13756_v30 = vld [vmem:[#allocation11_spill] sm:$0xff] }
 0xa0e   : > { %v5008_v59 = vmul.f32 %v10446_v9, %v4973_v43  ;;  %v5109_v44 = vsel %vm5105_vm5, %v5101_v32, %v9952_v63  ;;  %v5106_v43 = vsel %vm5105_vm5, %v5098_v60, %v9946_v47  ;;  %v13758_v47 = vld [vmem:[#allocation13_spill] sm:$0xff] }
 0xa0f   : > { %v9958_v12 = vpack.i.bf16 %v5010_v3, %v5009_v8 }
 0xa10   : > { %v9953_v10 = vpack.i.bf16 %v5008_v59, %v5007_v55 }
 0xa11   : > { %9959 = vrot.lane.b32.xlu1 %v9958_v12, %s13721_s1 }
 0xa12   : > { %v9668_v11 = vpop.f32.mrb[132].mxu0  ;;  %9954 = vrot.lane.b32.xlu0 %v9953_v10, %s13721_s1 }
 0xa13   : > { %v4986_v1 = vpop.f32.mrb[133].mxu0  ;;  %v5013_v7 = vmul.f32 %v10456_v51, %v9668_v11 }
 0xa14   : > { %v9669_v22 = vpop.f32.mrb[134].mxu0  ;;  %v5011_v46 = vmul.f32 %v10452_v19, %v4986_v1  ;;  %v10466_v19 = vpop.eup %10465 }
 0xa15   : > { %v4989_v42 = vpop.f32.mrb[135].mxu0  ;;  %5033 = vrot.lane.b32.xlu1 %v4435_v14, %s13715_s0  ;;  %v10468_v22 = vpop.eup %10467  ;;  %v4140_v37 = vmul.f32 %v10466_v19, %v12256_v5 }
 0xa16   : > { %v5012_v61 = vmul.f32 %v10454_v15, %v4989_v42  ;;  %9964 = vrot.lane.b32.xlu0 %v9963_v21, %s13715_s0  ;;  %v9937_v21 = vunpack.i.h.bf16 %v9935_v6  ;;  %v10470_v15 = vpop.eup %10469  ;;  %v4141_v51 = vmul.f32 %v10468_v22, %v12258_v52  ;;  %s13769_s0 = smov 112  }
 0xa18   : > { %v9973_v16 = vpack.i.bf16 %v5012_v61, %v5011_v46 }
 0xa19   : > { %5061 = vrot.lane.b32.xlu1 %v4724_v2, %s13717_s25 }
 0xa1a   : > { %9969 = vrot.lane.b32.xlu0 %v9968_v13, %s13717_s25  ;;  %v4137_v13 = vmul.f32 %v10460_v56, %v12252_v54  ;;  %s621_s25 = scalar_lea.vmem [#allocation2], %s620_s26 }
 0xa1c   : > { %v5099_v34 = vsel %vm3874_vm1, %v4137_v13, %v9937_v21  ;;  %v8615_v21 = vld [vmem:[%s13679_s10] ss:$0 sm:$0xff] }
 0xa1d   : > { %5089 = vrot.lane.b32.xlu1 %v5013_v7, %s13721_s1  ;;  %v5107_v55 = vsel %vm5105_vm5, %v5099_v34, %v9947_v17 }
 0xa1e   : > { %9974 = vrot.lane.b32.xlu0 %v9973_v16, %s13721_s1  ;;  %v4142_v16 = vmul.f32 %v10470_v15, %v12254_v39  ;;  %s8830_s1 = sshll.u32 %s10941_s2, 4 }
 0xa83   : > { %v9960_v0 = vpop.permute.xlu1 %9959 }
 0xa84   : > { %v9962_v54 = vunpack.i.h.bf16 %v9960_v0  ;;  %v9961_v9 = vunpack.i.l.bf16 %v9960_v0  ;;  %v9955_v20 = vpop.permute.xlu0 %9954 }
 0xa85   : > { %v9957_v8 = vunpack.i.h.bf16 %v9955_v20  ;;  %v9956_v3 = vunpack.i.l.bf16 %v9955_v20  ;;  %v13759_v20 = vld [vmem:[#allocation16_spill] sm:$0xff] }
 0xa86   : > { %v5116_v59 = vsel %vm5113_vm6, %v5108_v26, %v9961_v9  ;;  %v5117_v12 = vsel %vm5113_vm6, %v5109_v44, %v9962_v54  ;;  %v13760_v44 = vld [vmem:[#allocation14_spill] sm:$0xff] }
 0xa87   : > { %v5130_v48 = vpack.c.bf16 %v5117_v12, %v5116_v59  ;;  %v5114_v10 = vsel %vm5113_vm6, %v5106_v43, %v9956_v3  ;;  %v5115_v11 = vsel %vm5113_vm6, %v5107_v55, %v9957_v8  ;;  %v5034_v28 = vpop.permute.xlu1 %5033  ;;  %v13761_v12 = vld [vmem:[#allocation15_spill] sm:$0xff] }
 0xa88   : > { %v9965_v1 = vpop.permute.xlu0 %9964  ;;  %v5129_v14 = vpack.c.bf16 %v5115_v11, %v5114_v10  ;;  %v5104_v33 = vsel %vm3874_vm1, %v4142_v16, %v5034_v28 }
 0xa89   : > { %v9967_v46 = vunpack.i.h.bf16 %v9965_v1  ;;  %v9966_v2 = vunpack.i.l.bf16 %v9965_v1 }
 0xa8a   : > { %9678 = vmatprep.mubr.msk.bf16.mxu0 %vm3469_vm0, %v5129_v14 }
 0xa8b   : > { %v5062_v42 = vpop.permute.xlu1 %5061  ;;  %9679 = vmatmul.mubr.msk.bf16.vlgmr.msra.gmra.mrb[136].mxu0 %vm3469_vm0, %v5130_v48  ;;  %v5103_v36 = vsel %vm3874_vm1, %v4141_v51, %v9967_v46  ;;  %v5102_v58 = vsel %vm3874_vm1, %v4140_v37, %v9966_v2 }
 0xa8c   : > { %v9970_v61 = vpop.permute.xlu0 %9969  ;;  %v5112_v31 = vsel %vm5105_vm5, %v5104_v33, %v5062_v42 }
 0xa8d   : > { %v9972_v7 = vunpack.i.h.bf16 %v9970_v61  ;;  %v9971_v53 = vunpack.i.l.bf16 %v9970_v61 }
 0xa8f   : > { %v5090_v27 = vpop.permute.xlu1 %5089  ;;  %v5110_v39 = vsel %vm5105_vm5, %v5102_v58, %v9971_v53  ;;  %v5111_v52 = vsel %vm5105_vm5, %v5103_v36, %v9972_v7 }
 0xa90   : > { %v9975_v45 = vpop.permute.xlu0 %9974  ;;  %v5120_v6 = vsel %vm5113_vm6, %v5112_v31, %v5090_v27 }
 0xa91   : > { %v9977_v24 = vunpack.i.h.bf16 %v9975_v45  ;;  %v9976_v50 = vunpack.i.l.bf16 %v9975_v45  ;;  %v5132_v62 = vpack.c.bf16 %v5120_v6, %v5120_v6 }
 0xa93   : > { %v5118_v5 = vsel %vm5113_vm6, %v5110_v39, %v9976_v50  ;;  %v5119_v56 = vsel %vm5113_vm6, %v5111_v52, %v9977_v24 }
 0xa94   : > { %v5131_v23 = vpack.c.bf16 %v5119_v56, %v5118_v5 }
 0xa96   : > { %9682 = vmatprep.mubr.msk.bf16.mxu0 %vm3469_vm0, %v5131_v23 }
 0xa97   : > { %9683 = vmatmul.mubr.msk.bf16.gmra.mrb[140].mxu0 %vm3469_vm0, %v5132_v62 }
 0xb5e   : > { %v9680_v41 = vpop.f32.mrb[136].mxu0 }
 0xb5f   : > { %v5203_v35 = vpop.f32.mrb[137].mxu0  ;;  %v5235_v29 = vadd.f32 %v9680_v41, %v11729_v40 }
 0xb60   : > { %v5233_v49 = vadd.f32 %v5203_v35, %v13756_v30  ;;  %v9681_v13 = vpop.f32.mrb[138].mxu0 }
 0xb61   : > { %v5206_v63 = vpop.f32.mrb[139].mxu0  ;;  %v12445_v17 = vadd.f32 %v8615_v21, %v5235_v29  ;;  %v5236_v34 = vadd.f32 %v9681_v13, %v13758_v47  ;;  %v10260_v47 = vld [vmem:[%s13682_s13 + $0x14] ss:$8 sps:$4 sm:$0xff]  }
 0xb62   : > { %v12442_v18 = vadd.f32 %v8615_v21, %v5233_v49  ;;  %v5234_v57 = vadd.f32 %v5206_v63, %v13757_v4  ;;  %v10257_v4 = vld [vmem:[%s13682_s13 + $0x4] ss:$8 sps:$4 sm:$0xff]  }
 0xb63   : > { %v12454_v25 = vadd.f32 %v8615_v21, %v5236_v34  ;;  %v5262_v32 = vsel %vm3469_vm0, %v12445_v17, 0.0  ;;  %5449 = vmatprep.subr.bf16.mxu1 %v10257_v4  ;;  %v10258_v34 = vld [vmem:[%s13682_s13 + $0x10] ss:$8 sps:$4 sm:$0xff]  }
 0xb64   : > { %v12448_v60 = vadd.f32 %v8615_v21, %v5234_v57  ;;  %v5256_v0 = vsel %vm3469_vm0, %v12442_v18, 0.0  ;;  %v10255_v57 = vld [vmem:[%s13682_s13] ss:$8 sps:$4 sm:$0xff]  }
 0xb65   : > { %5257 = vadd.xlane.f32.xlu0 %v5256_v0  ;;  %v5265_v43 = vsel %vm3469_vm0, %v12454_v25, 0.0  ;;  %5450 = vmatpush1.bf16.msra.mxu1 %v10255_v57  ;;  %v10263_v0 = vld [vmem:[%s13682_s13 + $0x24] ss:$8 sps:$4 sm:$0xff]  }
 0xb66   : > { %v5259_v40 = vsel %vm3469_vm0, %v12448_v60, 0.0  ;;  %5451 = vmatprep.subr.bf16.mxu1 %v10260_v47 }
 0xb67   : > { %5260 = vadd.xlane.f32.xlu1 %v5259_v40  ;;  %v10261_v40 = vld [vmem:[%s13682_s13 + $0x20] ss:$8 sps:$4 sm:$0xff]  }
 0xb69   : > { %5263 = vadd.xlane.f32.xlu0 %v5262_v32  ;;  %5452 = vmatpush1.bf16.msra.mxu1 %v10258_v34  ;;  %v10266_v32 = vld [vmem:[%s13682_s13 + $0x34] ss:$8 sps:$4 sm:$0xff]  }
 0xb6a   : > { %v9684_v54 = vpop.f32.mrb[140].mxu0  ;;  %5453 = vmatprep.subr.bf16.mxu1 %v10263_v0 }
 0xb6b   : > { %v5219_v9 = vpop.f32.mrb[141].mxu0  ;;  %v5239_v26 = vadd.f32 %v9684_v54, %v13759_v20  ;;  %v10264_v54 = vld [vmem:[%s13682_s13 + $0x30] ss:$8 sps:$4 sm:$0xff]  }
 0xb6c   : > { %v5237_v8 = vadd.f32 %v5219_v9, %v13760_v44  ;;  %v9685_v3 = vpop.f32.mrb[142].mxu0 }
 0xb6d   : > { %5266 = vadd.xlane.f32.xlu0 %v5265_v43  ;;  %v5222_v55 = vpop.f32.mrb[143].mxu0  ;;  %v12465_v10 = vadd.f32 %v8615_v21, %v5239_v26  ;;  %5454 = vmatpush1.bf16.msra.mxu1 %v10261_v40 }
 0xb6e   : > { %v12462_v59 = vadd.f32 %v8615_v21, %v5237_v8  ;;  %v5238_v48 = vadd.f32 %v5222_v55, %v13761_v12  ;;  %5455 = vmatprep.subr.bf16.mxu1 %v10266_v32 }
 0xb6f   : > { %v5274_v14 = vsel %vm3469_vm0, %v12465_v10, 0.0 }
 0xb70   : > { %v12467_v11 = vadd.f32 %v8615_v21, %v5238_v48  ;;  %v5268_v28 = vsel %vm3469_vm0, %v12462_v59, 0.0 }
 0xb71   : > { %5269 = vadd.xlane.f32.xlu0 %v5268_v28  ;;  %5456 = vmatpush1.bf16.msra.mxu1 %v10264_v54 }
 0xb72   : > { %v5271_v1 = vsel %vm3469_vm0, %v12467_v11, 0.0 }
 0xb73   : > { %5272 = vadd.xlane.f32.xlu1 %v5271_v1 }
 0xb75   : > { %5275 = vadd.xlane.f32.xlu0 %v5274_v14 }
 0xbf2   : > { %v5258_v19 = vpop.xlane.xlu0 %5257 }
 0xbf3   : > { %v5277_v22 = vmul.f32 0.015625, %v5258_v19 }
 0xbf4   : > { %v5261_v15 = vpop.xlane.xlu1 %5260 }
 0xbf5   : > { %v12476_v42 = vsub.f32 %v12442_v18, %v5277_v22  ;;  %v5278_v46 = vmul.f32 0.015625, %v5261_v15 }
 0xbf6   : > { %v5264_v61 = vpop.xlane.xlu0 %5263 }
 0xbf7   : > { %v12479_v2 = vsub.f32 %v12448_v60, %v5278_v46  ;;  %v5279_v16 = vmul.f32 0.015625, %v5264_v61  ;;  %v5291_v51 = vmul.f32 %v12476_v42, %v12476_v42  ;;  %v8616_v46 = vld [vmem:[%s13680_s11] ss:$0 sm:$0xff] }
 0xbf9   : > { %v12484_v7 = vsub.f32 %v12445_v17, %v5279_v16  ;;  %v5298_v53 = vsel %vm3469_vm0, %v5291_v51, 0.0  ;;  %v5292_v37 = vmul.f32 %v12479_v2, %v12479_v2 }
 0xbfa   : > { %v5267_v27 = vpop.xlane.xlu0 %5266  ;;  %5299 = vadd.xlane.f32.xlu1 %v5298_v53 }
 0xbfb   : > { %v5280_v33 = vmul.f32 0.015625, %v5267_v27  ;;  %v5301_v36 = vsel %vm3469_vm0, %v5292_v37, 0.0  ;;  %v5293_v45 = vmul.f32 %v12484_v7, %v12484_v7 }
 0xbfc   : > { %5302 = vadd.xlane.f32.xlu0 %v5301_v36 }
 0xbfd   : > { %v12493_v58 = vsub.f32 %v12454_v25, %v5280_v33  ;;  %v5304_v31 = vsel %vm3469_vm0, %v5293_v45, 0.0 }
 0xbfe   : > { %v5270_v24 = vpop.xlane.xlu0 %5269  ;;  %5305 = vadd.xlane.f32.xlu1 %v5304_v31 }
 0xbff   : > { %v5281_v50 = vmul.f32 0.015625, %v5270_v24  ;;  %v5294_v39 = vmul.f32 %v12493_v58, %v12493_v58  ;;  %v8617_v24 = vld [vmem:[%s13681_s12] ss:$0 sm:$0xff] }
 0xc00   : > { %v5273_v52 = vpop.xlane.xlu1 %5272 }
 0xc01   : > { %v12499_v6 = vsub.f32 %v12462_v59, %v5281_v50  ;;  %v5282_v5 = vmul.f32 0.015625, %v5273_v52  ;;  %v5307_v56 = vsel %vm3469_vm0, %v5294_v39, 0.0 }
 0xc02   : > { %5308 = vadd.xlane.f32.xlu0 %v5307_v56  ;;  %v5276_v23 = vpop.xlane.xlu0 %5275 }
 0xc03   : > { %v12503_v62 = vsub.f32 %v12467_v11, %v5282_v5  ;;  %v5283_v41 = vmul.f32 0.015625, %v5276_v23  ;;  %v5295_v21 = vmul.f32 %v12499_v6, %v12499_v6 }
 0xc05   : > { %v12508_v35 = vsub.f32 %v12465_v10, %v5283_v41  ;;  %v5310_v29 = vsel %vm3469_vm0, %v5295_v21, 0.0  ;;  %v5296_v30 = vmul.f32 %v12503_v62, %v12503_v62 }
 0xc06   : > { %5311 = vadd.xlane.f32.xlu1 %v5310_v29 }
 0xc07   : > { %v5313_v49 = vsel %vm3469_vm0, %v5296_v30, 0.0  ;;  %v5297_v13 = vmul.f32 %v12508_v35, %v12508_v35  ;;  %v13762_v30 = vmov 0  }
 0xc08   : > { %5314 = vadd.xlane.f32.xlu0 %v5313_v49 }
 0xc09   : > { %v5316_v63 = vsel %vm3469_vm0, %v5297_v13, 0.0 }
 0xc0a   : > { %5317 = vadd.xlane.f32.xlu1 %v5316_v63 }
 0xc87   : > { %v5300_v9 = vpop.xlane.xlu1 %5299 }
 0xc88   : > { %v5319_v20 = vmul.f32 0.015625, %v5300_v9 }
 0xc89   : > { %v5303_v26 = vpop.xlane.xlu0 %5302 }
 0xc8a   : > { %v5326_v44 = vadd.f32 1e-05, %v5319_v20  ;;  %v5320_v8 = vmul.f32 0.015625, %v5303_v26  ;;  %v10267_v20 = vld [vmem:[%s13684_s15 + $0x40] sm:$0xff]   ;;  %v10269_v26 = vld [vmem:[%s13684_s15 + $0x48] sm:$0xff]  }
 0xc8b   : > { %v5306_v3 = vpop.xlane.xlu1 %5305  ;;  %9385 = vmatprep.subr.bf16.mxu0 %v10267_v20 }
 0xc8c   : > { %10471 = vrsqrt.f32 %v5326_v44  ;;  %v5327_v43 = vadd.f32 1e-05, %v5320_v8  ;;  %v5321_v55 = vmul.f32 0.015625, %v5306_v3  ;;  %v10270_v44 = vld [vmem:[%s13684_s15 + $0x8] sm:$0xff]   ;;  %v10271_v8 = vld [vmem:[%s13684_s15 + $0x50] sm:$0xff]  }
 0xc8d   : > { %v10272_v3 = vld [vmem:[%s13684_s15 + $0x10] sm:$0xff]  }
 0xc8e   : > { %10473 = vrsqrt.f32 %v5327_v43  ;;  %v5328_v12 = vadd.f32 1e-05, %v5321_v55  ;;  %v10273_v43 = vld [vmem:[%s13684_s15 + $0x58] sm:$0xff]  }
 0xc8f   : > { %v5309_v48 = vpop.xlane.xlu0 %5308  ;;  %v10274_v55 = vld [vmem:[%s13684_s15 + $0x18] sm:$0xff]  }
 0xc90   : > { %10475 = vrsqrt.f32 %v5328_v12  ;;  %v5322_v28 = vmul.f32 0.015625, %v5309_v48  ;;  %v10275_v12 = vld [vmem:[%s13684_s15 + $0x60] sm:$0xff]  }
 0xc91   : > { %v10276_v48 = vld [vmem:[%s13684_s15 + $0x20] sm:$0xff]  }
 0xc92   : > { %v5329_v1 = vadd.f32 1e-05, %v5322_v28  ;;  %v10277_v28 = vld [vmem:[%s13684_s15 + $0x68] sm:$0xff]  }
 0xc93   : > { %v5312_v14 = vpop.xlane.xlu1 %5311 }
 0xc94   : > { %10477 = vrsqrt.f32 %v5329_v1  ;;  %v5323_v19 = vmul.f32 0.015625, %v5312_v14  ;;  %v10278_v1 = vld [vmem:[%s13684_s15 + $0x28] sm:$0xff]   ;;  %v10279_v14 = vld [vmem:[%s13684_s15 + $0x70] sm:$0xff]  }
 0xc95   : > { %v5315_v22 = vpop.xlane.xlu0 %5314 }
 0xc96   : > { %v10472_v15 = vpop.eup %10471  ;;  %v5330_v61 = vadd.f32 1e-05, %v5323_v19  ;;  %v5324_v16 = vmul.f32 0.015625, %v5315_v22  ;;  %v10280_v19 = vld [vmem:[%s13684_s15 + $0x30] sm:$0xff]   ;;  %v10281_v22 = vld [vmem:[%s13684_s15 + $0x78] sm:$0xff]  }
 0xc97   : > { %v5340_v51 = vmul.f32 %v10472_v15, %v12476_v42  ;;  %v5318_v53 = vpop.xlane.xlu1 %5317  ;;  %v10282_v15 = vld [vmem:[%s13684_s15 + $0x38] sm:$0xff]  }
 0xc98   : > { %v10474_v37 = vpop.eup %10473  ;;  %10479 = vrsqrt.f32 %v5330_v61  ;;  %v5331_v27 = vadd.f32 1e-05, %v5324_v16  ;;  %v5325_v33 = vmul.f32 0.015625, %v5318_v53  ;;  %v13763_v61 = vld [vmem:[#allocation17_spill] sm:$0xff] }
 0xc99   : > { %v5353_v36 = vmul.f32 %v8616_v46, %v5340_v51  ;;  %v5341_v45 = vmul.f32 %v10474_v37, %v12479_v2  ;;  %v13764_v51 = vld [vmem:[#allocation18_spill] sm:$0xff] }
 0xc9a   : > { %v10476_v31 = vpop.eup %10475  ;;  %10481 = vrsqrt.f32 %v5331_v27  ;;  %v5332_v50 = vadd.f32 1e-05, %v5325_v33 }
 0xc9b   : > { %v5354_v39 = vmul.f32 %v8616_v46, %v5341_v45  ;;  %v5366_v52 = vadd.f32 %v8617_v24, %v5353_v36  ;;  %v5342_v42 = vmul.f32 %v10476_v31, %v12484_v7 }
 0xc9c   : > { %10483 = vrsqrt.f32 %v5332_v50 }
 0xc9d   : > { %v5367_v5 = vadd.f32 %v8617_v24, %v5354_v39  ;;  %v5355_v2 = vmul.f32 %v8616_v46, %v5342_v42 }
 0xc9e   : > { %v10478_v56 = vpop.eup %10477 }
 0xc9f   : > { %v5381_v23 = vpack.c.bf16 %v5367_v5, %v5366_v52  ;;  %v5343_v41 = vmul.f32 %v10478_v56, %v12493_v58  ;;  %v5368_v63 = vadd.f32 %v8617_v24, %v5355_v2 }
 0xca1   : > { %8626 = vmatmul.mubr.msk.bf16.vlgmr.msra.gmra.mrb[136].mxu1 %vm3469_vm0, %v5381_v23  ;;  %v5356_v21 = vmul.f32 %v8616_v46, %v5343_v41 }
 0xca2   : > { %v10480_v29 = vpop.eup %10479  ;;  %5491 = vmatprep.mubr.bf16.mxu1 %v13762_v30 }
 0xca3   : > { %v5369_v49 = vadd.f32 %v8617_v24, %v5356_v21  ;;  %v5344_v4 = vmul.f32 %v10480_v29, %v12499_v6 }
 0xca4   : > { %v10482_v13 = vpop.eup %10481 }
 0xca5   : > { %v5345_v57 = vmul.f32 %v10482_v13, %v12503_v62  ;;  %v5382_v7 = vpack.c.bf16 %v5369_v49, %v5368_v63  ;;  %v5357_v58 = vmul.f32 %v8616_v46, %v5344_v4 }
 0xca6   : > { %v10484_v34 = vpop.eup %10483 }
 0xca7   : > { %v5358_v47 = vmul.f32 %v8616_v46, %v5345_v57  ;;  %v5346_v40 = vmul.f32 %v10484_v34, %v12508_v35  ;;  %v5370_v32 = vadd.f32 %v8617_v24, %v5357_v58  ;;  %v10268_v35 = vld [vmem:[%s13684_s15] sm:$0xff]  }
 0xca8   : > { %9386 = vmatpush3.bf16.msra.mxu0 %v10268_v35 }
 0xca9   : > { %8627 = vmatmul.mubr.msk.bf16.gmra.mrb[140].mxu1 %vm3469_vm0, %v5382_v7  ;;  %v5371_v0 = vadd.f32 %v8617_v24, %v5358_v47  ;;  %v5359_v9 = vmul.f32 %v8616_v46, %v5346_v40  ;;  %9387 = vmatprep.subr.bf16.mxu0 %v10269_v26  ;;  %v5385_v46 = vld [vmem:[%s13683_s14] sm:$0x3] }
 0xcaa   : > { %5501 = vmatprep.mubr.bf16.mxu1 %v13762_v30  ;;  %v12614_v16 = vrot.slane %v5385_v46, %v13763_v61  ;;  %v12617_v53 = vrot.slane %v5385_v46, %v13764_v51 }
 0xcab   : > { %v5383_v54 = vpack.c.bf16 %v5371_v0, %v5370_v32  ;;  %v5372_v6 = vadd.f32 %v8617_v24, %v5359_v9 }
 0xcac   : > { %9388 = vmatpush3.bf16.msra.mxu0 %v10270_v44 }
 0xcad   : > { %v5384_v62 = vpack.c.bf16 %v5372_v6, %v5372_v6  ;;  %9389 = vmatprep.subr.bf16.mxu0 %v10271_v8 }
 0xcb0   : > { %9390 = vmatpush3.bf16.msra.mxu0 %v10272_v3 }
 0xcb1   : > { %8628 = vmatmul.mubr.msk.bf16.gmra.mrb[144].mxu1 %vm3469_vm0, %v5383_v54  ;;  %9391 = vmatprep.subr.bf16.mxu0 %v10273_v43 }
 0xcb2   : > { %5511 = vmatprep.mubr.bf16.mxu1 %v13762_v30 }
 0xcb4   : > { %9392 = vmatpush3.bf16.msra.mxu0 %v10274_v55 }
 0xcb5   : > { %9393 = vmatprep.subr.bf16.mxu0 %v10275_v12 }
 0xcb8   : > { %9394 = vmatpush3.bf16.msra.mxu0 %v10276_v48 }
 0xcb9   : > { %8629 = vmatmul.mubr.msk.bf16.gmra.mrb[148].mxu1 %vm3469_vm0, %v5384_v62  ;;  %9395 = vmatprep.subr.bf16.mxu0 %v10277_v28 }
 0xcba   : > { %6084 = vmatprep.mubr.bf16.mxu1 %v13762_v30 }
 0xcbc   : > { %9396 = vmatpush3.bf16.msra.mxu0 %v10278_v1 }
 0xcbd   : > { %9397 = vmatprep.subr.bf16.mxu0 %v10279_v14 }
 0xcc0   : > { %9398 = vmatpush3.bf16.msra.mxu0 %v10280_v19 }
 0xcc1   : > { %9399 = vmatprep.subr.bf16.mxu0 %v10281_v22 }
 0xcc4   : > { %9400 = vmatpush3.bf16.msra.mxu0 %v10282_v15 }
 0xd74   : > { %v5483_v37 = vpop.f32.mrb[136].mxu1 }
 0xd75   : > { %v12620_v27 = vadd.f32 %v5483_v37, %v12614_v16  ;;  %v5485_v33 = vpop.f32.mrb[137].mxu1 }
 0xd76   : > { %v12623_v36 = vadd.f32 %v5485_v33, %v12617_v53  ;;  %v5487_v45 = vpop.f32.mrb[138].mxu1 }
 0xd77   : > { %v8630_v31 = vmul.f32 -1.702, %v12620_v27  ;;  %v12627_v24 = vadd.f32 %v5487_v45, %v12614_v16  ;;  %v5489_v50 = vpop.f32.mrb[139].mxu1 }
 0xd78   : > { %v8631_v39 = vmul.f32 -1.702, %v12623_v36  ;;  %v12631_v52 = vadd.f32 %v5489_v50, %v12617_v53 }
 0xd79   : > { %v5548_v5 = vmul.f32 1.442695, %v8630_v31  ;;  %v8632_v42 = vmul.f32 -1.702, %v12627_v24 }
 0xd7a   : > { %v5550_v56 = vmul.f32 1.442695, %v8631_v39  ;;  %v8633_v23 = vmul.f32 -1.702, %v12631_v52 }
 0xd7b   : > { %10485 = vpow2.f32 %v5548_v5  ;;  %v5552_v41 = vmul.f32 1.442695, %v8632_v42 }
 0xd7c   : > { %10487 = vpow2.f32 %v5550_v56  ;;  %v5554_v2 = vmul.f32 1.442695, %v8633_v23  ;;  %v5493_v21 = vpop.f32.mrb[140].mxu1 }
 0xd7d   : > { %10489 = vpow2.f32 %v5552_v41  ;;  %v12636_v29 = vadd.f32 %v5493_v21, %v12614_v16  ;;  %v5495_v49 = vpop.f32.mrb[141].mxu1 }
 0xd7e   : > { %10491 = vpow2.f32 %v5554_v2  ;;  %v12639_v13 = vadd.f32 %v5495_v49, %v12617_v53  ;;  %v5497_v63 = vpop.f32.mrb[142].mxu1 }
 0xd7f   : > { %v8634_v4 = vmul.f32 -1.702, %v12636_v29  ;;  %v12643_v57 = vadd.f32 %v5497_v63, %v12614_v16  ;;  %v5499_v7 = vpop.f32.mrb[143].mxu1 }
 0xd80   : > { %v8635_v47 = vmul.f32 -1.702, %v12639_v13  ;;  %v12647_v34 = vadd.f32 %v5499_v7, %v12617_v53 }
 0xd81   : > { %v5556_v58 = vmul.f32 1.442695, %v8634_v4  ;;  %v8636_v0 = vmul.f32 -1.702, %v12643_v57 }
 0xd82   : > { %v5558_v40 = vmul.f32 1.442695, %v8635_v47  ;;  %v8637_v32 = vmul.f32 -1.702, %v12647_v34 }
 0xd83   : > { %10493 = vpow2.f32 %v5556_v58  ;;  %v5560_v54 = vmul.f32 1.442695, %v8636_v0 }
 0xd84   : > { %10495 = vpow2.f32 %v5558_v40  ;;  %v5562_v9 = vmul.f32 1.442695, %v8637_v32  ;;  %v5503_v6 = vpop.f32.mrb[144].mxu1 }
 0xd85   : > { %v10486_v62 = vpop.eup %10485  ;;  %10497 = vpow2.f32 %v5560_v54  ;;  %v12652_v20 = vadd.f32 %v5503_v6, %v12614_v16  ;;  %v5505_v35 = vpop.f32.mrb[145].mxu1 }
 0xd86   : > { %v10488_v26 = vpop.eup %10487  ;;  %v5576_v44 = vadd.f32 1.0, %v10486_v62  ;;  %10499 = vpow2.f32 %v5562_v9  ;;  %v12655_v8 = vadd.f32 %v5505_v35, %v12617_v53  ;;  %v5507_v3 = vpop.f32.mrb[146].mxu1 }
 0xd87   : > { %v10490_v43 = vpop.eup %10489  ;;  %v5577_v55 = vadd.f32 1.0, %v10488_v26  ;;  %v8638_v12 = vmul.f32 -1.702, %v12652_v20  ;;  %v12659_v48 = vadd.f32 %v5507_v3, %v12614_v16  ;;  %v5509_v28 = vpop.f32.mrb[147].mxu1 }
 0xd88   : > { %v10492_v1 = vpop.eup %10491  ;;  %10501 = vrcp.f32 %v5576_v44  ;;  %v5578_v14 = vadd.f32 1.0, %v10490_v43  ;;  %v8639_v19 = vmul.f32 -1.702, %v12655_v8  ;;  %v12663_v22 = vadd.f32 %v5509_v28, %v12617_v53 }
 0xd89   : > { %10503 = vrcp.f32 %v5577_v55  ;;  %v5579_v15 = vadd.f32 1.0, %v10492_v1  ;;  %v5564_v46 = vmul.f32 1.442695, %v8638_v12  ;;  %v8640_v37 = vmul.f32 -1.702, %v12659_v48 }
 0xd8a   : > { %10505 = vrcp.f32 %v5578_v14  ;;  %v5566_v33 = vmul.f32 1.442695, %v8639_v19  ;;  %v8641_v45 = vmul.f32 -1.702, %v12663_v22 }
 0xd8b   : > { %10507 = vrcp.f32 %v5579_v15  ;;  %v5568_v31 = vmul.f32 1.442695, %v8640_v37 }
 0xd8c   : > { %10509 = vpow2.f32 %v5564_v46  ;;  %v5570_v50 = vmul.f32 1.442695, %v8641_v45  ;;  %v5513_v39 = vpop.f32.mrb[148].mxu1 }
 0xd8d   : > { %v10494_v5 = vpop.eup %10493  ;;  %10511 = vpow2.f32 %v5566_v33  ;;  %v12668_v42 = vadd.f32 %v5513_v39, %v12614_v16  ;;  %v5515_v56 = vpop.f32.mrb[149].mxu1 }
 0xd8e   : > { %v10496_v23 = vpop.eup %10495  ;;  %v5580_v41 = vadd.f32 1.0, %v10494_v5  ;;  %10513 = vpow2.f32 %v5568_v31  ;;  %v12671_v2 = vadd.f32 %v5515_v56, %v12617_v53  ;;  %v5517_v21 = vpop.f32.mrb[150].mxu1 }
 0xd8f   : > { %v10498_v49 = vpop.eup %10497  ;;  %v5581_v63 = vadd.f32 1.0, %v10496_v23  ;;  %10515 = vpow2.f32 %v5570_v50  ;;  %v8642_v4 = vmul.f32 -1.702, %v12668_v42  ;;  %v5518_v7 = vpop.f32.mrb[151].mxu1 }
 0xd90   : > { %v10500_v47 = vpop.eup %10499  ;;  %10517 = vrcp.f32 %v5580_v41  ;;  %v5582_v58 = vadd.f32 1.0, %v10498_v49  ;;  %v8643_v16 = vmul.f32 -1.702, %v12671_v2 }
 0xd91   : > { %10519 = vrcp.f32 %v5581_v63  ;;  %v5583_v0 = vadd.f32 1.0, %v10500_v47  ;;  %v5572_v40 = vmul.f32 1.442695, %v8642_v4 }
 0xd92   : > { %v10502_v32 = vpop.eup %10501  ;;  %10521 = vrcp.f32 %v5582_v58  ;;  %v5574_v54 = vmul.f32 1.442695, %v8643_v16 }
 0xd93   : > { %v10504_v53 = vpop.eup %10503  ;;  %10523 = vrcp.f32 %v5583_v0  ;;  %v5618_v62 = vmul.f32 %v10502_v32, %v12620_v27 }
 0xd94   : > { %v10506_v9 = vpop.eup %10505  ;;  %10525 = vpow2.f32 %v5572_v40  ;;  %v5619_v44 = vmul.f32 %v10504_v53, %v12623_v36 }
 0xd95   : > { %v10508_v6 = vpop.eup %10507  ;;  %v5620_v35 = vmul.f32 %v10506_v9, %v12627_v24  ;;  %10527 = vpow2.f32 %v5574_v54 }
 0xd96   : > { %v10510_v26 = vpop.eup %10509  ;;  %v5621_v3 = vmul.f32 %v10508_v6, %v12631_v52 }
 0xd97   : > { %v10512_v43 = vpop.eup %10511  ;;  %v5664_v55 = vpack.c.bf16 %v5620_v35, %v5618_v62  ;;  %v5584_v12 = vadd.f32 1.0, %v10510_v26 }
 0xd98   : > { %v10514_v28 = vpop.eup %10513  ;;  %v5585_v1 = vadd.f32 1.0, %v10512_v43  ;;  %v5665_v14 = vpack.c.bf16 %v5621_v3, %v5619_v44 }
 0xd99   : > { %v10516_v19 = vpop.eup %10515  ;;  %10529 = vrcp.f32 %v5584_v12  ;;  %v5586_v15 = vadd.f32 1.0, %v10514_v28 }
 0xd9a   : > { %v10518_v46 = vpop.eup %10517  ;;  %10531 = vrcp.f32 %v5585_v1  ;;  %v5587_v27 = vadd.f32 1.0, %v10516_v19  ;;  %5800 = vmatprep.mubr.bf16.mxu0 %v5665_v14 }
 0xd9b   : > { %v10520_v24 = vpop.eup %10519  ;;  %10533 = vrcp.f32 %v5586_v15  ;;  %5801 = vmatmul.mubr.bf16.vlgmr.msra.gmra.mrb[144].mxu0 %v5664_v55  ;;  %v5622_v52 = vmul.f32 %v10518_v46, %v12636_v29 }
 0xd9c   : > { %v10522_v37 = vpop.eup %10521  ;;  %10535 = vrcp.f32 %v5587_v27  ;;  %v5623_v31 = vmul.f32 %v10520_v24, %v12639_v13 }
 0xd9d   : > { %v10524_v36 = vpop.eup %10523  ;;  %v5624_v33 = vmul.f32 %v10522_v37, %v12643_v57 }
 0xd9e   : > { %v10526_v45 = vpop.eup %10525  ;;  %v5625_v50 = vmul.f32 %v10524_v36, %v12647_v34 }
 0xd9f   : > { %v10528_v39 = vpop.eup %10527  ;;  %v5588_v5 = vadd.f32 1.0, %v10526_v45  ;;  %v5666_v56 = vpack.c.bf16 %v5624_v33, %v5622_v52 }
 0xda0   : > { %v5589_v23 = vadd.f32 1.0, %v10528_v39  ;;  %v5667_v41 = vpack.c.bf16 %v5625_v50, %v5623_v31 }
 0xda1   : > { %10537 = vrcp.f32 %v5588_v5 }
 0xda2   : > { %10539 = vrcp.f32 %v5589_v23  ;;  %5808 = vmatprep.mubr.bf16.mxu0 %v5667_v41 }
 0xda3   : > { %v10530_v21 = vpop.eup %10529  ;;  %5809 = vmatmul.mubr.bf16.gmra.mrb[148].mxu0 %v5666_v56 }
 0xda4   : > { %v10532_v49 = vpop.eup %10531  ;;  %v5626_v57 = vmul.f32 %v10530_v21, %v12652_v20 }
 0xda5   : > { %v10534_v63 = vpop.eup %10533  ;;  %v5627_v13 = vmul.f32 %v10532_v49, %v12655_v8 }
 0xda6   : > { %v10536_v29 = vpop.eup %10535  ;;  %v5628_v4 = vmul.f32 %v10534_v63, %v12659_v48  ;;  %v10283_v63 = vld [vmem:[%s13676_s7 + $0x40] ss:$8 sps:$4 sm:$0xff]  }
 0xda7   : > { %v5629_v34 = vmul.f32 %v10536_v29, %v12663_v22  ;;  %v8660_v22 = vld [vmem:[%s13685_s16] ss:$0 sm:$0xff]  ;;  %v10285_v29 = vld [vmem:[%s13676_s7 + $0x44] ss:$8 sps:$4 sm:$0xff]  }
 0xda8   : > { %v5668_v7 = vpack.c.bf16 %v5628_v4, %v5626_v57  ;;  %6052 = vmatprep.subr.bf16.mxu1 %v10285_v29 }
 0xda9   : > { %v5669_v47 = vpack.c.bf16 %v5629_v34, %v5627_v13  ;;  %6053 = vmatpush1.bf16.msra.mxu1 %v10283_v63 }
 0xdab   : > { %v10538_v58 = vpop.eup %10537  ;;  %5816 = vmatprep.mubr.bf16.mxu0 %v5669_v47 }
 0xdac   : > { %v10540_v16 = vpop.eup %10539  ;;  %5817 = vmatmul.mubr.bf16.gmra.mrb[152].mxu0 %v5668_v7  ;;  %v5630_v40 = vmul.f32 %v10538_v58, %v12668_v42 }
 0xdad   : > { %v5631_v0 = vmul.f32 %v10540_v16, %v12671_v2 }
 0xdae   : > { %v5670_v54 = vpack.c.bf16 %v5630_v40, %v5630_v40 }
 0xdaf   : > { %v5671_v32 = vpack.c.bf16 %v5631_v0, %v5631_v0 }
 0xdb1   : > { %5824 = vmatprep.mubr.bf16.mxu0 %v5671_v32 }
 0xdb4   : > { %5825 = vmatmul.mubr.bf16.gmra.mrb[156].mxu0 %v5670_v54 }
 0xe6e   : > { %v9401_v20 = vpop.f32.mrb[144].mxu0 }
 0xe6f   : > { %v9402_v48 = vpop.f32.mrb[145].mxu0 }
 0xe70   : > { %v9403_v53 = vadd.f32 %v9402_v48, %v9401_v20  ;;  %v9404_v8 = vpop.f32.mrb[146].mxu0 }
 0xe71   : > { %v9405_v9 = vpop.f32.mrb[147].mxu0 }
 0xe72   : > { %v5832_v6 = vadd.f32 %v9403_v53, %v12442_v18  ;;  %v9406_v62 = vadd.f32 %v9405_v9, %v9404_v8 }
 0xe74   : > { %v12693_v35 = vadd.f32 %v8660_v22, %v5832_v6  ;;  %v5833_v42 = vadd.f32 %v9406_v62, %v12448_v60 }
 0xe76   : > { %v12696_v2 = vadd.f32 %v8660_v22, %v5833_v42  ;;  %v9407_v26 = vpop.f32.mrb[148].mxu0  ;;  %v5857_v44 = vsel %vm3469_vm0, %v12693_v35, 0.0 }
 0xe77   : > { %5858 = vadd.xlane.f32.xlu0 %v5857_v44  ;;  %v9408_v3 = vpop.f32.mrb[149].mxu0 }
 0xe78   : > { %v9409_v43 = vadd.f32 %v9408_v3, %v9407_v26  ;;  %v9410_v55 = vpop.f32.mrb[150].mxu0  ;;  %v5860_v12 = vsel %vm3469_vm0, %v12696_v2, 0.0 }
 0xe79   : > { %5861 = vadd.xlane.f32.xlu1 %v5860_v12  ;;  %v9411_v18 = vpop.f32.mrb[151].mxu0 }
 0xe7a   : > { %v5834_v28 = vadd.f32 %v9409_v43, %v12445_v17  ;;  %v9412_v1 = vadd.f32 %v9411_v18, %v9410_v55 }
 0xe7c   : > { %v12703_v14 = vadd.f32 %v8660_v22, %v5834_v28  ;;  %v5835_v60 = vadd.f32 %v9412_v1, %v12454_v25 }
 0xe7e   : > { %v12706_v19 = vadd.f32 %v8660_v22, %v5835_v60  ;;  %v5863_v15 = vsel %vm3469_vm0, %v12703_v14, 0.0 }
 0xe7f   : > { %v9413_v46 = vpop.f32.mrb[152].mxu0  ;;  %5864 = vadd.xlane.f32.xlu0 %v5863_v15 }
 0xe80   : > { %v9414_v27 = vpop.f32.mrb[153].mxu0  ;;  %v5866_v24 = vsel %vm3469_vm0, %v12706_v19, 0.0 }
 0xe81   : > { %v9415_v37 = vadd.f32 %v9414_v27, %v9413_v46  ;;  %v9416_v36 = vpop.f32.mrb[154].mxu0  ;;  %5867 = vadd.xlane.f32.xlu1 %v5866_v24  ;;  %v10288_v24 = vld [vmem:[%s13676_s7 + $0x54] ss:$8 sps:$4 sm:$0xff]  }
 0xe82   : > { %v9417_v17 = vpop.f32.mrb[155].mxu0  ;;  %6054 = vmatprep.subr.bf16.mxu1 %v10288_v24 }
 0xe83   : > { %v5836_v52 = vadd.f32 %v9415_v37, %v12462_v59  ;;  %v9418_v33 = vadd.f32 %v9417_v17, %v9416_v36  ;;  %v10286_v37 = vld [vmem:[%s13676_s7 + $0x50] ss:$8 sps:$4 sm:$0xff]   ;;  %v10291_v36 = vld [vmem:[%s13676_s7 + $0x64] ss:$8 sps:$4 sm:$0xff]   ;;  %v10289_v17 = vld [vmem:[%s13676_s7 + $0x60] ss:$8 sps:$4 sm:$0xff]  }
 0xe84   : > { %6055 = vmatpush1.bf16.msra.mxu1 %v10286_v37 }
 0xe85   : > { %v12713_v45 = vadd.f32 %v8660_v22, %v5836_v52  ;;  %v5837_v25 = vadd.f32 %v9418_v33, %v12467_v11  ;;  %6056 = vmatprep.subr.bf16.mxu1 %v10291_v36  ;;  %v10294_v52 = vld [vmem:[%s13676_s7 + $0x74] ss:$8 sps:$4 sm:$0xff]   ;;  %v10292_v33 = vld [vmem:[%s13676_s7 + $0x70] ss:$8 sps:$4 sm:$0xff]  }
 0xe87   : > { %13765 = vst [vmem:[#allocation11_spill] sm:$0xff] %v12713_v45  ;;  %v12716_v31 = vadd.f32 %v8660_v22, %v5837_v25  ;;  %v9419_v50 = vpop.f32.mrb[156].mxu0  ;;  %v5869_v39 = vsel %vm3469_vm0, %v12713_v45, 0.0 }
 0xe88   : > { %5870 = vadd.xlane.f32.xlu0 %v5869_v39  ;;  %v9420_v5 = vpop.f32.mrb[157].mxu0  ;;  %6057 = vmatpush1.bf16.msra.mxu1 %v10289_v17 }
 0xe89   : > { %13766 = vst [vmem:[#allocation12_spill] sm:$0xff] %v12716_v31  ;;  %v9421_v56 = vadd.f32 %v9420_v5, %v9419_v50  ;;  %v9422_v23 = vpop.f32.mrb[158].mxu0  ;;  %v5872_v41 = vsel %vm3469_vm0, %v12716_v31, 0.0  ;;  %6058 = vmatprep.subr.bf16.mxu1 %v10294_v52 }
 0xe8a   : > { %5873 = vadd.xlane.f32.xlu1 %v5872_v41  ;;  %v9423_v59 = vpop.f32.mrb[159].mxu0 }
 0xe8b   : > { %v5838_v21 = vadd.f32 %v9421_v56, %v12465_v10 }
 0xe8c   : > { %6059 = vmatpush1.bf16.msra.mxu1 %v10292_v33 }
 0xe8d   : > { %v12723_v49 = vadd.f32 %v8660_v22, %v5838_v21 }
 0xe8f   : > { %13767 = vst [vmem:[#allocation13_spill] sm:$0xff] %v12723_v49  ;;  %v5875_v11 = vsel %vm3469_vm0, %v12723_v49, 0.0 }
 0xe90   : > { %5876 = vadd.xlane.f32.xlu0 %v5875_v11 }
 0xf04   : > { %v5859_v57 = vpop.xlane.xlu0 %5858 }
 0xf05   : > { %v5878_v4 = vmul.f32 0.015625, %v5859_v57 }
 0xf06   : > { %v5862_v13 = vpop.xlane.xlu1 %5861 }
 0xf07   : > { %v12734_v10 = vsub.f32 %v12693_v35, %v5878_v4  ;;  %v5879_v34 = vmul.f32 0.015625, %v5862_v13  ;;  %v8663_v4 = vld [vmem:[%s13674_s5 + $0x1] ss:$0 sm:$0xff] }
 0xf09   : > { %v12737_v7 = vsub.f32 %v12696_v2, %v5879_v34  ;;  %v5892_v47 = vmul.f32 %v12734_v10, %v12734_v10 }
 0xf0b   : > { %v5899_v58 = vsel %vm3469_vm0, %v5892_v47, 0.0  ;;  %v5893_v16 = vmul.f32 %v12737_v7, %v12737_v7 }
 0xf0c   : > { %v5865_v0 = vpop.xlane.xlu0 %5864  ;;  %5900 = vadd.xlane.f32.xlu1 %v5899_v58 }
 0xf0d   : > { %v5880_v40 = vmul.f32 0.015625, %v5865_v0  ;;  %v5902_v32 = vsel %vm3469_vm0, %v5893_v16, 0.0 }
 0xf0e   : > { %5903 = vadd.xlane.f32.xlu0 %v5902_v32  ;;  %v5868_v54 = vpop.xlane.xlu1 %5867 }
 0xf0f   : > { %v12746_v20 = vsub.f32 %v12703_v14, %v5880_v40  ;;  %v5881_v48 = vmul.f32 0.015625, %v5868_v54  ;;  %v8664_v40 = vld [vmem:[%s13675_s6 + $0x1] ss:$0 sm:$0xff] }
 0xf11   : > { %v12749_v53 = vsub.f32 %v12706_v19, %v5881_v48  ;;  %v5894_v8 = vmul.f32 %v12746_v20, %v12746_v20 }
 0xf13   : > { %v5905_v22 = vsel %vm3469_vm0, %v5894_v8, 0.0  ;;  %v5895_v9 = vmul.f32 %v12749_v53, %v12749_v53 }
 0xf14   : > { %5906 = vadd.xlane.f32.xlu1 %v5905_v22 }
 0xf15   : > { %v5871_v6 = vpop.xlane.xlu0 %5870  ;;  %v5908_v62 = vsel %vm3469_vm0, %v5895_v9, 0.0 }
 0xf16   : > { %v5882_v42 = vmul.f32 0.015625, %v5871_v6  ;;  %5909 = vadd.xlane.f32.xlu0 %v5908_v62 }
 0xf17   : > { %v5874_v26 = vpop.xlane.xlu1 %5873 }
 0xf18   : > { %v12758_v44 = vsub.f32 %v12713_v45, %v5882_v42  ;;  %v5883_v3 = vmul.f32 0.015625, %v5874_v26 }
 0xf1a   : > { %v12761_v43 = vsub.f32 %v12716_v31, %v5883_v3  ;;  %v5896_v55 = vmul.f32 %v12758_v44, %v12758_v44 }
 0xf1c   : > { %v5911_v12 = vsel %vm3469_vm0, %v5896_v55, 0.0  ;;  %v5897_v18 = vmul.f32 %v12761_v43, %v12761_v43 }
 0xf1d   : > { %5912 = vadd.xlane.f32.xlu1 %v5911_v12  ;;  %v5877_v28 = vpop.xlane.xlu0 %5876 }
 0xf1e   : > { %v5884_v1 = vmul.f32 0.015625, %v5877_v28  ;;  %v5914_v60 = vsel %vm3469_vm0, %v5897_v18, 0.0 }
 0xf1f   : > { %5915 = vadd.xlane.f32.xlu0 %v5914_v60 }
 0xf20   : > { %v12770_v15 = vsub.f32 %v12723_v49, %v5884_v1 }
 0xf22   : > { %v5898_v46 = vmul.f32 %v12770_v15, %v12770_v15 }
 0xf24   : > { %v5917_v27 = vsel %vm3469_vm0, %v5898_v46, 0.0 }
 0xf25   : > { %5918 = vadd.xlane.f32.xlu1 %v5917_v27 }
 0xf99   : > { %v5901_v25 = vpop.xlane.xlu1 %5900 }
 0xf9a   : > { %v5920_v50 = vmul.f32 0.015625, %v5901_v25 }
 0xf9b   : > { %v5904_v39 = vpop.xlane.xlu0 %5903 }
 0xf9c   : > { %v5927_v5 = vadd.f32 1e-05, %v5920_v50  ;;  %v5921_v56 = vmul.f32 0.015625, %v5904_v39 }
 0xf9e   : > { %10541 = vrsqrt.f32 %v5927_v5  ;;  %v5928_v23 = vadd.f32 1e-05, %v5921_v56 }
 0xfa0   : > { %10543 = vrsqrt.f32 %v5928_v23 }
 0xfa1   : > { %v5907_v41 = vpop.xlane.xlu1 %5906 }
 0xfa2   : > { %v5922_v59 = vmul.f32 0.015625, %v5907_v41 }
 0xfa3   : > { %v5910_v21 = vpop.xlane.xlu0 %5909 }
 0xfa4   : > { %v5929_v11 = vadd.f32 1e-05, %v5922_v59  ;;  %v5923_v63 = vmul.f32 0.015625, %v5910_v21 }
 0xfa6   : > { %10545 = vrsqrt.f32 %v5929_v11  ;;  %v5930_v29 = vadd.f32 1e-05, %v5923_v63 }
 0xfa8   : > { %v10542_v57 = vpop.eup %10541  ;;  %10547 = vrsqrt.f32 %v5930_v29 }
 0xfa9   : > { %v5941_v13 = vmul.f32 %v10542_v57, %v12734_v10 }
 0xfaa   : > { %v10544_v34 = vpop.eup %10543  ;;  %v5913_v47 = vpop.xlane.xlu1 %5912 }
 0xfab   : > { %v5954_v58 = vmul.f32 %v8663_v4, %v5941_v13  ;;  %v5942_v16 = vmul.f32 %v10544_v34, %v12737_v7  ;;  %v5924_v0 = vmul.f32 0.015625, %v5913_v47 }
 0xfac   : > { %v5916_v32 = vpop.xlane.xlu0 %5915 }
 0xfad   : > { %v5955_v54 = vmul.f32 %v8663_v4, %v5942_v16  ;;  %v5931_v48 = vadd.f32 1e-05, %v5924_v0  ;;  %v5925_v8 = vmul.f32 0.015625, %v5916_v32  ;;  %v5967_v22 = vadd.f32 %v8664_v40, %v5954_v58 }
 0xfaf   : > { %v5968_v9 = vadd.f32 %v8664_v40, %v5955_v54  ;;  %10549 = vrsqrt.f32 %v5931_v48  ;;  %v5932_v6 = vadd.f32 1e-05, %v5925_v8 }
 0xfb0   : > { %v10546_v62 = vpop.eup %10545 }
 0xfb1   : > { %10551 = vrsqrt.f32 %v5932_v6  ;;  %v5983_v10 = vpack.c.bf16 %v5968_v9, %v5967_v22  ;;  %v5943_v42 = vmul.f32 %v10546_v62, %v12746_v20 }
 0xfb2   : > { %v10548_v26 = vpop.eup %10547  ;;  %v5919_v7 = vpop.xlane.xlu1 %5918 }
 0xfb3   : > { %v5926_v3 = vmul.f32 0.015625, %v5919_v7  ;;  %8682 = vmatmul.mubr.msk.bf16.vlgmr.msra.gmra.mrb[152].mxu1 %vm3469_vm0, %v5983_v10  ;;  %v5944_v55 = vmul.f32 %v10548_v26, %v12749_v53  ;;  %v5956_v12 = vmul.f32 %v8663_v4, %v5943_v42 }
 0xfb4   : > { %6094 = vmatprep.mubr.bf16.mxu1 %v13762_v30 }
 0xfb5   : > { %v5933_v18 = vadd.f32 1e-05, %v5926_v3  ;;  %v5957_v28 = vmul.f32 %v8663_v4, %v5944_v55  ;;  %v5969_v1 = vadd.f32 %v8664_v40, %v5956_v12 }
 0xfb7   : > { %10553 = vrsqrt.f32 %v5933_v18  ;;  %v5970_v60 = vadd.f32 %v8664_v40, %v5957_v28 }
 0xfb9   : > { %v10550_v46 = vpop.eup %10549  ;;  %v5984_v27 = vpack.c.bf16 %v5970_v60, %v5969_v1 }
 0xfba   : > { %v5945_v24 = vmul.f32 %v10550_v46, %v12758_v44 }
 0xfbb   : > { %v10552_v20 = vpop.eup %10551  ;;  %8683 = vmatmul.mubr.msk.bf16.gmra.mrb[156].mxu1 %vm3469_vm0, %v5984_v27 }
 0xfbc   : > { %6104 = vmatprep.mubr.bf16.mxu1 %v13762_v30  ;;  %v5946_v37 = vmul.f32 %v10552_v20, %v12761_v43  ;;  %v5958_v53 = vmul.f32 %v8663_v4, %v5945_v24  ;;  %v8673_v43 = vld [vmem:[%s13677_s8 + $0x2] sm:$0x3] }
 0xfbd   : > { %v5993_v56 = vrot.slane %v8673_v43, %v13763_v61  ;;  %v5997_v41 = vrot.slane %v8673_v43, %v13764_v51 }
 0xfbe   : > { %v5959_v36 = vmul.f32 %v8663_v4, %v5946_v37  ;;  %v5971_v17 = vadd.f32 %v8664_v40, %v5958_v53 }
 0xfc0   : > { %v5972_v52 = vadd.f32 %v8664_v40, %v5959_v36 }
 0xfc1   : > { %v10554_v33 = vpop.eup %10553 }
 0xfc2   : > { %v5985_v25 = vpack.c.bf16 %v5972_v52, %v5971_v17  ;;  %v5947_v50 = vmul.f32 %v10554_v33, %v12770_v15 }
 0xfc4   : > { %8684 = vmatmul.mubr.msk.bf16.gmra.mrb[160].mxu1 %vm3469_vm0, %v5985_v25  ;;  %v5960_v39 = vmul.f32 %v8663_v4, %v5947_v50 }
 0xfc5   : > { %6114 = vmatprep.mubr.bf16.mxu1 %v13762_v30 }
 0xfc6   : > { %v5973_v44 = vadd.f32 %v8664_v40, %v5960_v39 }
 0xfc8   : > { %v5986_v5 = vpack.c.bf16 %v5973_v44, %v5973_v44 }
 0xfcc   : > { %8685 = vmatmul.mubr.msk.bf16.gmra.mrb[164].mxu1 %vm3469_vm0, %v5986_v5 }
0x1086   : > { %v6086_v23 = vpop.f32.mrb[152].mxu1 }
0x1087   : > { %v6088_v59 = vpop.f32.mrb[153].mxu1  ;;  %v6087_v21 = vadd.f32 %v6086_v23, %v5993_v56 }
0x1088   : > { %v6090_v15 = vpop.f32.mrb[154].mxu1  ;;  %v6089_v29 = vadd.f32 %v6088_v59, %v5997_v41 }
0x1089   : > { %v6091_v11 = vadd.f32 %v6090_v15, %v5993_v56  ;;  %v6092_v63 = vpop.f32.mrb[155].mxu1 }
0x108a   : > { %v6093_v57 = vadd.f32 %v6092_v63, %v5997_v41 }
0x108b   : > { %v12818_v4 = vpack.c.bf16 %v6091_v11, %v6087_v21 }
0x108c   : > { %v12820_v13 = vpack.c.bf16 %v6093_v57, %v6089_v29 }
0x108d   : > { %6131 = vrot.lane.b32.xlu0 %v12818_v4, %s10805_s20  ;;  %9694 = vmatprep.mubr.msk.bf16.mxu0 %vm3874_vm1, %v12818_v4 }
0x108e   : > { %v6096_v34 = vpop.f32.mrb[156].mxu1  ;;  %9702 = vmatprep.subr.bf16.mxu1 %v12820_v13 }
0x108f   : > { %v6098_v47 = vpop.f32.mrb[157].mxu1  ;;  %9703 = vmatpush3.bf16.msra.mxu1 %v12820_v13  ;;  %v6097_v16 = vadd.f32 %v6096_v34, %v5993_v56 }
0x1090   : > { %v6100_v58 = vpop.f32.mrb[158].mxu1  ;;  %v6099_v32 = vadd.f32 %v6098_v47, %v5997_v41 }
0x1091   : > { %v6101_v0 = vadd.f32 %v6100_v58, %v5993_v56  ;;  %6413 = vrot.lane.b32.xlu0 %v12818_v4, %s13768_s29  ;;  %v6102_v40 = vpop.f32.mrb[159].mxu1 }
0x1092   : > { %v6103_v54 = vadd.f32 %v6102_v40, %v5997_v41 }
0x1093   : > { %v12830_v48 = vpack.c.bf16 %v6101_v0, %v6097_v16 }
0x1094   : > { %v12832_v8 = vpack.c.bf16 %v6103_v54, %v6099_v32 }
0x1095   : > { %6133 = vrot.lane.b32.xlu1 %v12830_v48, %s10805_s20 }
0x1096   : > { %9704 = vmatprep.subr.bf16.mxu1 %v12832_v8 }
0x1097   : > { %v6106_v22 = vpop.f32.mrb[160].mxu1  ;;  %9705 = vmatpush3.bf16.msra.mxu1 %v12832_v8 }
0x1098   : > { %v6108_v9 = vpop.f32.mrb[161].mxu1  ;;  %v6107_v62 = vadd.f32 %v6106_v22, %v5993_v56 }
0x1099   : > { %v6110_v6 = vpop.f32.mrb[162].mxu1  ;;  %v6109_v26 = vadd.f32 %v6108_v9, %v5997_v41 }
0x109a   : > { %v6111_v10 = vadd.f32 %v6110_v6, %v5993_v56  ;;  %v6112_v42 = vpop.f32.mrb[163].mxu1 }
0x109b   : > { %v6113_v7 = vadd.f32 %v6112_v42, %v5997_v41 }
0x109c   : > { %v12838_v3 = vpack.c.bf16 %v6111_v10, %v6107_v62 }
0x109d   : > { %v12840_v55 = vpack.c.bf16 %v6113_v7, %v6109_v26 }
0x109e   : > { %6417 = vrot.lane.b32.xlu0 %v12838_v3, %s13768_s29  ;;  %6135 = vrot.lane.b32.xlu1 %v12838_v3, %s10805_s20 }
0x109f   : > { %v6116_v12 = vpop.f32.mrb[164].mxu1  ;;  %9706 = vmatprep.subr.bf16.mxu1 %v12840_v55 }
0x10a0   : > { %v6117_v18 = vadd.f32 %v6116_v12, %v5993_v56  ;;  %v6118_v28 = vpop.f32.mrb[165].mxu1  ;;  %9707 = vmatpush3.bf16.msra.mxu1 %v12840_v55 }
0x10a1   : > { %v6119_v1 = vadd.f32 %v6118_v28, %v5997_v41  ;;  %v6120_v60 = vpop.f32.mrb[166].mxu1 }
0x10a2   : > { %v12848_v46 = vpack.c.bf16 %v6117_v18, %v6117_v18  ;;  %6405 = vrot.lane.b32.xlu0 %v12818_v4, %s13769_s0  ;;  %v6121_v27 = vpop.f32.mrb[167].mxu1 }
0x10a3   : > { %v12852_v24 = vpack.c.bf16 %v6119_v1, %v6119_v1 }
0x10a4   : > { %6137 = vrot.lane.b32.xlu1 %v12848_v46, %s10805_s20  ;;  %s13770_s20 = smov 32  }
0x10a5   : > { %9866 = vmatprep.subr.msk.bf16.mxu1 %vm4061_vm2, %v12852_v24  ;;  %v6325_v20 = vsel %vm4061_vm2, %v12852_v24, 0 }
0x10a6   : > { %6409 = vrot.lane.b32.xlu0 %v12838_v3, %s13769_s0  ;;  %9709 = vmatpush3.bf16.msra.mxu1 %v6325_v20 }
0x10a8   : > { %6415 = vrot.lane.b32.xlu1 %v12830_v48, %s13768_s29 }
0x10aa   : > { %6596 = vrot.lane.b32.xlu0 %v12832_v8, %s13769_s0 }
0x10ac   : > { %6419 = vrot.lane.b32.xlu1 %v12848_v46, %s13768_s29 }
0x10b0   : > { %6407 = vrot.lane.b32.xlu1 %v12830_v48, %s13769_s0 }
0x10b4   : > { %6411 = vrot.lane.b32.xlu1 %v12848_v46, %s13769_s0 }
0x10b8   : > { %6594 = vrot.lane.b32.xlu1 %v12820_v13, %s13769_s0 }
0x10bc   : > { %6598 = vrot.lane.b32.xlu1 %v12840_v55, %s13769_s0 }
0x10ff   : > { %v6132_v37 = vpop.permute.xlu0 %6131 }
0x1100   : > { %9862 = vmatprep.subr.msk.bf16.mxu0 %vm3874_vm1, %v6132_v37  ;;  %v6152_v53 = vsel %vm3874_vm1, %v6132_v37, 0 }
0x1101   : > { %9687 = vmatpush3.bf16.xpose.msra.mxu0 %v6152_v53 }
0x1103   : > { %v6414_v39 = vpop.permute.xlu0 %6413 }
0x1104   : > { %v6434_v43 = vsel %vm3874_vm1, %v6414_v39, 0 }
0x1107   : > { %v6134_v36 = vpop.permute.xlu1 %6133 }
0x1108   : > { %9863 = vmatprep.subr.msk.bf16.mxu0 %vm3874_vm1, %v6134_v36  ;;  %v6155_v17 = vsel %vm3874_vm1, %v6134_v36, 0 }
0x1109   : > { %9689 = vmatpush3.bf16.xpose.msra.mxu0 %v6155_v17 }
0x1110   : > { %v6136_v52 = vpop.permute.xlu1 %6135  ;;  %v6418_v23 = vpop.permute.xlu0 %6417 }
0x1111   : > { %9864 = vmatprep.subr.msk.bf16.mxu0 %vm3874_vm1, %v6136_v52  ;;  %v6158_v33 = vsel %vm3874_vm1, %v6136_v52, 0  ;;  %v6440_v11 = vsel %vm3874_vm1, %v6418_v23, 0 }
0x1112   : > { %9691 = vmatpush3.bf16.xpose.msra.mxu0 %v6158_v33 }
0x1114   : > { %v6406_v59 = vpop.permute.xlu0 %6405 }
0x1116   : > { %v6138_v25 = vpop.permute.xlu1 %6137 }
0x1117   : > { %9865 = vmatprep.subr.msk.bf16.mxu0 %vm3874_vm1, %v6138_v25  ;;  %v6161_v50 = vsel %vm3874_vm1, %v6138_v25, 0 }
0x1118   : > { %v6410_v29 = vpop.permute.xlu0 %6409 }
0x111a   : > { %9693 = vmatpush3.bf16.xpose.msra.mxu0 %v6161_v50  ;;  %v6416_v44 = vpop.permute.xlu1 %6415 }
0x111b   : > { %9867 = vmatprep.subr.msk.bf16.mxu0 %vm3874_vm1, %v6414_v39  ;;  %v6437_v15 = vsel %vm3874_vm1, %v6416_v44, 0 }
0x111e   : > { %v6420_v5 = vpop.permute.xlu1 %6419 }
0x111f   : > { %v6443_v63 = vsel %vm3874_vm1, %v6420_v5, 0 }
0x1121   : > { %9695 = vmatmul.mubr.msk.bf16.vlgmr.msra.gmra.mrb[160].mxu0 %vm3874_vm1, %v12830_v48 }
0x1122   : > { %9698 = vmatprep.mubr.msk.bf16.mxu0 %vm3874_vm1, %v12838_v3  ;;  %9719 = vmatpush3.bf16.xpose.msra.mxu0 %v6434_v43  ;;  %v6408_v56 = vpop.permute.xlu1 %6407 }
0x1123   : > { %9868 = vmatprep.subr.msk.bf16.mxu0 %vm3874_vm1, %v6416_v44 }
0x1126   : > { %v6412_v41 = vpop.permute.xlu1 %6411 }
0x1129   : > { %9699 = vmatmul.mubr.msk.bf16.gmra.mrb[164].mxu0 %vm3874_vm1, %v12848_v46 }
0x112a   : > { %9721 = vmatpush3.bf16.xpose.msra.mxu0 %v6437_v15  ;;  %9726 = vmatprep.mubr.msk.bf16.mxu0 %vm3874_vm1, %v6406_v59  ;;  %v12895_v21 = vpop.permute.xlu1 %6594 }
0x112b   : > { %9869 = vmatprep.subr.msk.bf16.mxu0 %vm3874_vm1, %v6418_v23  ;;  %9734 = vmatprep.subr.bf16.mxu1 %v12895_v21 }
0x1132   : > { %9723 = vmatpush3.bf16.xpose.msra.mxu0 %v6440_v11 }
0x1133   : > { %9870 = vmatprep.subr.msk.bf16.mxu0 %vm3874_vm1, %v6420_v5 }
0x113a   : > { %9725 = vmatpush3.bf16.xpose.msra.mxu0 %v6443_v63 }
0x1141   : > { %9727 = vmatmul.mubr.msk.bf16.vlgmr.msra.gmra.mrb[168].mxu0 %vm3874_vm1, %v6408_v56 }
0x1142   : > { %9730 = vmatprep.mubr.msk.bf16.mxu0 %vm3874_vm1, %v6410_v29 }
0x1149   : > { %9731 = vmatmul.mubr.msk.bf16.gmra.mrb[172].mxu0 %vm3874_vm1, %v6412_v41 }
0x11f4   : > { %v9696_v57 = vpop.f32.mrb[160].mxu0 }
0x11f5   : > { %v6229_v34 = vmul.f32 0.25, %v9696_v57  ;;  %v6197_v47 = vpop.f32.mrb[161].mxu0 }
0x11f6   : > { %v6227_v58 = vmul.f32 0.25, %v6197_v47  ;;  %v9697_v16 = vpop.f32.mrb[162].mxu0 }
0x11f7   : > { %v12906_v0 = vadd.f32 %v6229_v34, %v11981_v38  ;;  %v6200_v40 = vpop.f32.mrb[163].mxu0  ;;  %v6230_v22 = vmul.f32 0.25, %v9697_v16 }
0x11f8   : > { %v6228_v32 = vmul.f32 0.25, %v6200_v40  ;;  %v12909_v54 = vadd.f32 %v6227_v58, %v11981_v38 }
0x11f9   : > { %v6247_v9 = vsel %vm3977_vm4, %v12906_v0, -inf  ;;  %v12919_v42 = vadd.f32 %v6230_v22, %v11981_v38 }
0x11fa   : > { %v12914_v6 = vadd.f32 %v6228_v32, %v11981_v38  ;;  %6248 = vmax.xlane.f32.xlu0 %v6247_v9  ;;  %v6241_v12 = vsel %vm3977_vm4, %v12909_v54, -inf }
0x11fb   : > { %v6250_v27 = vsel %vm3977_vm4, %v12919_v42, -inf }
0x11fc   : > { %v9700_v62 = vpop.f32.mrb[164].mxu0  ;;  %v6244_v10 = vsel %vm3977_vm4, %v12914_v6, -inf }
0x11fd   : > { %v6233_v26 = vmul.f32 0.25, %v9700_v62  ;;  %6245 = vmax.xlane.f32.xlu1 %v6244_v10  ;;  %v6213_v7 = vpop.f32.mrb[165].mxu0 }
0x11fe   : > { %6242 = vmax.xlane.f32.xlu0 %v6241_v12  ;;  %v9701_v18 = vpop.f32.mrb[166].mxu0  ;;  %v6231_v60 = vmul.f32 0.25, %v6213_v7 }
0x11ff   : > { %v6216_v28 = vpop.f32.mrb[167].mxu0  ;;  %v12924_v1 = vadd.f32 %v6233_v26, %v11981_v38  ;;  %v6597_v18 = vpop.permute.xlu0 %6596 }
0x1200   : > { %v12929_v20 = vadd.f32 %v6231_v60, %v11981_v38  ;;  %v6232_v47 = vmul.f32 0.25, %v6216_v28  ;;  %v6599_v28 = vpop.permute.xlu1 %6598 }
0x1201   : > { %v6259_v37 = vsel %vm3977_vm4, %v12924_v1, -inf }
0x1202   : > { %6251 = vmax.xlane.f32.xlu0 %v6250_v27  ;;  %v6253_v53 = vsel %vm3977_vm4, %v12929_v20, -inf  ;;  %v12958_v58 = vadd.f32 %v6232_v47, %v11981_v38 }
0x1204   : > { %v6256_v22 = vsel %vm3977_vm4, %v12958_v58, -inf }
0x1206   : > { %6260 = vmax.xlane.f32.xlu0 %v6259_v37 }
0x120a   : > { %6254 = vmax.xlane.f32.xlu0 %v6253_v53 }
0x120e   : > { %6600 = vrot.lane.b32.xlu1 %v12852_v24, %s13769_s0  ;;  %s8211_s0 = sshll.u32 %s621_s25, 4  ;;  %s13628_s0 = int_to_ptr.vmem [resolvable:$true] %s8211_s0 }
0x120f   : > { %s10739_s2 = scalar_lea.vmem %s13628_s0, 16 }
0x1210   : > { %p10740_p11 = scmp.ne.s32.totalorder %s13628_s0, %s10739_s2 }
0x1212   : > { %p10741_p12 = pnand %p10740_p11, %p10958_p5 }
0x1214   : > { %v9728_v36 = vpop.f32.mrb[168].mxu0  ;;  %p10742_p13 = pneg %p10741_p12 }
0x1215   : > { %v6479_v17 = vpop.f32.mrb[169].mxu0  ;;  %v6511_v16 = vmul.f32 0.25, %v9728_v36 }
0x1216   : > { %v9729_v52 = vpop.f32.mrb[170].mxu0  ;;  %v6509_v32 = vmul.f32 0.25, %v6479_v17 }
0x1217   : > { %v6512_v33 = vmul.f32 0.25, %v9729_v52  ;;  %v6482_v25 = vpop.f32.mrb[171].mxu0  ;;  %v12961_v40 = vadd.f32 %v6511_v16, %v11981_v38 }
0x1218   : > { %v6510_v50 = vmul.f32 0.25, %v6482_v25  ;;  %v12966_v9 = vadd.f32 %v6509_v32, %v11981_v38 }
0x1219   : > { %v12938_v39 = vadd.f32 %v6512_v33, %v11981_v38  ;;  %v6529_v10 = vsel %vm3977_vm4, %v12961_v40, -inf }
0x121a   : > { %v12941_v44 = vadd.f32 %v6510_v50, %v11981_v38  ;;  %v6523_v7 = vsel %vm3977_vm4, %v12966_v9, -inf }
0x121b   : > { %v6532_v5 = vsel %vm3977_vm4, %v12938_v39, -inf }
0x121c   : > { %6533 = vmax.xlane.f32.xlu0 %v6532_v5  ;;  %v9732_v43 = vpop.f32.mrb[172].mxu0  ;;  %v6526_v11 = vsel %vm3977_vm4, %v12941_v44, -inf }
0x121d   : > { %v6515_v56 = vmul.f32 0.25, %v9732_v43  ;;  %v6495_v23 = vpop.f32.mrb[173].mxu0 }
0x121e   : > { %v9733_v41 = vpop.f32.mrb[174].mxu0  ;;  %v6513_v62 = vmul.f32 0.25, %v6495_v23 }
0x121f   : > { %v12946_v59 = vadd.f32 %v6515_v56, %v11981_v38  ;;  %v6498_v15 = vpop.f32.mrb[175].mxu0 }
0x1220   : > { %v6514_v63 = vmul.f32 0.25, %v6498_v15  ;;  %6527 = vmax.xlane.f32.xlu0 %v6526_v11  ;;  %v12971_v26 = vadd.f32 %v6513_v62, %v11981_v38 }
0x1221   : > { %v6541_v57 = vsel %vm3977_vm4, %v12946_v59, -inf }
0x1222   : > { %v12951_v29 = vadd.f32 %v6514_v63, %v11981_v38  ;;  %v6535_v12 = vsel %vm3977_vm4, %v12971_v26, -inf }
0x1224   : > { %6542 = vmax.xlane.f32.xlu0 %v6541_v57  ;;  %v6538_v34 = vsel %vm3977_vm4, %v12951_v29, -inf }
0x1228   : > { %6539 = vmax.xlane.f32.xlu0 %v6538_v34 }
0x1232   : > { %6257 = vmax.xlane.f32.xlu1 %v6256_v22 }
0x1236   : > { %6530 = vmax.xlane.f32.xlu1 %v6529_v10 }
0x123a   : > { %6524 = vmax.xlane.f32.xlu1 %v6523_v7 }
0x123e   : > { %6536 = vmax.xlane.f32.xlu1 %v6535_v12  ;;  %6706 = vrot.lane.b32.xlu0 %v12818_v4, %s13770_s20 }
0x1242   : > { %6698 = vrot.lane.b32.xlu0 %v12818_v4, %s13771_s23 }
0x1246   : > { %6702 = vrot.lane.b32.xlu0 %v12838_v3, %s13771_s23 }
0x124a   : > { %6883 = vrot.lane.b32.xlu0 %v12820_v13, %s13771_s23 }
0x124f   : > { %6708 = vrot.lane.b32.xlu1 %v12830_v48, %s13770_s20 }
0x1253   : > { %6710 = vrot.lane.b32.xlu1 %v12838_v3, %s13770_s20 }
0x1257   : > { %6712 = vrot.lane.b32.xlu1 %v12848_v46, %s13770_s20 }
0x125b   : > { %6700 = vrot.lane.b32.xlu1 %v12830_v48, %s13771_s23 }
0x125f   : > { %6704 = vrot.lane.b32.xlu1 %v12848_v46, %s13771_s23 }
0x1263   : > { %6885 = vrot.lane.b32.xlu1 %v12832_v8, %s13771_s23 }
0x1267   : > { %6887 = vrot.lane.b32.xlu1 %v12840_v55, %s13771_s23 }
0x126b   : > { %6889 = vrot.lane.b32.xlu1 %v12852_v24, %s13771_s23 }
0x1287   : > { %v6249_v60 = vpop.xlane.xlu0 %6248 }
0x1288   : > { %v6264_v37 = vsub.f32 %v12906_v0, %v6249_v60 }
0x128a   : > { %v6246_v27 = vpop.xlane.xlu1 %6245  ;;  %v6273_v25 = vmul.f32 1.442695, %v6264_v37 }
0x128b   : > { %v6263_v53 = vsub.f32 %v12914_v6, %v6246_v27  ;;  %v6243_v36 = vpop.xlane.xlu0 %6242 }
0x128c   : > { %v6262_v17 = vsub.f32 %v12909_v54, %v6243_v36 }
0x128d   : > { %v6271_v52 = vmul.f32 1.442695, %v6263_v53 }
0x128e   : > { %v6269_v33 = vmul.f32 1.442695, %v6262_v17  ;;  %v6601_v63 = vpop.permute.xlu1 %6600 }
0x128f   : > { %10555 = vpow2.f32 %v6271_v52  ;;  %v6252_v50 = vpop.xlane.xlu0 %6251  ;;  %v6618_v34 = vsel %vm4061_vm2, %v6601_v63, 0 }
0x1290   : > { %10557 = vpow2.f32 %v6269_v33  ;;  %v6265_v5 = vsub.f32 %v12919_v42, %v6252_v50 }
0x1291   : > { %10559 = vpow2.f32 %v6273_v25 }
0x1292   : > { %v6275_v43 = vmul.f32 1.442695, %v6265_v5 }
0x1293   : > { %v6261_v42 = vpop.xlane.xlu0 %6260 }
0x1294   : > { %10561 = vpow2.f32 %v6275_v43  ;;  %v6268_v22 = vsub.f32 %v12924_v1, %v6261_v42 }
0x1296   : > { %v6281_v10 = vmul.f32 1.442695, %v6268_v22 }
0x1297   : > { %v6255_v15 = vpop.xlane.xlu0 %6254 }
0x1298   : > { %10563 = vpow2.f32 %v6281_v10 }
0x1299   : > { %v13005_v56 = vpop.eup %10555 }
0x129a   : > { %v13007_v23 = vpop.eup %10557 }
0x129b   : > { %v6304_v0 = vpack.c.bf16 %v13005_v56, %v13007_v23  ;;  %v13011_v6 = vpop.eup %10559 }
0x129d   : > { %9710 = vmatprep.mubr.msk.bf16.mxu1 %vm3977_vm4, %v6304_v0 }
0x129e   : > { %v13014_v54 = vpop.eup %10561 }
0x129f   : > { %v6305_v41 = vpack.c.bf16 %v13014_v54, %v13011_v6 }
0x12a1   : > { %9711 = vmatmul.mubr.msk.bf16.vlgmr.msra.gmra.mrb[168].mxu1 %vm3977_vm4, %v6305_v41 }
0x12a2   : > { %9735 = vmatpush3.bf16.msra.mxu1 %v12895_v21  ;;  %v6266_v21 = vsub.f32 %v12929_v20, %v6255_v15  ;;  %v13036_v43 = vpop.eup %10563 }
0x12a3   : > { %9736 = vmatprep.subr.bf16.mxu1 %v6597_v18  ;;  %v6307_v15 = vpack.c.bf16 %v13036_v43, %v13036_v43 }
0x12a4   : > { %v6277_v7 = vmul.f32 1.442695, %v6266_v21 }
0x12a6   : > { %9737 = vmatpush3.bf16.msra.mxu1 %v6597_v18  ;;  %10565 = vpow2.f32 %v6277_v7 }
0x12a7   : > { %9738 = vmatprep.subr.bf16.mxu1 %v6599_v28 }
0x12a9   : > { %v6534_v11 = vpop.xlane.xlu0 %6533 }
0x12aa   : > { %9739 = vmatpush3.bf16.msra.mxu1 %v6599_v28  ;;  %v6547_v20 = vsub.f32 %v12938_v39, %v6534_v11 }
0x12ab   : > { %9871 = vmatprep.subr.msk.bf16.mxu1 %vm4061_vm2, %v6601_v63 }
0x12ac   : > { %v6557_v25 = vmul.f32 1.442695, %v6547_v20 }
0x12ad   : > { %v6528_v57 = vpop.xlane.xlu0 %6527 }
0x12ae   : > { %9741 = vmatpush3.bf16.msra.mxu1 %v6618_v34  ;;  %v6545_v60 = vsub.f32 %v12941_v44, %v6528_v57 }
0x12b0   : > { %v6553_v36 = vmul.f32 1.442695, %v6545_v60  ;;  %v13039_v0 = vpop.eup %10565 }
0x12b1   : > { %v6543_v47 = vpop.xlane.xlu0 %6542 }
0x12b2   : > { %v6550_v50 = vsub.f32 %v12946_v59, %v6543_v47 }
0x12b5   : > { %v6540_v16 = vpop.xlane.xlu0 %6539 }
0x12b6   : > { %v6549_v17 = vsub.f32 %v12951_v29, %v6540_v16 }
0x12b8   : > { %v6561_v5 = vmul.f32 1.442695, %v6549_v17 }
0x12b9   : > { %v6707_v32 = vpop.permute.xlu0 %6706 }
0x12ba   : > { %9872 = vmatprep.subr.msk.bf16.mxu1 %vm3874_vm1, %v6707_v32  ;;  %v6727_v7 = vsel %vm3874_vm1, %v6707_v32, 0 }
0x12bd   : > { %v13025_v62 = vpop.permute.xlu0 %6698 }
0x12bf   : > { %v6258_v12 = vpop.xlane.xlu1 %6257 }
0x12c0   : > { %v6267_v18 = vsub.f32 %v12958_v58, %v6258_v12 }
0x12c1   : > { %v13028_v28 = vpop.permute.xlu0 %6702 }
0x12c2   : > { %v6279_v27 = vmul.f32 1.442695, %v6267_v18 }
0x12c3   : > { %v6531_v37 = vpop.xlane.xlu1 %6530 }
0x12c4   : > { %10567 = vpow2.f32 %v6279_v27  ;;  %v6546_v1 = vsub.f32 %v12961_v40, %v6531_v37 }
0x12c5   : > { %v6884_v53 = vpop.permute.xlu0 %6883  ;;  %10569 = vpow2.f32 %v6553_v36 }
0x12c6   : > { %9766 = vmatprep.subr.bf16.mxu0 %v6884_v53  ;;  %v6555_v52 = vmul.f32 1.442695, %v6546_v1 }
0x12c7   : > { %9767 = vmatpush3.bf16.msra.mxu0 %v6884_v53  ;;  %v6525_v58 = vpop.xlane.xlu1 %6524 }
0x12c8   : > { %v6544_v33 = vsub.f32 %v12966_v9, %v6525_v58  ;;  %10571 = vpow2.f32 %v6555_v52  ;;  %v6563_v9 = vmul.f32 1.442695, %v6550_v50 }
0x12ca   : > { %v6551_v44 = vmul.f32 1.442695, %v6544_v33 }
0x12cb   : > { %v6537_v40 = vpop.xlane.xlu1 %6536 }
0x12cc   : > { %10573 = vpow2.f32 %v6551_v44  ;;  %v6548_v39 = vsub.f32 %v12971_v26, %v6537_v40 }
0x12cd   : > { %10575 = vpow2.f32 %v6557_v25 }
0x12ce   : > { %v13041_v29 = vpop.eup %10567  ;;  %v6559_v41 = vmul.f32 1.442695, %v6548_v39  ;;  %10577 = vpow2.f32 %v6561_v5 }
0x12cf   : > { %v6709_v42 = vpop.permute.xlu1 %6708  ;;  %v6306_v59 = vpack.c.bf16 %v13041_v29, %v13039_v0  ;;  %v13049_v11 = vpop.eup %10569 }
0x12d0   : > { %10579 = vpow2.f32 %v6559_v41  ;;  %v6730_v1 = vsel %vm3874_vm1, %v6709_v42, 0 }
0x12d1   : > { %9714 = vmatprep.mubr.msk.bf16.mxu1 %vm3977_vm4, %v6306_v59  ;;  %10581 = vpow2.f32 %v6563_v9 }
0x12d2   : > { %9715 = vmatmul.mubr.msk.bf16.gmra.mrb[172].mxu1 %vm3977_vm4, %v6307_v15  ;;  %v13051_v63 = vpop.eup %10571 }
0x12d3   : > { %v6711_v26 = vpop.permute.xlu1 %6710 }
0x12d4   : > { %v6733_v53 = vsel %vm3874_vm1, %v6711_v26, 0 }
0x12d6   : > { %v13053_v57 = vpop.eup %10573 }
0x12d7   : > { %v13055_v34 = vpop.eup %10575  ;;  %v6713_v47 = vpop.permute.xlu1 %6712  ;;  %v6586_v16 = vpack.c.bf16 %v13049_v11, %v13053_v57 }
0x12d8   : > { %v6587_v22 = vpack.c.bf16 %v13055_v34, %v13051_v63  ;;  %v13061_v21 = vpop.eup %10577 }
0x12d9   : > { %9742 = vmatprep.mubr.msk.bf16.mxu1 %vm3977_vm4, %v6586_v16 }
0x12da   : > { %v13064_v10 = vpop.eup %10579  ;;  %9743 = vmatmul.mubr.msk.bf16.vlgmr.msra.gmra.mrb[176].mxu1 %vm3977_vm4, %v6587_v22 }
0x12db   : > { %9751 = vmatpush3.bf16.xpose.msra.mxu1 %v6727_v7  ;;  %v6701_v12 = vpop.permute.xlu1 %6700  ;;  %v6588_v18 = vpack.c.bf16 %v13061_v21, %v13064_v10  ;;  %v13071_v60 = vpop.eup %10581 }
0x12dc   : > { %9873 = vmatprep.subr.msk.bf16.mxu1 %vm3874_vm1, %v6709_v42  ;;  %v6589_v37 = vpack.c.bf16 %v13071_v60, %v13071_v60 }
0x12dd   : > { %9746 = vmatprep.mubr.msk.bf16.mxu1 %vm3977_vm4, %v6588_v18 }
0x12df   : > { %v6705_v27 = vpop.permute.xlu1 %6704 }
0x12e2   : > { %9747 = vmatmul.mubr.msk.bf16.gmra.mrb[180].mxu1 %vm3977_vm4, %v6589_v37 }
0x12e3   : > { %9753 = vmatpush3.bf16.xpose.msra.mxu1 %v6730_v1  ;;  %9758 = vmatprep.mubr.msk.bf16.mxu1 %vm3874_vm1, %v13025_v62  ;;  %v6886_v32 = vpop.permute.xlu1 %6885  ;;  %v6736_v62 = vsel %vm3874_vm1, %v6713_v47, 0 }
0x12e4   : > { %9874 = vmatprep.subr.msk.bf16.mxu1 %vm3874_vm1, %v6711_v26  ;;  %9768 = vmatprep.subr.bf16.mxu0 %v6886_v32 }
0x12e5   : > { %9769 = vmatpush3.bf16.msra.mxu0 %v6886_v32 }
0x12e7   : > { %v6888_v20 = vpop.permute.xlu1 %6887 }
0x12e8   : > { %9770 = vmatprep.subr.bf16.mxu0 %v6888_v20 }
0x12e9   : > { %9771 = vmatpush3.bf16.msra.mxu0 %v6888_v20 }
0x12eb   : > { %9755 = vmatpush3.bf16.xpose.msra.mxu1 %v6733_v53  ;;  %v6890_v36 = vpop.permute.xlu1 %6889 }
0x12ec   : > { %9875 = vmatprep.subr.msk.bf16.mxu1 %vm3874_vm1, %v6713_v47  ;;  %v6907_v17 = vsel %vm4061_vm2, %v6890_v36, 0  ;;  %9876 = vmatprep.subr.msk.bf16.mxu0 %vm4061_vm2, %v6890_v36 }
0x12ed   : > { %9773 = vmatpush3.bf16.msra.mxu0 %v6907_v17 }
0x12f3   : > { %9757 = vmatpush3.bf16.xpose.msra.mxu1 %v6736_v62 }
0x12fa   : > { %9759 = vmatmul.mubr.msk.bf16.vlgmr.msra.gmra.mrb[184].mxu1 %vm3874_vm1, %v6701_v12 }
0x12fb   : > { %9762 = vmatprep.mubr.msk.bf16.mxu1 %vm3874_vm1, %v13028_v28 }
0x1302   : > { %9763 = vmatmul.mubr.msk.bf16.gmra.mrb[188].mxu1 %vm3874_vm1, %v6705_v27 }
0x1374   : > { %v13090_v52 = vpop.f32.mrb[168].mxu1 }
0x1375   : > { %v13092_v58 = vpop.f32.mrb[169].mxu1 }
0x1376   : > { %v13094_v33 = vpop.f32.mrb[170].mxu1 }
0x1377   : > { %v13096_v25 = vpop.f32.mrb[171].mxu1 }
0x13a5   : > { %v13098_v44 = vpop.f32.mrb[172].mxu1 }
0x13a6   : > { %13772 = vst [vmem:[#allocation16_spill] sm:$0xff] %v13098_v44  ;;  %v13100_v50 = vpop.f32.mrb[173].mxu1 }
0x13a7   : > { %v9717_v5 = vpop.f32.mrb[174].mxu1 }
0x13a8   : > { %v13102_v40 = vpop.f32.mrb[175].mxu1 }
0x13ad   : > { %v13104_v39 = vpop.f32.mrb[176].mxu1 }
0x13ae   : > { %v13106_v28 = vpop.f32.mrb[177].mxu1 }
0x13af   : > { %v13108_v41 = vpop.f32.mrb[178].mxu1 }
0x13b0   : > { %v13110_v9 = vpop.f32.mrb[179].mxu1 }
0x13b5   : > { %v13112_v42 = vpop.f32.mrb[180].mxu1 }
0x13b6   : > { %v13114_v59 = vpop.f32.mrb[181].mxu1 }
0x13b7   : > { %v9749_v15 = vpop.f32.mrb[182].mxu1 }
0x13b8   : > { %v13116_v26 = vpop.f32.mrb[183].mxu1 }
0x13cd   : > { %v9760_v47 = vpop.f32.mrb[184].mxu1 }
0x13ce   : > { %v6804_v16 = vmul.f32 0.25, %v9760_v47  ;;  %v6772_v22 = vpop.f32.mrb[185].mxu1 }
0x13cf   : > { %v6802_v7 = vmul.f32 0.25, %v6772_v22  ;;  %v9761_v12 = vpop.f32.mrb[186].mxu1 }
0x13d0   : > { %v6811_v18 = vadd.f32 %v6804_v16, %v11981_v38  ;;  %v6775_v27 = vpop.f32.mrb[187].mxu1  ;;  %v6805_v32 = vmul.f32 0.25, %v9761_v12 }
0x13d1   : > { %v6803_v37 = vmul.f32 0.25, %v6775_v27  ;;  %v6809_v1 = vadd.f32 %v6802_v7, %v11981_v38 }
0x13d2   : > { %v6822_v20 = vsel %vm3977_vm4, %v6811_v18, -inf  ;;  %v6812_v62 = vadd.f32 %v6805_v32, %v11981_v38 }
0x13d3   : > { %v6810_v53 = vadd.f32 %v6803_v37, %v11981_v38  ;;  %6823 = vmax.xlane.f32.xlu0 %v6822_v20  ;;  %v6816_v47 = vsel %vm3977_vm4, %v6809_v1, -inf }
0x13d4   : > { %v6825_v27 = vsel %vm3977_vm4, %v6812_v62, -inf }
0x13d5   : > { %v9764_v36 = vpop.f32.mrb[188].mxu1  ;;  %v6819_v17 = vsel %vm3977_vm4, %v6810_v53, -inf }
0x13d6   : > { %v6808_v5 = vmul.f32 0.25, %v9764_v36  ;;  %6820 = vmax.xlane.f32.xlu1 %v6819_v17  ;;  %v6788_v15 = vpop.f32.mrb[189].mxu1 }
0x13d7   : > { %6817 = vmax.xlane.f32.xlu0 %v6816_v47  ;;  %v9765_v16 = vpop.f32.mrb[190].mxu1  ;;  %v6806_v12 = vmul.f32 0.25, %v6788_v15 }
0x13d8   : > { %v6791_v22 = vpop.f32.mrb[191].mxu1  ;;  %v6815_v7 = vadd.f32 %v6808_v5, %v11981_v38 }
0x13d9   : > { %v6813_v37 = vadd.f32 %v6806_v12, %v11981_v38  ;;  %v6807_v36 = vmul.f32 0.25, %v6791_v22 }
0x13da   : > { %v6834_v20 = vsel %vm3977_vm4, %v6815_v7, -inf }
0x13db   : > { %6826 = vmax.xlane.f32.xlu0 %v6825_v27  ;;  %v6828_v32 = vsel %vm3977_vm4, %v6813_v37, -inf  ;;  %v6814_v17 = vadd.f32 %v6807_v36, %v11981_v38 }
0x13dd   : > { %v6831_v5 = vsel %vm3977_vm4, %v6814_v17, -inf }
0x13df   : > { %6835 = vmax.xlane.f32.xlu0 %v6834_v20 }
0x13e3   : > { %6829 = vmax.xlane.f32.xlu0 %v6828_v32 }
0x13e7   : > { %6997 = vrot.lane.b32.xlu1 %v12830_v48, %s13773_s3 }
0x13f9   : > { %6995 = vrot.lane.b32.xlu0 %v12818_v4, %s13773_s3 }
0x13fd   : > { %7001 = vrot.lane.b32.xlu0 %v12848_v46, %s13773_s3 }
0x1401   : > { %6989 = vrot.lane.b32.xlu0 %v12830_v48, %s13774_s24 }
0x1405   : > { %6993 = vrot.lane.b32.xlu0 %v12848_v46, %s13774_s24 }
0x140b   : > { %6832 = vmax.xlane.f32.xlu1 %v6831_v5 }
0x141c   : > { %6999 = vrot.lane.b32.xlu1 %v12838_v3, %s13773_s3 }
0x1420   : > { %6987 = vrot.lane.b32.xlu1 %v12818_v4, %s13774_s24 }
0x1424   : > { %6991 = vrot.lane.b32.xlu1 %v12838_v3, %s13774_s24 }
0x1428   : > { %7172 = vrot.lane.b32.xlu1 %v12820_v13, %s13774_s24 }
0x1460   : > { %v6824_v48 = vpop.xlane.xlu0 %6823 }
0x1461   : > { %v6839_v46 = vsub.f32 %v6811_v18, %v6824_v48 }
0x1463   : > { %v6821_v15 = vpop.xlane.xlu1 %6820  ;;  %v6848_v20 = vmul.f32 1.442695, %v6839_v46 }
0x1464   : > { %v6838_v47 = vsub.f32 %v6810_v53, %v6821_v15  ;;  %v6818_v16 = vpop.xlane.xlu0 %6817 }
0x1465   : > { %v6837_v22 = vsub.f32 %v6809_v1, %v6818_v16 }
0x1466   : > { %v6846_v12 = vmul.f32 1.442695, %v6838_v47 }
0x1467   : > { %v6844_v27 = vmul.f32 1.442695, %v6837_v22  ;;  %v6998_v46 = vpop.permute.xlu1 %6997 }
0x1468   : > { %10583 = vpow2.f32 %v6846_v12  ;;  %v6827_v32 = vpop.xlane.xlu0 %6826  ;;  %v7019_v47 = vsel %vm3874_vm1, %v6998_v46, 0 }
0x1469   : > { %10585 = vpow2.f32 %v6844_v27  ;;  %v6840_v36 = vsub.f32 %v6812_v62, %v6827_v32 }
0x146a   : > { %10587 = vpow2.f32 %v6848_v20 }
0x146b   : > { %v6850_v4 = vmul.f32 1.442695, %v6840_v36 }
0x146c   : > { %v6836_v5 = vpop.xlane.xlu0 %6835 }
0x146d   : > { %10589 = vpow2.f32 %v6850_v4  ;;  %v6843_v16 = vsub.f32 %v6815_v7, %v6836_v5 }
0x146f   : > { %v6856_v12 = vmul.f32 1.442695, %v6843_v16 }
0x1470   : > { %v6830_v3 = vpop.xlane.xlu0 %6829 }
0x1471   : > { %v6841_v22 = vsub.f32 %v6813_v37, %v6830_v3  ;;  %10591 = vpow2.f32 %v6856_v12 }
0x1472   : > { %v13150_v51 = vpop.eup %10583 }
0x1473   : > { %v13152_v13 = vpop.eup %10585  ;;  %v6852_v27 = vmul.f32 1.442695, %v6841_v22 }
0x1474   : > { %v6996_v18 = vpop.permute.xlu0 %6995  ;;  %v6879_v1 = vpack.c.bf16 %v13150_v51, %v13152_v13  ;;  %v13157_v53 = vpop.eup %10587 }
0x1475   : > { %9877 = vmatprep.subr.msk.bf16.mxu0 %vm3874_vm1, %v6996_v18  ;;  %v7016_v15 = vsel %vm3874_vm1, %v6996_v18, 0  ;;  %10593 = vpow2.f32 %v6852_v27 }
0x1476   : > { %9774 = vmatprep.mubr.msk.bf16.mxu0 %vm3977_vm4, %v6879_v1 }
0x1477   : > { %v13160_v62 = vpop.eup %10589 }
0x1478   : > { %v6880_v48 = vpack.c.bf16 %v13160_v62, %v13157_v53  ;;  %v7002_v1 = vpop.permute.xlu0 %7001 }
0x1479   : > { %v7025_v5 = vsel %vm3874_vm1, %v7002_v1, 0 }
0x147a   : > { %9775 = vmatmul.mubr.msk.bf16.vlgmr.msra.gmra.mrb[176].mxu0 %vm3977_vm4, %v6880_v48 }
0x147b   : > { %9783 = vmatpush3.bf16.xpose.msra.mxu0 %v7016_v15  ;;  %v13171_v37 = vpop.eup %10591 }
0x147c   : > { %9878 = vmatprep.subr.msk.bf16.mxu0 %vm3874_vm1, %v6998_v46  ;;  %v6990_v16 = vpop.permute.xlu0 %6989 }
0x1480   : > { %v6994_v22 = vpop.permute.xlu0 %6993 }
0x1483   : > { %9785 = vmatpush3.bf16.xpose.msra.mxu0 %v7019_v47  ;;  %v6882_v47 = vpack.c.bf16 %v13171_v37, %v13171_v37 }
0x1498   : > { %v6833_v20 = vpop.xlane.xlu1 %6832 }
0x1499   : > { %v6842_v32 = vsub.f32 %v6814_v17, %v6833_v20  ;;  %v13174_v17 = vpop.eup %10593 }
0x149b   : > { %v6854_v36 = vmul.f32 1.442695, %v6842_v32 }
0x149c   : > { %v7000_v4 = vpop.permute.xlu1 %6999 }
0x149d   : > { %10595 = vpow2.f32 %v6854_v36  ;;  %v7022_v18 = vsel %vm3874_vm1, %v7000_v4, 0  ;;  %9879 = vmatprep.subr.msk.bf16.mxu0 %vm3874_vm1, %v7000_v4 }
0x149e   : > { %9787 = vmatpush3.bf16.xpose.msra.mxu0 %v7022_v18 }
0x149f   : > { %9880 = vmatprep.subr.msk.bf16.mxu0 %vm3874_vm1, %v7002_v1 }
0x14a0   : > { %v6988_v48 = vpop.permute.xlu1 %6987 }
0x14a4   : > { %v6992_v7 = vpop.permute.xlu1 %6991 }
0x14a6   : > { %9789 = vmatpush3.bf16.xpose.msra.mxu0 %v7025_v5 }
0x14a7   : > { %v13176_v3 = vpop.eup %10595 }
0x14a8   : > { %v7173_v15 = vpop.permute.xlu1 %7172  ;;  %v6881_v46 = vpack.c.bf16 %v13176_v3, %v13174_v17 }
0x14a9   : > { %9798 = vmatprep.subr.bf16.mxu1 %v7173_v15 }
0x14aa   : > { %9778 = vmatprep.mubr.msk.bf16.mxu0 %vm3977_vm4, %v6881_v46  ;;  %9799 = vmatpush3.bf16.msra.mxu1 %v7173_v15 }
0x14ab   : > { %9779 = vmatmul.mubr.msk.bf16.gmra.mrb[180].mxu0 %vm3977_vm4, %v6882_v47 }
0x14ac   : > { %9790 = vmatprep.mubr.msk.bf16.mxu0 %vm3874_vm1, %v6988_v48 }
0x14b3   : > { %9791 = vmatmul.mubr.msk.bf16.vlgmr.msra.gmra.mrb[184].mxu0 %vm3874_vm1, %v6990_v16 }
0x14b4   : > { %9794 = vmatprep.mubr.msk.bf16.mxu0 %vm3874_vm1, %v6992_v7 }
0x14bb   : > { %9795 = vmatmul.mubr.msk.bf16.gmra.mrb[188].mxu0 %vm3874_vm1, %v6994_v22 }
0x14bc   : > { %7747 = vmatprep.mubr.bf16.mxu0 %v13762_v30 }
0x154d   : > { %v13189_v12 = vpop.f32.mrb[176].mxu0 }
0x154e   : > { %v13191_v27 = vpop.f32.mrb[177].mxu0 }
0x154f   : > { %v13193_v20 = vpop.f32.mrb[178].mxu0 }
0x1550   : > { %v13195_v32 = vpop.f32.mrb[179].mxu0 }
0x157e   : > { %v13197_v36 = vpop.f32.mrb[180].mxu0 }
0x157f   : > { %v13199_v4 = vpop.f32.mrb[181].mxu0 }
0x1580   : > { %v9781_v18 = vpop.f32.mrb[182].mxu0 }
0x1581   : > { %v13201_v1 = vpop.f32.mrb[183].mxu0 }
0x1586   : > { %v9792_v48 = vpop.f32.mrb[184].mxu0 }
0x1587   : > { %v7093_v7 = vmul.f32 0.25, %v9792_v48  ;;  %v7061_v5 = vpop.f32.mrb[185].mxu0 }
0x1588   : > { %v7091_v15 = vmul.f32 0.25, %v7061_v5  ;;  %v9793_v46 = vpop.f32.mrb[186].mxu0 }
0x1589   : > { %v7100_v47 = vadd.f32 %v7093_v7, %v11981_v38  ;;  %v7094_v16 = vmul.f32 0.25, %v9793_v46  ;;  %v7064_v22 = vpop.f32.mrb[187].mxu0 }
0x158a   : > { %v7098_v61 = vadd.f32 %v7091_v15, %v11981_v38  ;;  %v7092_v31 = vmul.f32 0.25, %v7064_v22 }
0x158b   : > { %v7101_v49 = vadd.f32 %v7094_v16, %v11981_v38  ;;  %v7111_v45 = vsel %vm3977_vm4, %v7100_v47, -inf }
0x158c   : > { %7112 = vmax.xlane.f32.xlu0 %v7111_v45  ;;  %v7105_v18 = vsel %vm3977_vm4, %v7098_v61, -inf  ;;  %v7099_v48 = vadd.f32 %v7092_v31, %v11981_v38  ;;  %v6565_v45 = vsel %vm3977_vm4, %v13053_v57, 0.0  ;;  %v6568_v31 = vsel %vm3977_vm4, %v13049_v11, 0.0 }
0x158d   : > { %7106 = vmax.xlane.f32.xlu1 %v7105_v18  ;;  %v7114_v44 = vsel %vm3977_vm4, %v7101_v49, -inf  ;;  %v6861_v11 = vsel %vm3977_vm4, %v13150_v51, 0.0  ;;  %v6867_v57 = vsel %vm3977_vm4, %v13160_v62, 0.0 }
0x158e   : > { %v9796_v30 = vpop.f32.mrb[188].mxu0  ;;  %v7108_v15 = vsel %vm3977_vm4, %v7099_v48, -inf }
0x158f   : > { %v7077_v5 = vpop.f32.mrb[189].mxu0 }
0x1590   : > { %7115 = vmax.xlane.f32.xlu0 %v7114_v44  ;;  %v9797_v7 = vpop.f32.mrb[190].mxu0  ;;  %v6858_v44 = vsel %vm3977_vm4, %v13152_v13, 0.0 }
0x1591   : > { %v7080_v46 = vpop.f32.mrb[191].mxu0 }
0x1594   : > { %7109 = vmax.xlane.f32.xlu0 %v7108_v15 }
0x159e   : > { %7176 = vrot.lane.b32.xlu1 %v12840_v55, %s13774_s24  ;;  %v6571_v55 = vsel %vm3977_vm4, %v13051_v63, 0.0 }
0x15a2   : > { %7178 = vrot.lane.b32.xlu1 %v12852_v24, %s13774_s24  ;;  %v6864_v24 = vsel %vm3977_vm4, %v13157_v53, 0.0 }
0x15aa   : > { %7174 = vrot.lane.b32.xlu0 %v12832_v8, %s13774_s24  ;;  %v6574_v8 = vsel %vm3977_vm4, %v13055_v34, 0.0 }
0x15c6   : > { %6566 = vadd.xlane.f32.xlu1 %v6565_v45 }
0x15c9   : > { %6569 = vadd.xlane.f32.xlu0 %v6568_v31 }
0x15ca   : > { %6859 = vadd.xlane.f32.xlu1 %v6858_v44 }
0x15cd   : > { %6572 = vadd.xlane.f32.xlu0 %v6571_v55 }
0x15ce   : > { %6865 = vadd.xlane.f32.xlu1 %v6864_v24 }
0x15d1   : > { %6575 = vadd.xlane.f32.xlu0 %v6574_v8 }
0x15d5   : > { %6862 = vadd.xlane.f32.xlu0 %v6861_v11 }
0x15d9   : > { %6868 = vadd.xlane.f32.xlu0 %v6867_v57 }
0x1619   : > { %v7113_v13 = vpop.xlane.xlu0 %7112 }
0x161a   : > { %v7128_v16 = vsub.f32 %v7100_v47, %v7113_v13  ;;  %v7107_v63 = vpop.xlane.xlu1 %7106  ;;  %v7095_v47 = vmul.f32 0.25, %v7077_v5 }
0x161b   : > { %v7126_v22 = vsub.f32 %v7098_v61, %v7107_v63 }
0x161c   : > { %v7137_v18 = vmul.f32 1.442695, %v7128_v16  ;;  %v7096_v16 = vmul.f32 0.25, %v7080_v46 }
0x161d   : > { %v7133_v7 = vmul.f32 1.442695, %v7126_v22  ;;  %v7116_v53 = vpop.xlane.xlu0 %7115 }
0x161e   : > { %v7129_v15 = vsub.f32 %v7101_v49, %v7116_v53  ;;  %v7177_v51 = vpop.permute.xlu1 %7176  ;;  %v7097_v49 = vmul.f32 0.25, %v9796_v30  ;;  %v13249_v53 = vadd.f32 %v7096_v16, %v11981_v38 }
0x161f   : > { %10597 = vpow2.f32 %v7133_v7 }
0x1620   : > { %10599 = vpow2.f32 %v7137_v18  ;;  %v7139_v34 = vmul.f32 1.442695, %v7129_v15  ;;  %v13242_v18 = vadd.f32 %v7097_v49, %v11981_v38 }
0x1621   : > { %v7110_v45 = vpop.xlane.xlu0 %7109 }
0x1622   : > { %v7127_v31 = vsub.f32 %v7099_v48, %v7110_v45  ;;  %10601 = vpow2.f32 %v7139_v34  ;;  %v7179_v8 = vpop.permute.xlu1 %7178  ;;  %v13236_v48 = vadd.f32 %v7095_v47, %v11981_v38  ;;  %v7123_v15 = vsel %vm3977_vm4, %v13242_v18, -inf }
0x1623   : > { %v7196_v11 = vsel %vm4061_vm2, %v7179_v8, 0  ;;  %v7120_v34 = vsel %vm3977_vm4, %v13249_v53, -inf  ;;  %v6286_v45 = vsel %vm3977_vm4, %v13005_v56, 0.0  ;;  %v6292_v38 = vsel %vm3977_vm4, %v13014_v54, 0.0 }
0x1624   : > { %v7135_v44 = vmul.f32 1.442695, %v7127_v31  ;;  %v7117_v30 = vsel %vm3977_vm4, %v13236_v48, -inf  ;;  %v6283_v31 = vsel %vm3977_vm4, %v13007_v23, 0.0 }
0x1625   : > { %v7175_v55 = vpop.permute.xlu0 %7174 }
0x1626   : > { %10603 = vpow2.f32 %v7135_v44  ;;  %9800 = vmatprep.subr.bf16.mxu1 %v7175_v55  ;;  %v6289_v44 = vsel %vm3977_vm4, %v13011_v6, 0.0 }
0x1627   : > { %9801 = vmatpush3.bf16.msra.mxu1 %v7175_v55 }
0x1628   : > { %9802 = vmatprep.subr.bf16.mxu1 %v7177_v51 }
0x1629   : > { %v10598_v62 = vpop.eup %10597 }
0x162a   : > { %v7147_v61 = vsel %vm3977_vm4, %v10598_v62, 0.0  ;;  %v10600_v24 = vpop.eup %10599 }
0x162b   : > { %7148 = vadd.xlane.f32.xlu1 %v7147_v61  ;;  %9803 = vmatpush3.bf16.msra.mxu1 %v7177_v51  ;;  %v7153_v57 = vsel %vm3977_vm4, %v10600_v24, 0.0 }
0x162c   : > { %9881 = vmatprep.subr.msk.bf16.mxu1 %vm4061_vm2, %v7179_v8  ;;  %v10602_v13 = vpop.eup %10601 }
0x162d   : > { %v7169_v7 = vpack.c.bf16 %v10602_v13, %v10600_v24  ;;  %v7156_v46 = vsel %vm3977_vm4, %v10602_v13, 0.0 }
0x162f   : > { %7154 = vadd.xlane.f32.xlu1 %v7153_v57  ;;  %9805 = vmatpush3.bf16.msra.mxu1 %v7196_v11 }
0x1630   : > { %v10604_v5 = vpop.eup %10603 }
0x1631   : > { %v7150_v63 = vsel %vm3977_vm4, %v10604_v5, 0.0  ;;  %v7168_v22 = vpack.c.bf16 %v10604_v5, %v10598_v62 }
0x1632   : > { %7151 = vadd.xlane.f32.xlu0 %v7150_v63 }
0x1633   : > { %9806 = vmatprep.mubr.msk.bf16.mxu1 %vm3977_vm4, %v7168_v22  ;;  %7118 = vmax.xlane.f32.xlu1 %v7117_v30 }
0x1634   : > { %9807 = vmatmul.mubr.msk.bf16.vlgmr.msra.gmra.mrb[192].mxu1 %vm3977_vm4, %v7169_v7 }
0x1636   : > { %7157 = vadd.xlane.f32.xlu0 %v7156_v46 }
0x1637   : > { %7124 = vmax.xlane.f32.xlu1 %v7123_v15 }
0x163a   : > { %7121 = vmax.xlane.f32.xlu0 %v7120_v34 }
0x163b   : > { %6287 = vadd.xlane.f32.xlu1 %v6286_v45 }
0x163e   : > { %6284 = vadd.xlane.f32.xlu0 %v6283_v31  ;;  %v10295_v31 = vld [vmem:[%s13678_s9 + $0x20] sm:$0xff]  }
0x163f   : > { %6293 = vadd.xlane.f32.xlu1 %v6292_v38  ;;  %9814 = vmatprep.subr.bf16.mxu1 %v10295_v31 }
0x1640   : > { %9815 = vmatpush3.bf16.msra.mxu1 %v10295_v31 }
0x1642   : > { %6290 = vadd.xlane.f32.xlu0 %v6289_v44 }
0x1653   : > { %v6567_v51 = vpop.xlane.xlu1 %6566 }
0x1654   : > { %10605 = vrcp.f32 %v6567_v51 }
0x1656   : > { %v6570_v55 = vpop.xlane.xlu0 %6569 }
0x1657   : > { %10607 = vrcp.f32 %v6570_v55  ;;  %v6860_v47 = vpop.xlane.xlu1 %6859 }
0x165a   : > { %v6573_v62 = vpop.xlane.xlu0 %6572 }
0x165b   : > { %10609 = vrcp.f32 %v6573_v62  ;;  %v6866_v24 = vpop.xlane.xlu1 %6865 }
0x165e   : > { %v6576_v56 = vpop.xlane.xlu0 %6575  ;;  %v10606_v61 = vpop.eup %10605 }
0x165f   : > { %10611 = vrcp.f32 %v6576_v56  ;;  %v6691_v54 = vmul.f32 %v10606_v61, %v13106_v28 }
0x1660   : > { %10613 = vrcp.f32 %v6860_v47 }
0x1661   : > { %v10608_v23 = vpop.eup %10607 }
0x1662   : > { %v6863_v8 = vpop.xlane.xlu0 %6862  ;;  %v6692_v49 = vmul.f32 %v10608_v23, %v13110_v9 }
0x1663   : > { %10615 = vrcp.f32 %v6863_v8 }
0x1664   : > { %v9978_v6 = vpack.i.bf16 %v6692_v49, %v6691_v54  ;;  %10617 = vrcp.f32 %v6866_v24 }
0x1665   : > { %v10610_v57 = vpop.eup %10609 }
0x1666   : > { %v6869_v11 = vpop.xlane.xlu0 %6868  ;;  %9979 = vrot.lane.b32.xlu0 %v9978_v6, %s13773_s3  ;;  %v6693_v5 = vmul.f32 %v10610_v57, %v13104_v39 }
0x1667   : > { %10619 = vrcp.f32 %v6869_v11 }
0x1669   : > { %v10612_v13 = vpop.eup %10611 }
0x166a   : > { %v6694_v16 = vmul.f32 %v10612_v13, %v13108_v41  ;;  %v10614_v63 = vpop.eup %10613 }
0x166b   : > { %v6980_v28 = vmul.f32 %v10614_v63, %v13191_v27  ;;  %v10296_v27 = vld [vmem:[%s13678_s9 + $0x28] sm:$0xff]  }
0x166c   : > { %v9983_v22 = vpack.i.bf16 %v6694_v16, %v6693_v5  ;;  %9816 = vmatprep.subr.bf16.mxu1 %v10296_v27 }
0x166d   : > { %v10616_v7 = vpop.eup %10615  ;;  %9817 = vmatpush3.bf16.msra.mxu1 %v10296_v27 }
0x166e   : > { %9984 = vrot.lane.b32.xlu1 %v9983_v22, %s13773_s3  ;;  %v6981_v9 = vmul.f32 %v10616_v7, %v13195_v32  ;;  %v10618_v30 = vpop.eup %10617 }
0x166f   : > { %v6982_v34 = vmul.f32 %v10618_v30, %v13189_v12  ;;  %v10297_v12 = vld [vmem:[%s13678_s9 + $0x30] sm:$0xff]  }
0x1670   : > { %v9988_v46 = vpack.i.bf16 %v6981_v9, %v6980_v28  ;;  %9818 = vmatprep.subr.bf16.mxu1 %v10297_v12 }
0x1671   : > { %v10620_v15 = vpop.eup %10619  ;;  %9819 = vmatpush3.bf16.msra.mxu1 %v10297_v12 }
0x1672   : > { %9989 = vrot.lane.b32.xlu1 %v9988_v46, %s13770_s20  ;;  %v6983_v39 = vmul.f32 %v10620_v15, %v13193_v20 }
0x1674   : > { %v9993_v45 = vpack.i.bf16 %v6983_v39, %v6982_v34  ;;  %v6577_v34 = vsel %vm3977_vm4, %v13064_v10, 0.0  ;;  %v6580_v39 = vsel %vm3977_vm4, %v13061_v21, 0.0 }
0x1676   : > { %9994 = vrot.lane.b32.xlu1 %v9993_v45, %s13770_s20  ;;  %v6870_v45 = vsel %vm3977_vm4, %v13174_v17, 0.0 }
0x16b8   : > { %v7149_v41 = vpop.xlane.xlu1 %7148 }
0x16bc   : > { %v7155_v32 = vpop.xlane.xlu1 %7154 }
0x16bf   : > { %v7152_v20 = vpop.xlane.xlu0 %7151 }
0x16c0   : > { %v7119_v38 = vpop.xlane.xlu1 %7118 }
0x16c1   : > { %v7130_v44 = vsub.f32 %v13236_v48, %v7119_v38 }
0x16c3   : > { %v7158_v51 = vpop.xlane.xlu0 %7157  ;;  %v7141_v47 = vmul.f32 1.442695, %v7130_v44 }
0x16c4   : > { %v7125_v55 = vpop.xlane.xlu1 %7124 }
0x16c5   : > { %v7132_v62 = vsub.f32 %v13242_v18, %v7125_v55  ;;  %10621 = vpow2.f32 %v7141_v47 }
0x16c7   : > { %v7145_v56 = vmul.f32 1.442695, %v7132_v62  ;;  %v7122_v61 = vpop.xlane.xlu0 %7121 }
0x16c8   : > { %v7131_v23 = vsub.f32 %v13249_v53, %v7122_v61  ;;  %v10298_v53 = vld [vmem:[%s13678_s9 + $0x38] sm:$0xff]   ;;  %v6288_v27 = vpop.xlane.xlu1 %6287 }
0x16c9   : > { %10623 = vpow2.f32 %v7145_v56  ;;  %9820 = vmatprep.subr.bf16.mxu1 %v10298_v53 }
0x16ca   : > { %v7143_v24 = vmul.f32 1.442695, %v7131_v23  ;;  %9821 = vmatpush3.bf16.msra.mxu1 %v10298_v53 }
0x16cc   : > { %10625 = vpow2.f32 %v7143_v24  ;;  %v6294_v12 = vpop.xlane.xlu1 %6293 }
0x16cd   : > { %10627 = vrcp.f32 %v7149_v41  ;;  %v6876_v41 = vsel %vm3977_vm4, %v13171_v37, 0.0 }
0x16ce   : > { %10629 = vrcp.f32 %v7155_v32  ;;  %v6285_v32 = vpop.xlane.xlu0 %6284 }
0x16cf   : > { %v13288_v8 = vpop.eup %10621  ;;  %10631 = vrcp.f32 %v7158_v51 }
0x16d0   : > { %10633 = vrcp.f32 %v7152_v20 }
0x16d1   : > { %10635 = vrcp.f32 %v6288_v27 }
0x16d2   : > { %v6291_v10 = vpop.xlane.xlu0 %6290  ;;  %10637 = vrcp.f32 %v6285_v32 }
0x16d3   : > { %v13290_v54 = vpop.eup %10623  ;;  %10639 = vrcp.f32 %v6294_v12 }
0x16d4   : > { %v7171_v18 = vpack.c.bf16 %v13290_v54, %v13290_v54  ;;  %10641 = vrcp.f32 %v6291_v10 }
0x16d6   : > { %v10626_v48 = vpop.eup %10625 }
0x16d7   : > { %v7170_v49 = vpack.c.bf16 %v10626_v48, %v13288_v8  ;;  %v10628_v6 = vpop.eup %10627  ;;  %v7162_v31 = vsel %vm3977_vm4, %v10626_v48, 0.0 }
0x16d8   : > { %v10630_v57 = vpop.eup %10629  ;;  %v9980_v38 = vpop.permute.xlu0 %9979 }
0x16d9   : > { %9810 = vmatprep.mubr.msk.bf16.mxu1 %vm3977_vm4, %v7170_v49  ;;  %v10632_v5 = vpop.eup %10631  ;;  %v9982_v62 = vunpack.i.h.bf16 %v9980_v38  ;;  %v9981_v47 = vunpack.i.l.bf16 %v9980_v38 }
0x16da   : > { %9811 = vmatmul.mubr.msk.bf16.gmra.mrb[196].mxu1 %vm3977_vm4, %v7171_v18  ;;  %v10634_v22 = vpop.eup %10633 }
0x16db   : > { %v10636_v17 = vpop.eup %10635 }
0x16dc   : > { %v10638_v44 = vpop.eup %10637  ;;  %v6399_v24 = vmul.f32 %v10636_v17, %v13096_v25 }
0x16dd   : > { %v10640_v51 = vpop.eup %10639  ;;  %v6398_v23 = vmul.f32 %v10638_v44, %v13092_v58 }
0x16de   : > { %v10642_v37 = vpop.eup %10641  ;;  %v6401_v53 = vmul.f32 %v10640_v51, %v13094_v33 }
0x16df   : > { %v6400_v18 = vmul.f32 %v10642_v37, %v13090_v52  ;;  %v13342_v37 = vld [vmem:[%s13679_s10 + $0x1] ss:$0 sm:$0xff] }
0x16e0   : > { %v9985_v20 = vpop.permute.xlu1 %9984 }
0x16e1   : > { %v9987_v56 = vunpack.i.h.bf16 %v9985_v20  ;;  %v9986_v61 = vunpack.i.l.bf16 %v9985_v20 }
0x16e4   : > { %v9990_v21 = vpop.permute.xlu1 %9989 }
0x16e8   : > { %v9995_v55 = vpop.permute.xlu1 %9994 }
0x16e9   : > { %v9997_v48 = vunpack.i.h.bf16 %v9995_v55  ;;  %v9996_v49 = vunpack.i.l.bf16 %v9995_v55 }
0x1707   : > { %v9808_v11 = vpop.f32.mrb[192].mxu1 }
0x1708   : > { %v7232_v13 = vpop.f32.mrb[193].mxu1  ;;  %v7271_v7 = vmul.f32 %v10630_v57, %v9808_v11  ;;  %v9991_v11 = vunpack.i.l.bf16 %v9990_v21  ;;  %v7360_v57 = vsel %vm3874_vm1, %v6398_v23, %v9981_v47 }
0x1709   : > { %v7269_v16 = vmul.f32 %v10628_v6, %v7232_v13  ;;  %v9809_v63 = vpop.f32.mrb[194].mxu1  ;;  %v9992_v6 = vunpack.i.h.bf16 %v9990_v21  ;;  %v7361_v13 = vsel %vm3874_vm1, %v6399_v24, %v9982_v62 }
0x170a   : > { %v7272_v28 = vmul.f32 %v10632_v5, %v9809_v63  ;;  %v7235_v9 = vpop.f32.mrb[195].mxu1  ;;  %v7362_v63 = vsel %vm3874_vm1, %v6400_v18, %v9986_v61  ;;  %v6301_v18 = vsel %vm3977_vm4, %v13036_v43, 0.0 }
0x170b   : > { %v7270_v30 = vmul.f32 %v10634_v22, %v7235_v9  ;;  %v7368_v9 = vsel %vm5105_vm5, %v7361_v13, %v9992_v6 }
0x170c   : > { %v10003_v46 = vpack.i.bf16 %v7272_v28, %v7271_v7  ;;  %v7369_v7 = vsel %vm5105_vm5, %v7362_v63, %v9996_v49  ;;  %v6295_v49 = vsel %vm3977_vm4, %v13039_v0, 0.0  ;;  %v6298_v0 = vsel %vm3977_vm4, %v13041_v29, 0.0 }
0x170d   : > { %v9998_v15 = vpack.i.bf16 %v7270_v30, %v7269_v16  ;;  %v7363_v16 = vsel %vm3874_vm1, %v6401_v53, %v9987_v56  ;;  %v7367_v30 = vsel %vm5105_vm5, %v7360_v57, %v9991_v11  ;;  %v7159_v53 = vsel %vm3977_vm4, %v13288_v8, 0.0 }
0x170e   : > { %10004 = vrot.lane.b32.xlu1 %v10003_v46, %s13768_s29  ;;  %v7370_v52 = vsel %vm5105_vm5, %v7363_v16, %v9997_v48 }
0x170f   : > { %9999 = vrot.lane.b32.xlu0 %v9998_v15, %s13768_s29 }
0x172e   : > { %6578 = vadd.xlane.f32.xlu0 %v6577_v34 }
0x1732   : > { %6581 = vadd.xlane.f32.xlu0 %v6580_v39  ;;  %6871 = vadd.xlane.f32.xlu1 %v6870_v45 }
0x1736   : > { %6877 = vadd.xlane.f32.xlu1 %v6876_v41 }
0x173a   : > { %7163 = vadd.xlane.f32.xlu1 %v7162_v31 }
0x1780   : > { %v10005_v5 = vpop.permute.xlu1 %10004 }
0x1781   : > { %v10007_v58 = vunpack.i.h.bf16 %v10005_v5  ;;  %v10006_v22 = vunpack.i.l.bf16 %v10005_v5  ;;  %v10000_v25 = vpop.permute.xlu0 %9999 }
0x1782   : > { %v10002_v28 = vunpack.i.h.bf16 %v10000_v25  ;;  %v10001_v33 = vunpack.i.l.bf16 %v10000_v25 }
0x1783   : > { %v7376_v46 = vsel %vm5113_vm6, %v7369_v7, %v10006_v22  ;;  %v7377_v15 = vsel %vm5113_vm6, %v7370_v52, %v10007_v58 }
0x1784   : > { %v7391_v34 = vpack.c.bf16 %v7377_v15, %v7376_v46  ;;  %v7374_v39 = vsel %vm5113_vm6, %v7367_v30, %v10001_v33  ;;  %v7375_v45 = vsel %vm5113_vm6, %v7368_v9, %v10002_v28 }
0x1785   : > { %v7390_v41 = vpack.c.bf16 %v7375_v45, %v7374_v39 }
0x1787   : > { %9822 = vmatprep.mubr.msk.bf16.mxu1 %vm3469_vm0, %v7390_v41 }
0x1788   : > { %9823 = vmatmul.mubr.msk.bf16.vlgmr.msra.gmra.mrb[200].mxu1 %vm3469_vm0, %v7391_v34 }
0x17ad   : > { %v13329_v31 = vpop.f32.mrb[196].mxu1 }
0x17ae   : > { %v13331_v27 = vpop.f32.mrb[197].mxu1 }
0x17af   : > { %v9813_v32 = vpop.f32.mrb[198].mxu1 }
0x17b0   : > { %v13333_v12 = vpop.f32.mrb[199].mxu1 }
0x17bb   : > { %v6579_v10 = vpop.xlane.xlu0 %6578 }
0x17bc   : > { %10643 = vrcp.f32 %v6579_v10 }
0x17bf   : > { %v6582_v20 = vpop.xlane.xlu0 %6581 }
0x17c0   : > { %10645 = vrcp.f32 %v6582_v20  ;;  %v10301_v20 = vld [vmem:[%s13682_s13 + $0x44] ss:$8 sps:$4 sm:$0xff]  }
0x17c1   : > { %7715 = vmatprep.subr.bf16.mxu0 %v10301_v20 }
0x17c6   : > { %v10644_v21 = vpop.eup %10643 }
0x17c7   : > { %v6695_v38 = vmul.f32 %v10644_v21, %v13114_v59  ;;  %v10299_v21 = vld [vmem:[%s13682_s13 + $0x40] ss:$8 sps:$4 sm:$0xff]  }
0x17c8   : > { %7716 = vmatpush1.bf16.msra.mxu0 %v10299_v21  ;;  %v13462_v21 = vld [vmem:[%s13681_s12 + $0x1] ss:$0 sm:$0xff] }
0x17ca   : > { %v10646_v17 = vpop.eup %10645 }
0x17cb   : > { %v6696_v44 = vmul.f32 %v10646_v17, %v13116_v26  ;;  %v10304_v17 = vld [vmem:[%s13682_s13 + $0x54] ss:$8 sps:$4 sm:$0xff]  }
0x17cc   : > { %7717 = vmatprep.subr.bf16.mxu0 %v10304_v17 }
0x17cd   : > { %v10008_v51 = vpack.i.bf16 %v6696_v44, %v6695_v38  ;;  %v10307_v38 = vld [vmem:[%s13682_s13 + $0x64] ss:$8 sps:$4 sm:$0xff]   ;;  %v10305_v44 = vld [vmem:[%s13682_s13 + $0x60] ss:$8 sps:$4 sm:$0xff]  }
0x185b   : > { %v13337_v55 = vpop.f32.mrb[200].mxu1 }
0x185c   : > { %v7464_v62 = vpop.f32.mrb[201].mxu1 }
0x185d   : > { %v7494_v47 = vadd.f32 %v7464_v62, %v12693_v35  ;;  %v13345_v56 = vpop.f32.mrb[202].mxu1  ;;  %v6583_v35 = vsel %vm3977_vm4, %v13071_v60, 0.0  ;;  %v7165_v60 = vsel %vm3977_vm4, %v13290_v54, 0.0 }
0x185e   : > { %v7467_v61 = vpop.f32.mrb[203].mxu1  ;;  %v7497_v62 = vadd.f32 %v13345_v56, %v12706_v19 }
0x185f   : > { %v13348_v23 = vadd.f32 %v13342_v37, %v7494_v47  ;;  %v7495_v59 = vadd.f32 %v7467_v61, %v12696_v2  ;;  %v6873_v2 = vsel %vm3977_vm4, %v13176_v3, 0.0  ;;  %v6872_v3 = vpop.xlane.xlu1 %6871 }
0x1860   : > { %v13427_v47 = vadd.f32 %v13342_v37, %v7497_v62  ;;  %v10314_v62 = vld [vmem:[%s13684_s15 + $0x88] sm:$0xff]  }
0x1861   : > { %v7510_v26 = vadd.f32 %v13342_v37, %v7495_v59  ;;  %v7520_v24 = vsel %vm3469_vm0, %v13348_v23, 0.0 }
0x1862   : > { %7521 = vadd.xlane.f32.xlu0 %v7520_v24  ;;  %v7529_v61 = vsel %vm3469_vm0, %v13427_v47, 0.0 }
0x1863   : > { %v7523_v48 = vsel %vm3469_vm0, %v7510_v26, 0.0  ;;  %v6878_v57 = vpop.xlane.xlu1 %6877 }
0x1864   : > { %7524 = vadd.xlane.f32.xlu1 %v7523_v48 }
0x1866   : > { %6584 = vadd.xlane.f32.xlu0 %v6583_v35 }
0x1867   : > { %v7164_v5 = vpop.xlane.xlu1 %7163 }
0x1868   : > { %6296 = vadd.xlane.f32.xlu1 %v6295_v49 }
0x186a   : > { %6874 = vadd.xlane.f32.xlu0 %v6873_v2 }
0x186c   : > { %6302 = vadd.xlane.f32.xlu1 %v6301_v18 }
0x186e   : > { %7160 = vadd.xlane.f32.xlu0 %v7159_v53 }
0x1872   : > { %7166 = vadd.xlane.f32.xlu0 %v7165_v60 }
0x1876   : > { %6299 = vadd.xlane.f32.xlu0 %v6298_v0 }
0x188c   : > { %10009 = vrot.lane.b32.xlu0 %v10008_v51, %s13773_s3  ;;  %v10310_v51 = vld [vmem:[%s13682_s13 + $0x74] ss:$8 sps:$4 sm:$0xff]  }
0x18ef   : > { %v7522_v6 = vpop.xlane.xlu0 %7521 }
0x18f0   : > { %v7541_v11 = vmul.f32 0.015625, %v7522_v6 }
0x18f2   : > { %v13371_v43 = vsub.f32 %v13348_v23, %v7541_v11 }
0x18f3   : > { %v6585_v13 = vpop.xlane.xlu0 %6584 }
0x18f4   : > { %10647 = vrcp.f32 %v6585_v13  ;;  %v7555_v8 = vmul.f32 %v13371_v43, %v13371_v43 }
0x18f5   : > { %10649 = vrcp.f32 %v6872_v3 }
0x18f6   : > { %v7562_v54 = vsel %vm3469_vm0, %v7555_v8, 0.0 }
0x18f7   : > { %7563 = vadd.xlane.f32.xlu0 %v7562_v54  ;;  %v6875_v29 = vpop.xlane.xlu0 %6874 }
0x18f8   : > { %10651 = vrcp.f32 %v6875_v29 }
0x18f9   : > { %10653 = vrcp.f32 %v7164_v5 }
0x18fa   : > { %10655 = vrcp.f32 %v6878_v57 }
0x18fb   : > { %v7161_v16 = vpop.xlane.xlu0 %7160 }
0x18fc   : > { %10657 = vrcp.f32 %v7161_v16 }
0x18fe   : > { %v10648_v63 = vpop.eup %10647 }
0x18ff   : > { %v6697_v58 = vmul.f32 %v10648_v63, %v13112_v42  ;;  %v10650_v22 = vpop.eup %10649  ;;  %v7167_v32 = vpop.xlane.xlu0 %7166 }
0x1900   : > { %v6984_v7 = vmul.f32 %v10650_v22, %v13199_v4  ;;  %v7525_v4 = vpop.xlane.xlu1 %7524  ;;  %10659 = vrcp.f32 %v7167_v32 }
0x1901   : > { %7295 = vrot.lane.b32.xlu1 %v6697_v58, %s13773_s3  ;;  %v7542_v39 = vmul.f32 0.015625, %v7525_v4 }
0x1902   : > { %v10652_v25 = vpop.eup %10651 }
0x1903   : > { %v6985_v52 = vmul.f32 %v10652_v25, %v13201_v1  ;;  %v10654_v28 = vpop.eup %10653  ;;  %v7496_v1 = vadd.f32 %v13337_v55, %v12703_v14  ;;  %v13388_v45 = vsub.f32 %v7510_v26, %v7542_v39  ;;  %v10308_v55 = vld [vmem:[%s13682_s13 + $0x70] ss:$8 sps:$4 sm:$0xff]   ;;  %v6300_v26 = vpop.xlane.xlu0 %6299 }
0x1904   : > { %v10656_v33 = vpop.eup %10655  ;;  %v7274_v15 = vmul.f32 %v10654_v28, %v13333_v12  ;;  %v6297_v59 = vpop.xlane.xlu1 %6296  ;;  %10661 = vrcp.f32 %v6300_v26  ;;  %v10317_v26 = vld [vmem:[%s13684_s15 + $0xd8] sm:$0xff]  }
0x1905   : > { %v10013_v9 = vpack.i.bf16 %v6985_v52, %v6984_v7  ;;  %v6986_v42 = vmul.f32 %v10656_v33, %v13197_v36  ;;  %v13391_v41 = vadd.f32 %v13342_v37, %v7496_v1  ;;  %10663 = vrcp.f32 %v6297_v59  ;;  %v10316_v59 = vld [vmem:[%s13684_s15 + $0x90] sm:$0xff]  }
0x1906   : > { %v10658_v30 = vpop.eup %10657 }
0x1907   : > { %10014 = vrot.lane.b32.xlu1 %v10013_v9, %s13770_s20  ;;  %v7273_v46 = vmul.f32 %v10658_v30, %v13331_v27  ;;  %v7556_v27 = vmul.f32 %v13388_v45, %v13388_v45  ;;  %v7526_v36 = vsel %vm3469_vm0, %v13391_v41, 0.0  ;;  %v10010_v35 = vpop.permute.xlu0 %10009  ;;  %v13775_v9 = vld [vmem:[#allocation16_spill] sm:$0xff] }
0x1908   : > { %v6303_v24 = vpop.xlane.xlu1 %6302  ;;  %v10011_v56 = vunpack.i.l.bf16 %v10010_v35  ;;  %v10012_v3 = vunpack.i.h.bf16 %v10010_v35  ;;  %v10320_v35 = vld [vmem:[%s13684_s15 + $0xa0] sm:$0xff]  }
0x1909   : > { %v10018_v34 = vpack.i.bf16 %v7274_v15, %v7273_v46  ;;  %v7565_v12 = vsel %vm3469_vm0, %v7556_v27, 0.0  ;;  %10665 = vrcp.f32 %v6303_v24  ;;  %v10318_v24 = vld [vmem:[%s13684_s15 + $0x98] sm:$0xff]  }
0x190a   : > { %v10660_v10 = vpop.eup %10659 }
0x190b   : > { %7323 = vrot.lane.b32.xlu1 %v6986_v42, %s13770_s20  ;;  %v7275_v14 = vmul.f32 %v10660_v10, %v13329_v31  ;;  %v10302_v31 = vld [vmem:[%s13682_s13 + $0x50] ss:$8 sps:$4 sm:$0xff]   ;;  %s10814_s20 = smov [#allocation2]  }
0x190c   : > { %7718 = vmatpush1.bf16.msra.mxu0 %v10302_v31  ;;  %s10743_s3 = sshll.u32 %s10814_s20, 4  ;;  %s10744_s3 = int_to_ptr.vmem [resolvable:$false] %s10743_s3 }
0x190d   : > { %10019 = vrot.lane.b32.xlu0 %v10018_v34, %s13768_s29  ;;  %7719 = vmatprep.subr.bf16.mxu0 %v10307_v38  ;;  %p10746_p0 = scmp.lt.s32.totalorder %s13628_s0, %s10744_s3 }
0x190e   : > { %v10662_v49 = vpop.eup %10661 }
0x190f   : > { %v10664_v18 = vpop.eup %10663  ;;  %v6403_v19 = vmul.f32 %v10662_v49, %v13102_v40  ;;  %v10321_v49 = vld [vmem:[%s13684_s15 + $0xe8] sm:$0xff]  }
0x1910   : > { %7720 = vmatpush1.bf16.msra.mxu0 %v10305_v44  ;;  %v6402_v6 = vmul.f32 %v10664_v18, %v13100_v50  ;;  %v13776_v44 = vmov 0   ;;  %v10323_v18 = vld [vmem:[%s13684_s15 + $0xf0] sm:$0xff]  }
0x1911   : > { %7721 = vmatprep.subr.bf16.mxu0 %v10310_v51  ;;  %v7365_v57 = vsel %vm3874_vm1, %v6403_v19, %v10012_v3  ;;  %v10312_v51 = vld [vmem:[%s13684_s15 + $0x80] sm:$0xff]   ;;  %v10325_v19 = vld [vmem:[%s13684_s15 + $0xf8] sm:$0xff]  }
0x1912   : > { %v7364_v13 = vsel %vm3874_vm1, %v6402_v6, %v10011_v56  ;;  %v10326_v56 = vld [vmem:[%s13684_s15 + $0xb8] sm:$0xff]   ;;  %v13777_v3 = vld [vmem:[#allocation11_spill] sm:$0xff] }
0x1913   : > { %v10666_v7 = vpop.eup %10665 }
0x1914   : > { %7722 = vmatpush1.bf16.msra.mxu0 %v10308_v55  ;;  %v6404_v30 = vmul.f32 %v10666_v7, %v13775_v9  ;;  %v10313_v55 = vld [vmem:[%s13684_s15 + $0xc8] sm:$0xff]   ;;  %v8748_v7 = vld [vmem:[%s13683_s14 + $0x2] sm:$0x3] }
0x192c   : > { %7527 = vadd.xlane.f32.xlu0 %v7526_v36 }
0x192f   : > { %7566 = vadd.xlane.f32.xlu1 %v7565_v12  ;;  %v13455_v12 = vld [vmem:[%s13680_s11 + $0x1] ss:$0 sm:$0xff] }
0x1940   : > { %7351 = vrot.lane.b32.xlu1 %v7275_v14, %s13768_s29  ;;  %s13782_s29 = sld [smem:[#allocation24_spill]] }
0x1946   : > { %s13626_s28 = scalar_lea.hbm %s13782_s29, %s8830_s1  ;;  %s10745_s1 = scalar_lea.vmem %s10744_s3, 32 }
0x1947   : > { %p10747_p1 = scmp.lt.s32.totalorder %s10745_s1, %s10739_s2 }
0x1949   : > { %p10748_p2 = por %p10747_p1, %p10746_p0 }
0x194b   : > { %p10749_p3 = pnand %p10748_p2, %p10742_p13 }
0x1964   : > { %7530 = vadd.xlane.f32.xlu1 %v7529_v61  ;;  %v10315_v61 = vld [vmem:[%s13684_s15 + $0xd0] sm:$0xff]  }
0x1973   : > { %v7296_v48 = vpop.permute.xlu1 %7295 }
0x1974   : > { %v7366_v42 = vsel %vm3874_vm1, %v6404_v30, %v7296_v48  ;;  %v10319_v48 = vld [vmem:[%s13684_s15 + $0xe0] sm:$0xff]  }
0x1975   : > { %v13781_v30 = vld [vmem:[#allocation18_spill] sm:$0xff] }
0x1979   : > { %v10015_v2 = vpop.permute.xlu1 %10014 }
0x197a   : > { %v10017_v60 = vunpack.i.h.bf16 %v10015_v2  ;;  %v10016_v0 = vunpack.i.l.bf16 %v10015_v2  ;;  %v10322_v2 = vld [vmem:[%s13684_s15 + $0xa8] sm:$0xff]  }
0x197c   : > { %v7372_v5 = vsel %vm5105_vm5, %v7365_v57, %v10017_v60  ;;  %v7371_v29 = vsel %vm5105_vm5, %v7364_v13, %v10016_v0 }
0x197d   : > { %v7324_v22 = vpop.permute.xlu1 %7323 }
0x197e   : > { %v7373_v4 = vsel %vm5105_vm5, %v7366_v42, %v7324_v22 }
0x1984   : > { %v7564_v53 = vpop.xlane.xlu0 %7563 }
0x1985   : > { %v7583_v50 = vmul.f32 0.015625, %v7564_v53  ;;  %v10324_v53 = vld [vmem:[%s13684_s15 + $0xb0] sm:$0xff]  }
0x1987   : > { %v7590_v58 = vadd.f32 1e-05, %v7583_v50 }
0x1988   : > { %v10020_v11 = vpop.permute.xlu0 %10019 }
0x1989   : > { %v10022_v8 = vunpack.i.h.bf16 %v10020_v11  ;;  %v10021_v54 = vunpack.i.l.bf16 %v10020_v11  ;;  %10667 = vrsqrt.f32 %v7590_v58 }
0x198b   : > { %v7378_v16 = vsel %vm5113_vm6, %v7371_v29, %v10021_v54  ;;  %v7379_v40 = vsel %vm5113_vm6, %v7372_v5, %v10022_v8  ;;  %v13778_v54 = vld [vmem:[#allocation12_spill] sm:$0xff] }
0x198c   : > { %v7392_v63 = vpack.c.bf16 %v7379_v40, %v7378_v16  ;;  %v13779_v16 = vld [vmem:[#allocation13_spill] sm:$0xff] }
0x198e   : > { %9826 = vmatprep.mubr.msk.bf16.mxu1 %vm3469_vm0, %v7392_v63 }
0x1993   : > { %v10668_v36 = vpop.eup %10667 }
0x1994   : > { %v7604_v32 = vmul.f32 %v10668_v36, %v13371_v43 }
0x1996   : > { %v7617_v14 = vmul.f32 %v13455_v12, %v7604_v32 }
0x1998   : > { %v7630_v31 = vadd.f32 %v13462_v21, %v7617_v14 }
0x19b9   : > { %v7528_v25 = vpop.xlane.xlu0 %7527 }
0x19ba   : > { %v7543_v52 = vmul.f32 0.015625, %v7528_v25 }
0x19bc   : > { %v13441_v28 = vsub.f32 %v13391_v41, %v7543_v52  ;;  %v7567_v33 = vpop.xlane.xlu1 %7566  ;;  %v13780_v52 = vld [vmem:[#allocation17_spill] sm:$0xff] }
0x19bd   : > { %v7584_v46 = vmul.f32 0.015625, %v7567_v33  ;;  %v13540_v33 = vrot.slane %v8748_v7, %v13780_v52 }
0x19be   : > { %v7557_v15 = vmul.f32 %v13441_v28, %v13441_v28 }
0x19bf   : > { %v7591_v34 = vadd.f32 1e-05, %v7584_v46 }
0x19c0   : > { %v7352_v39 = vpop.permute.xlu1 %7351  ;;  %v7568_v1 = vsel %vm3469_vm0, %v7557_v15, 0.0 }
0x19c1   : > { %10669 = vrsqrt.f32 %v7591_v34  ;;  %v7380_v27 = vsel %vm5113_vm6, %v7373_v4, %v7352_v39  ;;  %7569 = vadd.xlane.f32.xlu1 %v7568_v1 }
0x19c2   : > { %v7393_v41 = vpack.c.bf16 %v7380_v27, %v7380_v27 }
0x19c4   : > { %9827 = vmatmul.mubr.msk.bf16.gmra.mrb[204].mxu1 %vm3469_vm0, %v7393_v41 }
0x19cb   : > { %v10670_v10 = vpop.eup %10669 }
0x19cc   : > { %v7605_v20 = vmul.f32 %v10670_v10, %v13388_v45  ;;  %v10311_v45 = vld [vmem:[%s13684_s15 + $0xc0] sm:$0xff]  }
0x19cd   : > { %9497 = vmatprep.subr.bf16.mxu1 %v10311_v45 }
0x19ce   : > { %v7618_v17 = vmul.f32 %v13455_v12, %v7605_v20  ;;  %9498 = vmatpush3.bf16.msra.mxu1 %v10312_v51 }
0x19cf   : > { %9499 = vmatprep.subr.bf16.mxu1 %v10313_v55 }
0x19d0   : > { %v7631_v43 = vadd.f32 %v13462_v21, %v7618_v17 }
0x19d2   : > { %v7646_v38 = vpack.c.bf16 %v7631_v43, %v7630_v31  ;;  %9500 = vmatpush3.bf16.msra.mxu1 %v10314_v62 }
0x19d3   : > { %9501 = vmatprep.subr.bf16.mxu1 %v10315_v61 }
0x19d4   : > { %8757 = vmatmul.mubr.msk.bf16.vlgmr.msra.gmra.mrb[192].mxu0 %vm3469_vm0, %v7646_v38 }
0x19d5   : > { %7757 = vmatprep.mubr.bf16.mxu0 %v13776_v44 }
0x19d6   : > { %9502 = vmatpush3.bf16.msra.mxu1 %v10316_v59 }
0x19d7   : > { %9503 = vmatprep.subr.bf16.mxu1 %v10317_v26 }
0x19da   : > { %9504 = vmatpush3.bf16.msra.mxu1 %v10318_v24 }
0x19db   : > { %9505 = vmatprep.subr.bf16.mxu1 %v10319_v48 }
0x19de   : > { %9506 = vmatpush3.bf16.msra.mxu1 %v10320_v35 }
0x19df   : > { %9507 = vmatprep.subr.bf16.mxu1 %v10321_v49 }
0x19e2   : > { %9508 = vmatpush3.bf16.msra.mxu1 %v10322_v2 }
0x19e3   : > { %9509 = vmatprep.subr.bf16.mxu1 %v10323_v18 }
0x19e6   : > { %9510 = vmatpush3.bf16.msra.mxu1 %v10324_v53 }
0x19e7   : > { %9511 = vmatprep.subr.bf16.mxu1 %v10325_v19 }
0x19ea   : > { %9512 = vmatpush3.bf16.msra.mxu1 %v10326_v56 }
0x19f1   : > { %v7531_v57 = vpop.xlane.xlu1 %7530 }
0x19f2   : > { %v7544_v29 = vmul.f32 0.015625, %v7531_v57 }
0x19f4   : > { %v13529_v58 = vsub.f32 %v13427_v47, %v7544_v29  ;;  %v13545_v47 = vrot.slane %v8748_v7, %v13781_v30 }
0x1a97   : > { %v9828_v60 = vpop.f32.mrb[204].mxu1 }
0x1a98   : > { %v7480_v0 = vpop.f32.mrb[205].mxu1  ;;  %v7500_v40 = vadd.f32 %v9828_v60, %v13779_v16 }
0x1a99   : > { %v7498_v6 = vadd.f32 %v7480_v0, %v13777_v3  ;;  %v9829_v11 = vpop.f32.mrb[206].mxu1  ;;  %v7570_v0 = vpop.xlane.xlu1 %7569 }
0x1a9a   : > { %v7483_v13 = vpop.f32.mrb[207].mxu1  ;;  %v13532_v22 = vadd.f32 %v13342_v37, %v7500_v40  ;;  %v7585_v11 = vmul.f32 0.015625, %v7570_v0 }
0x1a9b   : > { %v13519_v8 = vadd.f32 %v13342_v37, %v7498_v6  ;;  %v7499_v5 = vadd.f32 %v7483_v13, %v13778_v54 }
0x1a9c   : > { %v7538_v9 = vsel %vm3469_vm0, %v13532_v22, 0.0  ;;  %v7592_v29 = vadd.f32 1e-05, %v7585_v11 }
0x1a9d   : > { %v13524_v63 = vadd.f32 %v13342_v37, %v7499_v5  ;;  %v7532_v50 = vsel %vm3469_vm0, %v13519_v8, 0.0  ;;  %v7558_v37 = vmul.f32 %v13529_v58, %v13529_v58 }
0x1a9e   : > { %7533 = vadd.xlane.f32.xlu0 %v7532_v50 }
0x1a9f   : > { %v7535_v25 = vsel %vm3469_vm0, %v13524_v63, 0.0  ;;  %v7571_v39 = vsel %vm3469_vm0, %v7558_v37, 0.0 }
0x1aa2   : > { %7536 = vadd.xlane.f32.xlu0 %v7535_v25 }
0x1aa6   : > { %7539 = vadd.xlane.f32.xlu0 %v7538_v9 }
0x1aa7   : > { %v7749_v46 = vpop.f32.mrb[192].mxu0 }
0x1aa8   : > { %v7750_v15 = vadd.f32 %v7749_v46, %v13540_v33  ;;  %v7751_v42 = vpop.f32.mrb[193].mxu0 }
0x1aa9   : > { %v7752_v34 = vadd.f32 %v7751_v42, %v13545_v47  ;;  %v7753_v4 = vpop.f32.mrb[194].mxu0 }
0x1aaa   : > { %v8761_v1 = vmul.f32 -1.702, %v7750_v15  ;;  %v7754_v27 = vadd.f32 %v7753_v4, %v13540_v33  ;;  %v7755_v41 = vpop.f32.mrb[195].mxu0  ;;  %7572 = vadd.xlane.f32.xlu0 %v7571_v39 }
0x1aab   : > { %v8762_v36 = vmul.f32 -1.702, %v7752_v34  ;;  %v7756_v32 = vadd.f32 %v7755_v41, %v13545_v47 }
0x1aac   : > { %v7814_v10 = vmul.f32 1.442695, %v8761_v1  ;;  %v8763_v14 = vmul.f32 -1.702, %v7754_v27 }
0x1aad   : > { %v7816_v20 = vmul.f32 1.442695, %v8762_v36  ;;  %v8764_v17 = vmul.f32 -1.702, %v7756_v32 }
0x1aae   : > { %10671 = vpow2.f32 %v7814_v10  ;;  %v7818_v31 = vmul.f32 1.442695, %v8763_v14 }
0x1aaf   : > { %10673 = vpow2.f32 %v7816_v20  ;;  %v7820_v43 = vmul.f32 1.442695, %v8764_v17 }
0x1ab0   : > { %10675 = vpow2.f32 %v7818_v31 }
0x1ab1   : > { %10677 = vpow2.f32 %v7820_v43 }
0x1ab8   : > { %v10672_v38 = vpop.eup %10671 }
0x1ab9   : > { %v10674_v45 = vpop.eup %10673  ;;  %v7842_v51 = vadd.f32 1.0, %v10672_v38 }
0x1aba   : > { %v10676_v55 = vpop.eup %10675  ;;  %v7843_v62 = vadd.f32 1.0, %v10674_v45 }
0x1abb   : > { %v10678_v61 = vpop.eup %10677  ;;  %10679 = vrcp.f32 %v7842_v51  ;;  %v7844_v59 = vadd.f32 1.0, %v10676_v55 }
0x1abc   : > { %10681 = vrcp.f32 %v7843_v62  ;;  %v7845_v26 = vadd.f32 1.0, %v10678_v61 }
0x1abd   : > { %10683 = vrcp.f32 %v7844_v59 }
0x1abe   : > { %10685 = vrcp.f32 %v7845_v26 }
0x1abf   : > { %10687 = vrsqrt.f32 %v7592_v29 }
0x1ac5   : > { %v10680_v24 = vpop.eup %10679 }
0x1ac6   : > { %v10682_v48 = vpop.eup %10681  ;;  %v7884_v2 = vmul.f32 %v10680_v24, %v7750_v15 }
0x1ac7   : > { %v10684_v35 = vpop.eup %10683  ;;  %v7885_v53 = vmul.f32 %v10682_v48, %v7752_v34 }
0x1ac8   : > { %v10686_v49 = vpop.eup %10685  ;;  %v7886_v18 = vmul.f32 %v10684_v35, %v7754_v27 }
0x1ac9   : > { %v7887_v19 = vmul.f32 %v10686_v49, %v7756_v32 }
0x1aca   : > { %v7931_v56 = vpack.c.bf16 %v7886_v18, %v7884_v2 }
0x1acb   : > { %v7932_v60 = vpack.c.bf16 %v7887_v19, %v7885_v53 }
0x1acd   : > { %8067 = vmatprep.mubr.bf16.mxu1 %v7932_v60 }
0x1ace   : > { %8068 = vmatmul.mubr.bf16.vlgmr.msra.gmra.mrb[208].mxu1 %v7931_v56 }
0x1b2b   : > { %v7534_v3 = vpop.xlane.xlu0 %7533 }
0x1b2c   : > { %v7545_v6 = vmul.f32 0.015625, %v7534_v3 }
0x1b2e   : > { %v7552_v57 = vsub.f32 %v13519_v8, %v7545_v6 }
0x1b2f   : > { %v7537_v13 = vpop.xlane.xlu0 %7536 }
0x1b30   : > { %v7546_v54 = vmul.f32 0.015625, %v7537_v13  ;;  %v7559_v5 = vmul.f32 %v7552_v57, %v7552_v57 }
0x1b32   : > { %v7553_v16 = vsub.f32 %v13524_v63, %v7546_v54  ;;  %v7574_v40 = vsel %vm3469_vm0, %v7559_v5, 0.0  ;;  %v10688_v63 = vpop.eup %10687 }
0x1b33   : > { %7575 = vadd.xlane.f32.xlu1 %v7574_v40  ;;  %v7540_v50 = vpop.xlane.xlu0 %7539  ;;  %v7606_v42 = vmul.f32 %v10688_v63, %v13441_v28 }
0x1b34   : > { %v7547_v25 = vmul.f32 0.015625, %v7540_v50  ;;  %v7560_v7 = vmul.f32 %v7553_v16, %v7553_v16 }
0x1b35   : > { %v7619_v39 = vmul.f32 %v13455_v12, %v7606_v42 }
0x1b36   : > { %v7554_v52 = vsub.f32 %v13532_v22, %v7547_v25  ;;  %v7577_v9 = vsel %vm3469_vm0, %v7560_v7, 0.0 }
0x1b37   : > { %7578 = vadd.xlane.f32.xlu0 %v7577_v9  ;;  %v7573_v30 = vpop.xlane.xlu0 %7572  ;;  %v7632_v1 = vadd.f32 %v13462_v21, %v7619_v39 }
0x1b38   : > { %v7586_v8 = vmul.f32 0.015625, %v7573_v30  ;;  %v7561_v37 = vmul.f32 %v7554_v52, %v7554_v52 }
0x1b3a   : > { %v7593_v46 = vadd.f32 1e-05, %v7586_v8  ;;  %v7580_v15 = vsel %vm3469_vm0, %v7561_v37, 0.0 }
0x1b3b   : > { %7581 = vadd.xlane.f32.xlu1 %v7580_v15 }
0x1b3c   : > { %10689 = vrsqrt.f32 %v7593_v46 }
0x1b46   : > { %v10690_v34 = vpop.eup %10689 }
0x1b47   : > { %v7607_v4 = vmul.f32 %v10690_v34, %v13529_v58  ;;  %v8824_v58 = vld [vmem:[%s13685_s16 + $0x1] ss:$0 sm:$0xff] }
0x1b49   : > { %v7620_v22 = vmul.f32 %v13455_v12, %v7607_v4 }
0x1b4b   : > { %v7633_v27 = vadd.f32 %v13462_v21, %v7620_v22 }
0x1b4d   : > { %v7647_v41 = vpack.c.bf16 %v7633_v27, %v7632_v1 }
0x1b4f   : > { %8758 = vmatmul.mubr.msk.bf16.gmra.mrb[196].mxu0 %vm3469_vm0, %v7647_v41 }
0x1b50   : > { %7767 = vmatprep.mubr.bf16.mxu0 %v13776_v44 }
0x1ba1   : > { %v9513_v36 = vpop.f32.mrb[208].mxu1 }
0x1ba2   : > { %v9514_v32 = vpop.f32.mrb[209].mxu1 }
0x1ba3   : > { %v9515_v10 = vadd.f32 %v9514_v32, %v9513_v36  ;;  %v9516_v28 = vpop.f32.mrb[210].mxu1 }
0x1ba4   : > { %v9517_v14 = vpop.f32.mrb[211].mxu1 }
0x1ba5   : > { %v8093_v20 = vadd.f32 %v9515_v10, %v13348_v23 }
0x1ba7   : > { %v13572_v17 = vadd.f32 %v8824_v58, %v8093_v20 }
0x1ba9   : > { %v8106_v31 = vsel %vm8105_vm7, %v13572_v17, 0.0 }
0x1baa   : > { %8107 = vadd.xlane.f32.xlu0 %v8106_v31 }
0x1bc0   : > { %v7576_v43 = vpop.xlane.xlu1 %7575 }
0x1bc1   : > { %v7587_v38 = vmul.f32 0.015625, %v7576_v43 }
0x1bc3   : > { %v7594_v45 = vadd.f32 1e-05, %v7587_v38  ;;  %v10812_v38 = vmov 0.0  }
0x1bc4   : > { %v7579_v51 = vpop.xlane.xlu0 %7578  ;;  %9830 = vmatprep.subr.bf16.mxu0 %v10812_v38 }
0x1bc5   : > { %10691 = vrsqrt.f32 %v7594_v45  ;;  %v7588_v55 = vmul.f32 0.015625, %v7579_v51  ;;  %v10328_v45 = vld [vmem:[%s13688_s19 + $0x8] sm:$0xff]   ;;  %v10329_v51 = vld [vmem:[%s13688_s19 + $0x10] sm:$0xff]  }
0x1bc7   : > { %v7595_v62 = vadd.f32 1e-05, %v7588_v55  ;;  %v10330_v55 = vld [vmem:[%s13688_s19 + $0x18] sm:$0xff]  }
0x1bc8   : > { %v7582_v61 = vpop.xlane.xlu1 %7581 }
0x1bc9   : > { %10693 = vrsqrt.f32 %v7595_v62  ;;  %v7589_v59 = vmul.f32 0.015625, %v7582_v61 }
0x1bcb   : > { %v7596_v26 = vadd.f32 1e-05, %v7589_v59 }
0x1bcd   : > { %10695 = vrsqrt.f32 %v7596_v26 }
0x1bcf   : > { %v10692_v23 = vpop.eup %10691 }
0x1bd0   : > { %v7608_v24 = vmul.f32 %v10692_v23, %v7552_v57 }
0x1bd2   : > { %v7621_v49 = vmul.f32 %v13455_v12, %v7608_v24 }
0x1bd3   : > { %v10694_v48 = vpop.eup %10693 }
0x1bd4   : > { %v7609_v35 = vmul.f32 %v10694_v48, %v7553_v16  ;;  %v7634_v53 = vadd.f32 %v13462_v21, %v7621_v49 }
0x1bd6   : > { %v7622_v2 = vmul.f32 %v13455_v12, %v7609_v35 }
0x1bd7   : > { %v10696_v18 = vpop.eup %10695 }
0x1bd8   : > { %v7635_v19 = vadd.f32 %v13462_v21, %v7622_v2  ;;  %v7610_v56 = vmul.f32 %v10696_v18, %v7554_v52 }
0x1bda   : > { %v7648_v60 = vpack.c.bf16 %v7635_v19, %v7634_v53  ;;  %v7623_v0 = vmul.f32 %v13455_v12, %v7610_v56 }
0x1bdc   : > { %8759 = vmatmul.mubr.msk.bf16.gmra.mrb[200].mxu0 %vm3469_vm0, %v7648_v60  ;;  %v7636_v3 = vadd.f32 %v13462_v21, %v7623_v0 }
0x1bdd   : > { %7777 = vmatprep.mubr.bf16.mxu0 %v13776_v44 }
0x1bde   : > { %v7649_v6 = vpack.c.bf16 %v7636_v3, %v7636_v3 }
0x1be4   : > { %8760 = vmatmul.mubr.msk.bf16.gmra.mrb[204].mxu0 %vm3469_vm0, %v7649_v6 }
0x1be5   : > { %9838 = vmatprep.mubr.msk.bf16.mxu0 %vm10813_vm8, %v10812_v38 }
0x1c22   : > { %v7759_v11 = vpop.f32.mrb[196].mxu0 }
0x1c23   : > { %v7760_v57 = vadd.f32 %v7759_v11, %v13540_v33  ;;  %v7761_v13 = vpop.f32.mrb[197].mxu0 }
0x1c24   : > { %v7762_v54 = vadd.f32 %v7761_v13, %v13545_v47  ;;  %v7763_v5 = vpop.f32.mrb[198].mxu0 }
0x1c25   : > { %v8765_v29 = vmul.f32 -1.702, %v7760_v57  ;;  %v7764_v16 = vadd.f32 %v7763_v5, %v13540_v33  ;;  %v7765_v12 = vpop.f32.mrb[199].mxu0 }
0x1c26   : > { %v8766_v40 = vmul.f32 -1.702, %v7762_v54  ;;  %v7766_v50 = vadd.f32 %v7765_v12, %v13545_v47 }
0x1c27   : > { %v7822_v44 = vmul.f32 1.442695, %v8765_v29  ;;  %v8767_v25 = vmul.f32 -1.702, %v7764_v16 }
0x1c28   : > { %v7824_v21 = vmul.f32 1.442695, %v8766_v40  ;;  %v8768_v7 = vmul.f32 -1.702, %v7766_v50 }
0x1c29   : > { %10697 = vpow2.f32 %v7822_v44  ;;  %v7826_v52 = vmul.f32 1.442695, %v8767_v25 }
0x1c2a   : > { %10699 = vpow2.f32 %v7824_v21  ;;  %v7828_v9 = vmul.f32 1.442695, %v8768_v7 }
0x1c2b   : > { %10701 = vpow2.f32 %v7826_v52 }
0x1c2c   : > { %10703 = vpow2.f32 %v7828_v9 }
0x1c33   : > { %v10698_v30 = vpop.eup %10697 }
0x1c34   : > { %v10700_v8 = vpop.eup %10699  ;;  %v7846_v37 = vadd.f32 1.0, %v10698_v30 }
0x1c35   : > { %v10702_v46 = vpop.eup %10701  ;;  %v7847_v15 = vadd.f32 1.0, %v10700_v8 }
0x1c36   : > { %v10704_v63 = vpop.eup %10703  ;;  %10705 = vrcp.f32 %v7846_v37  ;;  %v7848_v42 = vadd.f32 1.0, %v10702_v46 }
0x1c37   : > { %10707 = vrcp.f32 %v7847_v15  ;;  %v7849_v34 = vadd.f32 1.0, %v10704_v63  ;;  %v8108_v4 = vpop.xlane.xlu0 %8107 }
0x1c38   : > { %10709 = vrcp.f32 %v7848_v42  ;;  %v8109_v39 = vmul.f32 0.015625, %v8108_v4 }
0x1c39   : > { %10711 = vrcp.f32 %v7849_v34 }
0x1c3a   : > { %v13590_v22 = vsub.f32 %v13572_v17, %v8109_v39  ;;  %v10327_v17 = vld [vmem:[%s13688_s19] sm:$0xff]  }
0x1c3b   : > { %9831 = vmatpush3.bf16.msra.mxu0 %v10327_v17 }
0x1c3c   : > { %v8111_v1 = vmul.f32 %v13590_v22, %v13590_v22  ;;  %9832 = vmatprep.subr.bf16.mxu0 %v10812_v38 }
0x1c3e   : > { %v8112_v27 = vsel %vm8105_vm7, %v8111_v1, 0.0 }
0x1c3f   : > { %8113 = vadd.xlane.f32.xlu1 %v8112_v27  ;;  %9833 = vmatpush3.bf16.msra.mxu0 %v10328_v45  ;;  %v8104_v45 = vld [vmem:[%s13687_s18] sm:$0x1] }
0x1c40   : > { %v10706_v41 = vpop.eup %10705  ;;  %9834 = vmatprep.subr.bf16.mxu0 %v10812_v38 }
0x1c41   : > { %v10708_v36 = vpop.eup %10707  ;;  %v7888_v28 = vmul.f32 %v10706_v41, %v7760_v57 }
0x1c42   : > { %v10710_v32 = vpop.eup %10709  ;;  %v7889_v58 = vmul.f32 %v10708_v36, %v7762_v54 }
0x1c43   : > { %v10712_v10 = vpop.eup %10711  ;;  %v7890_v14 = vmul.f32 %v10710_v32, %v7764_v16  ;;  %9835 = vmatpush3.bf16.msra.mxu0 %v10329_v51 }
0x1c44   : > { %v7891_v20 = vmul.f32 %v10712_v10, %v7766_v50  ;;  %9836 = vmatprep.subr.bf16.mxu0 %v10812_v38 }
0x1c45   : > { %v7933_v31 = vpack.c.bf16 %v7890_v14, %v7888_v28 }
0x1c46   : > { %v7934_v43 = vpack.c.bf16 %v7891_v20, %v7889_v58 }
0x1c47   : > { %9837 = vmatpush3.bf16.msra.mxu0 %v10330_v55 }
0x1c48   : > { %8074 = vmatprep.mubr.bf16.mxu1 %v7934_v43  ;;  %v8103_v43 = vld [vmem:[%s13686_s17] sm:$0x1] }
0x1c49   : > { %8075 = vmatmul.mubr.bf16.gmra.mrb[212].mxu1 %v7933_v31 }
0x1caf   : > { %v7769_v62 = vpop.f32.mrb[200].mxu0 }
0x1cb0   : > { %v7770_v61 = vadd.f32 %v7769_v62, %v13540_v33  ;;  %v7771_v59 = vpop.f32.mrb[201].mxu0 }
0x1cb1   : > { %v7772_v26 = vadd.f32 %v7771_v59, %v13545_v47  ;;  %v7773_v23 = vpop.f32.mrb[202].mxu0 }
0x1cb2   : > { %v8769_v24 = vmul.f32 -1.702, %v7770_v61  ;;  %v7774_v48 = vadd.f32 %v7773_v23, %v13540_v33  ;;  %v7775_v35 = vpop.f32.mrb[203].mxu0 }
0x1cb3   : > { %v8770_v49 = vmul.f32 -1.702, %v7772_v26  ;;  %v7776_v2 = vadd.f32 %v7775_v35, %v13545_v47 }
0x1cb4   : > { %v7830_v18 = vmul.f32 1.442695, %v8769_v24  ;;  %v8771_v53 = vmul.f32 -1.702, %v7774_v48 }
0x1cb5   : > { %v7832_v19 = vmul.f32 1.442695, %v8770_v49  ;;  %v8772_v56 = vmul.f32 -1.702, %v7776_v2 }
0x1cb6   : > { %10713 = vpow2.f32 %v7830_v18  ;;  %v7834_v60 = vmul.f32 1.442695, %v8771_v53 }
0x1cb7   : > { %10715 = vpow2.f32 %v7832_v19  ;;  %v7836_v0 = vmul.f32 1.442695, %v8772_v56  ;;  %v7779_v3 = vpop.f32.mrb[204].mxu0 }
0x1cb8   : > { %10717 = vpow2.f32 %v7834_v60  ;;  %v7780_v6 = vadd.f32 %v7779_v3, %v13540_v33  ;;  %v7781_v11 = vpop.f32.mrb[205].mxu0 }
0x1cb9   : > { %10719 = vpow2.f32 %v7836_v0  ;;  %v7782_v57 = vadd.f32 %v7781_v11, %v13545_v47  ;;  %v7783_v13 = vpop.f32.mrb[206].mxu0 }
0x1cba   : > { %v8773_v54 = vmul.f32 -1.702, %v7780_v6  ;;  %v7784_v5 = vpop.f32.mrb[207].mxu0 }
0x1cbb   : > { %v8774_v29 = vmul.f32 -1.702, %v7782_v57 }
0x1cbc   : > { %v7838_v16 = vmul.f32 1.442695, %v8773_v54 }
0x1cbd   : > { %v7840_v12 = vmul.f32 1.442695, %v8774_v29 }
0x1cbe   : > { %10721 = vpow2.f32 %v7838_v16 }
0x1cbf   : > { %10723 = vpow2.f32 %v7840_v12 }
0x1cc0   : > { %v10714_v40 = vpop.eup %10713 }
0x1cc1   : > { %v10716_v50 = vpop.eup %10715  ;;  %v7850_v44 = vadd.f32 1.0, %v10714_v40 }
0x1cc2   : > { %v10718_v25 = vpop.eup %10717  ;;  %v7851_v21 = vadd.f32 1.0, %v10716_v50 }
0x1cc3   : > { %v10720_v7 = vpop.eup %10719  ;;  %10725 = vrcp.f32 %v7850_v44  ;;  %v7852_v33 = vadd.f32 1.0, %v10718_v25 }
0x1cc4   : > { %10727 = vrcp.f32 %v7851_v21  ;;  %v7853_v52 = vadd.f32 1.0, %v10720_v7 }
0x1cc5   : > { %10729 = vrcp.f32 %v7852_v33 }
0x1cc6   : > { %10731 = vrcp.f32 %v7853_v52 }
0x1cc8   : > { %v10722_v47 = vpop.eup %10721 }
0x1cc9   : > { %v10724_v9 = vpop.eup %10723  ;;  %v7854_v30 = vadd.f32 1.0, %v10722_v47 }
0x1cca   : > { %v7855_v8 = vadd.f32 1.0, %v10724_v9 }
0x1ccb   : > { %10733 = vrcp.f32 %v7854_v30 }
0x1ccc   : > { %10735 = vrcp.f32 %v7855_v8  ;;  %v8114_v37 = vpop.xlane.xlu1 %8113 }
0x1ccd   : > { %v10726_v46 = vpop.eup %10725  ;;  %v8115_v15 = vmul.f32 0.015625, %v8114_v37 }
0x1cce   : > { %v10728_v63 = vpop.eup %10727  ;;  %v7892_v39 = vmul.f32 %v10726_v46, %v7770_v61 }
0x1ccf   : > { %v10730_v42 = vpop.eup %10729  ;;  %v8116_v34 = vadd.f32 1e-05, %v8115_v15  ;;  %v7893_v27 = vmul.f32 %v10728_v63, %v7772_v26 }
0x1cd0   : > { %v10732_v4 = vpop.eup %10731  ;;  %v7894_v1 = vmul.f32 %v10730_v42, %v7774_v48 }
0x1cd1   : > { %v7895_v41 = vmul.f32 %v10732_v4, %v7776_v2  ;;  %10737 = vrsqrt.f32 %v8116_v34 }
0x1cd2   : > { %v7935_v36 = vpack.c.bf16 %v7894_v1, %v7892_v39 }
0x1cd3   : > { %v7936_v32 = vpack.c.bf16 %v7895_v41, %v7893_v27 }
0x1cd5   : > { %v10734_v10 = vpop.eup %10733  ;;  %8080 = vmatprep.mubr.bf16.mxu1 %v7936_v32 }
0x1cd6   : > { %v10736_v28 = vpop.eup %10735  ;;  %8081 = vmatmul.mubr.bf16.gmra.mrb[216].mxu1 %v7935_v36  ;;  %v7896_v58 = vmul.f32 %v10734_v10, %v7780_v6 }
0x1cd7   : > { %v7897_v14 = vmul.f32 %v10736_v28, %v7782_v57 }
0x1cd8   : > { %v7937_v17 = vpack.c.bf16 %v7896_v58, %v7896_v58 }
0x1cd9   : > { %v7938_v20 = vpack.c.bf16 %v7897_v14, %v7897_v14 }
0x1cdb   : > { %v10738_v31 = vpop.eup %10737  ;;  %8086 = vmatprep.mubr.bf16.mxu1 %v7938_v20 }
0x1cdc   : > { %v8118_v38 = vmul.f32 %v10738_v31, %v13590_v22 }
0x1cde   : > { %v8119_v51 = vmul.f32 %v8118_v38, %v8103_v43  ;;  %8087 = vmatmul.mubr.bf16.gmra.mrb[220].mxu1 %v7937_v17 }
0x1ce0   : > { %v8120_v55 = vadd.f32 %v8119_v51, %v8104_v45 }
0x1ce2   : > { %v8129_v62 = vpack.c.bf16 %v8120_v55, %v8120_v55 }
0x1ce4   : > { %9839 = vmatmul.mubr.msk.bf16.vlgmr.msra.gmra.mrb[208].mxu0 %vm3469_vm0, %v8129_v62 }
0x1d1c   : > { %v9519_v61 = vpop.f32.mrb[212].mxu1 }
0x1d1d   : > { %v9520_v59 = vpop.f32.mrb[213].mxu1 }
0x1d1e   : > { %v9522_v26 = vpop.f32.mrb[214].mxu1 }
0x1d1f   : > { %v9523_v23 = vpop.f32.mrb[215].mxu1 }
0x1da9   : > { %v9525_v24 = vpop.f32.mrb[216].mxu1 }
0x1daa   : > { %v9526_v48 = vpop.f32.mrb[217].mxu1 }
0x1dab   : > { %v9528_v35 = vpop.f32.mrb[218].mxu1 }
0x1dac   : > { %v9529_v49 = vpop.f32.mrb[219].mxu1 }
0x1db1   : > { %v9531_v22 = vpop.f32.mrb[220].mxu1 }
0x1db2   : > { %v9532_v2 = vpop.f32.mrb[221].mxu1 }
0x1db3   : > { %v9534_v18 = vpop.f32.mrb[222].mxu1 }
0x1db4   : > { %v9535_v53 = vpop.f32.mrb[223].mxu1 }
0x1db7   : > { %v8191_v19 = vpop.f32.mrb[208].mxu0 }
0x1db8   : > { %8197 = vst.msk [vmem:[%s621_s25] sm:$0x1] %vm8105_vm7, %v8191_v19  ;;  %v9840_v56 = vpop.f32.mrb[209].mxu0 }
0x1db9   : > { %v8194_v60 = vpop.f32.mrb[210].mxu0 }
0x1dba   : > { %10752 = shalt.err (!%p10749_p3)
}
0x1dbb   : > { %s10753_s26 = scalar_lea.hbm %s13626_s28, 16  ;;  %s10757_s24 = scalar_lea.hbm %s13782_s29, 32 }
0x1dbc   : > { %p10754_p4 = scmp.ne.s32.totalorder %s13626_s28, %s10753_s26  ;;  %p10758_p9 = scmp.lt.u32.totalorder %s13626_s28, %s13782_s29 }
0x1dbd   : > { %p10759_p10 = scmp.lt.u32.totalorder %s10757_s24, %s10753_s26  ;;  %p10761_p12 = scmp.lt.u32.totalorder %s10753_s26, %s13626_s28 }
0x1dbe   : > { %p10755_p7 = pnand %p10754_p4, %p10958_p5 }
0x1dbf   : > { %p10760_p11 = por %p10759_p10, %p10758_p9 }
0x1dc0   : > { %p10756_p8 = pneg %p10755_p7 }
0x1dc1   : > { %p10762_p13 = por %p10761_p12, %p10760_p11 }
0x1dc3   : > { %p10763_p0 = pnand %p10762_p13, %p10756_p8 }
0x1dc5   : > { %10766 = shalt.err (!%p10763_p0)
}
0x1dc6   : > { %9883 = dma.vmem_to_hbm [thread:$0]  (%p10958_p5), %s13628_s0, 16, %s13626_s28, %s8199_s27   ;;  %v9841_v0 = vpop.f32.mrb[211].mxu0 }
0x1dc7 PF: > { %s13783_s2 = sld [smem:[#allocation7_spill]]  ;;  %s13784_s1 = sld [smem:[#allocation5_spill]] }
0x1dcd   : > { %p9889_p1 = scmp.ge.s32.totalorder %s13783_s2, 2  ;;  %s8223_s23 = sand.u32 1, %s13784_s1  }
0x1dce   : > { %s8224_s24 = scalar_lea.sflag [#allocation3], %s8223_s23 }
0x1dcf   : > { %p9886_p2 = pnand %p9889_p1, %p10962_p6 }
0x1dd1   : > { %10784 = dma.done.wait (!%p9886_p2), %s8224_s24, 16  }
0x1dd2   : > { %10786 = vsyncadd (!%p9886_p2), %s8224_s24, 4294967280  ;;  %s13786_s24 = sld [smem:[#allocation8_spill]]  ;;  %s13787_s26 = sld [smem:[#allocation6_spill]] }
0x1dd3   : > { %s13788_s23 = sld [smem:[#allocation9_spill]]  ;;  %s13789_s1 = smov %s10793_s22 }
0x1dd8   : > { %p30_p3 = scmp.ge.s32.totalorder %s13786_s24, 4   ;;  %s13790_s22 = smov %s13787_s26 }
0x1dda   :  { %32 = sbr.rel (!%p30_p3) target bundleno = 10 (0xa), region = 147 }
0x1de1   :  { %8228 = vsyncpa [#allocation3], 1 }
0x1de2   :  { %8230 = vsyncpa [#allocation3 + $0x1], 1 }

</bundles_post_ra>
